<compile_context>
chip_gen: v6e
topology: v6e:2x2x1
jax: 0.10.0
libtpu: 0.0.40
codegen_flags: <defaults>
</compile_context>

<pallas_src>
import functools

import jax
import jax.numpy as jnp
from jax import lax
from jax.experimental import pallas as pl
from jax.experimental.pallas import tpu as pltpu

EPS = 1e-5            # torch.nn.InstanceNorm3d default eps
NEG_SLOPE = 0.01      # torch.nn.LeakyReLU default negative_slope
_ROW_ALIGN = 32       # row-tile alignment (covers f32 / bf16 sublane tiling)
_VMEM_LIMIT = 48 * 1024 * 1024


def _round_up(x, m):
    return (x + m - 1) // m * m


def _cpad(c):
    # channel padding (lane dim of the rows layout / matmul N,K dims)
    return _round_up(c, 16)


# -----------------------------------------------------------------------------------------
# Geometry of the "padded-flat rows" layout shared by all kernels of the block.
#   row j (per sample) = padded spatial position (zp, yp, xp), j = zp*Hp*Wp + yp*Wp + xp.
#   Real data lives at HBM rows [TR, TR + Lp); one TR block of zeros/garbage on each side
#   serves as the conv halo.  Conv tap (dz,dy,dx) is the row shift (dz-1)*HpWp+(dy-1)*Wp+(dx-1).
# -----------------------------------------------------------------------------------------
def _make_geom(d, h, w, width, target_block_bytes=2 * 1024 * 1024):
    dp, hp, wp = d + 2, h + 2, w + 2
    hpwp = hp * wp
    lp = dp * hpwp
    max_off = hpwp + wp + 1                              # |largest tap row-offset|
    tr_cap = max(256, target_block_bytes // (width * 4))  # f32 accumulator is the widest
    tr = min(_round_up(lp, _ROW_ALIGN), _round_up(tr_cap, _ROW_ALIGN))
    tr = max(tr, _round_up(max_off, _ROW_ALIGN))         # halo must fit in one block
    g = -(-lp // tr)                                     # number of row tiles
    r = (g + 2) * tr                                     # + leading/trailing halo blocks
    offsets = [(dz - 1) * hpwp + (dy - 1) * wp + (dx - 1)
               for dz in range(3) for dy in range(3) for dx in range(3)]
    valid = jnp.zeros((dp, hp, wp), jnp.float32).at[1:-1, 1:-1, 1:-1].set(1.0)
    mask = jnp.zeros((r, 1), jnp.float32).at[tr:tr + lp, 0].set(valid.reshape(-1))
    return dict(d=d, h=h, w=w, dp=dp, hp=hp, wp=wp, lp=lp, tr=tr, g=g, r=r,
                offsets=offsets, mask=mask, count=d * h * w)


def _to_rows(x, geom, cin_p, dtype):
    """(N, Cin, D, H, W) -> (N, R, Cin_p) rows layout (zero padding ring / halo)."""
    n, cin, _, _, _ = x.shape
    xp = jnp.pad(x, ((0, 0), (0, 0), (1, 1), (1, 1), (1, 1)))
    xr = jnp.transpose(xp, (0, 2, 3, 4, 1)).reshape(n, geom["lp"], cin)
    xr = jnp.pad(xr, ((0, 0),
                      (geom["tr"], geom["r"] - geom["tr"] - geom["lp"]),
                      (0, cin_p - cin)))
    return xr.astype(dtype)


def _from_rows(rows, geom, cout, n, d, h, w):
    """(N, R, Cout_p) rows layout -> (N, Cout, D, H, W)."""
    v = rows[:, geom["tr"]:geom["tr"] + geom["lp"], :cout]
    v = v.reshape(n, geom["dp"], geom["hp"], geom["wp"], cout)[:, 1:-1, 1:-1, 1:-1, :]
    return jnp.transpose(v, (0, 4, 1, 2, 3))


# -----------------------------------------------------------------------------------------
# Kernel 1: Conv3d(3, padding=1) + LeakyReLU + per-(n, c) sum / sum-of-squares statistics.
# -----------------------------------------------------------------------------------------
def _conv_kernel(w_ref, b_ref, m_ref, x0_ref, x1_ref, x2_ref, y_ref, st_ref, win_ref,
                 *, tr, offsets):
    i = pl.program_id(1)

    # Assemble tile + one-block halo on each side once in VMEM; the 27 shifted conv taps
    # are then just static sublane slices of this buffer (no HBM im2col, no wrapper taps).
    win_ref[pl.ds(0, tr), :] = x0_ref[...]
    win_ref[pl.ds(tr, tr), :] = x1_ref[...]
    win_ref[pl.ds(2 * tr, tr), :] = x2_ref[...]

    prec = lax.Precision.HIGHEST if w_ref.dtype == jnp.float32 else None
    acc = jnp.zeros(y_ref.shape, jnp.float32)
    for t, off in enumerate(offsets):                     # 27 accumulating MXU matmuls
        xs = win_ref[pl.ds(tr + off, tr), :]              # static start (Python int)
        acc = acc + jnp.dot(xs, w_ref[t], preferred_element_type=jnp.float32,
                            precision=prec)
    acc = acc + b_ref[...]

    y = jnp.maximum(acc, NEG_SLOPE * acc)                 # LeakyReLU (cheap VALU form)
    y = jnp.where(m_ref[...] > 0.5, y, 0.0)               # zero ring / tail rows

    y_ref[...] = y.astype(y_ref.dtype)

    # Per-(n, c) statistics accumulated across the 'arbitrary' row-tile grid axis.
    @pl.when(i == 0)
    def _():
        st_ref[...] = jnp.zeros_like(st_ref)
    st_ref[0:1, :] = st_ref[0:1, :] + jnp.sum(y, axis=0, keepdims=True)
    st_ref[1:2, :] = st_ref[1:2, :] + jnp.sum(y * y, axis=0, keepdims=True)


def _conv3d_act_stats(xr, w, b, geom, compute_dtype):
    """xr: (N, R, Cin_p) rows.  Returns (y rows (N, R, Cout_p), stats (N, 8, Cout_p) f32)."""
    n, r, cin_p = xr.shape
    cout, cin = w.shape[0], w.shape[1]
    cout_p = _cpad(cout)
    tr, g = geom["tr"], geom["g"]

    # Weights as (tap, Cin_p, Cout_p), tap order matching geom["offsets"]; resident in VMEM.
    wt = jnp.transpose(w, (2, 3, 4, 1, 0)).reshape(27, cin, cout)
    wt = jnp.pad(wt, ((0, 0), (0, cin_p - cin), (0, cout_p - cout))).astype(compute_dtype)
    bb = jnp.pad(b.reshape(1, cout).astype(jnp.float32), ((0, 0), (0, cout_p - cout)))

    kernel = functools.partial(_conv_kernel, tr=tr, offsets=geom["offsets"])
    y, stats = pl.pallas_call(
        kernel,
        out_shape=(jax.ShapeDtypeStruct((n, r, cout_p), compute_dtype),
                   jax.ShapeDtypeStruct((n, 8, cout_p), jnp.float32)),
        grid=(n, g),
        in_specs=[
            pl.BlockSpec((27, cin_p, cout_p), lambda bi, i: (0, 0, 0)),    # resident W
            pl.BlockSpec((1, cout_p), lambda bi, i: (0, 0)),               # resident bias
            pl.BlockSpec((tr, 1), lambda bi, i: (i + 1, 0)),               # validity mask
            pl.BlockSpec((None, tr, cin_p), lambda bi, i: (bi, i, 0)),     # left halo
            pl.BlockSpec((None, tr, cin_p), lambda bi, i: (bi, i + 1, 0)),  # tile
            pl.BlockSpec((None, tr, cin_p), lambda bi, i: (bi, i + 2, 0)),  # right halo
        ],
        out_specs=(
            pl.BlockSpec((None, tr, cout_p), lambda bi, i: (bi, i + 1, 0)),
            pl.BlockSpec((None, 8, cout_p), lambda bi, i: (bi, 0, 0)),     # stats accum
        ),
        scratch_shapes=[pltpu.VMEM((3 * tr, cin_p), compute_dtype)],
        compiler_params=pltpu.CompilerParams(
            dimension_semantics=("parallel", "arbitrary"),
            vmem_limit_bytes=_VMEM_LIMIT,
        ),
    )(wt, bb, geom["mask"], xr, xr, xr)
    return y, stats


# -----------------------------------------------------------------------------------------
# Kernel 2: InstanceNorm3d(affine=True) normalize pass (+ optional fused residual add).
#           Spatially tiled; stats come precomputed from the conv kernel.
# -----------------------------------------------------------------------------------------
def _make_norm_kernel(inv_cnt, with_residual):
    def kernel(*refs):
        if with_residual:
            y_ref, m_ref, st_ref, g_ref, b_ref, res_ref, o_ref = refs
        else:
            y_ref, m_ref, st_ref, g_ref, b_ref, o_ref = refs
            res_ref = None
        y = y_ref[...].astype(jnp.float32)
        mean = st_ref[0:1, :] * inv_cnt
        var = jnp.maximum(st_ref[1:2, :] * inv_cnt - mean * mean, 0.0)  # biased (torch)
        inv = lax.rsqrt(var + EPS)                                      # EUP
        out = (y - mean) * (inv * g_ref[...]) + b_ref[...]
        if res_ref is not None:
            out = out + res_ref[...].astype(jnp.float32)
        out = jnp.where(m_ref[...] > 0.5, out, 0.0)   # keep ring rows zero for next conv
        o_ref[...] = out.astype(o_ref.dtype)
    return kernel


def _instance_norm_rows(y, stats, gamma, beta, geom, out_dtype, residual=None):
    n, r, cout_p = y.shape
    cout = gamma.shape[0]
    tr, g = geom["tr"], geom["g"]
    gg = jnp.pad(gamma.reshape(1, cout).astype(jnp.float32), ((0, 0), (0, cout_p - cout)))
    bb = jnp.pad(beta.reshape(1, cout).astype(jnp.float32), ((0, 0), (0, cout_p - cout)))

    row_spec = pl.BlockSpec((None, tr, cout_p), lambda bi, i: (bi, i + 1, 0))
    in_specs = [
        row_spec,                                                     # y
        pl.BlockSpec((tr, 1), lambda bi, i: (i + 1, 0)),              # mask
        pl.BlockSpec((None, 8, cout_p), lambda bi, i: (bi, 0, 0)),    # stats (per n)
        pl.BlockSpec((1, cout_p), lambda bi, i: (0, 0)),              # gamma (resident)
        pl.BlockSpec((1, cout_p), lambda bi, i: (0, 0)),              # beta  (resident)
    ]
    args = [y, geom["mask"], stats, gg, bb]
    if residual is not None:
        in_specs.append(row_spec)
        args.append(residual)

    kernel = _make_norm_kernel(1.0 / float(geom["count"]), residual is not None)
    return pl.pallas_call(
        kernel,
        out_shape=jax.ShapeDtypeStruct((n, r, cout_p), out_dtype),
        grid=(n, g),
        in_specs=in_specs,
        out_specs=row_spec,
        compiler_params=pltpu.CompilerParams(
            dimension_semantics=("parallel", "parallel"),
            vmem_limit_bytes=_VMEM_LIMIT,
        ),
    )(*args)


# -----------------------------------------------------------------------------------------
# UNet_down_block forward (inference)
# -----------------------------------------------------------------------------------------
def unet_down_block_forward(x, params, *, down_size=True, compute_dtype=jnp.bfloat16):
    out_dtype = x.dtype
    if down_size:
        # MaxPool3d(2, 2) folded into wrapper input prep (perf review: the old Pallas pool
        # kernel added an (8, M) HBM tap copy and ran 64 KiB blocks; one XLA reshape+max
        # is a single pass and feeds straight into the rows-layout construction).
        n_, c_, d_, h_, w_ = x.shape
        x = x.reshape(n_, c_, d_ // 2, 2, h_ // 2, 2, w_ // 2, 2).max(axis=(3, 5, 7))

    n, cin, d, h, w = x.shape
    cout = params["w1"].shape[0]
    cin_p = _cpad(cin)
    geom = _make_geom(d, h, w, max(cin_p, _cpad(cout)))

    xr = _to_rows(x, geom, cin_p, compute_dtype)
    y1, s1 = _conv3d_act_stats(xr, params["w1"], params["b1"], geom, compute_dtype)
    x1 = _instance_norm_rows(y1, s1, params["g1"], params["be1"], geom, compute_dtype)
    y2, s2 = _conv3d_act_stats(x1, params["w2"], params["b2"], geom, compute_dtype)
    x2 = _instance_norm_rows(y2, s2, params["g2"], params["be2"], geom, compute_dtype)
    y3, s3 = _conv3d_act_stats(x2, params["w3"], params["b3"], geom, compute_dtype)
    # Residual (x1) fused into the final normalize kernel; dropout is identity in eval.
    outr = _instance_norm_rows(y3, s3, params["g3"], params["be3"], geom, out_dtype,
                               residual=x1)
    return _from_rows(outr, geom, cout, n, d, h, w)


# -----------------------------------------------------------------------------------------
# Pure-JAX reference (mirrors the PyTorch module)
# -----------------------------------------------------------------------------------------
def _ref_leaky_relu(x):
    return jnp.where(x >= 0, x, NEG_SLOPE * x)


def _ref_instance_norm(x, g, b):
    mean = jnp.mean(x, axis=(2, 3, 4), keepdims=True)
    var = jnp.mean((x - mean) ** 2, axis=(2, 3, 4), keepdims=True)
    y = (x - mean) * lax.rsqrt(var + EPS)
    return y * g[None, :, None, None, None] + b[None, :, None, None, None]


def _ref_conv3d(x, w, b):
    out = lax.conv_general_dilated(
        x, w, window_strides=(1, 1, 1), padding=((1, 1), (1, 1), (1, 1)),
        dimension_numbers=("NCDHW", "OIDHW", "NCDHW"),
        precision=lax.Precision.HIGHEST)
    return out + b[None, :, None, None, None]


def _ref_maxpool(x):
    n, c, d, h, w = x.shape
    return x.reshape(n, c, d // 2, 2, h // 2, 2, w // 2, 2).max(axis=(3, 5, 7))


def unet_down_block_ref(x, params, *, down_size=True):
    if down_size:
        x = _ref_maxpool(x)
    x1 = _ref_instance_norm(_ref_leaky_relu(_ref_conv3d(x, params["w1"], params["b1"])),
                            params["g1"], params["be1"])
    x2 = _ref_instance_norm(_ref_leaky_relu(_ref_conv3d(x1, params["w2"], params["b2"])),
                            params["g2"], params["be2"])
    x3 = _ref_instance_norm(_ref_leaky_relu(_ref_conv3d(x2, params["w3"], params["b3"])),
                            params["g3"], params["be3"])
    return x3 + x1


if __name__ == "__main__":
    key = jax.random.PRNGKey(0)
    ks = jax.random.split(key, 13)

    n, cin, cout = 2, 4, 8
    d = h = w = 8
    x = jax.random.normal(ks[0], (n, cin, d, h, w), dtype=jnp.float32)

    def conv_init(kw, kb, ci, co):
        bound = 1.0 / (ci * 27) ** 0.5            # torch Conv3d default init range
        wgt = jax.random.uniform(kw, (co, ci, 3, 3, 3), jnp.float32, -bound, bound)
        bia = jax.random.uniform(kb, (co,), jnp.float32, -bound, bound)
        return wgt, bia

    w1, b1 = conv_init(ks[1], ks[2], cin, cout)
    w2, b2 = conv_init(ks[3], ks[4], cout, cout)
    w3, b3 = conv_init(ks[5], ks[6], cout, cout)
    params = {
        "w1": w1, "b1": b1,
        "g1": 1.0 + 0.1 * jax.random.normal(ks[7], (cout,), jnp.float32),
        "be1": 0.1 * jax.random.normal(ks[8], (cout,), jnp.float32),
        "w2": w2, "b2": b2,
        "g2": 1.0 + 0.1 * jax.random.normal(ks[9], (cout,), jnp.float32),
        "be2": 0.1 * jax.random.normal(ks[10], (cout,), jnp.float32),
        "w3": w3, "b3": b3,
        "g3": 1.0 + 0.1 * jax.random.normal(ks[11], (cout,), jnp.float32),
        "be3": 0.1 * jax.random.normal(ks[12], (cout,), jnp.float32),
    }

    ref = unet_down_block_ref(x, params, down_size=True)

    # --- default perf path: bf16 GEMM operands + bf16 inter-kernel activations ------------
    fwd = jax.jit(functools.partial(unet_down_block_forward, down_size=True))
    out = jax.block_until_ready(fwd(x, params))
    assert out.shape == (n, cout, d // 2, h // 2, w // 2)
    err = jnp.abs(out.astype(jnp.float32) - ref)
    bf16_max, bf16_mean = float(err.max()), float(err.mean())
    assert bf16_max < 2e-1 and bf16_mean < 3e-2, f"bf16 path mismatch: {bf16_max}/{bf16_mean}"

    # --- f32 path: per-kernel and end-to-end checks (tight) --------------------------------
    pooled = _ref_maxpool(x)
    dn, hn, wn = d // 2, h // 2, w // 2
    geom = _make_geom(dn, hn, wn, max(_cpad(cin), _cpad(cout)))
    xr = _to_rows(pooled, geom, _cpad(cin), jnp.float32)

    y1, s1 = _conv3d_act_stats(xr, w1, b1, geom, jnp.float32)
    y1_ncdhw = _from_rows(y1, geom, cout, n, dn, hn, wn)
    ref_y1 = _ref_leaky_relu(_ref_conv3d(pooled, w1, b1))
    conv_err = float(jnp.max(jnp.abs(y1_ncdhw - ref_y1)))
    assert conv_err < 2e-2, f"conv+act mismatch: {conv_err}"

    x1 = _instance_norm_rows(y1, s1, params["g1"], params["be1"], geom, jnp.float32)
    x1_ncdhw = _from_rows(x1, geom, cout, n, dn, hn, wn)
    norm_ref = _ref_instance_norm(y1_ncdhw, params["g1"], params["be1"])
    norm_err = float(jnp.max(jnp.abs(x1_ncdhw - norm_ref)))
    assert norm_err < 1e-3, f"instance-norm mismatch: {norm_err}"

    out32 = unet_down_block_forward(x, params, down_size=True, compute_dtype=jnp.float32)
    e2e_err = float(jnp.max(jnp.abs(out32 - ref)))
    assert e2e_err < 5e-2, f"f32 forward mismatch: {e2e_err}"

    print("KERNEL_OK")
</pallas_src>

<mosaic_0001>
module attributes {stable_mosaic.version = 11 : i64} {
  func.func @_conv_kernel(%arg0: i32, %arg1: i32, %arg2: memref<27x16x16xbf16, #tpu.memory_space<vmem>>, %arg3: memref<1x16xf32, #tpu.memory_space<vmem>>, %arg4: memref<224x1xf32, #tpu.memory_space<vmem>>, %arg5: memref<1x224x16xbf16, #tpu.memory_space<vmem>>, %arg6: memref<1x224x16xbf16, #tpu.memory_space<vmem>>, %arg7: memref<1x224x16xbf16, #tpu.memory_space<vmem>>, %arg8: memref<1x224x16xbf16, #tpu.memory_space<vmem>>, %arg9: memref<1x8x16xf32, #tpu.memory_space<vmem>>, %arg10: memref<672x16xbf16, #tpu.memory_space<vmem>>) attributes {dimension_semantics = [#tpu.dimension_semantics<parallel>, #tpu.dimension_semantics<arbitrary>], iteration_bounds = array<i64: 2, 1>, scalar_prefetch = 0 : i64, scratch_operands = 1 : i64, tpu.core_type = #tpu.core_type<tc>, window_params = [{pipeline_mode = #tpu.pipeline_mode<synchronous>, transform_indices = @transform_0, window_bounds = array<i64: 27, 16, 16>}, {pipeline_mode = #tpu.pipeline_mode<synchronous>, transform_indices = @transform_1, window_bounds = array<i64: 1, 16>}, {transform_indices = @transform_2, window_bounds = array<i64: 224, 1>}, {transform_indices = @transform_3, window_bounds = array<i64: 1, 224, 16>}, {transform_indices = @transform_4, window_bounds = array<i64: 1, 224, 16>}, {transform_indices = @transform_5, window_bounds = array<i64: 1, 224, 16>}, {transform_indices = @transform_6, window_bounds = array<i64: 1, 224, 16>}, {transform_indices = @transform_7, window_bounds = array<i64: 1, 8, 16>}]} {
    %c0 = arith.constant 0 : index
    %c0_0 = arith.constant 0 : index
    %c0_1 = arith.constant 0 : index
    %0 = vector.load %arg5[%c0, %c0_0, %c0_1] : memref<1x224x16xbf16, #tpu.memory_space<vmem>>, vector<1x224x16xbf16>
    %1 = vector.shape_cast %0 : vector<1x224x16xbf16> to vector<224x16xbf16>
    %c0_2 = arith.constant 0 : index
    %c0_3 = arith.constant 0 : index
    %2 = vector.load %arg10[%c0_2, %c0_3] : memref<672x16xbf16, #tpu.memory_space<vmem>>, vector<224x16xbf16>
    tpu.vector_store %arg10[%c0_2, %c0_3], %1 {strides = array<i32>} : memref<672x16xbf16, #tpu.memory_space<vmem>>, vector<224x16xbf16>,
    %c0_4 = arith.constant 0 : index
    %c0_5 = arith.constant 0 : index
    %c0_6 = arith.constant 0 : index
    %3 = vector.load %arg6[%c0_4, %c0_5, %c0_6] : memref<1x224x16xbf16, #tpu.memory_space<vmem>>, vector<1x224x16xbf16>
    %4 = vector.shape_cast %3 : vector<1x224x16xbf16> to vector<224x16xbf16>
    %c224 = arith.constant 224 : index
    %c0_7 = arith.constant 0 : index
    %5 = vector.load %arg10[%c224, %c0_7] : memref<672x16xbf16, #tpu.memory_space<vmem>>, vector<224x16xbf16>
    tpu.vector_store %arg10[%c224, %c0_7], %4 {strides = array<i32>} : memref<672x16xbf16, #tpu.memory_space<vmem>>, vector<224x16xbf16>,
    %c0_8 = arith.constant 0 : index
    %c0_9 = arith.constant 0 : index
    %c0_10 = arith.constant 0 : index
    %6 = vector.load %arg7[%c0_8, %c0_9, %c0_10] : memref<1x224x16xbf16, #tpu.memory_space<vmem>>, vector<1x224x16xbf16>
    %7 = vector.shape_cast %6 : vector<1x224x16xbf16> to vector<224x16xbf16>
    %c448 = arith.constant 448 : index
    %c0_11 = arith.constant 0 : index
    %8 = vector.load %arg10[%c448, %c0_11] : memref<672x16xbf16, #tpu.memory_space<vmem>>, vector<224x16xbf16>
    tpu.vector_store %arg10[%c448, %c0_11], %7 {strides = array<i32>} : memref<672x16xbf16, #tpu.memory_space<vmem>>, vector<224x16xbf16>,
    %cst = arith.constant 0.000000e+00 : f32
    %9 = vector.broadcast %cst : f32 to vector<224x16xf32>
    %c181 = arith.constant 181 : index
    %c0_12 = arith.constant 0 : index
    %10 = vector.load %arg10[%c181, %c0_12] : memref<672x16xbf16, #tpu.memory_space<vmem>>, vector<224x16xbf16>
    %c0_13 = arith.constant 0 : index
    %c0_14 = arith.constant 0 : index
    %c0_15 = arith.constant 0 : index
    %11 = vector.load %arg2[%c0_13, %c0_14, %c0_15] : memref<27x16x16xbf16, #tpu.memory_space<vmem>>, vector<1x16x16xbf16>
    %12 = vector.shape_cast %11 : vector<1x16x16xbf16> to vector<16x16xbf16>
    %cst_16 = arith.constant dense<0.000000e+00> : vector<224x16xf32>
    %13 = tpu.matmul %10, %12, %cst_16 {dimension_numbers = #tpu.dot_dimension_numbers<[1], [0], [0], [1], [0, 0, 1, 1], [], []>} : vector<224x16xbf16>, vector<16x16xbf16>, vector<224x16xf32> -> vector<224x16xf32>
    %14 = arith.addf %9, %13 : vector<224x16xf32>
    %c182 = arith.constant 182 : index
    %c0_17 = arith.constant 0 : index
    %15 = vector.load %arg10[%c182, %c0_17] : memref<672x16xbf16, #tpu.memory_space<vmem>>, vector<224x16xbf16>
    %c1 = arith.constant 1 : index
    %c0_18 = arith.constant 0 : index
    %c0_19 = arith.constant 0 : index
    %16 = vector.load %arg2[%c1, %c0_18, %c0_19] : memref<27x16x16xbf16, #tpu.memory_space<vmem>>, vector<1x16x16xbf16>
    %17 = vector.shape_cast %16 : vector<1x16x16xbf16> to vector<16x16xbf16>
    %cst_20 = arith.constant dense<0.000000e+00> : vector<224x16xf32>
    %18 = tpu.matmul %15, %17, %cst_20 {dimension_numbers = #tpu.dot_dimension_numbers<[1], [0], [0], [1], [0, 0, 1, 1], [], []>} : vector<224x16xbf16>, vector<16x16xbf16>, vector<224x16xf32> -> vector<224x16xf32>
    %19 = arith.addf %14, %18 : vector<224x16xf32>
    %c183 = arith.constant 183 : index
    %c0_21 = arith.constant 0 : index
    %20 = vector.load %arg10[%c183, %c0_21] : memref<672x16xbf16, #tpu.memory_space<vmem>>, vector<224x16xbf16>
    %c2 = arith.constant 2 : index
    %c0_22 = arith.constant 0 : index
    %c0_23 = arith.constant 0 : index
    %21 = vector.load %arg2[%c2, %c0_22, %c0_23] : memref<27x16x16xbf16, #tpu.memory_space<vmem>>, vector<1x16x16xbf16>
    %22 = vector.shape_cast %21 : vector<1x16x16xbf16> to vector<16x16xbf16>
    %cst_24 = arith.constant dense<0.000000e+00> : vector<224x16xf32>
    %23 = tpu.matmul %20, %22, %cst_24 {dimension_numbers = #tpu.dot_dimension_numbers<[1], [0], [0], [1], [0, 0, 1, 1], [], []>} : vector<224x16xbf16>, vector<16x16xbf16>, vector<224x16xf32> -> vector<224x16xf32>
    %24 = arith.addf %19, %23 : vector<224x16xf32>
    %c187 = arith.constant 187 : index
    %c0_25 = arith.constant 0 : index
    %25 = vector.load %arg10[%c187, %c0_25] : memref<672x16xbf16, #tpu.memory_space<vmem>>, vector<224x16xbf16>
    %c3 = arith.constant 3 : index
    %c0_26 = arith.constant 0 : index
    %c0_27 = arith.constant 0 : index
    %26 = vector.load %arg2[%c3, %c0_26, %c0_27] : memref<27x16x16xbf16, #tpu.memory_space<vmem>>, vector<1x16x16xbf16>
    %27 = vector.shape_cast %26 : vector<1x16x16xbf16> to vector<16x16xbf16>
    %cst_28 = arith.constant dense<0.000000e+00> : vector<224x16xf32>
    %28 = tpu.matmul %25, %27, %cst_28 {dimension_numbers = #tpu.dot_dimension_numbers<[1], [0], [0], [1], [0, 0, 1, 1], [], []>} : vector<224x16xbf16>, vector<16x16xbf16>, vector<224x16xf32> -> vector<224x16xf32>
    %29 = arith.addf %24, %28 : vector<224x16xf32>
    %c188 = arith.constant 188 : index
    %c0_29 = arith.constant 0 : index
    %30 = vector.load %arg10[%c188, %c0_29] : memref<672x16xbf16, #tpu.memory_space<vmem>>, vector<224x16xbf16>
    %c4 = arith.constant 4 : index
    %c0_30 = arith.constant 0 : index
    %c0_31 = arith.constant 0 : index
    %31 = vector.load %arg2[%c4, %c0_30, %c0_31] : memref<27x16x16xbf16, #tpu.memory_space<vmem>>, vector<1x16x16xbf16>
    %32 = vector.shape_cast %31 : vector<1x16x16xbf16> to vector<16x16xbf16>
    %cst_32 = arith.constant dense<0.000000e+00> : vector<224x16xf32>
    %33 = tpu.matmul %30, %32, %cst_32 {dimension_numbers = #tpu.dot_dimension_numbers<[1], [0], [0], [1], [0, 0, 1, 1], [], []>} : vector<224x16xbf16>, vector<16x16xbf16>, vector<224x16xf32> -> vector<224x16xf32>
    %34 = arith.addf %29, %33 : vector<224x16xf32>
    %c189 = arith.constant 189 : index
    %c0_33 = arith.constant 0 : index
    %35 = vector.load %arg10[%c189, %c0_33] : memref<672x16xbf16, #tpu.memory_space<vmem>>, vector<224x16xbf16>
    %c5 = arith.constant 5 : index
    %c0_34 = arith.constant 0 : index
    %c0_35 = arith.constant 0 : index
    %36 = vector.load %arg2[%c5, %c0_34, %c0_35] : memref<27x16x16xbf16, #tpu.memory_space<vmem>>, vector<1x16x16xbf16>
    %37 = vector.shape_cast %36 : vector<1x16x16xbf16> to vector<16x16xbf16>
    %cst_36 = arith.constant dense<0.000000e+00> : vector<224x16xf32>
    %38 = tpu.matmul %35, %37, %cst_36 {dimension_numbers = #tpu.dot_dimension_numbers<[1], [0], [0], [1], [0, 0, 1, 1], [], []>} : vector<224x16xbf16>, vector<16x16xbf16>, vector<224x16xf32> -> vector<224x16xf32>
    %39 = arith.addf %34, %38 : vector<224x16xf32>
    %c193 = arith.constant 193 : index
    %c0_37 = arith.constant 0 : index
    %40 = vector.load %arg10[%c193, %c0_37] : memref<672x16xbf16, #tpu.memory_space<vmem>>, vector<224x16xbf16>
    %c6 = arith.constant 6 : index
    %c0_38 = arith.constant 0 : index
    %c0_39 = arith.constant 0 : index
    %41 = vector.load %arg2[%c6, %c0_38, %c0_39] : memref<27x16x16xbf16, #tpu.memory_space<vmem>>, vector<1x16x16xbf16>
    %42 = vector.shape_cast %41 : vector<1x16x16xbf16> to vector<16x16xbf16>
    %cst_40 = arith.constant dense<0.000000e+00> : vector<224x16xf32>
    %43 = tpu.matmul %40, %42, %cst_40 {dimension_numbers = #tpu.dot_dimension_numbers<[1], [0], [0], [1], [0, 0, 1, 1], [], []>} : vector<224x16xbf16>, vector<16x16xbf16>, vector<224x16xf32> -> vector<224x16xf32>
    %44 = arith.addf %39, %43 : vector<224x16xf32>
    %c194 = arith.constant 194 : index
    %c0_41 = arith.constant 0 : index
    %45 = vector.load %arg10[%c194, %c0_41] : memref<672x16xbf16, #tpu.memory_space<vmem>>, vector<224x16xbf16>
    %c7 = arith.constant 7 : index
    %c0_42 = arith.constant 0 : index
    %c0_43 = arith.constant 0 : index
    %46 = vector.load %arg2[%c7, %c0_42, %c0_43] : memref<27x16x16xbf16, #tpu.memory_space<vmem>>, vector<1x16x16xbf16>
    %47 = vector.shape_cast %46 : vector<1x16x16xbf16> to vector<16x16xbf16>
    %cst_44 = arith.constant dense<0.000000e+00> : vector<224x16xf32>
    %48 = tpu.matmul %45, %47, %cst_44 {dimension_numbers = #tpu.dot_dimension_numbers<[1], [0], [0], [1], [0, 0, 1, 1], [], []>} : vector<224x16xbf16>, vector<16x16xbf16>, vector<224x16xf32> -> vector<224x16xf32>
    %49 = arith.addf %44, %48 : vector<224x16xf32>
    %c195 = arith.constant 195 : index
    %c0_45 = arith.constant 0 : index
    %50 = vector.load %arg10[%c195, %c0_45] : memref<672x16xbf16, #tpu.memory_space<vmem>>, vector<224x16xbf16>
    %c8 = arith.constant 8 : index
    %c0_46 = arith.constant 0 : index
    %c0_47 = arith.constant 0 : index
    %51 = vector.load %arg2[%c8, %c0_46, %c0_47] : memref<27x16x16xbf16, #tpu.memory_space<vmem>>, vector<1x16x16xbf16>
    %52 = vector.shape_cast %51 : vector<1x16x16xbf16> to vector<16x16xbf16>
    %cst_48 = arith.constant dense<0.000000e+00> : vector<224x16xf32>
    %53 = tpu.matmul %50, %52, %cst_48 {dimension_numbers = #tpu.dot_dimension_numbers<[1], [0], [0], [1], [0, 0, 1, 1], [], []>} : vector<224x16xbf16>, vector<16x16xbf16>, vector<224x16xf32> -> vector<224x16xf32>
    %54 = arith.addf %49, %53 : vector<224x16xf32>
    %c217 = arith.constant 217 : index
    %c0_49 = arith.constant 0 : index
    %55 = vector.load %arg10[%c217, %c0_49] : memref<672x16xbf16, #tpu.memory_space<vmem>>, vector<224x16xbf16>
    %c9 = arith.constant 9 : index
    %c0_50 = arith.constant 0 : index
    %c0_51 = arith.constant 0 : index
    %56 = vector.load %arg2[%c9, %c0_50, %c0_51] : memref<27x16x16xbf16, #tpu.memory_space<vmem>>, vector<1x16x16xbf16>
    %57 = vector.shape_cast %56 : vector<1x16x16xbf16> to vector<16x16xbf16>
    %cst_52 = arith.constant dense<0.000000e+00> : vector<224x16xf32>
    %58 = tpu.matmul %55, %57, %cst_52 {dimension_numbers = #tpu.dot_dimension_numbers<[1], [0], [0], [1], [0, 0, 1, 1], [], []>} : vector<224x16xbf16>, vector<16x16xbf16>, vector<224x16xf32> -> vector<224x16xf32>
    %59 = arith.addf %54, %58 : vector<224x16xf32>
    %c218 = arith.constant 218 : index
    %c0_53 = arith.constant 0 : index
    %60 = vector.load %arg10[%c218, %c0_53] : memref<672x16xbf16, #tpu.memory_space<vmem>>, vector<224x16xbf16>
    %c10 = arith.constant 10 : index
    %c0_54 = arith.constant 0 : index
    %c0_55 = arith.constant 0 : index
    %61 = vector.load %arg2[%c10, %c0_54, %c0_55] : memref<27x16x16xbf16, #tpu.memory_space<vmem>>, vector<1x16x16xbf16>
    %62 = vector.shape_cast %61 : vector<1x16x16xbf16> to vector<16x16xbf16>
    %cst_56 = arith.constant dense<0.000000e+00> : vector<224x16xf32>
    %63 = tpu.matmul %60, %62, %cst_56 {dimension_numbers = #tpu.dot_dimension_numbers<[1], [0], [0], [1], [0, 0, 1, 1], [], []>} : vector<224x16xbf16>, vector<16x16xbf16>, vector<224x16xf32> -> vector<224x16xf32>
    %64 = arith.addf %59, %63 : vector<224x16xf32>
    %c219 = arith.constant 219 : index
    %c0_57 = arith.constant 0 : index
    %65 = vector.load %arg10[%c219, %c0_57] : memref<672x16xbf16, #tpu.memory_space<vmem>>, vector<224x16xbf16>
    %c11 = arith.constant 11 : index
    %c0_58 = arith.constant 0 : index
    %c0_59 = arith.constant 0 : index
    %66 = vector.load %arg2[%c11, %c0_58, %c0_59] : memref<27x16x16xbf16, #tpu.memory_space<vmem>>, vector<1x16x16xbf16>
    %67 = vector.shape_cast %66 : vector<1x16x16xbf16> to vector<16x16xbf16>
    %cst_60 = arith.constant dense<0.000000e+00> : vector<224x16xf32>
    %68 = tpu.matmul %65, %67, %cst_60 {dimension_numbers = #tpu.dot_dimension_numbers<[1], [0], [0], [1], [0, 0, 1, 1], [], []>} : vector<224x16xbf16>, vector<16x16xbf16>, vector<224x16xf32> -> vector<224x16xf32>
    %69 = arith.addf %64, %68 : vector<224x16xf32>
    %c223 = arith.constant 223 : index
    %c0_61 = arith.constant 0 : index
    %70 = vector.load %arg10[%c223, %c0_61] : memref<672x16xbf16, #tpu.memory_space<vmem>>, vector<224x16xbf16>
    %c12 = arith.constant 12 : index
    %c0_62 = arith.constant 0 : index
    %c0_63 = arith.constant 0 : index
    %71 = vector.load %arg2[%c12, %c0_62, %c0_63] : memref<27x16x16xbf16, #tpu.memory_space<vmem>>, vector<1x16x16xbf16>
    %72 = vector.shape_cast %71 : vector<1x16x16xbf16> to vector<16x16xbf16>
    %cst_64 = arith.constant dense<0.000000e+00> : vector<224x16xf32>
    %73 = tpu.matmul %70, %72, %cst_64 {dimension_numbers = #tpu.dot_dimension_numbers<[1], [0], [0], [1], [0, 0, 1, 1], [], []>} : vector<224x16xbf16>, vector<16x16xbf16>, vector<224x16xf32> -> vector<224x16xf32>
    %74 = arith.addf %69, %73 : vector<224x16xf32>
    %c224_65 = arith.constant 224 : index
    %c0_66 = arith.constant 0 : index
    %75 = vector.load %arg10[%c224_65, %c0_66] : memref<672x16xbf16, #tpu.memory_space<vmem>>, vector<224x16xbf16>
    %c13 = arith.constant 13 : index
    %c0_67 = arith.constant 0 : index
    %c0_68 = arith.constant 0 : index
    %76 = vector.load %arg2[%c13, %c0_67, %c0_68] : memref<27x16x16xbf16, #tpu.memory_space<vmem>>, vector<1x16x16xbf16>
    %77 = vector.shape_cast %76 : vector<1x16x16xbf16> to vector<16x16xbf16>
    %cst_69 = arith.constant dense<0.000000e+00> : vector<224x16xf32>
    %78 = tpu.matmul %75, %77, %cst_69 {dimension_numbers = #tpu.dot_dimension_numbers<[1], [0], [0], [1], [0, 0, 1, 1], [], []>} : vector<224x16xbf16>, vector<16x16xbf16>, vector<224x16xf32> -> vector<224x16xf32>
    %79 = arith.addf %74, %78 : vector<224x16xf32>
    %c225 = arith.constant 225 : index
    %c0_70 = arith.constant 0 : index
    %80 = vector.load %arg10[%c225, %c0_70] : memref<672x16xbf16, #tpu.memory_space<vmem>>, vector<224x16xbf16>
    %c14 = arith.constant 14 : index
    %c0_71 = arith.constant 0 : index
    %c0_72 = arith.constant 0 : index
    %81 = vector.load %arg2[%c14, %c0_71, %c0_72] : memref<27x16x16xbf16, #tpu.memory_space<vmem>>, vector<1x16x16xbf16>
    %82 = vector.shape_cast %81 : vector<1x16x16xbf16> to vector<16x16xbf16>
    %cst_73 = arith.constant dense<0.000000e+00> : vector<224x16xf32>
    %83 = tpu.matmul %80, %82, %cst_73 {dimension_numbers = #tpu.dot_dimension_numbers<[1], [0], [0], [1], [0, 0, 1, 1], [], []>} : vector<224x16xbf16>, vector<16x16xbf16>, vector<224x16xf32> -> vector<224x16xf32>
    %84 = arith.addf %79, %83 : vector<224x16xf32>
    %c229 = arith.constant 229 : index
    %c0_74 = arith.constant 0 : index
    %85 = vector.load %arg10[%c229, %c0_74] : memref<672x16xbf16, #tpu.memory_space<vmem>>, vector<224x16xbf16>
    %c15 = arith.constant 15 : index
    %c0_75 = arith.constant 0 : index
    %c0_76 = arith.constant 0 : index
    %86 = vector.load %arg2[%c15, %c0_75, %c0_76] : memref<27x16x16xbf16, #tpu.memory_space<vmem>>, vector<1x16x16xbf16>
    %87 = vector.shape_cast %86 : vector<1x16x16xbf16> to vector<16x16xbf16>
    %cst_77 = arith.constant dense<0.000000e+00> : vector<224x16xf32>
    %88 = tpu.matmul %85, %87, %cst_77 {dimension_numbers = #tpu.dot_dimension_numbers<[1], [0], [0], [1], [0, 0, 1, 1], [], []>} : vector<224x16xbf16>, vector<16x16xbf16>, vector<224x16xf32> -> vector<224x16xf32>
    %89 = arith.addf %84, %88 : vector<224x16xf32>
    %c230 = arith.constant 230 : index
    %c0_78 = arith.constant 0 : index
    %90 = vector.load %arg10[%c230, %c0_78] : memref<672x16xbf16, #tpu.memory_space<vmem>>, vector<224x16xbf16>
    %c16 = arith.constant 16 : index
    %c0_79 = arith.constant 0 : index
    %c0_80 = arith.constant 0 : index
    %91 = vector.load %arg2[%c16, %c0_79, %c0_80] : memref<27x16x16xbf16, #tpu.memory_space<vmem>>, vector<1x16x16xbf16>
    %92 = vector.shape_cast %91 : vector<1x16x16xbf16> to vector<16x16xbf16>
    %cst_81 = arith.constant dense<0.000000e+00> : vector<224x16xf32>
    %93 = tpu.matmul %90, %92, %cst_81 {dimension_numbers = #tpu.dot_dimension_numbers<[1], [0], [0], [1], [0, 0, 1, 1], [], []>} : vector<224x16xbf16>, vector<16x16xbf16>, vector<224x16xf32> -> vector<224x16xf32>
    %94 = arith.addf %89, %93 : vector<224x16xf32>
    %c231 = arith.constant 231 : index
    %c0_82 = arith.constant 0 : index
    %95 = vector.load %arg10[%c231, %c0_82] : memref<672x16xbf16, #tpu.memory_space<vmem>>, vector<224x16xbf16>
    %c17 = arith.constant 17 : index
    %c0_83 = arith.constant 0 : index
    %c0_84 = arith.constant 0 : index
    %96 = vector.load %arg2[%c17, %c0_83, %c0_84] : memref<27x16x16xbf16, #tpu.memory_space<vmem>>, vector<1x16x16xbf16>
    %97 = vector.shape_cast %96 : vector<1x16x16xbf16> to vector<16x16xbf16>
    %cst_85 = arith.constant dense<0.000000e+00> : vector<224x16xf32>
    %98 = tpu.matmul %95, %97, %cst_85 {dimension_numbers = #tpu.dot_dimension_numbers<[1], [0], [0], [1], [0, 0, 1, 1], [], []>} : vector<224x16xbf16>, vector<16x16xbf16>, vector<224x16xf32> -> vector<224x16xf32>
    %99 = arith.addf %94, %98 : vector<224x16xf32>
    %c253 = arith.constant 253 : index
    %c0_86 = arith.constant 0 : index
    %100 = vector.load %arg10[%c253, %c0_86] : memref<672x16xbf16, #tpu.memory_space<vmem>>, vector<224x16xbf16>
    %c18 = arith.constant 18 : index
    %c0_87 = arith.constant 0 : index
    %c0_88 = arith.constant 0 : index
    %101 = vector.load %arg2[%c18, %c0_87, %c0_88] : memref<27x16x16xbf16, #tpu.memory_space<vmem>>, vector<1x16x16xbf16>
    %102 = vector.shape_cast %101 : vector<1x16x16xbf16> to vector<16x16xbf16>
    %cst_89 = arith.constant dense<0.000000e+00> : vector<224x16xf32>
    %103 = tpu.matmul %100, %102, %cst_89 {dimension_numbers = #tpu.dot_dimension_numbers<[1], [0], [0], [1], [0, 0, 1, 1], [], []>} : vector<224x16xbf16>, vector<16x16xbf16>, vector<224x16xf32> -> vector<224x16xf32>
    %104 = arith.addf %99, %103 : vector<224x16xf32>
    %c254 = arith.constant 254 : index
    %c0_90 = arith.constant 0 : index
    %105 = vector.load %arg10[%c254, %c0_90] : memref<672x16xbf16, #tpu.memory_space<vmem>>, vector<224x16xbf16>
    %c19 = arith.constant 19 : index
    %c0_91 = arith.constant 0 : index
    %c0_92 = arith.constant 0 : index
    %106 = vector.load %arg2[%c19, %c0_91, %c0_92] : memref<27x16x16xbf16, #tpu.memory_space<vmem>>, vector<1x16x16xbf16>
    %107 = vector.shape_cast %106 : vector<1x16x16xbf16> to vector<16x16xbf16>
    %cst_93 = arith.constant dense<0.000000e+00> : vector<224x16xf32>
    %108 = tpu.matmul %105, %107, %cst_93 {dimension_numbers = #tpu.dot_dimension_numbers<[1], [0], [0], [1], [0, 0, 1, 1], [], []>} : vector<224x16xbf16>, vector<16x16xbf16>, vector<224x16xf32> -> vector<224x16xf32>
    %109 = arith.addf %104, %108 : vector<224x16xf32>
    %c255 = arith.constant 255 : index
    %c0_94 = arith.constant 0 : index
    %110 = vector.load %arg10[%c255, %c0_94] : memref<672x16xbf16, #tpu.memory_space<vmem>>, vector<224x16xbf16>
    %c20 = arith.constant 20 : index
    %c0_95 = arith.constant 0 : index
    %c0_96 = arith.constant 0 : index
    %111 = vector.load %arg2[%c20, %c0_95, %c0_96] : memref<27x16x16xbf16, #tpu.memory_space<vmem>>, vector<1x16x16xbf16>
    %112 = vector.shape_cast %111 : vector<1x16x16xbf16> to vector<16x16xbf16>
    %cst_97 = arith.constant dense<0.000000e+00> : vector<224x16xf32>
    %113 = tpu.matmul %110, %112, %cst_97 {dimension_numbers = #tpu.dot_dimension_numbers<[1], [0], [0], [1], [0, 0, 1, 1], [], []>} : vector<224x16xbf16>, vector<16x16xbf16>, vector<224x16xf32> -> vector<224x16xf32>
    %114 = arith.addf %109, %113 : vector<224x16xf32>
    %c259 = arith.constant 259 : index
    %c0_98 = arith.constant 0 : index
    %115 = vector.load %arg10[%c259, %c0_98] : memref<672x16xbf16, #tpu.memory_space<vmem>>, vector<224x16xbf16>
    %c21 = arith.constant 21 : index
    %c0_99 = arith.constant 0 : index
    %c0_100 = arith.constant 0 : index
    %116 = vector.load %arg2[%c21, %c0_99, %c0_100] : memref<27x16x16xbf16, #tpu.memory_space<vmem>>, vector<1x16x16xbf16>
    %117 = vector.shape_cast %116 : vector<1x16x16xbf16> to vector<16x16xbf16>
    %cst_101 = arith.constant dense<0.000000e+00> : vector<224x16xf32>
    %118 = tpu.matmul %115, %117, %cst_101 {dimension_numbers = #tpu.dot_dimension_numbers<[1], [0], [0], [1], [0, 0, 1, 1], [], []>} : vector<224x16xbf16>, vector<16x16xbf16>, vector<224x16xf32> -> vector<224x16xf32>
    %119 = arith.addf %114, %118 : vector<224x16xf32>
    %c260 = arith.constant 260 : index
    %c0_102 = arith.constant 0 : index
    %120 = vector.load %arg10[%c260, %c0_102] : memref<672x16xbf16, #tpu.memory_space<vmem>>, vector<224x16xbf16>
    %c22 = arith.constant 22 : index
    %c0_103 = arith.constant 0 : index
    %c0_104 = arith.constant 0 : index
    %121 = vector.load %arg2[%c22, %c0_103, %c0_104] : memref<27x16x16xbf16, #tpu.memory_space<vmem>>, vector<1x16x16xbf16>
    %122 = vector.shape_cast %121 : vector<1x16x16xbf16> to vector<16x16xbf16>
    %cst_105 = arith.constant dense<0.000000e+00> : vector<224x16xf32>
    %123 = tpu.matmul %120, %122, %cst_105 {dimension_numbers = #tpu.dot_dimension_numbers<[1], [0], [0], [1], [0, 0, 1, 1], [], []>} : vector<224x16xbf16>, vector<16x16xbf16>, vector<224x16xf32> -> vector<224x16xf32>
    %124 = arith.addf %119, %123 : vector<224x16xf32>
    %c261 = arith.constant 261 : index
    %c0_106 = arith.constant 0 : index
    %125 = vector.load %arg10[%c261, %c0_106] : memref<672x16xbf16, #tpu.memory_space<vmem>>, vector<224x16xbf16>
    %c23 = arith.constant 23 : index
    %c0_107 = arith.constant 0 : index
    %c0_108 = arith.constant 0 : index
    %126 = vector.load %arg2[%c23, %c0_107, %c0_108] : memref<27x16x16xbf16, #tpu.memory_space<vmem>>, vector<1x16x16xbf16>
    %127 = vector.shape_cast %126 : vector<1x16x16xbf16> to vector<16x16xbf16>
    %cst_109 = arith.constant dense<0.000000e+00> : vector<224x16xf32>
    %128 = tpu.matmul %125, %127, %cst_109 {dimension_numbers = #tpu.dot_dimension_numbers<[1], [0], [0], [1], [0, 0, 1, 1], [], []>} : vector<224x16xbf16>, vector<16x16xbf16>, vector<224x16xf32> -> vector<224x16xf32>
    %129 = arith.addf %124, %128 : vector<224x16xf32>
    %c265 = arith.constant 265 : index
    %c0_110 = arith.constant 0 : index
    %130 = vector.load %arg10[%c265, %c0_110] : memref<672x16xbf16, #tpu.memory_space<vmem>>, vector<224x16xbf16>
    %c24 = arith.constant 24 : index
    %c0_111 = arith.constant 0 : index
    %c0_112 = arith.constant 0 : index
    %131 = vector.load %arg2[%c24, %c0_111, %c0_112] : memref<27x16x16xbf16, #tpu.memory_space<vmem>>, vector<1x16x16xbf16>
    %132 = vector.shape_cast %131 : vector<1x16x16xbf16> to vector<16x16xbf16>
    %cst_113 = arith.constant dense<0.000000e+00> : vector<224x16xf32>
    %133 = tpu.matmul %130, %132, %cst_113 {dimension_numbers = #tpu.dot_dimension_numbers<[1], [0], [0], [1], [0, 0, 1, 1], [], []>} : vector<224x16xbf16>, vector<16x16xbf16>, vector<224x16xf32> -> vector<224x16xf32>
    %134 = arith.addf %129, %133 : vector<224x16xf32>
    %c266 = arith.constant 266 : index
    %c0_114 = arith.constant 0 : index
    %135 = vector.load %arg10[%c266, %c0_114] : memref<672x16xbf16, #tpu.memory_space<vmem>>, vector<224x16xbf16>
    %c25 = arith.constant 25 : index
    %c0_115 = arith.constant 0 : index
    %c0_116 = arith.constant 0 : index
    %136 = vector.load %arg2[%c25, %c0_115, %c0_116] : memref<27x16x16xbf16, #tpu.memory_space<vmem>>, vector<1x16x16xbf16>
    %137 = vector.shape_cast %136 : vector<1x16x16xbf16> to vector<16x16xbf16>
    %cst_117 = arith.constant dense<0.000000e+00> : vector<224x16xf32>
    %138 = tpu.matmul %135, %137, %cst_117 {dimension_numbers = #tpu.dot_dimension_numbers<[1], [0], [0], [1], [0, 0, 1, 1], [], []>} : vector<224x16xbf16>, vector<16x16xbf16>, vector<224x16xf32> -> vector<224x16xf32>
    %139 = arith.addf %134, %138 : vector<224x16xf32>
    %c267 = arith.constant 267 : index
    %c0_118 = arith.constant 0 : index
    %140 = vector.load %arg10[%c267, %c0_118] : memref<672x16xbf16, #tpu.memory_space<vmem>>, vector<224x16xbf16>
    %c26 = arith.constant 26 : index
    %c0_119 = arith.constant 0 : index
    %c0_120 = arith.constant 0 : index
    %141 = vector.load %arg2[%c26, %c0_119, %c0_120] : memref<27x16x16xbf16, #tpu.memory_space<vmem>>, vector<1x16x16xbf16>
    %142 = vector.shape_cast %141 : vector<1x16x16xbf16> to vector<16x16xbf16>
    %cst_121 = arith.constant dense<0.000000e+00> : vector<224x16xf32>
    %143 = tpu.matmul %140, %142, %cst_121 {dimension_numbers = #tpu.dot_dimension_numbers<[1], [0], [0], [1], [0, 0, 1, 1], [], []>} : vector<224x16xbf16>, vector<16x16xbf16>, vector<224x16xf32> -> vector<224x16xf32>
    %144 = arith.addf %139, %143 : vector<224x16xf32>
    %c0_122 = arith.constant 0 : index
    %c0_123 = arith.constant 0 : index
    %145 = vector.load %arg3[%c0_122, %c0_123] : memref<1x16xf32, #tpu.memory_space<vmem>>, vector<1x16xf32>
    %146 = vector.broadcast %145 : vector<1x16xf32> to vector<224x16xf32>
    %147 = arith.addf %144, %146 : vector<224x16xf32>
    %cst_124 = arith.constant 0.00999999977 : f32
    %148 = vector.broadcast %cst_124 : f32 to vector<224x16xf32>
    %149 = arith.mulf %148, %147 : vector<224x16xf32>
    %150 = arith.maximumf %147, %149 : vector<224x16xf32>
    %c0_125 = arith.constant 0 : index
    %c0_126 = arith.constant 0 : index
    %151 = vector.load %arg4[%c0_125, %c0_126] : memref<224x1xf32, #tpu.memory_space<vmem>>, vector<224x1xf32>
    %cst_127 = arith.constant 5.000000e-01 : f32
    %152 = vector.broadcast %cst_127 : f32 to vector<224x1xf32>
    %153 = arith.cmpf ogt, %151, %152 : vector<224x1xf32>
    %cst_128 = arith.constant 0.000000e+00 : f32
    %154 = vector.shape_cast %153 : vector<224x1xi1> to vector<224x1xi1>
    %155 = vector.broadcast %154 : vector<224x1xi1> to vector<224x16xi1>
    %156 = vector.broadcast %cst_128 : f32 to vector<224x16xf32>
    %157 = arith.select %155, %150, %156 : vector<224x16xi1>, vector<224x16xf32>
    %158 = arith.truncf %157 : vector<224x16xf32> to vector<224x16xbf16>
    %c0_129 = arith.constant 0 : index
    %c0_130 = arith.constant 0 : index
    %c0_131 = arith.constant 0 : index
    %159 = vector.load %arg8[%c0_129, %c0_130, %c0_131] : memref<1x224x16xbf16, #tpu.memory_space<vmem>>, vector<1x224x16xbf16>
    %160 = vector.shape_cast %159 : vector<1x224x16xbf16> to vector<224x16xbf16>
    %161 = vector.shape_cast %158 : vector<224x16xbf16> to vector<1x224x16xbf16>
    tpu.vector_store %arg8[%c0_129, %c0_130, %c0_131], %161 {strides = array<i32>} : memref<1x224x16xbf16, #tpu.memory_space<vmem>>, vector<1x224x16xbf16>,
    %c0_i32 = arith.constant 0 : i32
    %162 = arith.cmpi eq, %arg1, %c0_i32 : i32
    %163 = arith.extui %162 : i1 to i32
    %c0_i32_132 = arith.constant 0 : i32
    %164 = arith.cmpi ne, %163, %c0_i32_132 : i32
    scf.if %164 {
      %cst_147 = arith.constant 0.000000e+00 : f32
      %182 = vector.broadcast %cst_147 : f32 to vector<8x16xf32>
      %c0_148 = arith.constant 0 : index
      %c0_149 = arith.constant 0 : index
      %c0_150 = arith.constant 0 : index
      %183 = vector.load %arg9[%c0_148, %c0_149, %c0_150] : memref<1x8x16xf32, #tpu.memory_space<vmem>>, vector<1x8x16xf32>
      %184 = vector.shape_cast %183 : vector<1x8x16xf32> to vector<8x16xf32>
      %185 = vector.shape_cast %182 : vector<8x16xf32> to vector<1x8x16xf32>
      tpu.vector_store %arg9[%c0_148, %c0_149, %c0_150], %185 {strides = array<i32>} : memref<1x8x16xf32, #tpu.memory_space<vmem>>, vector<1x8x16xf32>,
    } else {
    }
    %c0_133 = arith.constant 0 : index
    %c0_134 = arith.constant 0 : index
    %c0_135 = arith.constant 0 : index
    %165 = vector.load %arg9[%c0_133, %c0_134, %c0_135] : memref<1x8x16xf32, #tpu.memory_space<vmem>>, vector<1x1x16xf32>
    %166 = vector.shape_cast %165 : vector<1x1x16xf32> to vector<1x16xf32>
    %cst_136 = arith.constant dense<0.000000e+00> : vector<16xf32>
    %167 = vector.multi_reduction <add>, %157, %cst_136 [0] : vector<224x16xf32> to vector<16xf32>
    %168 = vector.shape_cast %167 : vector<16xf32> to vector<1x16xf32>
    %169 = arith.addf %166, %168 : vector<1x16xf32>
    %c0_137 = arith.constant 0 : index
    %c0_138 = arith.constant 0 : index
    %c0_139 = arith.constant 0 : index
    %170 = vector.load %arg9[%c0_137, %c0_138, %c0_139] : memref<1x8x16xf32, #tpu.memory_space<vmem>>, vector<1x1x16xf32>
    %171 = vector.shape_cast %170 : vector<1x1x16xf32> to vector<1x16xf32>
    %172 = vector.shape_cast %169 : vector<1x16xf32> to vector<1x1x16xf32>
    tpu.vector_store %arg9[%c0_137, %c0_138, %c0_139], %172 {strides = array<i32>} : memref<1x8x16xf32, #tpu.memory_space<vmem>>, vector<1x1x16xf32>,
    %c0_140 = arith.constant 0 : index
    %c1_141 = arith.constant 1 : index
    %c0_142 = arith.constant 0 : index
    %173 = vector.load %arg9[%c0_140, %c1_141, %c0_142] : memref<1x8x16xf32, #tpu.memory_space<vmem>>, vector<1x1x16xf32>
    %174 = vector.shape_cast %173 : vector<1x1x16xf32> to vector<1x16xf32>
    %175 = arith.mulf %157, %157 : vector<224x16xf32>
    %cst_143 = arith.constant dense<0.000000e+00> : vector<16xf32>
    %176 = vector.multi_reduction <add>, %175, %cst_143 [0] : vector<224x16xf32> to vector<16xf32>
    %177 = vector.shape_cast %176 : vector<16xf32> to vector<1x16xf32>
    %178 = arith.addf %174, %177 : vector<1x16xf32>
    %c0_144 = arith.constant 0 : index
    %c1_145 = arith.constant 1 : index
    %c0_146 = arith.constant 0 : index
    %179 = vector.load %arg9[%c0_144, %c1_145, %c0_146] : memref<1x8x16xf32, #tpu.memory_space<vmem>>, vector<1x1x16xf32>
    %180 = vector.shape_cast %179 : vector<1x1x16xf32> to vector<1x16xf32>
    %181 = vector.shape_cast %178 : vector<1x16xf32> to vector<1x1x16xf32>
    tpu.vector_store %arg9[%c0_144, %c1_145, %c0_146], %181 {strides = array<i32>} : memref<1x8x16xf32, #tpu.memory_space<vmem>>, vector<1x1x16xf32>,
    return
  }
  func.func @transform_0(%arg0: i32, %arg1: i32) -> (i32, i32, i32) {
    %c0_i32 = arith.constant 0 : i32
    %c0_i32_0 = arith.constant 0 : i32
    %c0_i32_1 = arith.constant 0 : i32
    %c0_i32_2 = arith.constant 0 : i32
    return %c0_i32, %c0_i32_0, %c0_i32_1 : i32, i32, i32
  }
  func.func @transform_1(%arg0: i32, %arg1: i32) -> (i32, i32) {
    %c0_i32 = arith.constant 0 : i32
    %c0_i32_0 = arith.constant 0 : i32
    %c0_i32_1 = arith.constant 0 : i32
    return %c0_i32, %c0_i32_0 : i32, i32
  }
  func.func @transform_2(%arg0: i32, %arg1: i32) -> (i32, i32) {
    %c1_i32 = arith.constant 1 : i32
    %0 = arith.addi %arg1, %c1_i32 : i32
    %c0_i32 = arith.constant 0 : i32
    %c0_i32_0 = arith.constant 0 : i32
    return %0, %c0_i32 : i32, i32
  }
  func.func @transform_3(%arg0: i32, %arg1: i32) -> (i32, i32, i32) {
    %c0_i32 = arith.constant 0 : i32
    %c0_i32_0 = arith.constant 0 : i32
    return %arg0, %arg1, %c0_i32 : i32, i32, i32
  }
  func.func @transform_4(%arg0: i32, %arg1: i32) -> (i32, i32, i32) {
    %c1_i32 = arith.constant 1 : i32
    %0 = arith.addi %arg1, %c1_i32 : i32
    %c0_i32 = arith.constant 0 : i32
    %c0_i32_0 = arith.constant 0 : i32
    return %arg0, %0, %c0_i32 : i32, i32, i32
  }
  func.func @transform_5(%arg0: i32, %arg1: i32) -> (i32, i32, i32) {
    %c2_i32 = arith.constant 2 : i32
    %0 = arith.addi %arg1, %c2_i32 : i32
    %c0_i32 = arith.constant 0 : i32
    %c0_i32_0 = arith.constant 0 : i32
    return %arg0, %0, %c0_i32 : i32, i32, i32
  }
  func.func @transform_6(%arg0: i32, %arg1: i32) -> (i32, i32, i32) {
    %c1_i32 = arith.constant 1 : i32
    %0 = arith.addi %arg1, %c1_i32 : i32
    %c0_i32 = arith.constant 0 : i32
    %c0_i32_0 = arith.constant 0 : i32
    return %arg0, %0, %c0_i32 : i32, i32, i32
  }
  func.func @transform_7(%arg0: i32, %arg1: i32) -> (i32, i32, i32) {
    %c0_i32 = arith.constant 0 : i32
    %c0_i32_0 = arith.constant 0 : i32
    %c0_i32_1 = arith.constant 0 : i32
    return %arg0, %c0_i32, %c0_i32_0 : i32, i32, i32
  }
}

module attributes {stable_mosaic.version = 11 : i64} {
  func.func @kernel(%arg0: i32, %arg1: i32, %arg2: memref<1x224x16xbf16, #tpu.memory_space<vmem>>, %arg3: memref<224x1xf32, #tpu.memory_space<vmem>>, %arg4: memref<1x8x16xf32, #tpu.memory_space<vmem>>, %arg5: memref<1x16xf32, #tpu.memory_space<vmem>>, %arg6: memref<1x16xf32, #tpu.memory_space<vmem>>, %arg7: memref<1x224x16xbf16, #tpu.memory_space<vmem>>) attributes {dimension_semantics = [#tpu.dimension_semantics<parallel>, #tpu.dimension_semantics<parallel>], iteration_bounds = array<i64: 2, 1>, scalar_prefetch = 0 : i64, scratch_operands = 0 : i64, tpu.core_type = #tpu.core_type<tc>, window_params = [{transform_indices = @transform_0, window_bounds = array<i64: 1, 224, 16>}, {transform_indices = @transform_1, window_bounds = array<i64: 224, 1>}, {transform_indices = @transform_2, window_bounds = array<i64: 1, 8, 16>}, {pipeline_mode = #tpu.pipeline_mode<synchronous>, transform_indices = @transform_3, window_bounds = array<i64: 1, 16>}, {pipeline_mode = #tpu.pipeline_mode<synchronous>, transform_indices = @transform_4, window_bounds = array<i64: 1, 16>}, {transform_indices = @transform_5, window_bounds = array<i64: 1, 224, 16>}]} {
    %c0 = arith.constant 0 : index
    %c0_0 = arith.constant 0 : index
    %c0_1 = arith.constant 0 : index
    %0 = vector.load %arg2[%c0, %c0_0, %c0_1] : memref<1x224x16xbf16, #tpu.memory_space<vmem>>, vector<1x224x16xbf16>
    %1 = vector.shape_cast %0 : vector<1x224x16xbf16> to vector<224x16xbf16>
    %2 = arith.extf %1 : vector<224x16xbf16> to vector<224x16xf32>
    %c0_2 = arith.constant 0 : index
    %c0_3 = arith.constant 0 : index
    %c0_4 = arith.constant 0 : index
    %3 = vector.load %arg4[%c0_2, %c0_3, %c0_4] : memref<1x8x16xf32, #tpu.memory_space<vmem>>, vector<1x1x16xf32>
    %4 = vector.shape_cast %3 : vector<1x1x16xf32> to vector<1x16xf32>
    %cst = arith.constant 1.562500e-02 : f32
    %5 = vector.broadcast %cst : f32 to vector<1x16xf32>
    %6 = arith.mulf %4, %5 : vector<1x16xf32>
    %c0_5 = arith.constant 0 : index
    %c1 = arith.constant 1 : index
    %c0_6 = arith.constant 0 : index
    %7 = vector.load %arg4[%c0_5, %c1, %c0_6] : memref<1x8x16xf32, #tpu.memory_space<vmem>>, vector<1x1x16xf32>
    %8 = vector.shape_cast %7 : vector<1x1x16xf32> to vector<1x16xf32>
    %cst_7 = arith.constant 1.562500e-02 : f32
    %9 = vector.broadcast %cst_7 : f32 to vector<1x16xf32>
    %10 = arith.mulf %8, %9 : vector<1x16xf32>
    %11 = arith.mulf %6, %6 : vector<1x16xf32>
    %12 = arith.subf %10, %11 : vector<1x16xf32>
    %cst_8 = arith.constant 0.000000e+00 : f32
    %13 = vector.broadcast %cst_8 : f32 to vector<1x16xf32>
    %14 = arith.maximumf %12, %13 : vector<1x16xf32>
    %cst_9 = arith.constant 9.99999974E-6 : f32
    %15 = vector.broadcast %cst_9 : f32 to vector<1x16xf32>
    %16 = arith.addf %14, %15 : vector<1x16xf32>
    %17 = math.rsqrt %16 : vector<1x16xf32>
    %18 = vector.broadcast %6 : vector<1x16xf32> to vector<224x16xf32>
    %19 = arith.subf %2, %18 : vector<224x16xf32>
    %c0_10 = arith.constant 0 : index
    %c0_11 = arith.constant 0 : index
    %20 = vector.load %arg5[%c0_10, %c0_11] : memref<1x16xf32, #tpu.memory_space<vmem>>, vector<1x16xf32>
    %21 = arith.mulf %17, %20 : vector<1x16xf32>
    %22 = vector.broadcast %21 : vector<1x16xf32> to vector<224x16xf32>
    %23 = arith.mulf %19, %22 : vector<224x16xf32>
    %c0_12 = arith.constant 0 : index
    %c0_13 = arith.constant 0 : index
    %24 = vector.load %arg6[%c0_12, %c0_13] : memref<1x16xf32, #tpu.memory_space<vmem>>, vector<1x16xf32>
    %25 = vector.broadcast %24 : vector<1x16xf32> to vector<224x16xf32>
    %26 = arith.addf %23, %25 : vector<224x16xf32>
    %c0_14 = arith.constant 0 : index
    %c0_15 = arith.constant 0 : index
    %27 = vector.load %arg3[%c0_14, %c0_15] : memref<224x1xf32, #tpu.memory_space<vmem>>, vector<224x1xf32>
    %cst_16 = arith.constant 5.000000e-01 : f32
    %28 = vector.broadcast %cst_16 : f32 to vector<224x1xf32>
    %29 = arith.cmpf ogt, %27, %28 : vector<224x1xf32>
    %cst_17 = arith.constant 0.000000e+00 : f32
    %30 = vector.shape_cast %29 : vector<224x1xi1> to vector<224x1xi1>
    %31 = vector.broadcast %30 : vector<224x1xi1> to vector<224x16xi1>
    %32 = vector.broadcast %cst_17 : f32 to vector<224x16xf32>
    %33 = arith.select %31, %26, %32 : vector<224x16xi1>, vector<224x16xf32>
    %34 = arith.truncf %33 : vector<224x16xf32> to vector<224x16xbf16>
    %c0_18 = arith.constant 0 : index
    %c0_19 = arith.constant 0 : index
    %c0_20 = arith.constant 0 : index
    %35 = vector.load %arg7[%c0_18, %c0_19, %c0_20] : memref<1x224x16xbf16, #tpu.memory_space<vmem>>, vector<1x224x16xbf16>
    %36 = vector.shape_cast %35 : vector<1x224x16xbf16> to vector<224x16xbf16>
    %37 = vector.shape_cast %34 : vector<224x16xbf16> to vector<1x224x16xbf16>
    tpu.vector_store %arg7[%c0_18, %c0_19, %c0_20], %37 {strides = array<i32>} : memref<1x224x16xbf16, #tpu.memory_space<vmem>>, vector<1x224x16xbf16>,
    return
  }
  func.func @transform_0(%arg0: i32, %arg1: i32) -> (i32, i32, i32) {
    %c1_i32 = arith.constant 1 : i32
    %0 = arith.addi %arg1, %c1_i32 : i32
    %c0_i32 = arith.constant 0 : i32
    %c0_i32_0 = arith.constant 0 : i32
    return %arg0, %0, %c0_i32 : i32, i32, i32
  }
  func.func @transform_1(%arg0: i32, %arg1: i32) -> (i32, i32) {
    %c1_i32 = arith.constant 1 : i32
    %0 = arith.addi %arg1, %c1_i32 : i32
    %c0_i32 = arith.constant 0 : i32
    %c0_i32_0 = arith.constant 0 : i32
    return %0, %c0_i32 : i32, i32
  }
  func.func @transform_2(%arg0: i32, %arg1: i32) -> (i32, i32, i32) {
    %c0_i32 = arith.constant 0 : i32
    %c0_i32_0 = arith.constant 0 : i32
    %c0_i32_1 = arith.constant 0 : i32
    return %arg0, %c0_i32, %c0_i32_0 : i32, i32, i32
  }
  func.func @transform_3(%arg0: i32, %arg1: i32) -> (i32, i32) {
    %c0_i32 = arith.constant 0 : i32
    %c0_i32_0 = arith.constant 0 : i32
    %c0_i32_1 = arith.constant 0 : i32
    return %c0_i32, %c0_i32_0 : i32, i32
  }
  func.func @transform_4(%arg0: i32, %arg1: i32) -> (i32, i32) {
    %c0_i32 = arith.constant 0 : i32
    %c0_i32_0 = arith.constant 0 : i32
    %c0_i32_1 = arith.constant 0 : i32
    return %c0_i32, %c0_i32_0 : i32, i32
  }
  func.func @transform_5(%arg0: i32, %arg1: i32) -> (i32, i32, i32) {
    %c1_i32 = arith.constant 1 : i32
    %0 = arith.addi %arg1, %c1_i32 : i32
    %c0_i32 = arith.constant 0 : i32
    %c0_i32_0 = arith.constant 0 : i32
    return %arg0, %0, %c0_i32 : i32, i32, i32
  }
}

module attributes {stable_mosaic.version = 11 : i64} {
  func.func @kernel(%arg0: i32, %arg1: i32, %arg2: memref<1x224x16xbf16, #tpu.memory_space<vmem>>, %arg3: memref<224x1xf32, #tpu.memory_space<vmem>>, %arg4: memref<1x8x16xf32, #tpu.memory_space<vmem>>, %arg5: memref<1x16xf32, #tpu.memory_space<vmem>>, %arg6: memref<1x16xf32, #tpu.memory_space<vmem>>, %arg7: memref<1x224x16xbf16, #tpu.memory_space<vmem>>, %arg8: memref<1x224x16xf32, #tpu.memory_space<vmem>>) attributes {dimension_semantics = [#tpu.dimension_semantics<parallel>, #tpu.dimension_semantics<parallel>], iteration_bounds = array<i64: 2, 1>, scalar_prefetch = 0 : i64, scratch_operands = 0 : i64, tpu.core_type = #tpu.core_type<tc>, window_params = [{transform_indices = @transform_0, window_bounds = array<i64: 1, 224, 16>}, {transform_indices = @transform_1, window_bounds = array<i64: 224, 1>}, {transform_indices = @transform_2, window_bounds = array<i64: 1, 8, 16>}, {pipeline_mode = #tpu.pipeline_mode<synchronous>, transform_indices = @transform_3, window_bounds = array<i64: 1, 16>}, {pipeline_mode = #tpu.pipeline_mode<synchronous>, transform_indices = @transform_4, window_bounds = array<i64: 1, 16>}, {transform_indices = @transform_5, window_bounds = array<i64: 1, 224, 16>}, {transform_indices = @transform_6, window_bounds = array<i64: 1, 224, 16>}]} {
    %c0 = arith.constant 0 : index
    %c0_0 = arith.constant 0 : index
    %c0_1 = arith.constant 0 : index
    %0 = vector.load %arg2[%c0, %c0_0, %c0_1] : memref<1x224x16xbf16, #tpu.memory_space<vmem>>, vector<1x224x16xbf16>
    %1 = vector.shape_cast %0 : vector<1x224x16xbf16> to vector<224x16xbf16>
    %2 = arith.extf %1 : vector<224x16xbf16> to vector<224x16xf32>
    %c0_2 = arith.constant 0 : index
    %c0_3 = arith.constant 0 : index
    %c0_4 = arith.constant 0 : index
    %3 = vector.load %arg4[%c0_2, %c0_3, %c0_4] : memref<1x8x16xf32, #tpu.memory_space<vmem>>, vector<1x1x16xf32>
    %4 = vector.shape_cast %3 : vector<1x1x16xf32> to vector<1x16xf32>
    %cst = arith.constant 1.562500e-02 : f32
    %5 = vector.broadcast %cst : f32 to vector<1x16xf32>
    %6 = arith.mulf %4, %5 : vector<1x16xf32>
    %c0_5 = arith.constant 0 : index
    %c1 = arith.constant 1 : index
    %c0_6 = arith.constant 0 : index
    %7 = vector.load %arg4[%c0_5, %c1, %c0_6] : memref<1x8x16xf32, #tpu.memory_space<vmem>>, vector<1x1x16xf32>
    %8 = vector.shape_cast %7 : vector<1x1x16xf32> to vector<1x16xf32>
    %cst_7 = arith.constant 1.562500e-02 : f32
    %9 = vector.broadcast %cst_7 : f32 to vector<1x16xf32>
    %10 = arith.mulf %8, %9 : vector<1x16xf32>
    %11 = arith.mulf %6, %6 : vector<1x16xf32>
    %12 = arith.subf %10, %11 : vector<1x16xf32>
    %cst_8 = arith.constant 0.000000e+00 : f32
    %13 = vector.broadcast %cst_8 : f32 to vector<1x16xf32>
    %14 = arith.maximumf %12, %13 : vector<1x16xf32>
    %cst_9 = arith.constant 9.99999974E-6 : f32
    %15 = vector.broadcast %cst_9 : f32 to vector<1x16xf32>
    %16 = arith.addf %14, %15 : vector<1x16xf32>
    %17 = math.rsqrt %16 : vector<1x16xf32>
    %18 = vector.broadcast %6 : vector<1x16xf32> to vector<224x16xf32>
    %19 = arith.subf %2, %18 : vector<224x16xf32>
    %c0_10 = arith.constant 0 : index
    %c0_11 = arith.constant 0 : index
    %20 = vector.load %arg5[%c0_10, %c0_11] : memref<1x16xf32, #tpu.memory_space<vmem>>, vector<1x16xf32>
    %21 = arith.mulf %17, %20 : vector<1x16xf32>
    %22 = vector.broadcast %21 : vector<1x16xf32> to vector<224x16xf32>
    %23 = arith.mulf %19, %22 : vector<224x16xf32>
    %c0_12 = arith.constant 0 : index
    %c0_13 = arith.constant 0 : index
    %24 = vector.load %arg6[%c0_12, %c0_13] : memref<1x16xf32, #tpu.memory_space<vmem>>, vector<1x16xf32>
    %25 = vector.broadcast %24 : vector<1x16xf32> to vector<224x16xf32>
    %26 = arith.addf %23, %25 : vector<224x16xf32>
    %c0_14 = arith.constant 0 : index
    %c0_15 = arith.constant 0 : index
    %c0_16 = arith.constant 0 : index
    %27 = vector.load %arg7[%c0_14, %c0_15, %c0_16] : memref<1x224x16xbf16, #tpu.memory_space<vmem>>, vector<1x224x16xbf16>
    %28 = vector.shape_cast %27 : vector<1x224x16xbf16> to vector<224x16xbf16>
    %29 = arith.extf %28 : vector<224x16xbf16> to vector<224x16xf32>
    %30 = arith.addf %26, %29 : vector<224x16xf32>
    %c0_17 = arith.constant 0 : index
    %c0_18 = arith.constant 0 : index
    %31 = vector.load %arg3[%c0_17, %c0_18] : memref<224x1xf32, #tpu.memory_space<vmem>>, vector<224x1xf32>
    %cst_19 = arith.constant 5.000000e-01 : f32
    %32 = vector.broadcast %cst_19 : f32 to vector<224x1xf32>
    %33 = arith.cmpf ogt, %31, %32 : vector<224x1xf32>
    %cst_20 = arith.constant 0.000000e+00 : f32
    %34 = vector.shape_cast %33 : vector<224x1xi1> to vector<224x1xi1>
    %35 = vector.broadcast %34 : vector<224x1xi1> to vector<224x16xi1>
    %36 = vector.broadcast %cst_20 : f32 to vector<224x16xf32>
    %37 = arith.select %35, %30, %36 : vector<224x16xi1>, vector<224x16xf32>
    %c0_21 = arith.constant 0 : index
    %c0_22 = arith.constant 0 : index
    %c0_23 = arith.constant 0 : index
    %38 = vector.load %arg8[%c0_21, %c0_22, %c0_23] : memref<1x224x16xf32, #tpu.memory_space<vmem>>, vector<1x224x16xf32>
    %39 = vector.shape_cast %38 : vector<1x224x16xf32> to vector<224x16xf32>
    %40 = vector.shape_cast %37 : vector<224x16xf32> to vector<1x224x16xf32>
    tpu.vector_store %arg8[%c0_21, %c0_22, %c0_23], %40 {strides = array<i32>} : memref<1x224x16xf32, #tpu.memory_space<vmem>>, vector<1x224x16xf32>,
    return
  }
  func.func @transform_0(%arg0: i32, %arg1: i32) -> (i32, i32, i32) {
    %c1_i32 = arith.constant 1 : i32
    %0 = arith.addi %arg1, %c1_i32 : i32
    %c0_i32 = arith.constant 0 : i32
    %c0_i32_0 = arith.constant 0 : i32
    return %arg0, %0, %c0_i32 : i32, i32, i32
  }
  func.func @transform_1(%arg0: i32, %arg1: i32) -> (i32, i32) {
    %c1_i32 = arith.constant 1 : i32
    %0 = arith.addi %arg1, %c1_i32 : i32
    %c0_i32 = arith.constant 0 : i32
    %c0_i32_0 = arith.constant 0 : i32
    return %0, %c0_i32 : i32, i32
  }
  func.func @transform_2(%arg0: i32, %arg1: i32) -> (i32, i32, i32) {
    %c0_i32 = arith.constant 0 : i32
    %c0_i32_0 = arith.constant 0 : i32
    %c0_i32_1 = arith.constant 0 : i32
    return %arg0, %c0_i32, %c0_i32_0 : i32, i32, i32
  }
  func.func @transform_3(%arg0: i32, %arg1: i32) -> (i32, i32) {
    %c0_i32 = arith.constant 0 : i32
    %c0_i32_0 = arith.constant 0 : i32
    %c0_i32_1 = arith.constant 0 : i32
    return %c0_i32, %c0_i32_0 : i32, i32
  }
  func.func @transform_4(%arg0: i32, %arg1: i32) -> (i32, i32) {
    %c0_i32 = arith.constant 0 : i32
    %c0_i32_0 = arith.constant 0 : i32
    %c0_i32_1 = arith.constant 0 : i32
    return %c0_i32, %c0_i32_0 : i32, i32
  }
  func.func @transform_5(%arg0: i32, %arg1: i32) -> (i32, i32, i32) {
    %c1_i32 = arith.constant 1 : i32
    %0 = arith.addi %arg1, %c1_i32 : i32
    %c0_i32 = arith.constant 0 : i32
    %c0_i32_0 = arith.constant 0 : i32
    return %arg0, %0, %c0_i32 : i32, i32, i32
  }
  func.func @transform_6(%arg0: i32, %arg1: i32) -> (i32, i32, i32) {
    %c1_i32 = arith.constant 1 : i32
    %0 = arith.addi %arg1, %c1_i32 : i32
    %c0_i32 = arith.constant 0 : i32
    %c0_i32_0 = arith.constant 0 : i32
    return %arg0, %0, %c0_i32 : i32, i32, i32
  }
}

</mosaic_0001>

<bundles_post_ra>
// kernel: unet_down_block_forward.7
= control target key start
LH: loop header
LB: loop body
LE: loop exit
PB: predicated region body
PF: predicated region fallthrough
CT: control target
= control target key end

     0   :  { %s1225_s18 = smov 0   ;;  %s1227_s19 = smov 0   ;;  %s1557_s0 = inlined_call_operand.vmem [shape: bf16[2,672,16], index: 0, kind: input, shape index: {}]   ;;  %s1558_s1 = inlined_call_operand.vmem [shape: f32[672,1], index: 1, kind: input, shape index: {}]   ;;  %s1559_s2 = inlined_call_operand.vmem [shape: f32[2,8,16], index: 2, kind: input, shape index: {}]   ;;  %s1560_s3 = inlined_call_operand.vmem [shape: f32[1,16], index: 3, kind: input, shape index: {}]   ;;  %s1561_s4 = inlined_call_operand.vmem [shape: f32[1,16], index: 4, kind: input, shape index: {}]   ;;  %s1562_s5 = inlined_call_operand.vmem [shape: bf16[2,672,16], index: 5, kind: output, shape index: {}]  }
   0x1   :  { %s1229_s20 = smov 0  }
   0x2 LB: > { %s27_s21 = sadd.s32 1, %s1188_s19  ;;  %p975_p0 = scmp.ge.s32.totalorder %s1192_s20, 1  ;;  %s1192_s20 = sphi %s1229_s20, %s15_s20   ;;  %s1188_s19 = sphi %s1227_s19, %s1564_s19   ;;  %s1184_s18 = sphi %s1225_s18, %s1563_s18  }
   0x3   : > { %p29_p1 = scmp.ge.s32.totalorder %s27_s21, 2  ;;  %p238_p2 = scmp.lt.s32.totalorder %s1192_s20, 3 }
   0x5   : > { %s1566_s21 = smov (%p29_p1, %s27_s21), 0  ;;  %p239_p3 = pnand %p975_p0, %p238_p2 }
   0x6   : > { %p288_p4 = scmp.lt.s32.totalorder (!%p239_p3), %s1184_s18, 1 }
   0x7   : > { %242 = sbr.rel (%p239_p3) target bundleno = 196 (0xc4), region = 40 }
   0xc   : > { %v982_v0 = vld [vmem:[%s1558_s1 + $0xf0] sm:$0xff]  ;;  %v980_v1 = vld [vmem:[%s1558_s1 + $0xe0] sm:$0xff]  ;;  %v983_v2 = vld [vmem:[%s1558_s1 + $0xf8] sm:$0xff]  ;;  %v1194_v3 = vmov 0   ;;  %s1568_s18 = smov (!%p288_p4, %s1184_s18), 1 }
   0xd   : > { %1167 = vset.pattern.permute.xlu1 %v1194_v3  ;;  %1166 = vset.pattern.permute.xlu0 %v1194_v3  ;;  %vm518_vm0 = vcmp.gt.f32.partialorder %v982_v0, 0.5  ;;  %vm516_vm1 = vcmp.gt.f32.partialorder %v980_v1, 0.5  ;;  %vm519_vm2 = vcmp.gt.f32.partialorder %v983_v2, 0.5  ;;  %v981_v4 = vld [vmem:[%s1558_s1 + $0xe8] sm:$0xff]  ;;  %v984_v8 = vld [vmem:[%s1558_s1 + $0x100] sm:$0xff]  ;;  %v987_v11 = vld [vmem:[%s1558_s1 + $0x118] sm:$0xff]  ;;  %v387_v1 = vlaneseq }
   0xe   : > { %v546_v5 = vsel %vm518_vm0, 1, %v1194_v3  ;;  %v544_v6 = vsel %vm516_vm1, 1, %v1194_v3  ;;  %vm517_vm3 = vcmp.gt.f32.partialorder %v981_v4, 0.5  ;;  %v985_v7 = vld [vmem:[%s1558_s1 + $0x108] sm:$0xff]  ;;  %v547_v9 = vsel %vm519_vm2, 1, %v1194_v3  ;;  %v986_v12 = vld [vmem:[%s1558_s1 + $0x110] sm:$0xff] }
   0xf   : > { %579 = vperm.xlu1 %1167, %v546_v5   ;;  %573 = vperm.xlu0 %1166, %v544_v6   ;;  %v545_v10 = vsel %vm517_vm3, 1, %v1194_v3  ;;  %vm521_vm4 = vcmp.gt.f32.partialorder %v985_v7, 0.5  ;;  %vm520_vm5 = vcmp.gt.f32.partialorder %v984_v8, 0.5  ;;  %vm523_vm6 = vcmp.gt.f32.partialorder %v987_v11, 0.5  ;;  %v989_v15 = vld [vmem:[%s1558_s1 + $0x128] sm:$0xff]  ;;  %v988_v16 = vld [vmem:[%s1558_s1 + $0x120] sm:$0xff] }
  0x10   : > { %v549_v13 = vsel %vm521_vm4, 1, %v1194_v3  ;;  %v548_v14 = vsel %vm520_vm5, 1, %v1194_v3  ;;  %vm522_vm7 = vcmp.gt.f32.partialorder %v986_v12, 0.5  ;;  %v551_v17 = vsel %vm523_vm6, 1, %v1194_v3  ;;  %v991_v19 = vld [vmem:[%s1558_s1 + $0x138] sm:$0xff]  ;;  %v990_v20 = vld [vmem:[%s1558_s1 + $0x130] sm:$0xff] }
  0x11   : > { %v550_v18 = vsel %vm522_vm7, 1, %v1194_v3  ;;  %vm525_vm8 = vcmp.gt.f32.partialorder %v989_v15, 0.5  ;;  %vm524_vm9 = vcmp.gt.f32.partialorder %v988_v16, 0.5  ;;  %vm527_vm10 = vcmp.gt.f32.partialorder %v991_v19, 0.5  ;;  %v993_v23 = vld [vmem:[%s1558_s1 + $0x148] sm:$0xff]  ;;  %v992_v24 = vld [vmem:[%s1558_s1 + $0x140] sm:$0xff] }
  0x12   : > { %v553_v21 = vsel %vm525_vm8, 1, %v1194_v3  ;;  %v552_v22 = vsel %vm524_vm9, 1, %v1194_v3  ;;  %vm526_vm11 = vcmp.gt.f32.partialorder %v990_v20, 0.5  ;;  %v555_v25 = vsel %vm527_vm10, 1, %v1194_v3  ;;  %v995_v27 = vld [vmem:[%s1558_s1 + $0x158] sm:$0xff]  ;;  %v994_v28 = vld [vmem:[%s1558_s1 + $0x150] sm:$0xff] }
  0x13   : > { %582 = vperm.xlu1 %1167, %v547_v9   ;;  %576 = vperm.xlu0 %1166, %v545_v10   ;;  %v554_v26 = vsel %vm526_vm11, 1, %v1194_v3  ;;  %vm529_vm12 = vcmp.gt.f32.partialorder %v993_v23, 0.5  ;;  %vm528_vm13 = vcmp.gt.f32.partialorder %v992_v24, 0.5  ;;  %vm531_vm14 = vcmp.gt.f32.partialorder %v995_v27, 0.5  ;;  %v997_v31 = vld [vmem:[%s1558_s1 + $0x168] sm:$0xff]  ;;  %v996_v32 = vld [vmem:[%s1558_s1 + $0x160] sm:$0xff] }
  0x14   : > { %v557_v29 = vsel %vm529_vm12, 1, %v1194_v3  ;;  %v556_v30 = vsel %vm528_vm13, 1, %v1194_v3  ;;  %vm530_vm15 = vcmp.gt.f32.partialorder %v994_v28, 0.5  ;;  %v559_v33 = vsel %vm531_vm14, 1, %v1194_v3  ;;  %v999_v35 = vld [vmem:[%s1558_s1 + $0x178] sm:$0xff]  ;;  %v998_v36 = vld [vmem:[%s1558_s1 + $0x170] sm:$0xff] }
  0x15   : > { %v558_v34 = vsel %vm530_vm15, 1, %v1194_v3  ;;  %vm533_vm0 = vcmp.gt.f32.partialorder %v997_v31, 0.5  ;;  %vm532_vm1 = vcmp.gt.f32.partialorder %v996_v32, 0.5  ;;  %vm535_vm2 = vcmp.gt.f32.partialorder %v999_v35, 0.5  ;;  %v1001_v39 = vld [vmem:[%s1558_s1 + $0x188] sm:$0xff]  ;;  %v1000_v40 = vld [vmem:[%s1558_s1 + $0x180] sm:$0xff] }
  0x16   : > { %v561_v37 = vsel %vm533_vm0, 1, %v1194_v3  ;;  %v560_v38 = vsel %vm532_vm1, 1, %v1194_v3  ;;  %vm534_vm3 = vcmp.gt.f32.partialorder %v998_v36, 0.5  ;;  %v563_v41 = vsel %vm535_vm2, 1, %v1194_v3  ;;  %v1003_v43 = vld [vmem:[%s1558_s1 + $0x198] sm:$0xff]  ;;  %v1002_v44 = vld [vmem:[%s1558_s1 + $0x190] sm:$0xff] }
  0x17   : > { %588 = vperm.xlu1 %1167, %v549_v13   ;;  %585 = vperm.xlu0 %1166, %v548_v14   ;;  %v562_v42 = vsel %vm534_vm3, 1, %v1194_v3  ;;  %vm537_vm4 = vcmp.gt.f32.partialorder %v1001_v39, 0.5  ;;  %vm536_vm5 = vcmp.gt.f32.partialorder %v1000_v40, 0.5  ;;  %vm539_vm6 = vcmp.gt.f32.partialorder %v1003_v43, 0.5  ;;  %v1005_v47 = vld [vmem:[%s1558_s1 + $0x1a8] sm:$0xff]  ;;  %v1004_v48 = vld [vmem:[%s1558_s1 + $0x1a0] sm:$0xff] }
  0x18   : > { %v565_v45 = vsel %vm537_vm4, 1, %v1194_v3  ;;  %v564_v46 = vsel %vm536_vm5, 1, %v1194_v3  ;;  %vm538_vm7 = vcmp.gt.f32.partialorder %v1002_v44, 0.5  ;;  %v567_v49 = vsel %vm539_vm6, 1, %v1194_v3  ;;  %v1007_v51 = vld [vmem:[%s1558_s1 + $0x1b8] sm:$0xff]  ;;  %v1006_v52 = vld [vmem:[%s1558_s1 + $0x1b0] sm:$0xff] }
  0x19   : > { %v566_v50 = vsel %vm538_vm7, 1, %v1194_v3  ;;  %vm541_vm8 = vcmp.gt.f32.partialorder %v1005_v47, 0.5  ;;  %vm540_vm9 = vcmp.gt.f32.partialorder %v1004_v48, 0.5  ;;  %vm543_vm10 = vcmp.gt.f32.partialorder %v1007_v51, 0.5  ;;  %s977_s11 = sshll.u32 %s1568_s18, 3  ;;  %s1140_s15 = smul.u32 336, %s1568_s18 }
  0x1a   : > { %v569_v53 = vsel %vm541_vm8, 1, %v1194_v3  ;;  %v568_v54 = vsel %vm540_vm9, 1, %v1194_v3  ;;  %vm542_vm11 = vcmp.gt.f32.partialorder %v1006_v52, 0.5  ;;  %v571_v55 = vsel %vm543_vm10, 1, %v1194_v3  ;;  %s309_s14 = scalar_lea.vmem %s1559_s2, %s977_s11  ;;  %v419_v6 = vld [vmem:[%s1560_s3] sm:$0x1] }
  0x1b   : > { %594 = vperm.xlu1 %1167, %v551_v17   ;;  %591 = vperm.xlu0 %1166, %v550_v18   ;;  %v570_v56 = vsel %vm542_vm11, 1, %v1194_v3  ;;  %v378_v57 = vld [vmem:[%s309_s14] sm:$0x1]  ;;  %v380_v59 = vld [vmem:[%s309_s14 + $0x1] sm:$0x1]  ;;  %s1368_s16 = sadd.s32 112, %s1140_s15 }
  0x1c   : > { %v379_v58 = vmul.f32 0.015625, %v378_v57  ;;  %v381_v60 = vmul.f32 0.015625, %v380_v59  ;;  %v388_v2 = vshrl.u32 %v387_v1, 7  ;;  %s1374_s23 = scalar_lea.vmem %s1557_s0, %s1368_s16  ;;  %vm824_vm12 = vcmask 125952   ;;  %s1414_s29 = scalar_lea.vmem %s1562_s5, %s1368_s16 }
  0x1d   : > { %v1126_v5 = vld [vmem:[%s1374_s23 + $0x8] sm:$0xff]   ;;  %v1071_v7 = vld [vmem:[%s1374_s23] sm:$0xff]   ;;  %v1127_v17 = vld [vmem:[%s1374_s23 + $0x10] sm:$0xff]  }
  0x1e   : > { %v382_v61 = vmul.f32 %v379_v58, %v379_v58  ;;  %v389_v3 = vsub.s32 0, %v388_v2  ;;  %v1076_v8 = vunpack.c.l.bf16 %v1126_v5  ;;  %v1072_v11 = vunpack.c.l.bf16 %v1071_v7  ;;  %v1128_v20 = vld [vmem:[%s1374_s23 + $0x18] sm:$0xff]   ;;  %v1130_v43 = vld [vmem:[%s1374_s23 + $0x28] sm:$0xff]  }
  0x1f   : > { %600 = vperm.xlu1 %1167, %v553_v21   ;;  %597 = vperm.xlu0 %1166, %v552_v22   ;;  %v1077_v12 = vunpack.c.h.bf16 %v1126_v5  ;;  %v1073_v16 = vunpack.c.h.bf16 %v1071_v7  ;;  %v1081_v18 = vunpack.c.h.bf16 %v1127_v17  ;;  %v1080_v19 = vunpack.c.l.bf16 %v1127_v17 }
  0x20   : > { %v383_v62 = vsub.f32 %v381_v60, %v382_v61  ;;  %v1381_v9 = vrot.slane %v379_v58, %v389_v3  ;;  %v1084_v27 = vunpack.c.l.bf16 %v1128_v20  ;;  %v1131_v58 = vld [vmem:[%s1374_s23 + $0x30] sm:$0xff]  }
  0x21   : > { %v1097_v5 = vunpack.c.h.bf16 %v1131_v58 }
  0x22   : > { %v384_v63 = vmax.f32 %v383_v62, 0.0  ;;  %v393_v13 = vsub.f32 %v1076_v8, %v1381_v9  ;;  %v391_v15 = vsub.f32 %v1072_v11, %v1381_v9  ;;  %v394_v23 = vsub.f32 %v1077_v12, %v1381_v9 }
  0x23   : > { %606 = vperm.xlu1 %1167, %v555_v25   ;;  %603 = vperm.xlu0 %1166, %v554_v26   ;;  %v392_v24 = vsub.f32 %v1073_v16, %v1381_v9  ;;  %v1396_v25 = vld [vmem:[%s1561_s4] ss:$0 sm:$0xff]  ;;  %v1085_v26 = vunpack.c.h.bf16 %v1128_v20  ;;  %v396_v28 = vsub.f32 %v1081_v18, %v1381_v9  ;;  %v404_v20 = vsub.f32 %v1097_v5, %v1381_v9 }
  0x24   : > { %v385_v0 = vadd.f32 1e-05, %v384_v63 }
  0x26   : > { %1168 = vrsqrt.f32 %v385_v0 }
  0x27   : > { %612 = vperm.xlu1 %1167, %v557_v29   ;;  %609 = vperm.xlu0 %1166, %v556_v30   ;;  %v395_v29 = vsub.f32 %v1080_v19, %v1381_v9  ;;  %v1129_v30 = vld [vmem:[%s1374_s23 + $0x20] sm:$0xff]  }
  0x28   : > { %v1089_v39 = vunpack.c.h.bf16 %v1129_v30  ;;  %v1088_v40 = vunpack.c.l.bf16 %v1129_v30 }
  0x2a   : > { %v400_v52 = vsub.f32 %v1089_v39, %v1381_v9 }
  0x2b   : > { %618 = vperm.xlu1 %1167, %v559_v33   ;;  %615 = vperm.xlu0 %1166, %v558_v34  }
  0x2f   : > { %624 = vperm.xlu1 %1167, %v561_v37   ;;  %621 = vperm.xlu0 %1166, %v560_v38   ;;  %v398_v37 = vsub.f32 %v1085_v26, %v1381_v9  ;;  %v397_v38 = vsub.f32 %v1084_v27, %v1381_v9  ;;  %v1133_v27 = vld [vmem:[%s1374_s23 + $0x40] sm:$0xff]  }
  0x30   : > { %v1104_v39 = vunpack.c.l.bf16 %v1133_v27 }
  0x33   : > { %630 = vperm.xlu1 %1167, %v563_v41   ;;  %627 = vperm.xlu0 %1166, %v562_v42   ;;  %v1169_v4 = vpop.eup %1168 }
  0x34   : > { %v420_v10 = vmul.f32 %v1169_v4, %v419_v6  ;;  %v1096_v6 = vunpack.c.l.bf16 %v1131_v58 }
  0x36   : > { %v1384_v14 = vrot.slane %v420_v10, %v389_v3  ;;  %v1132_v10 = vld [vmem:[%s1374_s23 + $0x38] sm:$0xff]  }
  0x37   : > { %636 = vperm.xlu1 %1167, %v565_v45   ;;  %633 = vperm.xlu0 %1166, %v564_v46  }
  0x38   : > { %v427_v21 = vmul.f32 %v1384_v14, %v393_v13  ;;  %v425_v22 = vmul.f32 %v1384_v14, %v391_v15  ;;  %v428_v33 = vmul.f32 %v1384_v14, %v394_v23  ;;  %v426_v34 = vmul.f32 %v1384_v14, %v392_v24 }
  0x39   : > { %v430_v41 = vmul.f32 %v1384_v14, %v396_v28  ;;  %v429_v42 = vmul.f32 %v1384_v14, %v395_v29  ;;  %v432_v57 = vmul.f32 %v1384_v14, %v398_v37  ;;  %v431_v62 = vmul.f32 %v1384_v14, %v397_v38 }
  0x3a   : > { %v462_v31 = vadd.f32 %v1396_v25, %v427_v21  ;;  %v460_v32 = vadd.f32 %v1396_v25, %v425_v22  ;;  %v463_v46 = vadd.f32 %v1396_v25, %v428_v33  ;;  %v461_v47 = vadd.f32 %v1396_v25, %v426_v34 }
  0x3b   : > { %642 = vperm.xlu1 %1167, %v567_v49   ;;  %639 = vperm.xlu0 %1166, %v566_v50   ;;  %v464_v61 = vadd.f32 %v1396_v25, %v429_v42  ;;  %v467_v7 = vadd.f32 %v1396_v25, %v432_v57  ;;  %v434_v8 = vmul.f32 %v1384_v14, %v400_v52  ;;  %v1101_v22 = vunpack.c.h.bf16 %v1132_v10  ;;  %v1134_v42 = vld [vmem:[%s1374_s23 + $0x48] sm:$0xff]   ;;  %v1135_v57 = vld [vmem:[%s1374_s23 + $0x50] sm:$0xff]  }
  0x3c   : > { %v466_v13 = vadd.f32 %v1396_v25, %v431_v62  ;;  %v403_v21 = vsub.f32 %v1096_v6, %v1381_v9  ;;  %v1100_v23 = vunpack.c.l.bf16 %v1132_v10  ;;  %v1105_v38 = vunpack.c.h.bf16 %v1133_v27 }
  0x3d   : > { %v469_v30 = vadd.f32 %v1396_v25, %v434_v8  ;;  %v407_v52 = vsub.f32 %v1104_v39, %v1381_v9  ;;  %v1112_v5 = vunpack.c.l.bf16 %v1135_v57  ;;  %v1136_v8 = vld [vmem:[%s1374_s23 + $0x58] sm:$0xff]  }
  0x3e   : > { %v405_v37 = vsub.f32 %v1100_v23, %v1381_v9 }
  0x3f   : > { %648 = vperm.xlu1 %1167, %v569_v53   ;;  %645 = vperm.xlu0 %1166, %v568_v54   ;;  %v399_v53 = vsub.f32 %v1088_v40, %v1381_v9  ;;  %v1093_v54 = vunpack.c.h.bf16 %v1130_v43  ;;  %v438_v40 = vmul.f32 %v1384_v14, %v404_v20  ;;  %v411_v20 = vsub.f32 %v1112_v5, %v1381_v9 }
  0x41   : > { %v402_v3 = vsub.f32 %v1093_v54, %v1381_v9  ;;  %v433_v15 = vmul.f32 %v1384_v14, %v399_v53  ;;  %v1109_v53 = vunpack.c.h.bf16 %v1134_v42  ;;  %v1108_v54 = vunpack.c.l.bf16 %v1134_v42 }
  0x43   : > { %654 = vperm.xlu1 %1167, %v571_v55   ;;  %651 = vperm.xlu0 %1166, %v570_v56   ;;  %v1092_v55 = vunpack.c.l.bf16 %v1130_v43  ;;  %v465_v56 = vadd.f32 %v1396_v25, %v430_v41  ;;  %v436_v24 = vmul.f32 %v1384_v14, %v402_v3  ;;  %v437_v41 = vmul.f32 %v1384_v14, %v403_v21 }
  0x44   : > { %v409_v3 = vsub.f32 %v1108_v54, %v1381_v9  ;;  %v1117_v21 = vunpack.c.h.bf16 %v1136_v8 }
  0x45   : > { %v401_v4 = vsub.f32 %v1092_v55, %v1381_v9  ;;  %v473_v55 = vadd.f32 %v1396_v25, %v438_v40 }
  0x47   : > { %v435_v26 = vmul.f32 %v1384_v14, %v401_v4  ;;  %v1113_v4 = vunpack.c.h.bf16 %v1135_v57 }
  0x8a   : > { %v580_v35 = vpop.permute.xlu1 %579  ;;  %v574_v36 = vpop.permute.xlu0 %573 }
  0x8b   : > { %vm658_vm13 = vcmp.eq.s32.totalorder %v580_v35, 1  ;;  %vm656_vm14 = vcmp.eq.s32.totalorder %v574_v36, 1  ;;  %v406_v36 = vsub.f32 %v1101_v22, %v1381_v9  ;;  %v1116_v22 = vunpack.c.l.bf16 %v1136_v8 }
  0x8c   : > { %v686_v44 = vsel %vm658_vm13, %v462_v31, 0.0  ;;  %v684_v45 = vsel %vm656_vm14, %v460_v32, 0.0  ;;  %v468_v31 = vadd.f32 %v1396_v25, %v433_v15 }
  0x8d   : > { %v1044_v48 = vpack.c.bf16 %v686_v44, %v686_v44  ;;  %v1042_v49 = vpack.c.bf16 %v684_v45, %v684_v45  ;;  %v471_v45 = vadd.f32 %v1396_v25, %v436_v24  ;;  %v443_v24 = vmul.f32 %v1384_v14, %v409_v3 }
  0x8e   : > { %v583_v50 = vpop.permute.xlu1 %582  ;;  %v577_v51 = vpop.permute.xlu0 %576 }
  0x8f   : > { %827 = vst.msk [vmem:[%s1414_s29 + $0x8] sm:$0xf] %vm824_vm12, %v1044_v48  ;;  %825 = vst.msk [vmem:[%s1414_s29] sm:$0xf] %vm824_vm12, %v1042_v49  ;;  %vm659_vm15 = vcmp.eq.s32.totalorder %v583_v50, 1  ;;  %vm657_vm0 = vcmp.eq.s32.totalorder %v577_v51, 1  ;;  %v408_v51 = vsub.f32 %v1105_v38, %v1381_v9 }
  0x90   : > { %v687_v59 = vsel %vm659_vm15, %v463_v46, 0.0  ;;  %v685_v60 = vsel %vm657_vm0, %v461_v47, 0.0  ;;  %v470_v46 = vadd.f32 %v1396_v25, %v435_v26  ;;  %v1137_v26 = vld [vmem:[%s1374_s23 + $0x60] sm:$0xff]  }
  0x91   : > { %v1045_v63 = vpack.c.bf16 %v687_v59, %v687_v59  ;;  %v1043_v0 = vpack.c.bf16 %v685_v60, %v685_v60  ;;  %v440_v60 = vmul.f32 %v1384_v14, %v406_v36  ;;  %v442_v6 = vmul.f32 %v1384_v14, %v408_v51 }
  0x92   : > { %v589_v1 = vpop.permute.xlu1 %588  ;;  %v586_v2 = vpop.permute.xlu0 %585  ;;  %v413_v36 = vsub.f32 %v1116_v22, %v1381_v9  ;;  %v1120_v38 = vunpack.c.l.bf16 %v1137_v26 }
  0x93   : > { %828 = vst.msk [vmem:[%s1414_s29 + $0xc] sm:$0xf] %vm824_vm12, %v1045_v63  ;;  %826 = vst.msk [vmem:[%s1414_s29 + $0x4] sm:$0xf] %vm824_vm12, %v1043_v0  ;;  %vm661_vm1 = vcmp.eq.s32.totalorder %v589_v1, 1  ;;  %vm660_vm2 = vcmp.eq.s32.totalorder %v586_v2, 1  ;;  %v410_v2 = vsub.f32 %v1109_v53, %v1381_v9 }
  0x94   : > { %v689_v11 = vsel %vm661_vm1, %v465_v56, 0.0  ;;  %v688_v12 = vsel %vm660_vm2, %v464_v61, 0.0  ;;  %v472_v56 = vadd.f32 %v1396_v25, %v437_v41  ;;  %v439_v61 = vmul.f32 %v1384_v14, %v405_v37  ;;  %v1138_v41 = vld [vmem:[%s1374_s23 + $0x68] sm:$0xff]  }
  0x95   : > { %v1047_v16 = vpack.c.bf16 %v689_v11, %v689_v11  ;;  %v1046_v17 = vpack.c.bf16 %v688_v12, %v688_v12  ;;  %v475_v12 = vadd.f32 %v1396_v25, %v440_v60  ;;  %v444_v23 = vmul.f32 %v1384_v14, %v410_v2 }
  0x96   : > { %v595_v18 = vpop.permute.xlu1 %594  ;;  %v592_v19 = vpop.permute.xlu0 %591  ;;  %v1121_v37 = vunpack.c.h.bf16 %v1137_v26  ;;  %v415_v51 = vsub.f32 %v1120_v38, %v1381_v9  ;;  %v1124_v53 = vunpack.c.l.bf16 %v1138_v41 }
  0x97   : > { %830 = vst.msk [vmem:[%s1414_s29 + $0x14] sm:$0xf] %vm824_vm12, %v1047_v16  ;;  %829 = vst.msk [vmem:[%s1414_s29 + $0x10] sm:$0xf] %vm824_vm12, %v1046_v17  ;;  %vm663_vm3 = vcmp.eq.s32.totalorder %v595_v18, 1  ;;  %vm662_vm4 = vcmp.eq.s32.totalorder %v592_v19, 1  ;;  %v412_v19 = vsub.f32 %v1113_v4, %v1381_v9  ;;  %v479_v39 = vadd.f32 %v1396_v25, %v444_v23 }
  0x98   : > { %v691_v28 = vsel %vm663_vm3, %v467_v7, 0.0  ;;  %v690_v29 = vsel %vm662_vm4, %v466_v13, 0.0  ;;  %v441_v7 = vmul.f32 %v1384_v14, %v407_v52  ;;  %v474_v13 = vadd.f32 %v1396_v25, %v439_v61 }
  0x99   : > { %v1049_v32 = vpack.c.bf16 %v691_v28, %v691_v28  ;;  %v1048_v33 = vpack.c.bf16 %v690_v29, %v690_v29  ;;  %v477_v29 = vadd.f32 %v1396_v25, %v442_v6  ;;  %v446_v40 = vmul.f32 %v1384_v14, %v412_v19 }
  0x9a   : > { %v601_v34 = vpop.permute.xlu1 %600  ;;  %v598_v35 = vpop.permute.xlu0 %597  ;;  %v1125_v52 = vunpack.c.h.bf16 %v1138_v41  ;;  %v417_v3 = vsub.f32 %v1124_v53, %v1381_v9 }
  0x9b   : > { %832 = vst.msk [vmem:[%s1414_s29 + $0x1c] sm:$0xf] %vm824_vm12, %v1049_v32  ;;  %831 = vst.msk [vmem:[%s1414_s29 + $0x18] sm:$0xf] %vm824_vm12, %v1048_v33  ;;  %vm665_vm5 = vcmp.eq.s32.totalorder %v601_v34, 1  ;;  %vm664_vm6 = vcmp.eq.s32.totalorder %v598_v35, 1  ;;  %v414_v35 = vsub.f32 %v1117_v21, %v1381_v9  ;;  %v481_v54 = vadd.f32 %v1396_v25, %v446_v40 }
  0x9c   : > { %v693_v43 = vsel %vm665_vm5, %v469_v30, 0.0  ;;  %v692_v44 = vsel %vm664_vm6, %v468_v31, 0.0  ;;  %v476_v30 = vadd.f32 %v1396_v25, %v441_v7  ;;  %v418_v2 = vsub.f32 %v1125_v52, %v1381_v9 }
  0x9d   : > { %v1051_v47 = vpack.c.bf16 %v693_v43, %v693_v43  ;;  %v1050_v48 = vpack.c.bf16 %v692_v44, %v692_v44  ;;  %v478_v44 = vadd.f32 %v1396_v25, %v443_v24 }
  0x9e   : > { %v607_v49 = vpop.permute.xlu1 %606  ;;  %v604_v50 = vpop.permute.xlu0 %603 }
  0x9f   : > { %834 = vst.msk [vmem:[%s1414_s29 + $0x24] sm:$0xf] %vm824_vm12, %v1051_v47  ;;  %833 = vst.msk [vmem:[%s1414_s29 + $0x20] sm:$0xf] %vm824_vm12, %v1050_v48  ;;  %vm667_vm7 = vcmp.eq.s32.totalorder %v607_v49, 1  ;;  %vm666_vm8 = vcmp.eq.s32.totalorder %v604_v50, 1  ;;  %v416_v50 = vsub.f32 %v1121_v37, %v1381_v9 }
  0xa0   : > { %v695_v58 = vsel %vm667_vm7, %v471_v45, 0.0  ;;  %v694_v59 = vsel %vm666_vm8, %v470_v46, 0.0  ;;  %v445_v45 = vmul.f32 %v1384_v14, %v411_v20 }
  0xa1   : > { %v1053_v62 = vpack.c.bf16 %v695_v58, %v695_v58  ;;  %v1052_v63 = vpack.c.bf16 %v694_v59, %v694_v59  ;;  %v447_v59 = vmul.f32 %v1384_v14, %v413_v36 }
  0xa2   : > { %v613_v0 = vpop.permute.xlu1 %612  ;;  %v610_v1 = vpop.permute.xlu0 %609  ;;  %v480_v58 = vadd.f32 %v1396_v25, %v445_v45 }
  0xa3   : > { %836 = vst.msk [vmem:[%s1414_s29 + $0x2c] sm:$0xf] %vm824_vm12, %v1053_v62  ;;  %835 = vst.msk [vmem:[%s1414_s29 + $0x28] sm:$0xf] %vm824_vm12, %v1052_v63  ;;  %vm669_vm9 = vcmp.eq.s32.totalorder %v613_v0, 1  ;;  %vm668_vm10 = vcmp.eq.s32.totalorder %v610_v1, 1  ;;  %v450_v0 = vmul.f32 %v1384_v14, %v416_v50  ;;  %v449_v1 = vmul.f32 %v1384_v14, %v415_v51 }
  0xa4   : > { %v697_v10 = vsel %vm669_vm9, %v473_v55, 0.0  ;;  %v696_v11 = vsel %vm668_vm10, %v472_v56, 0.0  ;;  %v448_v55 = vmul.f32 %v1384_v14, %v414_v35  ;;  %v482_v7 = vadd.f32 %v1396_v25, %v447_v59 }
  0xa5   : > { %v1055_v15 = vpack.c.bf16 %v697_v10, %v697_v10  ;;  %v1054_v16 = vpack.c.bf16 %v696_v11, %v696_v11  ;;  %v485_v9 = vadd.f32 %v1396_v25, %v450_v0 }
  0xa6   : > { %v619_v17 = vpop.permute.xlu1 %618  ;;  %v616_v18 = vpop.permute.xlu0 %615  ;;  %v483_v6 = vadd.f32 %v1396_v25, %v448_v55 }
  0xa7   : > { %838 = vst.msk [vmem:[%s1414_s29 + $0x34] sm:$0xf] %vm824_vm12, %v1055_v15  ;;  %837 = vst.msk [vmem:[%s1414_s29 + $0x30] sm:$0xf] %vm824_vm12, %v1054_v16  ;;  %vm671_vm11 = vcmp.eq.s32.totalorder %v619_v17, 1  ;;  %vm670_vm13 = vcmp.eq.s32.totalorder %v616_v18, 1  ;;  %v452_v17 = vmul.f32 %v1384_v14, %v418_v2  ;;  %v451_v18 = vmul.f32 %v1384_v14, %v417_v3 }
  0xa8   : > { %v699_v27 = vsel %vm671_vm11, %v475_v12, 0.0  ;;  %v698_v28 = vsel %vm670_vm13, %v474_v13, 0.0  ;;  %v484_v13 = vadd.f32 %v1396_v25, %v449_v1 }
  0xa9   : > { %v1057_v31 = vpack.c.bf16 %v699_v27, %v699_v27  ;;  %v1056_v32 = vpack.c.bf16 %v698_v28, %v698_v28  ;;  %v487_v26 = vadd.f32 %v1396_v25, %v452_v17  ;;  %v486_v14 = vadd.f32 %v1396_v25, %v451_v18 }
  0xaa   : > { %v625_v33 = vpop.permute.xlu1 %624  ;;  %v622_v34 = vpop.permute.xlu0 %621 }
  0xab   : > { %840 = vst.msk [vmem:[%s1414_s29 + $0x3c] sm:$0xf] %vm824_vm12, %v1057_v31  ;;  %839 = vst.msk [vmem:[%s1414_s29 + $0x38] sm:$0xf] %vm824_vm12, %v1056_v32  ;;  %vm673_vm14 = vcmp.eq.s32.totalorder %v625_v33, 1  ;;  %vm672_vm15 = vcmp.eq.s32.totalorder %v622_v34, 1 }
  0xac   : > { %v701_v42 = vsel %vm673_vm14, %v477_v29, 0.0  ;;  %v700_v43 = vsel %vm672_vm15, %v476_v30, 0.0 }
  0xad   : > { %v1059_v46 = vpack.c.bf16 %v701_v42, %v701_v42  ;;  %v1058_v47 = vpack.c.bf16 %v700_v43, %v700_v43 }
  0xae   : > { %v631_v48 = vpop.permute.xlu1 %630  ;;  %v628_v49 = vpop.permute.xlu0 %627 }
  0xaf   : > { %842 = vst.msk [vmem:[%s1414_s29 + $0x44] sm:$0xf] %vm824_vm12, %v1059_v46  ;;  %841 = vst.msk [vmem:[%s1414_s29 + $0x40] sm:$0xf] %vm824_vm12, %v1058_v47  ;;  %vm675_vm0 = vcmp.eq.s32.totalorder %v631_v48, 1  ;;  %vm674_vm1 = vcmp.eq.s32.totalorder %v628_v49, 1 }
  0xb0   : > { %v703_v56 = vsel %vm675_vm0, %v479_v39, 0.0  ;;  %v702_v57 = vsel %vm674_vm1, %v478_v44, 0.0 }
  0xb1   : > { %v1061_v60 = vpack.c.bf16 %v703_v56, %v703_v56  ;;  %v1060_v61 = vpack.c.bf16 %v702_v57, %v702_v57 }
  0xb2   : > { %v637_v62 = vpop.permute.xlu1 %636  ;;  %v634_v63 = vpop.permute.xlu0 %633 }
  0xb3   : > { %844 = vst.msk [vmem:[%s1414_s29 + $0x4c] sm:$0xf] %vm824_vm12, %v1061_v60  ;;  %843 = vst.msk [vmem:[%s1414_s29 + $0x48] sm:$0xf] %vm824_vm12, %v1060_v61  ;;  %vm677_vm2 = vcmp.eq.s32.totalorder %v637_v62, 1  ;;  %vm676_vm3 = vcmp.eq.s32.totalorder %v634_v63, 1 }
  0xb4   : > { %v705_v4 = vsel %vm677_vm2, %v481_v54, 0.0  ;;  %v704_v5 = vsel %vm676_vm3, %v480_v58, 0.0 }
  0xb5   : > { %v1063_v8 = vpack.c.bf16 %v705_v4, %v705_v4  ;;  %v1062_v10 = vpack.c.bf16 %v704_v5, %v704_v5 }
  0xb6   : > { %v643_v11 = vpop.permute.xlu1 %642  ;;  %v640_v12 = vpop.permute.xlu0 %639 }
  0xb7   : > { %846 = vst.msk [vmem:[%s1414_s29 + $0x54] sm:$0xf] %vm824_vm12, %v1063_v8  ;;  %845 = vst.msk [vmem:[%s1414_s29 + $0x50] sm:$0xf] %vm824_vm12, %v1062_v10  ;;  %vm679_vm4 = vcmp.eq.s32.totalorder %v643_v11, 1  ;;  %vm678_vm5 = vcmp.eq.s32.totalorder %v640_v12, 1 }
  0xb8   : > { %v707_v15 = vsel %vm679_vm4, %v483_v6, 0.0  ;;  %v706_v16 = vsel %vm678_vm5, %v482_v7, 0.0 }
  0xb9   : > { %v1065_v19 = vpack.c.bf16 %v707_v15, %v707_v15  ;;  %v1064_v20 = vpack.c.bf16 %v706_v16, %v706_v16 }
  0xba   : > { %v649_v21 = vpop.permute.xlu1 %648  ;;  %v646_v22 = vpop.permute.xlu0 %645 }
  0xbb   : > { %848 = vst.msk [vmem:[%s1414_s29 + $0x5c] sm:$0xf] %vm824_vm12, %v1065_v19  ;;  %847 = vst.msk [vmem:[%s1414_s29 + $0x58] sm:$0xf] %vm824_vm12, %v1064_v20  ;;  %vm681_vm6 = vcmp.eq.s32.totalorder %v649_v21, 1  ;;  %vm680_vm7 = vcmp.eq.s32.totalorder %v646_v22, 1 }
  0xbc   : > { %v709_v23 = vsel %vm681_vm6, %v485_v9, 0.0  ;;  %v708_v24 = vsel %vm680_vm7, %v484_v13, 0.0 }
  0xbd   : > { %v1067_v27 = vpack.c.bf16 %v709_v23, %v709_v23  ;;  %v1066_v28 = vpack.c.bf16 %v708_v24, %v708_v24 }
  0xbe   : > { %v655_v29 = vpop.permute.xlu1 %654  ;;  %v652_v30 = vpop.permute.xlu0 %651 }
  0xbf   : > { %850 = vst.msk [vmem:[%s1414_s29 + $0x64] sm:$0xf] %vm824_vm12, %v1067_v27  ;;  %849 = vst.msk [vmem:[%s1414_s29 + $0x60] sm:$0xf] %vm824_vm12, %v1066_v28  ;;  %vm683_vm8 = vcmp.eq.s32.totalorder %v655_v29, 1  ;;  %vm682_vm9 = vcmp.eq.s32.totalorder %v652_v30, 1 }
  0xc0   : > { %v711_v31 = vsel %vm683_vm8, %v487_v26, 0.0  ;;  %v710_v32 = vsel %vm682_vm9, %v486_v14, 0.0 }
  0xc1   : > { %v1069_v33 = vpack.c.bf16 %v711_v31, %v711_v31  ;;  %v1068_v34 = vpack.c.bf16 %v710_v32, %v710_v32 }
  0xc3   : > { %852 = vst.msk [vmem:[%s1414_s29 + $0x6c] sm:$0xf] %vm824_vm12, %v1069_v33  ;;  %851 = vst.msk [vmem:[%s1414_s29 + $0x68] sm:$0xf] %vm824_vm12, %v1068_v34 }
  0xc4 PF: > { %s15_s20 = sadd.s32 1, %s1192_s20   ;;  %s1563_s18 = smov %s1188_s19 }
  0xc5   : > { %p12_p5 = scmp.ge.s32.totalorder %s15_s20, 4   ;;  %s1564_s19 = smov %s1566_s21 }
  0xc7   :  { %14 = sbr.rel (!%p12_p5) target bundleno = 2 (0x2), region = 76 }

// kernel: unet_down_block_forward.11
= control target key start
LH: loop header
LB: loop body
LE: loop exit
PB: predicated region body
PF: predicated region fallthrough
CT: control target
= control target key end

     0   :  { %s1307_s21 = smov 0   ;;  %s1309_s22 = smov 0   ;;  %s1655_s0 = inlined_call_operand.vmem [shape: bf16[2,672,16], index: 0, kind: input, shape index: {}]   ;;  %s1656_s1 = inlined_call_operand.vmem [shape: f32[672,1], index: 1, kind: input, shape index: {}]   ;;  %s1657_s2 = inlined_call_operand.vmem [shape: f32[2,8,16], index: 2, kind: input, shape index: {}]   ;;  %s1658_s3 = inlined_call_operand.vmem [shape: f32[1,16], index: 3, kind: input, shape index: {}]   ;;  %s1659_s4 = inlined_call_operand.vmem [shape: f32[1,16], index: 4, kind: input, shape index: {}]   ;;  %s1660_s5 = inlined_call_operand.vmem [shape: bf16[2,672,16], index: 5, kind: input, shape index: {}]   ;;  %s1661_s6 = inlined_call_operand.vmem [shape: f32[2,672,16], index: 6, kind: output, shape index: {}]  }
   0x1   :  { %s1311_s23 = smov 0  }
   0x2 LB: > { %s28_s24 = sadd.s32 1, %s1265_s22  ;;  %p1035_p0 = scmp.ge.s32.totalorder %s1269_s23, 1  ;;  %s1269_s23 = sphi %s1311_s23, %s16_s23   ;;  %s1265_s22 = sphi %s1309_s22, %s1663_s22   ;;  %s1261_s21 = sphi %s1307_s21, %s1662_s21  }
   0x3   : > { %p30_p1 = scmp.ge.s32.totalorder %s28_s24, 2  ;;  %p284_p2 = scmp.lt.s32.totalorder %s1269_s23, 3 }
   0x5   : > { %s1665_s24 = smov (%p30_p1, %s28_s24), 0  ;;  %p285_p3 = pnand %p1035_p0, %p284_p2 }
   0x6   : > { %p346_p4 = scmp.lt.s32.totalorder (!%p285_p3), %s1261_s21, 1 }
   0x7   : > { %288 = sbr.rel (%p285_p3) target bundleno = 194 (0xc2), region = 44 }
   0xc   : > { %v1043_v0 = vld [vmem:[%s1656_s1 + $0xf0] sm:$0xff]  ;;  %v1041_v1 = vld [vmem:[%s1656_s1 + $0xe0] sm:$0xff]  ;;  %v1044_v2 = vld [vmem:[%s1656_s1 + $0xf8] sm:$0xff]  ;;  %v1271_v3 = vmov 0   ;;  %s1667_s21 = smov (!%p346_p4, %s1261_s21), 1 }
   0xd   : > { %1244 = vset.pattern.permute.xlu1 %v1271_v3  ;;  %1243 = vset.pattern.permute.xlu0 %v1271_v3  ;;  %vm672_vm0 = vcmp.gt.f32.partialorder %v1043_v0, 0.5  ;;  %vm670_vm1 = vcmp.gt.f32.partialorder %v1041_v1, 0.5  ;;  %vm673_vm2 = vcmp.gt.f32.partialorder %v1044_v2, 0.5  ;;  %v1042_v4 = vld [vmem:[%s1656_s1 + $0xe8] sm:$0xff]  ;;  %v1045_v8 = vld [vmem:[%s1656_s1 + $0x100] sm:$0xff]  ;;  %v1048_v11 = vld [vmem:[%s1656_s1 + $0x118] sm:$0xff]  ;;  %v457_v1 = vlaneseq }
   0xe   : > { %v700_v5 = vsel %vm672_vm0, 1, %v1271_v3  ;;  %v698_v6 = vsel %vm670_vm1, 1, %v1271_v3  ;;  %vm671_vm3 = vcmp.gt.f32.partialorder %v1042_v4, 0.5  ;;  %v1046_v7 = vld [vmem:[%s1656_s1 + $0x108] sm:$0xff]  ;;  %v701_v9 = vsel %vm673_vm2, 1, %v1271_v3  ;;  %v1047_v12 = vld [vmem:[%s1656_s1 + $0x110] sm:$0xff] }
   0xf   : > { %733 = vperm.xlu1 %1244, %v700_v5   ;;  %727 = vperm.xlu0 %1243, %v698_v6   ;;  %v699_v10 = vsel %vm671_vm3, 1, %v1271_v3  ;;  %vm675_vm4 = vcmp.gt.f32.partialorder %v1046_v7, 0.5  ;;  %vm674_vm5 = vcmp.gt.f32.partialorder %v1045_v8, 0.5  ;;  %vm677_vm6 = vcmp.gt.f32.partialorder %v1048_v11, 0.5  ;;  %v1050_v15 = vld [vmem:[%s1656_s1 + $0x128] sm:$0xff]  ;;  %v1049_v16 = vld [vmem:[%s1656_s1 + $0x120] sm:$0xff] }
  0x10   : > { %v703_v13 = vsel %vm675_vm4, 1, %v1271_v3  ;;  %v702_v14 = vsel %vm674_vm5, 1, %v1271_v3  ;;  %vm676_vm7 = vcmp.gt.f32.partialorder %v1047_v12, 0.5  ;;  %v705_v17 = vsel %vm677_vm6, 1, %v1271_v3  ;;  %v1052_v19 = vld [vmem:[%s1656_s1 + $0x138] sm:$0xff]  ;;  %v1051_v20 = vld [vmem:[%s1656_s1 + $0x130] sm:$0xff] }
  0x11   : > { %v704_v18 = vsel %vm676_vm7, 1, %v1271_v3  ;;  %vm679_vm8 = vcmp.gt.f32.partialorder %v1050_v15, 0.5  ;;  %vm678_vm9 = vcmp.gt.f32.partialorder %v1049_v16, 0.5  ;;  %vm681_vm10 = vcmp.gt.f32.partialorder %v1052_v19, 0.5  ;;  %v1054_v23 = vld [vmem:[%s1656_s1 + $0x148] sm:$0xff]  ;;  %v1053_v24 = vld [vmem:[%s1656_s1 + $0x140] sm:$0xff] }
  0x12   : > { %v707_v21 = vsel %vm679_vm8, 1, %v1271_v3  ;;  %v706_v22 = vsel %vm678_vm9, 1, %v1271_v3  ;;  %vm680_vm11 = vcmp.gt.f32.partialorder %v1051_v20, 0.5  ;;  %v709_v25 = vsel %vm681_vm10, 1, %v1271_v3  ;;  %v1056_v27 = vld [vmem:[%s1656_s1 + $0x158] sm:$0xff]  ;;  %v1055_v28 = vld [vmem:[%s1656_s1 + $0x150] sm:$0xff] }
  0x13   : > { %736 = vperm.xlu1 %1244, %v701_v9   ;;  %730 = vperm.xlu0 %1243, %v699_v10   ;;  %v708_v26 = vsel %vm680_vm11, 1, %v1271_v3  ;;  %vm683_vm12 = vcmp.gt.f32.partialorder %v1054_v23, 0.5  ;;  %vm682_vm13 = vcmp.gt.f32.partialorder %v1053_v24, 0.5  ;;  %vm685_vm14 = vcmp.gt.f32.partialorder %v1056_v27, 0.5  ;;  %v1058_v31 = vld [vmem:[%s1656_s1 + $0x168] sm:$0xff]  ;;  %v1057_v32 = vld [vmem:[%s1656_s1 + $0x160] sm:$0xff] }
  0x14   : > { %v711_v29 = vsel %vm683_vm12, 1, %v1271_v3  ;;  %v710_v30 = vsel %vm682_vm13, 1, %v1271_v3  ;;  %vm684_vm15 = vcmp.gt.f32.partialorder %v1055_v28, 0.5  ;;  %v713_v33 = vsel %vm685_vm14, 1, %v1271_v3  ;;  %v1060_v35 = vld [vmem:[%s1656_s1 + $0x178] sm:$0xff]  ;;  %v1059_v36 = vld [vmem:[%s1656_s1 + $0x170] sm:$0xff] }
  0x15   : > { %v712_v34 = vsel %vm684_vm15, 1, %v1271_v3  ;;  %vm687_vm0 = vcmp.gt.f32.partialorder %v1058_v31, 0.5  ;;  %vm686_vm1 = vcmp.gt.f32.partialorder %v1057_v32, 0.5  ;;  %vm689_vm2 = vcmp.gt.f32.partialorder %v1060_v35, 0.5  ;;  %v1062_v39 = vld [vmem:[%s1656_s1 + $0x188] sm:$0xff]  ;;  %v1061_v40 = vld [vmem:[%s1656_s1 + $0x180] sm:$0xff] }
  0x16   : > { %v715_v37 = vsel %vm687_vm0, 1, %v1271_v3  ;;  %v714_v38 = vsel %vm686_vm1, 1, %v1271_v3  ;;  %vm688_vm3 = vcmp.gt.f32.partialorder %v1059_v36, 0.5  ;;  %v717_v41 = vsel %vm689_vm2, 1, %v1271_v3  ;;  %v1064_v43 = vld [vmem:[%s1656_s1 + $0x198] sm:$0xff]  ;;  %v1063_v44 = vld [vmem:[%s1656_s1 + $0x190] sm:$0xff] }
  0x17   : > { %742 = vperm.xlu1 %1244, %v703_v13   ;;  %739 = vperm.xlu0 %1243, %v702_v14   ;;  %v716_v42 = vsel %vm688_vm3, 1, %v1271_v3  ;;  %vm691_vm4 = vcmp.gt.f32.partialorder %v1062_v39, 0.5  ;;  %vm690_vm5 = vcmp.gt.f32.partialorder %v1061_v40, 0.5  ;;  %vm693_vm6 = vcmp.gt.f32.partialorder %v1064_v43, 0.5  ;;  %v1066_v47 = vld [vmem:[%s1656_s1 + $0x1a8] sm:$0xff]  ;;  %v1065_v48 = vld [vmem:[%s1656_s1 + $0x1a0] sm:$0xff] }
  0x18   : > { %v719_v45 = vsel %vm691_vm4, 1, %v1271_v3  ;;  %v718_v46 = vsel %vm690_vm5, 1, %v1271_v3  ;;  %vm692_vm7 = vcmp.gt.f32.partialorder %v1063_v44, 0.5  ;;  %v721_v49 = vsel %vm693_vm6, 1, %v1271_v3  ;;  %v1068_v51 = vld [vmem:[%s1656_s1 + $0x1b8] sm:$0xff]  ;;  %v1067_v52 = vld [vmem:[%s1656_s1 + $0x1b0] sm:$0xff] }
  0x19   : > { %v720_v50 = vsel %vm692_vm7, 1, %v1271_v3  ;;  %vm695_vm8 = vcmp.gt.f32.partialorder %v1066_v47, 0.5  ;;  %vm694_vm9 = vcmp.gt.f32.partialorder %v1065_v48, 0.5  ;;  %vm697_vm10 = vcmp.gt.f32.partialorder %v1068_v51, 0.5  ;;  %s1037_s17 = sshll.u32 %s1667_s21, 3  ;;  %s1216_s25 = smul.u32 336, %s1667_s21 }
  0x1a   : > { %v723_v53 = vsel %vm695_vm8, 1, %v1271_v3  ;;  %v722_v54 = vsel %vm694_vm9, 1, %v1271_v3  ;;  %vm696_vm11 = vcmp.gt.f32.partialorder %v1067_v52, 0.5  ;;  %v725_v55 = vsel %vm697_vm10, 1, %v1271_v3  ;;  %s367_s20 = scalar_lea.vmem %s1657_s2, %s1037_s17  ;;  %v489_v6 = vld [vmem:[%s1658_s3] sm:$0x1] }
  0x1b   : > { %748 = vperm.xlu1 %1244, %v705_v17   ;;  %745 = vperm.xlu0 %1243, %v704_v18   ;;  %v724_v56 = vsel %vm696_vm11, 1, %v1271_v3  ;;  %v448_v57 = vld [vmem:[%s367_s20] sm:$0x1]  ;;  %v450_v59 = vld [vmem:[%s367_s20 + $0x1] sm:$0x1]  ;;  %s1072_s26 = sadd.s32 112, %s1216_s25 }
  0x1c   : > { %v449_v58 = vmul.f32 0.015625, %v448_v57  ;;  %v451_v60 = vmul.f32 0.015625, %v450_v59  ;;  %v458_v2 = vshrl.u32 %v457_v1, 7  ;;  %s1453_s29 = scalar_lea.vmem %s1655_s0, %s1072_s26  ;;  %s1470_s10 = scalar_lea.vmem %s1660_s5, %s1072_s26  ;;  %v1482_v27 = vld [vmem:[%s1659_s4] ss:$0 sm:$0xff]  ;;  %vm866_vm12 = vcmask 130048  }
  0x1d   : > { %v1189_v5 = vld [vmem:[%s1453_s29 + $0x8] sm:$0xff]   ;;  %v1078_v7 = vld [vmem:[%s1453_s29] sm:$0xff]   ;;  %v1190_v13 = vld [vmem:[%s1453_s29 + $0x10] sm:$0xff]   ;;  %s1217_s13 = smul.u32 672, %s1667_s21 }
  0x1e   : > { %v452_v61 = vmul.f32 %v449_v58, %v449_v58  ;;  %v459_v3 = vsub.s32 0, %v458_v2  ;;  %v1083_v8 = vunpack.c.l.bf16 %v1189_v5  ;;  %v1079_v11 = vunpack.c.l.bf16 %v1078_v7  ;;  %v1191_v20 = vld [vmem:[%s1453_s29 + $0x18] sm:$0xff]   ;;  %v1134_v24 = vld [vmem:[%s1470_s10] sm:$0xff]   ;;  %v1193_v44 = vld [vmem:[%s1453_s29 + $0x28] sm:$0xff]  }
  0x1f   : > { %754 = vperm.xlu1 %1244, %v707_v21   ;;  %751 = vperm.xlu0 %1243, %v706_v22   ;;  %v1084_v12 = vunpack.c.h.bf16 %v1189_v5  ;;  %v1080_v17 = vunpack.c.h.bf16 %v1078_v7  ;;  %v1088_v18 = vunpack.c.h.bf16 %v1190_v13  ;;  %v1087_v19 = vunpack.c.l.bf16 %v1190_v13  ;;  %v1202_v22 = vld [vmem:[%s1470_s10 + $0x8] sm:$0xff]   ;;  %s1076_s21 = sadd.s32 224, %s1217_s13 }
  0x20   : > { %v453_v62 = vsub.f32 %v451_v60, %v452_v61  ;;  %v1460_v9 = vrot.slane %v449_v58, %v459_v3  ;;  %v1139_v31 = vunpack.c.l.bf16 %v1202_v22  ;;  %v1135_v32 = vunpack.c.l.bf16 %v1134_v24  ;;  %s1504_s16 = scalar_lea.vmem %s1661_s6, %s1076_s21  ;;  %v1204_v61 = vld [vmem:[%s1470_s10 + $0x18] sm:$0xff]  }
  0x21   : > { %v1148_v7 = vunpack.c.h.bf16 %v1204_v61 }
  0x22   : > { %v454_v63 = vmax.f32 %v453_v62, 0.0  ;;  %v463_v14 = vsub.f32 %v1083_v8, %v1460_v9  ;;  %v461_v16 = vsub.f32 %v1079_v11, %v1460_v9  ;;  %v466_v28 = vsub.f32 %v1088_v18, %v1460_v9 }
  0x23   : > { %760 = vperm.xlu1 %1244, %v709_v25   ;;  %757 = vperm.xlu0 %1243, %v708_v26   ;;  %v464_v25 = vsub.f32 %v1084_v12, %v1460_v9  ;;  %v462_v26 = vsub.f32 %v1080_v17, %v1460_v9  ;;  %v1147_v8 = vunpack.c.l.bf16 %v1204_v61  ;;  %v1205_v17 = vld [vmem:[%s1470_s10 + $0x20] sm:$0xff]  }
  0x24   : > { %v455_v0 = vadd.f32 1e-05, %v454_v63  ;;  %v1099_v63 = vunpack.c.l.bf16 %v1193_v44 }
  0x26   : > { %1245 = vrsqrt.f32 %v455_v0  ;;  %v1194_v0 = vld [vmem:[%s1453_s29 + $0x30] sm:$0xff]   ;;  %v471_v18 = vsub.f32 %v1099_v63, %v1460_v9 }
  0x27   : > { %766 = vperm.xlu1 %1244, %v711_v29   ;;  %763 = vperm.xlu0 %1243, %v710_v30   ;;  %v1092_v29 = vunpack.c.h.bf16 %v1191_v20  ;;  %v1192_v30 = vld [vmem:[%s1453_s29 + $0x20] sm:$0xff]   ;;  %v1104_v11 = vunpack.c.h.bf16 %v1194_v0 }
  0x28   : > { %v1096_v39 = vunpack.c.h.bf16 %v1192_v30  ;;  %v1095_v43 = vunpack.c.l.bf16 %v1192_v30 }
  0x29   : > { %v474_v30 = vsub.f32 %v1104_v11, %v1460_v9 }
  0x2a   : > { %v469_v62 = vsub.f32 %v1095_v43, %v1460_v9 }
  0x2b   : > { %772 = vperm.xlu1 %1244, %v713_v33   ;;  %769 = vperm.xlu0 %1243, %v712_v34   ;;  %v465_v33 = vsub.f32 %v1087_v19, %v1460_v9  ;;  %v1091_v34 = vunpack.c.l.bf16 %v1191_v20  ;;  %v1103_v19 = vunpack.c.l.bf16 %v1194_v0  ;;  %v1195_v20 = vld [vmem:[%s1453_s29 + $0x38] sm:$0xff]  }
  0x2d   : > { %v467_v48 = vsub.f32 %v1091_v34, %v1460_v9 }
  0x2f   : > { %778 = vperm.xlu1 %1244, %v715_v37   ;;  %775 = vperm.xlu0 %1243, %v714_v38  }
  0x33   : > { %784 = vperm.xlu1 %1244, %v717_v41   ;;  %781 = vperm.xlu0 %1243, %v716_v42   ;;  %v1246_v4 = vpop.eup %1245  ;;  %v1203_v41 = vld [vmem:[%s1470_s10 + $0x10] sm:$0xff]   ;;  %v468_v42 = vsub.f32 %v1092_v29, %v1460_v9  ;;  %v1151_v29 = vunpack.c.l.bf16 %v1205_v17 }
  0x34   : > { %v490_v10 = vmul.f32 %v1246_v4, %v489_v6 }
  0x36   : > { %v1464_v15 = vrot.slane %v490_v10, %v459_v3 }
  0x37   : > { %790 = vperm.xlu1 %1244, %v719_v45   ;;  %787 = vperm.xlu0 %1243, %v718_v46   ;;  %v1140_v45 = vunpack.c.h.bf16 %v1202_v22  ;;  %v1136_v46 = vunpack.c.h.bf16 %v1134_v24 }
  0x38   : > { %v497_v21 = vmul.f32 %v1464_v15, %v463_v14  ;;  %v495_v23 = vmul.f32 %v1464_v15, %v461_v16  ;;  %v498_v37 = vmul.f32 %v1464_v15, %v464_v25  ;;  %v496_v38 = vmul.f32 %v1464_v15, %v462_v26 }
  0x39   : > { %v500_v40 = vmul.f32 %v1464_v15, %v466_v28  ;;  %v499_v47 = vmul.f32 %v1464_v15, %v465_v33  ;;  %v502_v60 = vmul.f32 %v1464_v15, %v468_v42  ;;  %v501_v2 = vmul.f32 %v1464_v15, %v467_v48 }
  0x3a   : > { %v532_v35 = vadd.f32 %v1482_v27, %v497_v21  ;;  %v530_v36 = vadd.f32 %v1482_v27, %v495_v23  ;;  %v533_v51 = vadd.f32 %v1482_v27, %v498_v37  ;;  %v531_v52 = vadd.f32 %v1482_v27, %v496_v38 }
  0x3b   : > { %796 = vperm.xlu1 %1244, %v721_v49   ;;  %793 = vperm.xlu0 %1243, %v720_v50   ;;  %v535_v59 = vadd.f32 %v1482_v27, %v500_v40  ;;  %v534_v1 = vadd.f32 %v1482_v27, %v499_v47  ;;  %v537_v16 = vadd.f32 %v1482_v27, %v502_v60  ;;  %v1152_v28 = vunpack.c.h.bf16 %v1205_v17 }
  0x3c   : > { %v616_v49 = vadd.f32 %v1139_v31, %v532_v35  ;;  %v614_v50 = vadd.f32 %v1135_v32, %v530_v36  ;;  %v617_v5 = vadd.f32 %v1140_v45, %v533_v51  ;;  %v615_v6 = vadd.f32 %v1136_v46, %v531_v52  ;;  %v1206_v36 = vld [vmem:[%s1470_s10 + $0x28] sm:$0xff]  }
  0x3d   : > { %v536_v22 = vadd.f32 %v1482_v27, %v501_v2  ;;  %v503_v26 = vmul.f32 %v1464_v15, %v469_v62  ;;  %v1108_v31 = vunpack.c.h.bf16 %v1195_v20  ;;  %v621_v34 = vadd.f32 %v1148_v7, %v537_v16 }
  0x3e   : > { %v473_v37 = vsub.f32 %v1103_v19, %v1460_v9  ;;  %v1107_v38 = vunpack.c.l.bf16 %v1195_v20  ;;  %v1156_v46 = vunpack.c.h.bf16 %v1206_v36  ;;  %v1155_v47 = vunpack.c.l.bf16 %v1206_v36 }
  0x3f   : > { %802 = vperm.xlu1 %1244, %v723_v53   ;;  %799 = vperm.xlu0 %1243, %v722_v54   ;;  %v1144_v53 = vunpack.c.h.bf16 %v1203_v41  ;;  %v1143_v54 = vunpack.c.l.bf16 %v1203_v41  ;;  %v620_v40 = vadd.f32 %v1147_v8, %v536_v22  ;;  %v505_v41 = vmul.f32 %v1464_v15, %v471_v18  ;;  %v1208_v8 = vld [vmem:[%s1470_s10 + $0x38] sm:$0xff]  }
  0x40   : > { %v538_v45 = vadd.f32 %v1482_v27, %v503_v26  ;;  %v476_v48 = vsub.f32 %v1108_v31, %v1460_v9  ;;  %v508_v52 = vmul.f32 %v1464_v15, %v474_v30  ;;  %v1164_v20 = vunpack.c.h.bf16 %v1208_v8 }
  0x41   : > { %v619_v14 = vadd.f32 %v1144_v53, %v535_v59  ;;  %v618_v21 = vadd.f32 %v1143_v54, %v534_v1  ;;  %v1207_v53 = vld [vmem:[%s1470_s10 + $0x30] sm:$0xff]   ;;  %v507_v54 = vmul.f32 %v1464_v15, %v473_v37  ;;  %v540_v59 = vadd.f32 %v1482_v27, %v505_v41 }
  0x42   : > { %v622_v63 = vadd.f32 %v1151_v29, %v538_v45  ;;  %v1160_v0 = vunpack.c.h.bf16 %v1207_v53  ;;  %v1159_v1 = vunpack.c.l.bf16 %v1207_v53  ;;  %v510_v7 = vmul.f32 %v1464_v15, %v476_v48  ;;  %v1209_v29 = vld [vmem:[%s1470_s10 + $0x40] sm:$0xff]  }
  0x43   : > { %808 = vperm.xlu1 %1244, %v725_v55   ;;  %805 = vperm.xlu0 %1243, %v724_v56   ;;  %v470_v55 = vsub.f32 %v1096_v39, %v1460_v9  ;;  %v1100_v56 = vunpack.c.h.bf16 %v1193_v44  ;;  %v1196_v39 = vld [vmem:[%s1453_s29 + $0x40] sm:$0xff]   ;;  %v624_v18 = vadd.f32 %v1155_v47, %v540_v59  ;;  %v1210_v47 = vld [vmem:[%s1470_s10 + $0x48] sm:$0xff]  }
  0x45   : > { %v472_v10 = vsub.f32 %v1100_v56, %v1460_v9  ;;  %v504_v25 = vmul.f32 %v1464_v15, %v470_v55  ;;  %v475_v55 = vsub.f32 %v1107_v38, %v1460_v9  ;;  %v1111_v56 = vunpack.c.l.bf16 %v1196_v39 }
  0x47   : > { %v506_v35 = vmul.f32 %v1464_v15, %v472_v10  ;;  %v539_v44 = vadd.f32 %v1482_v27, %v504_v25  ;;  %v477_v10 = vsub.f32 %v1111_v56, %v1460_v9  ;;  %v509_v19 = vmul.f32 %v1464_v15, %v475_v55 }
  0x49   : > { %v623_v62 = vadd.f32 %v1152_v28, %v539_v44  ;;  %v545_v28 = vadd.f32 %v1482_v27, %v510_v7  ;;  %v544_v37 = vadd.f32 %v1482_v27, %v509_v19  ;;  %v511_v38 = vmul.f32 %v1464_v15, %v477_v10 }
  0x4b   : > { %v629_v45 = vadd.f32 %v1164_v20, %v545_v28  ;;  %v546_v56 = vadd.f32 %v1482_v27, %v511_v38 }
  0x8a   : > { %v734_v57 = vpop.permute.xlu1 %733  ;;  %v728_v58 = vpop.permute.xlu0 %727 }
  0x8b   : > { %vm812_vm13 = vcmp.eq.s32.totalorder %v734_v57, 1  ;;  %vm810_vm14 = vcmp.eq.s32.totalorder %v728_v58, 1  ;;  %v1197_v57 = vld [vmem:[%s1453_s29 + $0x48] sm:$0xff]   ;;  %v541_v58 = vadd.f32 %v1482_v27, %v506_v35 }
  0x8c   : > { %v840_v3 = vsel %vm812_vm13, %v616_v49, 0.0  ;;  %v838_v4 = vsel %vm810_vm14, %v614_v50, 0.0  ;;  %v1112_v49 = vunpack.c.h.bf16 %v1196_v39  ;;  %v1115_v11 = vunpack.c.l.bf16 %v1197_v57 }
  0x8d   : > { %869 = vst.msk [vmem:[%s1504_s16 + $0x10] sm:$0xff] %vm866_vm12, %v840_v3  ;;  %867 = vst.msk [vmem:[%s1504_s16] sm:$0xff] %vm866_vm12, %v838_v4  ;;  %v1116_v3 = vunpack.c.h.bf16 %v1197_v57  ;;  %v1168_v39 = vunpack.c.h.bf16 %v1209_v29  ;;  %v1172_v57 = vunpack.c.h.bf16 %v1210_v47 }
  0x8e   : > { %v737_v12 = vpop.permute.xlu1 %736  ;;  %v731_v13 = vpop.permute.xlu0 %730  ;;  %v478_v2 = vsub.f32 %v1112_v49, %v1460_v9  ;;  %v479_v30 = vsub.f32 %v1115_v11, %v1460_v9 }
  0x8f   : > { %vm813_vm15 = vcmp.eq.s32.totalorder %v737_v12, 1  ;;  %vm811_vm0 = vcmp.eq.s32.totalorder %v731_v13, 1  ;;  %v1198_v12 = vld [vmem:[%s1453_s29 + $0x50] sm:$0xff]   ;;  %v625_v13 = vadd.f32 %v1156_v46, %v541_v58  ;;  %v480_v22 = vsub.f32 %v1116_v3, %v1460_v9 }
  0x90   : > { %v841_v23 = vsel %vm813_vm15, %v617_v5, 0.0  ;;  %v839_v24 = vsel %vm811_vm0, %v615_v6, 0.0  ;;  %v543_v6 = vadd.f32 %v1482_v27, %v508_v52  ;;  %v1119_v31 = vunpack.c.l.bf16 %v1198_v12 }
  0x91   : > { %870 = vst.msk [vmem:[%s1504_s16 + $0x18] sm:$0xff] %vm866_vm12, %v841_v23  ;;  %868 = vst.msk [vmem:[%s1504_s16 + $0x8] sm:$0xff] %vm866_vm12, %v839_v24  ;;  %v1120_v23 = vunpack.c.h.bf16 %v1198_v12  ;;  %v514_v46 = vmul.f32 %v1464_v15, %v480_v22  ;;  %v513_v52 = vmul.f32 %v1464_v15, %v479_v30  ;;  %v1171_v58 = vunpack.c.l.bf16 %v1210_v47 }
  0x92   : > { %v743_v32 = vpop.permute.xlu1 %742  ;;  %v740_v33 = vpop.permute.xlu0 %739  ;;  %v627_v26 = vadd.f32 %v1160_v0, %v543_v6  ;;  %v481_v49 = vsub.f32 %v1119_v31, %v1460_v9  ;;  %v1211_v0 = vld [vmem:[%s1470_s10 + $0x50] sm:$0xff]   ;;  %v1201_v6 = vld [vmem:[%s1453_s29 + $0x68] sm:$0xff]  }
  0x93   : > { %vm815_vm1 = vcmp.eq.s32.totalorder %v743_v32, 1  ;;  %vm814_vm2 = vcmp.eq.s32.totalorder %v740_v33, 1  ;;  %v1199_v32 = vld [vmem:[%s1453_s29 + $0x58] sm:$0xff]   ;;  %v482_v48 = vsub.f32 %v1120_v23, %v1460_v9  ;;  %v1176_v12 = vunpack.c.h.bf16 %v1211_v0 }
  0x94   : > { %v843_v42 = vsel %vm815_vm1, %v619_v14, 0.0  ;;  %v842_v43 = vsel %vm814_vm2, %v618_v21, 0.0  ;;  %v542_v14 = vadd.f32 %v1482_v27, %v507_v54  ;;  %v1163_v21 = vunpack.c.l.bf16 %v1208_v8 }
  0x95   : > { %872 = vst.msk [vmem:[%s1504_s16 + $0x28] sm:$0xff] %vm866_vm12, %v843_v42  ;;  %871 = vst.msk [vmem:[%s1504_s16 + $0x20] sm:$0xff] %vm866_vm12, %v842_v43  ;;  %v1124_v41 = vunpack.c.h.bf16 %v1199_v32  ;;  %v1123_v42 = vunpack.c.l.bf16 %v1199_v32  ;;  %v1132_v22 = vunpack.c.h.bf16 %v1201_v6  ;;  %v1131_v23 = vunpack.c.l.bf16 %v1201_v6 }
  0x96   : > { %v749_v50 = vpop.permute.xlu1 %748  ;;  %v746_v51 = vpop.permute.xlu0 %745  ;;  %v626_v33 = vadd.f32 %v1159_v1, %v542_v14  ;;  %v628_v55 = vadd.f32 %v1163_v21, %v544_v37  ;;  %v515_v1 = vmul.f32 %v1464_v15, %v481_v49  ;;  %v1212_v21 = vld [vmem:[%s1470_s10 + $0x58] sm:$0xff]  }
  0x97   : > { %vm817_vm3 = vcmp.eq.s32.totalorder %v749_v50, 1  ;;  %vm816_vm4 = vcmp.eq.s32.totalorder %v746_v51, 1  ;;  %v1200_v50 = vld [vmem:[%s1453_s29 + $0x60] sm:$0xff]   ;;  %v483_v3 = vsub.f32 %v1123_v42, %v1460_v9  ;;  %v1180_v31 = vunpack.c.h.bf16 %v1212_v21 }
  0x98   : > { %v845_v60 = vsel %vm817_vm3, %v621_v34, 0.0  ;;  %v844_v61 = vsel %vm816_vm4, %v620_v40, 0.0  ;;  %v512_v34 = vmul.f32 %v1464_v15, %v478_v2  ;;  %v1167_v40 = vunpack.c.l.bf16 %v1209_v29 }
  0x99   : > { %874 = vst.msk [vmem:[%s1504_s16 + $0x38] sm:$0xff] %vm866_vm12, %v845_v60  ;;  %873 = vst.msk [vmem:[%s1504_s16 + $0x30] sm:$0xff] %vm866_vm12, %v844_v61  ;;  %v1128_v59 = vunpack.c.h.bf16 %v1200_v50  ;;  %v1127_v60 = vunpack.c.l.bf16 %v1200_v50  ;;  %v484_v2 = vsub.f32 %v1124_v41, %v1460_v9  ;;  %v517_v30 = vmul.f32 %v1464_v15, %v483_v3  ;;  %v1213_v41 = vld [vmem:[%s1470_s10 + $0x60] sm:$0xff]  }
  0x9a   : > { %v755_v4 = vpop.permute.xlu1 %754  ;;  %v752_v5 = vpop.permute.xlu0 %751  ;;  %v547_v51 = vadd.f32 %v1482_v27, %v512_v34  ;;  %v630_v11 = vadd.f32 %v1167_v40, %v546_v56  ;;  %v1179_v32 = vunpack.c.l.bf16 %v1212_v21  ;;  %v488_v37 = vsub.f32 %v1132_v22, %v1460_v9 }
  0x9b   : > { %vm819_vm5 = vcmp.eq.s32.totalorder %v755_v4, 1  ;;  %vm818_vm6 = vcmp.eq.s32.totalorder %v752_v5, 1  ;;  %v549_v4 = vadd.f32 %v1482_v27, %v514_v46  ;;  %v548_v5 = vadd.f32 %v1482_v27, %v513_v52  ;;  %v1214_v52 = vld [vmem:[%s1470_s10 + $0x68] sm:$0xff]  }
  0x9c   : > { %v847_v16 = vsel %vm819_vm5, %v623_v62, 0.0  ;;  %v846_v17 = vsel %vm818_vm6, %v622_v63, 0.0  ;;  %v516_v63 = vmul.f32 %v1464_v15, %v482_v48  ;;  %v631_v10 = vadd.f32 %v1168_v39, %v547_v51 }
  0x9d   : > { %876 = vst.msk [vmem:[%s1504_s16 + $0x48] sm:$0xff] %vm866_vm12, %v847_v16  ;;  %875 = vst.msk [vmem:[%s1504_s16 + $0x40] sm:$0xff] %vm866_vm12, %v846_v17  ;;  %v486_v14 = vsub.f32 %v1128_v59, %v1460_v9  ;;  %v485_v16 = vsub.f32 %v1127_v60, %v1460_v9  ;;  %v518_v20 = vmul.f32 %v1464_v15, %v484_v2  ;;  %v1184_v48 = vunpack.c.h.bf16 %v1213_v41 }
  0x9e   : > { %v761_v24 = vpop.permute.xlu1 %760  ;;  %v758_v25 = vpop.permute.xlu0 %757  ;;  %v551_v19 = vadd.f32 %v1482_v27, %v516_v63  ;;  %v632_v29 = vadd.f32 %v1171_v58, %v548_v5  ;;  %v487_v38 = vsub.f32 %v1131_v23, %v1460_v9  ;;  %v1183_v49 = vunpack.c.l.bf16 %v1213_v41 }
  0x9f   : > { %vm821_vm7 = vcmp.eq.s32.totalorder %v761_v24, 1  ;;  %vm820_vm8 = vcmp.eq.s32.totalorder %v758_v25, 1  ;;  %v633_v24 = vadd.f32 %v1172_v57, %v549_v4  ;;  %v550_v25 = vadd.f32 %v1482_v27, %v515_v1 }
  0xa0   : > { %v849_v35 = vsel %vm821_vm7, %v625_v13, 0.0  ;;  %v848_v36 = vsel %vm820_vm8, %v624_v18, 0.0  ;;  %v1175_v13 = vunpack.c.l.bf16 %v1211_v0  ;;  %v520_v40 = vmul.f32 %v1464_v15, %v486_v14 }
  0xa1   : > { %878 = vst.msk [vmem:[%s1504_s16 + $0x58] sm:$0xff] %vm866_vm12, %v849_v35  ;;  %877 = vst.msk [vmem:[%s1504_s16 + $0x50] sm:$0xff] %vm866_vm12, %v848_v36  ;;  %v635_v35 = vadd.f32 %v1176_v12, %v551_v19  ;;  %v553_v36 = vadd.f32 %v1482_v27, %v518_v20  ;;  %v522_v50 = vmul.f32 %v1464_v15, %v488_v37  ;;  %v1188_v60 = vunpack.c.h.bf16 %v1214_v52 }
  0xa2   : > { %v767_v43 = vpop.permute.xlu1 %766  ;;  %v764_v44 = vpop.permute.xlu0 %763  ;;  %v634_v39 = vadd.f32 %v1175_v13, %v550_v25  ;;  %v555_v51 = vadd.f32 %v1482_v27, %v520_v40 }
  0xa3   : > { %vm823_vm9 = vcmp.eq.s32.totalorder %v767_v43, 1  ;;  %vm822_vm10 = vcmp.eq.s32.totalorder %v764_v44, 1  ;;  %v552_v44 = vadd.f32 %v1482_v27, %v517_v30  ;;  %v637_v47 = vadd.f32 %v1180_v31, %v553_v36 }
  0xa4   : > { %v851_v53 = vsel %vm823_vm9, %v627_v26, 0.0  ;;  %v850_v54 = vsel %vm822_vm10, %v626_v33, 0.0  ;;  %v639_v1 = vadd.f32 %v1184_v48, %v555_v51 }
  0xa5   : > { %880 = vst.msk [vmem:[%s1504_s16 + $0x68] sm:$0xff] %vm866_vm12, %v851_v53  ;;  %879 = vst.msk [vmem:[%s1504_s16 + $0x60] sm:$0xff] %vm866_vm12, %v850_v54  ;;  %v521_v53 = vmul.f32 %v1464_v15, %v487_v38  ;;  %v636_v56 = vadd.f32 %v1179_v32, %v552_v44 }
  0xa6   : > { %v773_v61 = vpop.permute.xlu1 %772  ;;  %v770_v62 = vpop.permute.xlu0 %769 }
  0xa7   : > { %vm825_vm11 = vcmp.eq.s32.totalorder %v773_v61, 1  ;;  %vm824_vm13 = vcmp.eq.s32.totalorder %v770_v62, 1  ;;  %v1187_v61 = vunpack.c.l.bf16 %v1214_v52  ;;  %v557_v62 = vadd.f32 %v1482_v27, %v522_v50 }
  0xa8   : > { %v853_v7 = vsel %vm825_vm11, %v629_v45, 0.0  ;;  %v852_v8 = vsel %vm824_vm13, %v628_v55, 0.0  ;;  %v519_v45 = vmul.f32 %v1464_v15, %v485_v16  ;;  %v556_v15 = vadd.f32 %v1482_v27, %v521_v53 }
  0xa9   : > { %882 = vst.msk [vmem:[%s1504_s16 + $0x78] sm:$0xff] %vm866_vm12, %v853_v7  ;;  %881 = vst.msk [vmem:[%s1504_s16 + $0x70] sm:$0xff] %vm866_vm12, %v852_v8  ;;  %v641_v7 = vadd.f32 %v1188_v60, %v557_v62 }
  0xaa   : > { %v779_v17 = vpop.permute.xlu1 %778  ;;  %v776_v18 = vpop.permute.xlu0 %775  ;;  %v554_v57 = vadd.f32 %v1482_v27, %v519_v45  ;;  %v640_v8 = vadd.f32 %v1187_v61, %v556_v15 }
  0xab   : > { %vm827_vm14 = vcmp.eq.s32.totalorder %v779_v17, 1  ;;  %vm826_vm15 = vcmp.eq.s32.totalorder %v776_v18, 1 }
  0xac   : > { %v855_v26 = vsel %vm827_vm14, %v631_v10, 0.0  ;;  %v854_v28 = vsel %vm826_vm15, %v630_v11, 0.0  ;;  %v638_v2 = vadd.f32 %v1183_v49, %v554_v57 }
  0xad   : > { %884 = vst.msk [vmem:[%s1504_s16 + $0x88] sm:$0xff] %vm866_vm12, %v855_v26  ;;  %883 = vst.msk [vmem:[%s1504_s16 + $0x80] sm:$0xff] %vm866_vm12, %v854_v28 }
  0xae   : > { %v785_v33 = vpop.permute.xlu1 %784  ;;  %v782_v34 = vpop.permute.xlu0 %781 }
  0xaf   : > { %vm829_vm0 = vcmp.eq.s32.totalorder %v785_v33, 1  ;;  %vm828_vm1 = vcmp.eq.s32.totalorder %v782_v34, 1 }
  0xb0   : > { %v857_v42 = vsel %vm829_vm0, %v633_v24, 0.0  ;;  %v856_v43 = vsel %vm828_vm1, %v632_v29, 0.0 }
  0xb1   : > { %886 = vst.msk [vmem:[%s1504_s16 + $0x98] sm:$0xff] %vm866_vm12, %v857_v42  ;;  %885 = vst.msk [vmem:[%s1504_s16 + $0x90] sm:$0xff] %vm866_vm12, %v856_v43 }
  0xb2   : > { %v791_v46 = vpop.permute.xlu1 %790  ;;  %v788_v9 = vpop.permute.xlu0 %787 }
  0xb3   : > { %vm831_vm2 = vcmp.eq.s32.totalorder %v791_v46, 1  ;;  %vm830_vm3 = vcmp.eq.s32.totalorder %v788_v9, 1 }
  0xb4   : > { %v859_v54 = vsel %vm831_vm2, %v635_v35, 0.0  ;;  %v858_v55 = vsel %vm830_vm3, %v634_v39, 0.0 }
  0xb5   : > { %888 = vst.msk [vmem:[%s1504_s16 + $0xa8] sm:$0xff] %vm866_vm12, %v859_v54  ;;  %887 = vst.msk [vmem:[%s1504_s16 + $0xa0] sm:$0xff] %vm866_vm12, %v858_v55 }
  0xb6   : > { %v797_v58 = vpop.permute.xlu1 %796  ;;  %v794_v59 = vpop.permute.xlu0 %793 }
  0xb7   : > { %vm833_vm4 = vcmp.eq.s32.totalorder %v797_v58, 1  ;;  %vm832_vm5 = vcmp.eq.s32.totalorder %v794_v59, 1 }
  0xb8   : > { %v861_v63 = vsel %vm833_vm4, %v637_v47, 0.0  ;;  %v860_v0 = vsel %vm832_vm5, %v636_v56, 0.0 }
  0xb9   : > { %890 = vst.msk [vmem:[%s1504_s16 + $0xb8] sm:$0xff] %vm866_vm12, %v861_v63  ;;  %889 = vst.msk [vmem:[%s1504_s16 + $0xb0] sm:$0xff] %vm866_vm12, %v860_v0 }
  0xba   : > { %v803_v3 = vpop.permute.xlu1 %802  ;;  %v800_v4 = vpop.permute.xlu0 %799 }
  0xbb   : > { %vm835_vm6 = vcmp.eq.s32.totalorder %v803_v3, 1  ;;  %vm834_vm7 = vcmp.eq.s32.totalorder %v800_v4, 1 }
  0xbc   : > { %v863_v5 = vsel %vm835_vm6, %v639_v1, 0.0  ;;  %v862_v6 = vsel %vm834_vm7, %v638_v2, 0.0 }
  0xbd   : > { %892 = vst.msk [vmem:[%s1504_s16 + $0xc8] sm:$0xff] %vm866_vm12, %v863_v5  ;;  %891 = vst.msk [vmem:[%s1504_s16 + $0xc0] sm:$0xff] %vm866_vm12, %v862_v6 }
  0xbe   : > { %v809_v27 = vpop.permute.xlu1 %808  ;;  %v806_v10 = vpop.permute.xlu0 %805 }
  0xbf   : > { %vm837_vm8 = vcmp.eq.s32.totalorder %v809_v27, 1  ;;  %vm836_vm9 = vcmp.eq.s32.totalorder %v806_v10, 1 }
  0xc0   : > { %v865_v11 = vsel %vm837_vm8, %v641_v7, 0.0  ;;  %v864_v12 = vsel %vm836_vm9, %v640_v8, 0.0 }
  0xc1   : > { %894 = vst.msk [vmem:[%s1504_s16 + $0xd8] sm:$0xff] %vm866_vm12, %v865_v11  ;;  %893 = vst.msk [vmem:[%s1504_s16 + $0xd0] sm:$0xff] %vm866_vm12, %v864_v12 }
  0xc2 PF: > { %s16_s23 = sadd.s32 1, %s1269_s23   ;;  %s1662_s21 = smov %s1265_s22 }
  0xc3   : > { %p13_p5 = scmp.ge.s32.totalorder %s16_s23, 4   ;;  %s1663_s22 = smov %s1665_s24 }
  0xc5   :  { %15 = sbr.rel (!%p13_p5) target bundleno = 2 (0x2), region = 83 }

// kernel: unet_down_block_forward.6
= control target key start
LH: loop header
LB: loop body
LE: loop exit
PB: predicated region body
PF: predicated region fallthrough
CT: control target
= control target key end

     0   :  { %s12455_s24 = smov 0   ;;  %s12457_s25 = smov 0   ;;  %s16584_s0 = inlined_call_operand.vmem [shape: bf16[27,16,16], index: 0, kind: input, shape index: {}]   ;;  %s16585_s1 = inlined_call_operand.vmem [shape: f32[1,16], index: 1, kind: input, shape index: {}]   ;;  %s16586_s2 = inlined_call_operand.vmem [shape: f32[672,1], index: 2, kind: input, shape index: {}]   ;;  %s16587_s3 = inlined_call_operand.vmem [shape: bf16[2,672,16], index: 3, kind: input, shape index: {}, may-alias: {3,4,5}]   ;;  %s16588_s4 = inlined_call_operand.vmem [shape: bf16[2,672,16], index: 4, kind: input, shape index: {}, may-alias: {3,4,5}]   ;;  %s16589_s5 = inlined_call_operand.vmem [shape: bf16[2,672,16], index: 5, kind: input, shape index: {}, may-alias: {3,4,5}]   ;;  %s16590_s6 = inlined_call_operand.vmem [shape: bf16[2,672,16], index: 6, kind: output, shape index: {0}]   ;;  %s16591_s7 = inlined_call_operand.vmem [shape: f32[2,8,16], index: 7, kind: output, shape index: {1}]  }
   0x1   :  { %s12459_s26 = smov 0  }
   0x2 LB: > { %s30_s27 = sadd.s32 1, %s12407_s25  ;;  %p10244_p0 = scmp.ge.s32.totalorder %s12411_s26, 1  ;;  %s12411_s26 = sphi %s12459_s26, %s18_s26   ;;  %s12407_s25 = sphi %s12457_s25, %s17024_s25   ;;  %s12403_s24 = sphi %s12455_s24, %s17023_s24  }
   0x3   : > { %p32_p1 = scmp.ge.s32.totalorder %s30_s27, 2  ;;  %p320_p2 = scmp.lt.s32.totalorder %s12411_s26, 3 }
   0x5   : > { %s17026_s27 = smov (%p32_p1, %s30_s27), 0  ;;  %p321_p3 = pnand %p10244_p0, %p320_p2 }
   0x7   : > { %324 = sbr.rel (%p321_p3) target bundleno = 1054 (0x41e), region = 44 }
   0xc   : > { %v12202_v0 = vld [vmem:[%s16584_s0 + $0x8] sm:$0xff]   ;;  %p400_p4 = scmp.lt.s32.totalorder %s12403_s24, 1  ;;  %v12479_v1 = vld [vmem:[%s16584_s0 + $0x10] sm:$0xff]   ;;  %v12486_v2 = vld [vmem:[%s16584_s0] sm:$0xff]   ;;  %vm478_vm0 = vcmask 125952   ;;  %vm727_vm1 = vcmask 1044480  }
   0xd   : > { %11359 = vmatprep.subr.bf16.mxu0 %v12202_v0  ;;  %12169 = vmatprep.subr.bf16.mxu1 %v12202_v0  ;;  %vm763_vm2 = vcmask 130048   ;;  %v12556_v34 = vld [vmem:[%s16584_s0 + $0x20] sm:$0xff]   ;;  %v12576_v44 = vld [vmem:[%s16584_s0 + $0x18] sm:$0xff]   ;;  %vm954_vm3 = vsmask.f32 5376  ;;  %vm2048_vm6 = vcmask 1045504  }
   0xe   : > { %s17028_s24 = smov (!%p400_p4, %s12403_s24), 1  ;;  %11360 = vmatpush3.bf16.msra.mxu0 %v12202_v0  ;;  %12170 = vmatpush3.bf16.msra.mxu1 %v12202_v0  ;;  %vm1289_vm4 = vsmask.f32 4352  ;;  %vm1685_vm5 = vsmask.f32 6400  ;;  %vm3046_vm8 = vcmask 1046528  }
   0xf   : > { %s12489_s11 = smul.u32 336, %s17028_s24  ;;  %11419 = vmatprep.subr.bf16.mxu0 %v12479_v1  ;;  %11389 = vmatprep.subr.bf16.mxu1 %v12486_v2  ;;  %vm2701_vm7 = vsmask.f32 7424  ;;  %s10249_s29 = sshll.u32 %s17028_s24, 3 }
  0x10   : > { %s16142_s9 = scalar_lea.vmem %s16591_s7, %s10249_s29 }
  0x11   : > { %s407_s14 = scalar_lea.vmem %s16587_s3, %s12489_s11  ;;  %s10921_s15 = sadd.s32 112, %s12489_s11 }
  0x12   : > { %s12503_s18 = scalar_lea.vmem %s16588_s4, %s10921_s15  ;;  %v472_v3 = vld [vmem:[%s407_s14 + $0x58] sm:$0xf]  ;;  %v473_v4 = vld [vmem:[%s407_s14 + $0x5c] sm:$0xf]  ;;  %v474_v5 = vld [vmem:[%s407_s14 + $0x60] sm:$0xf]  ;;  %s16277_s16 = scalar_lea.vmem %s16590_s6, %s10921_s15 }
  0x13   : > { %v475_v6 = vld [vmem:[%s407_s14 + $0x64] sm:$0xf]  ;;  %501 = vst.msk [vmem:[#allocation2 + $0x58] sm:$0xf] %vm478_vm0, %v472_v3  ;;  %502 = vst.msk [vmem:[#allocation2 + $0x5c] sm:$0xf] %vm478_vm0, %v473_v4 }
  0x14   : > { %v476_v7 = vld [vmem:[%s407_s14 + $0x68] sm:$0xf]  ;;  %503 = vst.msk [vmem:[#allocation2 + $0x60] sm:$0xf] %vm478_vm0, %v474_v5  ;;  %504 = vst.msk [vmem:[#allocation2 + $0x64] sm:$0xf] %vm478_vm0, %v475_v6 }
  0x15   : > { %v477_v8 = vld [vmem:[%s407_s14 + $0x6c] sm:$0xf]  ;;  %505 = vst.msk [vmem:[#allocation2 + $0x68] sm:$0xf] %vm478_vm0, %v476_v7  ;;  %v517_v9 = vld [vmem:[%s12503_s18 + $0x28] sm:$0xf] }
  0x16   : > { %v518_v10 = vld [vmem:[%s12503_s18 + $0x2c] sm:$0xf]  ;;  %506 = vst.msk [vmem:[#allocation2 + $0x6c] sm:$0xf] %vm478_vm0, %v477_v8  ;;  %v519_v11 = vld [vmem:[%s12503_s18 + $0x30] sm:$0xf] }
  0x17   : > { %v520_v12 = vld [vmem:[%s12503_s18 + $0x34] sm:$0xf]  ;;  %545 = vst.msk [vmem:[#allocation2 + $0x98] sm:$0xf] %vm478_vm0, %v517_v9  ;;  %546 = vst.msk [vmem:[#allocation2 + $0x9c] sm:$0xf] %vm478_vm0, %v518_v10 }
  0x18   : > { %v521_v13 = vld [vmem:[%s12503_s18 + $0x38] sm:$0xf]  ;;  %547 = vst.msk [vmem:[#allocation2 + $0xa0] sm:$0xf] %vm478_vm0, %v519_v11  ;;  %548 = vst.msk [vmem:[#allocation2 + $0xa4] sm:$0xf] %vm478_vm0, %v520_v12 }
  0x19   : > { %v522_v14 = vld [vmem:[%s12503_s18 + $0x3c] sm:$0xf]  ;;  %549 = vst.msk [vmem:[#allocation2 + $0xa8] sm:$0xf] %vm478_vm0, %v521_v13  ;;  %v507_v15 = vld [vmem:[%s12503_s18] sm:$0xf] }
  0x1a   : > { %v508_v16 = vld [vmem:[%s12503_s18 + $0x4] sm:$0xf]  ;;  %550 = vst.msk [vmem:[#allocation2 + $0xac] sm:$0xf] %vm478_vm0, %v522_v14  ;;  %535 = vst.msk [vmem:[#allocation2 + $0x70] sm:$0xf] %vm478_vm0, %v507_v15 }
  0x1b   : > { %536 = vst.msk [vmem:[#allocation2 + $0x74] sm:$0xf] %vm478_vm0, %v508_v16  ;;  %v509_v17 = vld [vmem:[%s12503_s18 + $0x8] sm:$0xf]  ;;  %v510_v18 = vld [vmem:[%s12503_s18 + $0xc] sm:$0xf] }
  0x1c   : > { %v523_v19 = vld [vmem:[%s12503_s18 + $0x40] sm:$0xf]  ;;  %537 = vst.msk [vmem:[#allocation2 + $0x78] sm:$0xf] %vm478_vm0, %v509_v17  ;;  %538 = vst.msk [vmem:[#allocation2 + $0x7c] sm:$0xf] %vm478_vm0, %v510_v18 }
  0x1d   : > { %v524_v20 = vld [vmem:[%s12503_s18 + $0x44] sm:$0xf]  ;;  %551 = vst.msk [vmem:[#allocation2 + $0xb0] sm:$0xf] %vm478_vm0, %v523_v19  ;;  %v525_v21 = vld [vmem:[%s12503_s18 + $0x48] sm:$0xf] }
  0x1e   : > { %v526_v22 = vld [vmem:[%s12503_s18 + $0x4c] sm:$0xf]  ;;  %552 = vst.msk [vmem:[#allocation2 + $0xb4] sm:$0xf] %vm478_vm0, %v524_v20  ;;  %553 = vst.msk [vmem:[#allocation2 + $0xb8] sm:$0xf] %vm478_vm0, %v525_v21 }
  0x1f   : > { %554 = vst.msk [vmem:[#allocation2 + $0xbc] sm:$0xf] %vm478_vm0, %v526_v22  ;;  %v511_v23 = vld [vmem:[%s12503_s18 + $0x10] sm:$0xf]  ;;  %v512_v24 = vld [vmem:[%s12503_s18 + $0x14] sm:$0xf] }
  0x20   : > { %v513_v25 = vld [vmem:[%s12503_s18 + $0x18] sm:$0xf]  ;;  %v620_v26 = vld [vmem:[#allocation2 + $0x5c] sm:$0xf]  ;;  %539 = vst.msk [vmem:[#allocation2 + $0x80] sm:$0xf] %vm478_vm0, %v511_v23 }
  0x21   : > { %v650_v27 = vld [vmem:[#allocation2 + $0x58] sm:$0x8]  ;;  %540 = vst.msk [vmem:[#allocation2 + $0x84] sm:$0xf] %vm478_vm0, %v512_v24  ;;  %541 = vst.msk [vmem:[#allocation2 + $0x88] sm:$0xf] %vm478_vm0, %v513_v25 }
  0x22   : > { %v12545_v28 = vcombine.low %v650_v27, %v620_v26  ;;  %v12547_v29 = vld [vmem:[#allocation2 + $0x60] sm:$0xff]   ;;  %v12549_v30 = vld [vmem:[#allocation2 + $0x68] sm:$0xff]   ;;  %v619_v31 = vld [vmem:[#allocation2 + $0x58] sm:$0xc]  ;;  %s10923_s30 = sadd.s32 224, %s12489_s11 }
  0x23   : > { %v729_v33 = vrot.slane %v12547_v29, 3  ;;  %v731_v35 = vrot.slane %v12549_v30, 3  ;;  %v12559_v36 = vld [vmem:[#allocation2 + $0x98] sm:$0xff]   ;;  %v12562_v38 = vld [vmem:[#allocation2 + $0xa0] sm:$0xff]   ;;  %v12567_v41 = vld [vmem:[#allocation2 + $0xa8] sm:$0xff]   ;;  %v10282_v45 = vcombine.low %v619_v31, %v620_v26  ;;  %v964_v5 = vshrl.u32 %v12547_v29, 16  ;;  %s13655_s10 = scalar_lea.vmem %s16589_s5, %s10923_s30 }
  0x24   : > { %v728_v32 = vrot.slane %v12545_v28, 3  ;;  %v743_v40 = vrot.slane %v12559_v36, 3  ;;  %v745_v42 = vrot.slane %v12562_v38, 3  ;;  %v12571_v43 = vld [vmem:[#allocation2 + $0x70] sm:$0xff]   ;;  %v747_v46 = vrot.slane %v12567_v41, 3  ;;  %v12580_v47 = vld [vmem:[#allocation2 + $0x78] sm:$0xff]  }
  0x25   : > { %v732_v39 = vsel %vm727_vm1, %v729_v33, %v731_v35  ;;  %v733_v49 = vrot.slane %v12571_v43, 3  ;;  %v12586_v50 = vld [vmem:[#allocation2 + $0xb0] sm:$0xff]   ;;  %v735_v52 = vrot.slane %v12580_v47, 3  ;;  %v514_v57 = vld [vmem:[%s12503_s18 + $0x1c] sm:$0xf]  ;;  %v956_v62 = vshrl.u32 %v10282_v45, 16 }
  0x26   : > { %v730_v37 = vsel %vm727_vm1, %v728_v32, %v729_v33  ;;  %v746_v48 = vsel %vm727_vm1, %v743_v40, %v745_v42  ;;  %v748_v51 = vsel %vm727_vm1, %v745_v42, %v747_v46  ;;  %v12592_v53 = vld [vmem:[#allocation2 + $0xb8] sm:$0xff]   ;;  %v749_v55 = vrot.slane %v12586_v50, 3  ;;  %542 = vst.msk [vmem:[#allocation2 + $0x8c] sm:$0xf] %vm478_vm0, %v514_v57  ;;  %v527_v60 = vld [vmem:[%s12503_s18 + $0x50] sm:$0xf] }
  0x27   : > { %11361 = vmatprep.mubr.msk.bf16.mxu0 %vm763_vm2, %v730_v37  ;;  %11377 = vmatprep.mubr.msk.bf16.mxu1 %vm763_vm2, %v746_v48  ;;  %v734_v54 = vsel %vm727_vm1, %v731_v35, %v733_v49  ;;  %v736_v58 = vsel %vm727_vm1, %v733_v49, %v735_v52  ;;  %v751_v59 = vrot.slane %v12592_v53, 3  ;;  %v528_v61 = vld [vmem:[%s12503_s18 + $0x54] sm:$0xf]  ;;  %555 = vst.msk [vmem:[#allocation2 + $0xc0] sm:$0xf] %vm478_vm0, %v527_v60  ;;  %v959_v3 = vshll.u32 %v10282_v45, 16 }
  0x28   : > { %11362 = vmatmul.mubr.msk.bf16.vlgmr.msra.gmra.mxu0 %vm763_vm2, %v732_v39  ;;  %11378 = vmatmul.mubr.msk.bf16.vlgmr.msra.gmra.mxu1 %vm763_vm2, %v748_v51  ;;  %v12597_v56 = vld [vmem:[#allocation2 + $0x80] sm:$0xff]   ;;  %v750_v63 = vsel %vm727_vm1, %v747_v46, %v749_v55  ;;  %556 = vst.msk [vmem:[#allocation2 + $0xc4] sm:$0xf] %vm478_vm0, %v528_v61  ;;  %v967_v6 = vshll.u32 %v12547_v29, 16  ;;  %v1291_v8 = vshrl.u32 %v12545_v28, 16  ;;  %v1294_v10 = vshll.u32 %v12545_v28, 16 }
  0x29   : > { %11420 = vmatpush3.bf16.msra.mxu0 %v12479_v1  ;;  %11390 = vmatpush3.bf16.msra.mxu1 %v12486_v2  ;;  %v737_v0 = vrot.slane %v12597_v56, 3  ;;  %v529_v1 = vld [vmem:[%s12503_s18 + $0x58] sm:$0xf]  ;;  %v515_v2 = vld [vmem:[%s12503_s18 + $0x20] sm:$0xf]  ;;  %v752_v9 = vsel %vm727_vm1, %v749_v55, %v751_v59  ;;  %v958_v11 = vrot.slane %v956_v62, 2 }
  0x2a   : > { %11479 = vmatprep.subr.bf16.mxu0 %v12556_v34  ;;  %11365 = vmatprep.mubr.msk.bf16.mxu0 %vm763_vm2, %v734_v54  ;;  %557 = vst.msk [vmem:[#allocation2 + $0xc8] sm:$0xf] %vm478_vm0, %v529_v1  ;;  %v516_v4 = vld [vmem:[%s12503_s18 + $0x24] sm:$0xf]  ;;  %543 = vst.msk [vmem:[#allocation2 + $0x90] sm:$0xf] %vm478_vm0, %v515_v2 }
  0x2b   : > { %11449 = vmatprep.subr.bf16.mxu1 %v12576_v44  ;;  %11381 = vmatprep.mubr.msk.bf16.mxu1 %vm763_vm2, %v750_v63  ;;  %v738_v7 = vsel %vm727_vm1, %v735_v52, %v737_v0  ;;  %544 = vst.msk [vmem:[#allocation2 + $0x94] sm:$0xf] %vm478_vm0, %v516_v4  ;;  %v961_v12 = vrot.slane %v959_v3, 3  ;;  %v966_v13 = vrot.slane %v964_v5, 2  ;;  %v969_v14 = vrot.slane %v967_v6, 3 }
  0x2c   : > { %v973_v15 = vshrl.u32 %v12549_v30, 16  ;;  %v976_v16 = vshll.u32 %v12549_v30, 16  ;;  %v1293_v17 = vrot.slane %v1291_v8, 3  ;;  %v1298_v18 = vrot.slane %v964_v5, 3 }
  0x2d   : > { %v12630_v19 = vld [vmem:[#allocation2 + $0x88] sm:$0xff]   ;;  %v1296_v20 = vrot.slane %v1294_v10, 4  ;;  %v1299_v21 = vrot.slane %v967_v6, 4  ;;  %v982_v22 = vshrl.u32 %v12571_v43, 16  ;;  %v985_v24 = vshll.u32 %v12571_v43, 16 }
  0x2e   : > { %v739_v25 = vrot.slane %v12630_v19, 3  ;;  %v962_v27 = vor.u32 %v961_v12, %v958_v11  ;;  %v970_v28 = vor.u32 %v969_v14, %v966_v13  ;;  %v975_v33 = vrot.slane %v973_v15, 2 }
  0x2f   : > { %v12633_v23 = vld [vmem:[#allocation2 + $0xc0] sm:$0xff]   ;;  %v978_v35 = vrot.slane %v976_v16, 3  ;;  %v984_v45 = vrot.slane %v982_v22, 2  ;;  %v987_v46 = vrot.slane %v985_v24, 3  ;;  %v1297_v49 = vor.u32 %v1296_v20, %v1293_v17 }
  0x30   : > { %11366 = vmatmul.mubr.msk.bf16.gmra.mxu0 %vm763_vm2, %v736_v58  ;;  %11382 = vmatmul.mubr.msk.bf16.gmra.mxu1 %vm763_vm2, %v752_v9  ;;  %v753_v29 = vrot.slane %v12633_v23, 3  ;;  %v740_v31 = vsel %vm727_vm1, %v737_v0, %v739_v25  ;;  %v971_v43 = vsel %vm954_vm3, %v962_v27, %v970_v28  ;;  %v1300_v51 = vor.u32 %v1299_v21, %v1298_v18 }
  0x31   : > { %11369 = vmatprep.mubr.msk.bf16.mxu0 %vm763_vm2, %v738_v7  ;;  %v12637_v26 = vld [vmem:[#allocation2 + $0xc8] ss:$0 sps:$4 sm:$0x77]   ;;  %v979_v52 = vor.u32 %v978_v35, %v975_v33  ;;  %v1302_v54 = vrot.slane %v973_v15, 3  ;;  %v1303_v55 = vrot.slane %v976_v16, 4  ;;  %v991_v57 = vshrl.u32 %v12580_v47, 16 }
  0x32   : > { %v12640_v30 = vld [vmem:[#allocation2 + $0x90] sm:$0xff]   ;;  %v755_v32 = vrot.slane %v12637_v26, 3  ;;  %v754_v37 = vsel %vm727_vm1, %v751_v59, %v753_v29  ;;  %v994_v58 = vshll.u32 %v12580_v47, 16  ;;  %v988_v60 = vor.u32 %v987_v46, %v984_v45  ;;  %v12667_v47 = vld [vmem:[%s16584_s0 + $0x28] sm:$0xff]  }
  0x33   : > { %v741_v39 = vrot.slane %v12640_v30, 3  ;;  %11385 = vmatprep.mubr.msk.bf16.mxu1 %vm763_vm2, %v754_v37  ;;  %v1000_v61 = vshrl.u32 %v12597_v56, 16  ;;  %v1003_v62 = vshll.u32 %v12597_v56, 16  ;;  %v1301_v63 = vsel %vm1289_vm4, %v1297_v49, %v1300_v51 }
  0x34   : > { %v756_v42 = vsel %vm727_vm1, %v753_v29, %v755_v32  ;;  %v1306_v0 = vrot.slane %v982_v22, 3  ;;  %v1307_v1 = vrot.slane %v985_v24, 4  ;;  %v980_v2 = vsel %vm954_vm3, %v970_v28, %v979_v52 }
  0x35   : > { %v742_v48 = vsel %vm727_vm1, %v739_v25, %v741_v39  ;;  %v744_v59 = vsel %vm727_vm1, %v741_v39, %v743_v40  ;;  %v993_v3 = vrot.slane %v991_v57, 2  ;;  %v996_v4 = vrot.slane %v994_v58, 3 }
  0x36   : > { %v989_v40 = vsel %vm954_vm3, %v979_v52, %v988_v60  ;;  %v1304_v56 = vor.u32 %v1303_v55, %v1302_v54  ;;  %v1002_v5 = vrot.slane %v1000_v61, 2  ;;  %v1005_v6 = vrot.slane %v1003_v62, 3 }
  0x37   : > { %v1308_v7 = vor.u32 %v1307_v1, %v1306_v0  ;;  %v1310_v8 = vrot.slane %v991_v57, 3  ;;  %v1311_v9 = vrot.slane %v994_v58, 4  ;;  %v997_v10 = vor.u32 %v996_v4, %v993_v3 }
  0x38   : > { %11370 = vmatmul.mubr.msk.bf16.gmra.mxu0 %vm763_vm2, %v740_v31  ;;  %11386 = vmatmul.mubr.msk.bf16.gmra.mxu1 %vm763_vm2, %v756_v42  ;;  %v1009_v11 = vshrl.u32 %v12630_v19, 16  ;;  %v1012_v12 = vshll.u32 %v12630_v19, 16  ;;  %v1305_v13 = vsel %vm1289_vm4, %v1300_v51, %v1304_v56  ;;  %v1006_v14 = vor.u32 %v1005_v6, %v1002_v5  ;;  %v530_v31 = vld [vmem:[%s12503_s18 + $0x5c] sm:$0xf] }
  0x39   : > { %11373 = vmatprep.mubr.msk.bf16.mxu0 %vm763_vm2, %v742_v48  ;;  %11391 = vmatprep.mubr.msk.bf16.mxu1 %vm763_vm2, %v971_v43  ;;  %v1018_v15 = vshrl.u32 %v12640_v30, 16  ;;  %v1021_v16 = vshll.u32 %v12640_v30, 16  ;;  %v1309_v17 = vsel %vm1289_vm4, %v1304_v56, %v1308_v7  ;;  %v1314_v18 = vrot.slane %v1000_v61, 3  ;;  %558 = vst.msk [vmem:[#allocation2 + $0xcc] sm:$0xf] %vm478_vm0, %v530_v31 }
  0x3a   : > { %v1315_v20 = vrot.slane %v1003_v62, 4  ;;  %v1312_v19 = vor.u32 %v1311_v9, %v1310_v8  ;;  %v998_v21 = vsel %vm954_vm3, %v988_v60, %v997_v10  ;;  %v1011_v22 = vrot.slane %v1009_v11, 2 }
  0x3b   : > { %v1014_v24 = vrot.slane %v1012_v12, 3  ;;  %v1007_v25 = vsel %vm954_vm3, %v997_v10, %v1006_v14  ;;  %v1020_v27 = vrot.slane %v1018_v15, 2  ;;  %v1023_v28 = vrot.slane %v1021_v16, 3 }
  0x3c   : > { %v1316_v29 = vor.u32 %v1315_v20, %v1314_v18  ;;  %v1313_v30 = vsel %vm1289_vm4, %v1308_v7, %v1312_v19  ;;  %v1318_v33 = vrot.slane %v1009_v11, 3  ;;  %v1030_v35 = vshll.u32 %v12559_v36, 16  ;;  %v1580_v11 = vld [vmem:[#allocation2 + $0x5c] sm:$0xe] }
  0x3d   : > { %v1015_v32 = vor.u32 %v1014_v24, %v1011_v22  ;;  %v1024_v37 = vor.u32 %v1023_v28, %v1020_v27  ;;  %v1319_v39 = vrot.slane %v1012_v12, 4  ;;  %v1036_v42 = vshrl.u32 %v12562_v38, 16  ;;  %v12719_v12 = vld [vmem:[#allocation2 + $0x60] sm:$0xf] }
  0x3e   : > { %v1039_v43 = vshll.u32 %v12562_v38, 16  ;;  %v1317_v45 = vsel %vm1289_vm4, %v1312_v19, %v1316_v29  ;;  %v1322_v46 = vrot.slane %v1018_v15, 3  ;;  %v1323_v48 = vrot.slane %v1021_v16, 4 }
  0x3f   : > { %v1016_v49 = vsel %vm954_vm3, %v1006_v14, %v1015_v32  ;;  %v1032_v52 = vrot.slane %v1030_v35, 3  ;;  %v1320_v54 = vor.u32 %v1319_v39, %v1318_v33  ;;  %v1038_v55 = vrot.slane %v1036_v42, 2 }
  0x40   : > { %11374 = vmatmul.mubr.msk.bf16.gmra.mxu0 %vm763_vm2, %v744_v59  ;;  %11392 = vmatmul.mubr.msk.bf16.vlgmr.msra.gmra.mxu1 %vm763_vm2, %v980_v2  ;;  %v1041_v57 = vrot.slane %v1039_v43, 3  ;;  %v1324_v58 = vor.u32 %v1323_v48, %v1322_v46  ;;  %v1327_v60 = vrot.slane %v1030_v35, 4  ;;  %v1045_v61 = vshrl.u32 %v12567_v41, 16 }
  0x41   : > { %11421 = vmatprep.mubr.msk.bf16.mxu0 %vm763_vm2, %v1301_v63  ;;  %11450 = vmatpush3.bf16.msra.mxu1 %v12576_v44  ;;  %v12683_v44 = vld [vmem:[%s16584_s0 + $0x30] sm:$0xff]   ;;  %v1048_v62 = vshll.u32 %v12567_v41, 16  ;;  %v1321_v63 = vsel %vm1289_vm4, %v1316_v29, %v1320_v54  ;;  %v1054_v1 = vshrl.u32 %v12586_v50, 16  ;;  %v1057_v2 = vshll.u32 %v12586_v50, 16 }
  0x42   : > { %11395 = vmatprep.mubr.msk.bf16.mxu1 %vm763_vm2, %v989_v40  ;;  %11509 = vmatprep.subr.bf16.mxu1 %v12667_v47  ;;  %v1042_v0 = vor.u32 %v1041_v57, %v1038_v55  ;;  %v1325_v3 = vsel %vm1289_vm4, %v1320_v54, %v1324_v58  ;;  %v1330_v4 = vrot.slane %v1036_v42, 3  ;;  %v1331_v40 = vrot.slane %v1039_v43, 4  ;;  %v12223_v42 = vld [vmem:[#allocation2 + $0xc8] ss:$0 sps:$4 sm:$0xff]  }
  0x43   : > { %v1047_v5 = vrot.slane %v1045_v61, 2  ;;  %v1050_v6 = vrot.slane %v1048_v62, 3  ;;  %v1056_v8 = vrot.slane %v1054_v1, 2  ;;  %v1059_v9 = vrot.slane %v1057_v2, 3 }
  0x44   : > { %v1332_v10 = vor.u32 %v1331_v40, %v1330_v4  ;;  %v1334_v50 = vrot.slane %v1045_v61, 3  ;;  %v1335_v14 = vrot.slane %v1048_v62, 4  ;;  %v1063_v15 = vshrl.u32 %v12592_v53, 16  ;;  %v12747_v61 = vld [vmem:[#allocation2 + $0x74] sm:$0xff]  }
  0x45   : > { %v1066_v16 = vshll.u32 %v12592_v53, 16  ;;  %v1060_v18 = vor.u32 %v1059_v9, %v1056_v8  ;;  %v1072_v20 = vshrl.u32 %v12633_v23, 16  ;;  %v1075_v19 = vshll.u32 %v12633_v23, 16  ;;  %v12733_v23 = vld [vmem:[#allocation2 + $0x64] sm:$0xff]  }
  0x46   : > { %v1338_v22 = vrot.slane %v1054_v1, 3  ;;  %v1339_v24 = vrot.slane %v1057_v2, 4  ;;  %v1065_v27 = vrot.slane %v1063_v15, 2  ;;  %v10318_v29 = vcombine.low %v1580_v11, %v12719_v12 }
  0x47   : > { %v1068_v28 = vrot.slane %v1066_v16, 3  ;;  %v1074_v31 = vrot.slane %v1072_v20, 2  ;;  %v1343_v35 = vrot.slane %v1066_v16, 4  ;;  %v1084_v39 = vshll.u32 %v12637_v26, 16  ;;  %v12768_v16 = vld [vmem:[#allocation2 + $0x7c] sm:$0xff]  }
  0x48   : > { %11422 = vmatmul.mubr.msk.bf16.vlgmr.msra.gmra.mxu0 %vm763_vm2, %v1305_v13  ;;  %11396 = vmatmul.mubr.msk.bf16.gmra.mxu1 %vm763_vm2, %v998_v21  ;;  %v1051_v13 = vor.u32 %v1050_v6, %v1047_v5  ;;  %v1340_v33 = vor.u32 %v1339_v24, %v1338_v22  ;;  %v1690_v46 = vshll.u32 %v10318_v29, 16  ;;  %v1346_v55 = vrot.slane %v1072_v20, 3  ;;  %v2041_v6 = vld [vmem:[#allocation2 + $0x5c] sm:$0xc]  ;;  %v12782_v24 = vld [vmem:[#allocation2 + $0x84] sm:$0xff]  }
  0x49   : > { %11480 = vmatpush3.bf16.msra.mxu0 %v12556_v34  ;;  %11425 = vmatprep.mubr.msk.bf16.mxu0 %vm763_vm2, %v1309_v17  ;;  %v1027_v34 = vshrl.u32 %v12559_v36, 16  ;;  %v1025_v36 = vsel %vm954_vm3, %v1015_v32, %v1024_v37  ;;  %v1077_v32 = vrot.slane %v1075_v19, 3  ;;  %v1069_v43 = vor.u32 %v1068_v28, %v1065_v27 }
  0x4a   : > { %11539 = vmatprep.subr.bf16.mxu0 %v12683_v44  ;;  %11399 = vmatprep.mubr.msk.bf16.mxu1 %vm763_vm2, %v1007_v25  ;;  %v1052_v25 = vsel %vm954_vm3, %v1042_v0, %v1051_v13  ;;  %v1061_v53 = vsel %vm954_vm3, %v1051_v13, %v1060_v18  ;;  %v1347_v57 = vrot.slane %v1075_v19, 4  ;;  %v1692_v1 = vrot.slane %v1690_v46, 2 }
  0x4b   : > { %v1029_v51 = vrot.slane %v1027_v34, 2  ;;  %v1326_v38 = vrot.slane %v1027_v34, 3  ;;  %v1342_v34 = vrot.slane %v1063_v15, 3  ;;  %v1070_v62 = vsel %vm954_vm3, %v1060_v18, %v1069_v43 }
  0x4c   : > { %v1348_v40 = vor.u32 %v1347_v57, %v1346_v55  ;;  %v1713_v11 = vshrl.u32 %v12747_v61, 16  ;;  %v1716_v13 = vshll.u32 %v12747_v61, 16  ;;  %v12766_v15 = vcombine.low %v2041_v6, %v12719_v12 }
  0x4d   : > { %v1033_v59 = vor.u32 %v1032_v52, %v1029_v51  ;;  %v1328_v7 = vor.u32 %v1327_v60, %v1326_v38  ;;  %v1695_v51 = vshrl.u32 %v12733_v23, 16  ;;  %v1698_v52 = vshll.u32 %v12733_v23, 16 }
  0x4e   : > { %v1086_v38 = vrot.slane %v1084_v39, 3  ;;  %v1354_v60 = vshll.u32 %v12223_v42, 16  ;;  %v1715_v12 = vrot.slane %v1713_v11, 1  ;;  %v1718_v22 = vrot.slane %v1716_v13, 2 }
  0x4f   : > { %v1034_v56 = vsel %vm954_vm3, %v1024_v37, %v1033_v59  ;;  %v1043_v41 = vsel %vm954_vm3, %v1033_v59, %v1042_v0  ;;  %v1329_v17 = vsel %vm1289_vm4, %v1324_v58, %v1328_v7  ;;  %v1333_v21 = vsel %vm1289_vm4, %v1328_v7, %v1332_v10  ;;  %v12744_v58 = vld [vmem:[#allocation2 + $0x6c] sm:$0xff]  }
  0x50   : > { %11426 = vmatmul.mubr.msk.bf16.gmra.mxu0 %vm763_vm2, %v1313_v30  ;;  %11400 = vmatmul.mubr.msk.bf16.gmra.mxu1 %vm763_vm2, %v1016_v49  ;;  %v1336_v30 = vor.u32 %v1335_v14, %v1334_v50  ;;  %v1081_v37 = vshrl.u32 %v12637_v26, 16  ;;  %v1078_v49 = vor.u32 %v1077_v32, %v1074_v31  ;;  %v1351_v59 = vshrl.u32 %v12223_v42, 16  ;;  %v12800_v42 = vld [vmem:[#allocation2 + $0x8c] sm:$0xff]  }
  0x51   : > { %11429 = vmatprep.mubr.msk.bf16.mxu0 %vm763_vm2, %v1317_v45  ;;  %11403 = vmatprep.mubr.msk.bf16.mxu1 %vm763_vm2, %v1025_v36  ;;  %v1687_v45 = vshrl.u32 %v10318_v29, 16  ;;  %v531_v36 = vld [vmem:[%s12503_s18 + $0x60] sm:$0xf]  ;;  %v1700_v4 = vrot.slane %v1698_v52, 2  ;;  %v1356_v5 = vrot.slane %v1354_v60, 4  ;;  %v1704_v8 = vshrl.u32 %v12744_v58, 16 }
  0x52   : > { %v1337_v48 = vsel %vm1289_vm4, %v1332_v10, %v1336_v30  ;;  %v1341_v54 = vsel %vm1289_vm4, %v1336_v30, %v1340_v33  ;;  %559 = vst.msk [vmem:[#allocation2 + $0xd0] sm:$0xf] %vm478_vm0, %v531_v36  ;;  %v1083_v26 = vrot.slane %v1081_v37, 2  ;;  %v1079_v2 = vsel %vm954_vm3, %v1069_v43, %v1078_v49  ;;  %v12802_v43 = vld [vmem:[#allocation2 + $0x94] sm:$0xff]  }
  0x53   : > { %v1689_v0 = vrot.slane %v1687_v45, 1  ;;  %v1707_v9 = vshll.u32 %v12744_v58, 16  ;;  %v1706_v18 = vrot.slane %v1704_v8, 1  ;;  %v2050_v27 = vrot.slane %v12733_v23, 2  ;;  %v12814_v36 = vld [vmem:[%s16584_s0 + $0x38] sm:$0xff]  }
  0x54   : > { %v1087_v7 = vor.u32 %v1086_v38, %v1083_v26  ;;  %v1722_v29 = vshrl.u32 %v12768_v16, 16  ;;  %v1719_v31 = vor.u32 %v1718_v22, %v1715_v12  ;;  %v1731_v32 = vshrl.u32 %v12782_v24, 16  ;;  %v12863_v12 = vld [vmem:[#allocation2 + $0xb4] sm:$0xff]  }
  0x55   : > { %v1693_v10 = vor.u32 %v1692_v1, %v1689_v0  ;;  %v1709_v20 = vrot.slane %v1707_v9, 2  ;;  %v2052_v46 = vrot.slane %v12744_v58, 2  ;;  %v1740_v57 = vshrl.u32 %v12800_v42, 16  ;;  %v12833_v1 = vld [vmem:[#allocation2 + $0x9c] sm:$0xff]  }
  0x56   : > { %v1724_v37 = vrot.slane %v1722_v29, 1  ;;  %v1743_v26 = vshll.u32 %v12800_v42, 16  ;;  %v1749_v60 = vshrl.u32 %v12802_v43, 16  ;;  %v2056_v0 = vrot.slane %v12768_v16, 2 }
  0x57   : > { %v1710_v28 = vor.u32 %v1709_v20, %v1706_v18  ;;  %v2053_v38 = vsel %vm2048_vm6, %v2050_v27, %v2052_v46 }
  0x58   : > { %11430 = vmatmul.mubr.msk.bf16.gmra.mxu0 %vm763_vm2, %v1321_v63  ;;  %11404 = vmatmul.mubr.msk.bf16.gmra.mxu1 %vm763_vm2, %v1034_v56  ;;  %v1344_v63 = vor.u32 %v1343_v35, %v1342_v34  ;;  %v1353_v56 = vrot.slane %v1351_v59, 3 }
  0x59   : > { %11433 = vmatprep.mubr.msk.bf16.mxu0 %vm763_vm2, %v1325_v3  ;;  %11407 = vmatprep.mubr.msk.bf16.mxu1 %vm763_vm2, %v1043_v41  ;;  %v1697_v3 = vrot.slane %v1695_v51, 1  ;;  %v1720_v45 = vsel %vm1685_vm5, %v1710_v28, %v1719_v31 }
  0x5a   : > { %v1345_v41 = vsel %vm1289_vm4, %v1340_v33, %v1344_v63  ;;  %v1349_v14 = vsel %vm1289_vm4, %v1344_v63, %v1348_v40  ;;  %v1357_v19 = vor.u32 %v1356_v5, %v1353_v56  ;;  %v1734_v33 = vshll.u32 %v12782_v24, 16 }
  0x5b   : > { %v1701_v50 = vor.u32 %v1700_v4, %v1697_v3  ;;  %v1742_v4 = vrot.slane %v1740_v57, 1  ;;  %v1751_v5 = vrot.slane %v1749_v60, 1 }
  0x5c   : > { %v1358_v30 = vsel %vm1289_vm4, %v1348_v40, %v1357_v19  ;;  %v1745_v40 = vrot.slane %v1743_v26, 2  ;;  %v12860_v19 = vld [vmem:[#allocation2 + $0xac] sm:$0xff]  }
  0x5d   : > { %v1711_v35 = vsel %vm1685_vm5, %v1701_v50, %v1710_v28 }
  0x60   : > { %11434 = vmatmul.mubr.msk.bf16.gmra.mxu0 %vm763_vm2, %v1329_v17  ;;  %11408 = vmatmul.mubr.msk.bf16.gmra.mxu1 %vm763_vm2, %v1052_v25  ;;  %v1088_v17 = vsel %vm954_vm3, %v1078_v49, %v1087_v7  ;;  %v2049_v25 = vrot.slane %v12766_v15, 2  ;;  %v1736_v49 = vrot.slane %v1734_v33, 2  ;;  %v1746_v7 = vor.u32 %v1745_v40, %v1742_v4 }
  0x61   : > { %11437 = vmatprep.mubr.msk.bf16.mxu0 %vm763_vm2, %v1333_v21  ;;  %11411 = vmatprep.mubr.msk.bf16.mxu1 %vm763_vm2, %v1061_v53  ;;  %v1702_v21 = vsel %vm1685_vm5, %v1693_v10, %v1701_v50  ;;  %v1725_v53 = vshll.u32 %v12768_v16, 16  ;;  %v1761_v10 = vshll.u32 %v12833_v1, 16 }
  0x62   : > { %v2051_v34 = vsel %vm2048_vm6, %v2049_v25, %v2050_v27 }
  0x63   : > { %v1727_v39 = vrot.slane %v1725_v53, 2  ;;  %v1763_v27 = vrot.slane %v1761_v10, 2 }
  0x65   : > { %v1728_v55 = vor.u32 %v1727_v39, %v1724_v37  ;;  %v1776_v37 = vshrl.u32 %v12860_v19, 16  ;;  %v1779_v39 = vshll.u32 %v12860_v19, 16 }
  0x67   : > { %v1729_v3 = vsel %vm1685_vm5, %v1719_v31, %v1728_v55 }
  0x68   : > { %11438 = vmatmul.mubr.msk.bf16.gmra.mxu0 %vm763_vm2, %v1337_v48  ;;  %11412 = vmatmul.mubr.msk.bf16.gmra.mxu1 %vm763_vm2, %v1070_v62  ;;  %v1733_v48 = vrot.slane %v1731_v32, 1  ;;  %v1752_v62 = vshll.u32 %v12802_v43, 16 }
  0x69   : > { %11441 = vmatprep.mubr.msk.bf16.mxu0 %vm763_vm2, %v1341_v54  ;;  %11415 = vmatprep.mubr.msk.bf16.mxu1 %vm763_vm2, %v1079_v2  ;;  %v2054_v54 = vrot.slane %v12747_v61, 2  ;;  %v12835_v2 = vld [vmem:[#allocation2 + $0xa4] sm:$0xff]  }
  0x6a   : > { %v1737_v59 = vor.u32 %v1736_v49, %v1733_v48  ;;  %v1754_v6 = vrot.slane %v1752_v62, 2  ;;  %v1770_v18 = vshll.u32 %v12835_v2, 16  ;;  %v1785_v48 = vshrl.u32 %v12863_v12, 16 }
  0x6b   : > { %v2055_v63 = vsel %vm2048_vm6, %v2052_v46, %v2054_v54  ;;  %v2057_v50 = vsel %vm2048_vm6, %v2054_v54, %v2056_v0  ;;  %v1788_v49 = vshll.u32 %v12863_v12, 16 }
  0x6c   : > { %v1738_v56 = vsel %vm1685_vm5, %v1728_v55, %v1737_v59  ;;  %v1747_v22 = vsel %vm1685_vm5, %v1737_v59, %v1746_v7  ;;  %v1772_v31 = vrot.slane %v1770_v18, 2  ;;  %v12886_v55 = vld [vmem:[#allocation2 + $0xbc] sm:$0xff]   ;;  %v2064_v59 = vrot.slane %v12833_v1, 2 }
  0x6d   : > { %v1787_v40 = vrot.slane %v1785_v48, 1 }
  0x70   : > { %11442 = vmatmul.mubr.msk.bf16.gmra.mxu0 %vm763_vm2, %v1345_v41  ;;  %11416 = vmatmul.mubr.msk.bf16.gmra.mxu1 %vm763_vm2, %v1088_v17  ;;  %v2058_v41 = vrot.slane %v12782_v24, 2  ;;  %v1767_v17 = vshrl.u32 %v12835_v2, 16 }
  0x71   : > { %11445 = vmatprep.mubr.msk.bf16.mxu0 %vm763_vm2, %v1349_v14  ;;  %11451 = vmatprep.mubr.msk.bf16.mxu1 %vm763_vm2, %v1702_v21  ;;  %v1755_v14 = vor.u32 %v1754_v6, %v1751_v5  ;;  %v2060_v21 = vrot.slane %v12800_v42, 2  ;;  %v2066_v5 = vrot.slane %v12835_v2, 2 }
  0x72   : > { %v2059_v20 = vsel %vm2048_vm6, %v2056_v0, %v2058_v41  ;;  %v1781_v0 = vrot.slane %v1779_v39, 2 }
  0x73   : > { %v1756_v28 = vsel %vm1685_vm5, %v1746_v7, %v1755_v14  ;;  %v1797_v7 = vshll.u32 %v12886_v55, 16 }
  0x78   : > { %11446 = vmatmul.mubr.msk.bf16.gmra.mxu0 %vm763_vm2, %v1358_v30  ;;  %11452 = vmatmul.mubr.msk.bf16.vlgmr.msra.gmra.mxu1 %vm763_vm2, %v1711_v35  ;;  %v1769_v30 = vrot.slane %v1767_v17, 1 }
  0x79   : > { %11481 = vmatprep.mubr.msk.bf16.mxu0 %vm763_vm2, %v2051_v34  ;;  %11510 = vmatpush3.bf16.msra.mxu1 %v12667_v47  ;;  %v12830_v47 = vld [vmem:[%s16584_s0 + $0x40] sm:$0xff]   ;;  %v2062_v34 = vrot.slane %v12802_v43, 2 }
  0x7a   : > { %11455 = vmatprep.mubr.msk.bf16.mxu1 %vm763_vm2, %v1720_v45  ;;  %11569 = vmatprep.subr.bf16.mxu1 %v12814_v36  ;;  %v2061_v45 = vsel %vm2048_vm6, %v2058_v41, %v2060_v21  ;;  %v1773_v46 = vor.u32 %v1772_v31, %v1769_v30  ;;  %v1794_v41 = vshrl.u32 %v12886_v55, 16  ;;  %v1799_v30 = vrot.slane %v1797_v7, 2 }
  0x7b   : > { %v2063_v54 = vsel %vm2048_vm6, %v2060_v21, %v2062_v34 }
  0x80   : > { %11482 = vmatmul.mubr.msk.bf16.vlgmr.msra.gmra.mxu0 %vm763_vm2, %v2053_v38  ;;  %11456 = vmatmul.mubr.msk.bf16.gmra.mxu1 %vm763_vm2, %v1729_v3  ;;  %v12895_v3 = vld [vmem:[#allocation2 + $0xc4] sm:$0xff]  }
  0x81   : > { %11540 = vmatpush3.bf16.msra.mxu0 %v12683_v44  ;;  %11485 = vmatprep.mubr.msk.bf16.mxu0 %vm763_vm2, %v2055_v63  ;;  %v1758_v44 = vshrl.u32 %v12833_v1, 16  ;;  %v1778_v63 = vrot.slane %v1776_v37, 1  ;;  %v16592_v21 = vshll.u32 %v12895_v3, 16 }
  0x82   : > { %11599 = vmatprep.subr.bf16.mxu0 %v12830_v47  ;;  %11459 = vmatprep.mubr.msk.bf16.mxu1 %vm763_vm2, %v1738_v56  ;;  %v1790_v56 = vrot.slane %v1788_v49, 2 }
  0x83   : > { %v1760_v25 = vrot.slane %v1758_v44, 1  ;;  %v1782_v6 = vor.u32 %v1781_v0, %v1778_v63 }
  0x85   : > { %v1764_v35 = vor.u32 %v1763_v27, %v1760_v25  ;;  %v12912_v25 = vld [vmem:[#allocation2 + $0xcc] ss:$0 sps:$4 sm:$0x33]   ;;  %v1783_v27 = vsel %vm1685_vm5, %v1773_v46, %v1782_v6 }
  0x86   : > { %v1815_v0 = vshll.u32 %v12912_v25, 16 }
  0x87   : > { %v1765_v38 = vsel %vm1685_vm5, %v1755_v14, %v1764_v35  ;;  %v1774_v4 = vsel %vm1685_vm5, %v1764_v35, %v1773_v46  ;;  %v1791_v14 = vor.u32 %v1790_v56, %v1787_v40  ;;  %v2070_v46 = vrot.slane %v12863_v12, 2 }
  0x88   : > { %11486 = vmatmul.mubr.msk.bf16.gmra.mxu0 %vm763_vm2, %v2057_v50  ;;  %11460 = vmatmul.mubr.msk.bf16.gmra.mxu1 %vm763_vm2, %v1747_v22  ;;  %v2065_v50 = vsel %vm2048_vm6, %v2062_v34, %v2064_v59  ;;  %v2067_v22 = vsel %vm2048_vm6, %v2064_v59, %v2066_v5  ;;  %v2068_v34 = vrot.slane %v12860_v19, 2  ;;  %v12930_v59 = vld [vmem:[#allocation2 + $0x64] sm:$0xf]  ;;  %v2307_v56 = vshrl.u32 %v12766_v15, 16 }
  0x89   : > { %11489 = vmatprep.mubr.msk.bf16.mxu0 %vm763_vm2, %v2059_v20  ;;  %11463 = vmatprep.mubr.msk.bf16.mxu1 %vm763_vm2, %v1756_v28  ;;  %v1803_v20 = vshrl.u32 %v12895_v3, 16  ;;  %v1796_v28 = vrot.slane %v1794_v41, 1  ;;  %v1792_v31 = vsel %vm1685_vm5, %v1782_v6, %v1791_v14  ;;  %v2310_v6 = vshll.u32 %v12766_v15, 16 }
  0x8a   : > { %v2309_v15 = vrot.slane %v2307_v56, 2 }
  0x8b   : > { %v1805_v35 = vrot.slane %v1803_v20, 1  ;;  %v1800_v63 = vor.u32 %v1799_v30, %v1796_v28  ;;  %v1817_v30 = vrot.slane %v1815_v0, 2 }
  0x8d   : > { %v1801_v28 = vsel %vm1685_vm5, %v1791_v14, %v1800_v63 }
  0x90   : > { %11490 = vmatmul.mubr.msk.bf16.gmra.mxu0 %vm763_vm2, %v2061_v45  ;;  %11464 = vmatmul.mubr.msk.bf16.gmra.mxu1 %vm763_vm2, %v1765_v38  ;;  %v1808_v45 = vrot.slane %v16592_v21, 2  ;;  %v2596_v38 = vld [vmem:[#allocation2 + $0x60] sm:$0xf] }
  0x91   : > { %11493 = vmatprep.mubr.msk.bf16.mxu0 %vm763_vm2, %v2063_v54  ;;  %11467 = vmatprep.mubr.msk.bf16.mxu1 %vm763_vm2, %v1774_v4  ;;  %v1812_v54 = vshrl.u32 %v12912_v25, 16  ;;  %v2069_v4 = vsel %vm2048_vm6, %v2066_v5, %v2068_v34  ;;  %v2314_v5 = vrot.slane %v1695_v51, 2 }
  0x92   : > { %v1809_v40 = vor.u32 %v1808_v45, %v1805_v35  ;;  %v2312_v35 = vrot.slane %v2310_v6, 3  ;;  %v12948_v45 = vld [vmem:[#allocation2 + $0x68] sm:$0xff]   ;;  %v12956_v6 = vld [vmem:[#allocation2 + $0x70] sm:$0xff]  }
  0x93   : > { %v1814_v21 = vrot.slane %v1812_v54, 1  ;;  %v2074_v54 = vrot.slane %v12895_v3, 2  ;;  %v2714_v58 = vshrl.u32 %v12948_v45, 16 }
  0x94   : > { %v2313_v0 = vor.u32 %v2312_v35, %v2309_v15  ;;  %v2722_v35 = vshrl.u32 %v12956_v6, 16 }
  0x95   : > { %v1818_v14 = vor.u32 %v1817_v30, %v1814_v21  ;;  %v2319_v21 = vrot.slane %v1707_v9, 3  ;;  %v2323_v30 = vrot.slane %v1716_v13, 3  ;;  %v2718_v9 = vshll.u32 %v12956_v6, 16 }
  0x98   : > { %11494 = vmatmul.mubr.msk.bf16.gmra.mxu0 %vm763_vm2, %v2065_v50  ;;  %11468 = vmatmul.mubr.msk.bf16.gmra.mxu1 %vm763_vm2, %v1783_v27  ;;  %v2071_v50 = vsel %vm2048_vm6, %v2068_v34, %v2070_v46  ;;  %v2072_v27 = vrot.slane %v12886_v55, 2  ;;  %v2315_v34 = vrot.slane %v1698_v52, 3  ;;  %v16726_v55 = vshll.u32 %v12895_v3, 16 }
  0x99   : > { %11497 = vmatprep.mubr.msk.bf16.mxu0 %vm763_vm2, %v2067_v22  ;;  %11471 = vmatprep.mubr.msk.bf16.mxu1 %vm763_vm2, %v1792_v31  ;;  %v10386_v22 = vcombine.low %v2596_v38, %v12930_v59  ;;  %v1810_v31 = vsel %vm1685_vm5, %v1800_v63, %v1809_v40  ;;  %v2710_v63 = vshll.u32 %v12948_v45, 16 }
  0x9a   : > { %v2073_v51 = vsel %vm2048_vm6, %v2070_v46, %v2072_v27  ;;  %v2075_v56 = vsel %vm2048_vm6, %v2072_v27, %v2074_v54  ;;  %v2076_v46 = vrot.slane %v12912_v25, 2 }
  0x9b   : > { %v2705_v38 = vshll.u32 %v10386_v22, 16  ;;  %v2703_v23 = vshrl.u32 %v10386_v22, 16  ;;  %v2322_v22 = vrot.slane %v1713_v11, 2  ;;  %v12979_v11 = vld [vmem:[#allocation2 + $0x78] sm:$0xf] }
  0x9c   : > { %16724 = vst [vmem:[#allocation3_spill] sm:$0xff] %v12979_v11  ;;  %v2077_v61 = vsel %vm2048_vm6, %v2074_v54, %v2076_v46 }
  0x9d   : > { %v2707_v52 = vrot.slane %v2705_v38, 1  ;;  %v2324_v13 = vor.u32 %v2323_v30, %v2322_v22 }
  0xa0   : > { %11498 = vmatmul.mubr.msk.bf16.gmra.mxu0 %vm763_vm2, %v2069_v4  ;;  %11472 = vmatmul.mubr.msk.bf16.gmra.mxu1 %vm763_vm2, %v1801_v28  ;;  %v2316_v4 = vor.u32 %v2315_v34, %v2314_v5  ;;  %v2318_v28 = vrot.slane %v1704_v8, 2  ;;  %v2708_v5 = vor.u32 %v2707_v52, %v2703_v23  ;;  %v12973_v8 = vld [vmem:[#allocation2 + $0x78] sm:$0xff]  }
  0xa1   : > { %11501 = vmatprep.mubr.msk.bf16.mxu0 %vm763_vm2, %v2071_v50  ;;  %11475 = vmatprep.mubr.msk.bf16.mxu1 %vm763_vm2, %v1810_v31  ;;  %v1819_v50 = vsel %vm1685_vm5, %v1809_v40, %v1818_v14  ;;  %v2712_v40 = vrot.slane %v2710_v63, 1  ;;  %v12982_v31 = vld [vmem:[#allocation2 + $0x7c] sm:$0xf]  ;;  %v2726_v34 = vshll.u32 %v12973_v8, 16  ;;  %v2326_v14 = vrot.slane %v1722_v29, 2 }
  0xa2   : > { %v2317_v27 = vsel %vm954_vm3, %v2313_v0, %v2316_v4  ;;  %v2320_v25 = vor.u32 %v2319_v21, %v2318_v28  ;;  %16725 = vst [vmem:[#allocation4_spill] sm:$0xff] %v12982_v31  ;;  %v2720_v0 = vrot.slane %v2718_v9, 1  ;;  %v2330_v29 = vrot.slane %v1731_v32, 2  ;;  %v13016_v28 = vld [vmem:[#allocation2 + $0x88] sm:$0xff]  }
  0xa3   : > { %v2713_v15 = vsel %vm2701_vm7, %v2708_v5, %v2712_v40  ;;  %v2716_v23 = vor.u32 %v2714_v58, %v2712_v40  ;;  %v2730_v46 = vshrl.u32 %v12973_v8, 16  ;;  %v2742_v30 = vshll.u32 %v13016_v28, 16 }
  0xa4   : > { %v2321_v54 = vsel %vm954_vm3, %v2316_v4, %v2320_v25  ;;  %v2325_v52 = vsel %vm954_vm3, %v2320_v25, %v2324_v13  ;;  %v13010_v4 = vld [vmem:[%s16584_s0 + $0x48] sm:$0xff]   ;;  %v2724_v16 = vor.u32 %v2722_v35, %v2720_v0  ;;  %v2334_v25 = vrot.slane %v1740_v57, 2 }
  0xa5   : > { %v2339_v57 = vrot.slane %v1752_v62, 3 }
  0xa8   : > { %11502 = vmatmul.mubr.msk.bf16.gmra.mxu0 %vm763_vm2, %v2073_v51  ;;  %11476 = vmatmul.mubr.msk.bf16.gmra.mxu1 %vm763_vm2, %v1819_v50  ;;  %v12991_v51 = vld [vmem:[#allocation2 + $0x80] sm:$0xff]   ;;  %v2331_v50 = vrot.slane %v1734_v33, 3  ;;  %v2721_v33 = vsel %vm2701_vm7, %v2716_v23, %v2720_v0 }
  0xa9   : > { %11505 = vmatprep.mubr.msk.bf16.mxu0 %vm763_vm2, %v2075_v56  ;;  %11511 = vmatprep.mubr.msk.bf16.mxu1 %vm763_vm2, %v2317_v27  ;;  %v2327_v56 = vrot.slane %v1725_v53, 3  ;;  %v2728_v53 = vrot.slane %v2726_v34, 1  ;;  %v2734_v32 = vshll.u32 %v12991_v51, 16  ;;  %v13028_v27 = vld [vmem:[%s16584_s0 + $0x50] sm:$0xff]  }
  0xaa   : > { %v2332_v21 = vor.u32 %v2331_v50, %v2330_v29 }
  0xab   : > { %v2328_v24 = vor.u32 %v2327_v56, %v2326_v14  ;;  %v2729_v22 = vsel %vm2701_vm7, %v2724_v16, %v2728_v53  ;;  %v2736_v40 = vrot.slane %v2734_v32, 1 }
  0xad   : > { %v2329_v5 = vsel %vm954_vm3, %v2324_v13, %v2328_v24  ;;  %v2333_v14 = vsel %vm954_vm3, %v2328_v24, %v2332_v21  ;;  %v2732_v13 = vor.u32 %v2730_v46, %v2728_v53  ;;  %v2342_v53 = vrot.slane %v1758_v44, 2 }
  0xae   : > { %v2343_v24 = vrot.slane %v1761_v10, 3  ;;  %v13089_v10 = vld [vmem:[#allocation2 + $0xa8] sm:$0xff]  }
  0xaf   : > { %v2737_v62 = vsel %vm2701_vm7, %v2732_v13, %v2736_v40  ;;  %v2778_v12 = vshrl.u32 %v13089_v10, 16 }
  0xb0   : > { %11506 = vmatmul.mubr.msk.bf16.gmra.mxu0 %vm763_vm2, %v2077_v61  ;;  %11512 = vmatmul.mubr.msk.bf16.vlgmr.msra.gmra.mxu1 %vm763_vm2, %v2321_v54  ;;  %v2335_v61 = vrot.slane %v1743_v26, 3  ;;  %v2338_v54 = vrot.slane %v1749_v60, 2  ;;  %v2744_v26 = vrot.slane %v2742_v30, 1  ;;  %v2746_v60 = vshrl.u32 %v13016_v28, 16 }
  0xb1   : > { %11541 = vmatprep.mubr.msk.bf16.mxu0 %vm763_vm2, %v2713_v15  ;;  %11570 = vmatpush3.bf16.msra.mxu1 %v12814_v36  ;;  %v2738_v36 = vshrl.u32 %v12991_v51, 16  ;;  %v13041_v15 = vld [vmem:[#allocation2 + $0x90] sm:$0xff]   ;;  %v2344_v2 = vor.u32 %v2343_v24, %v2342_v53 }
  0xb2   : > { %11515 = vmatprep.mubr.msk.bf16.mxu1 %vm763_vm2, %v2325_v52  ;;  %11629 = vmatprep.subr.bf16.mxu1 %v13010_v4  ;;  %v2336_v0 = vor.u32 %v2335_v61, %v2334_v25  ;;  %v2750_v43 = vshll.u32 %v13041_v15, 16  ;;  %v2340_v56 = vor.u32 %v2339_v57, %v2338_v54  ;;  %v2754_v52 = vshrl.u32 %v13041_v15, 16  ;;  %v532_v25 = vld [vmem:[%s12503_s18 + $0x64] sm:$0xf]  ;;  %v533_v61 = vld [vmem:[%s12503_s18 + $0x68] sm:$0xf] }
  0xb3   : > { %v2740_v42 = vor.u32 %v2738_v36, %v2736_v40  ;;  %v2347_v40 = vrot.slane %v1770_v18, 3  ;;  %560 = vst.msk [vmem:[#allocation2 + $0xd4] sm:$0xf] %vm478_vm0, %v532_v25  ;;  %561 = vst.msk [vmem:[#allocation2 + $0xd8] sm:$0xf] %vm478_vm0, %v533_v61 }
  0xb4   : > { %v2337_v50 = vsel %vm954_vm3, %v2332_v21, %v2336_v0  ;;  %v2752_v16 = vrot.slane %v2750_v43, 1  ;;  %v2346_v21 = vrot.slane %v1767_v17, 2  ;;  %v534_v18 = vld [vmem:[%s12503_s18 + $0x6c] sm:$0xf] }
  0xb5   : > { %v2745_v23 = vsel %vm2701_vm7, %v2740_v42, %v2744_v26  ;;  %562 = vst.msk [vmem:[#allocation2 + $0xdc] sm:$0xf] %vm478_vm0, %v534_v18  ;;  %v12257_v61 = vld [vmem:[#allocation2 + $0xcc] ss:$0 sps:$4 sm:$0x77]   ;;  %v2359_v18 = vrot.slane %v1797_v7, 3 }
  0xb6   : > { %v2756_v1 = vor.u32 %v2754_v52, %v2752_v16  ;;  %v2348_v13 = vor.u32 %v2347_v40, %v2346_v21  ;;  %v2363_v7 = vrot.slane %v16726_v55, 3  ;;  %v2370_v3 = vshll.u32 %v12257_v61, 16 }
  0xb8   : > { %11542 = vmatmul.mubr.msk.bf16.vlgmr.msra.gmra.mxu0 %vm763_vm2, %v2721_v33  ;;  %11516 = vmatmul.mubr.msk.bf16.gmra.mxu1 %vm763_vm2, %v2329_v5  ;;  %v13075_v33 = vld [vmem:[#allocation2 + $0xa0] sm:$0xff]   ;;  %v2748_v5 = vor.u32 %v2746_v60, %v2744_v26  ;;  %v2774_v26 = vshll.u32 %v13089_v10, 16  ;;  %v2349_v53 = vsel %vm954_vm3, %v2344_v2, %v2348_v13 }
  0xb9   : > { %11600 = vmatpush3.bf16.msra.mxu0 %v12830_v47  ;;  %11545 = vmatprep.mubr.msk.bf16.mxu0 %vm763_vm2, %v2729_v22  ;;  %v13056_v47 = vld [vmem:[#allocation2 + $0x98] sm:$0xff]   ;;  %v2341_v22 = vsel %vm954_vm3, %v2336_v0, %v2340_v56  ;;  %v2766_v17 = vshll.u32 %v13075_v33, 16  ;;  %v2770_v42 = vshrl.u32 %v13075_v33, 16  ;;  %v2345_v0 = vsel %vm954_vm3, %v2340_v56, %v2344_v2 }
  0xba   : > { %11659 = vmatprep.subr.bf16.mxu0 %v13028_v27  ;;  %11519 = vmatprep.mubr.msk.bf16.mxu1 %vm763_vm2, %v2333_v14  ;;  %v2758_v29 = vshll.u32 %v13056_v47, 16  ;;  %v2753_v14 = vsel %vm2701_vm7, %v2748_v5, %v2752_v16  ;;  %v2762_v54 = vshrl.u32 %v13056_v47, 16  ;;  %v13113_v16 = vld [vmem:[#allocation2 + $0xb0] sm:$0xff]   ;;  %v2354_v56 = vrot.slane %v1785_v48, 2 }
  0xbb   : > { %v2776_v19 = vrot.slane %v2774_v26, 1  ;;  %v2782_v21 = vshll.u32 %v13113_v16, 16  ;;  %v2358_v2 = vrot.slane %v1794_v41, 2  ;;  %v2362_v41 = vrot.slane %v1803_v20, 2 }
  0xbc   : > { %v2760_v44 = vrot.slane %v2758_v29, 1 }
  0xbe   : > { %v2761_v57 = vsel %vm2701_vm7, %v2756_v1, %v2760_v44  ;;  %v2764_v24 = vor.u32 %v2762_v54, %v2760_v44  ;;  %v2786_v44 = vshrl.u32 %v13113_v16, 16 }
  0xc0   : > { %11546 = vmatmul.mubr.msk.bf16.gmra.mxu0 %vm763_vm2, %v2737_v62  ;;  %11520 = vmatmul.mubr.msk.bf16.gmra.mxu1 %vm763_vm2, %v2337_v50  ;;  %v2768_v62 = vrot.slane %v2766_v17, 1  ;;  %v2351_v50 = vrot.slane %v1779_v39, 3  ;;  %v13127_v39 = vld [vmem:[#allocation2 + $0xb8] sm:$0xff]  }
  0xc1   : > { %11549 = vmatprep.mubr.msk.bf16.mxu0 %vm763_vm2, %v2745_v23  ;;  %11523 = vmatprep.mubr.msk.bf16.mxu1 %vm763_vm2, %v2341_v22  ;;  %v2350_v23 = vrot.slane %v1776_v37, 2  ;;  %v2355_v22 = vrot.slane %v1788_v49, 3  ;;  %v13134_v49 = vld [vmem:[#allocation2 + $0xc0] sm:$0xff]   ;;  %v2790_v25 = vshll.u32 %v13127_v39, 16  ;;  %v2794_v20 = vshrl.u32 %v13127_v39, 16 }
  0xc2   : > { %v2772_v37 = vor.u32 %v2770_v42, %v2768_v62  ;;  %v2769_v48 = vsel %vm2701_vm7, %v2764_v24, %v2768_v62  ;;  %v2780_v62 = vor.u32 %v2778_v12, %v2776_v19  ;;  %v2798_v24 = vshll.u32 %v13134_v49, 16 }
  0xc3   : > { %v2352_v5 = vor.u32 %v2351_v50, %v2350_v23  ;;  %v2356_v40 = vor.u32 %v2355_v22, %v2354_v56  ;;  %v13155_v23 = vld [vmem:[#allocation2 + $0xc8] sm:$0xff]   ;;  %v2792_v50 = vrot.slane %v2790_v25, 1  ;;  %v2367_v56 = vshrl.u32 %v12257_v61, 16 }
  0xc4   : > { %v2777_v1 = vsel %vm2701_vm7, %v2772_v37, %v2776_v19  ;;  %v2364_v37 = vor.u32 %v2363_v7, %v2362_v41  ;;  %v2802_v19 = vshrl.u32 %v13134_v49, 16 }
  0xc5   : > { %v2796_v61 = vor.u32 %v2794_v20, %v2792_v50 }
  0xc8   : > { %11550 = vmatmul.mubr.msk.bf16.gmra.mxu0 %vm763_vm2, %v2753_v14  ;;  %11524 = vmatmul.mubr.msk.bf16.gmra.mxu1 %vm763_vm2, %v2345_v0  ;;  %v2353_v14 = vsel %vm954_vm3, %v2348_v13, %v2352_v5  ;;  %v2357_v0 = vsel %vm954_vm3, %v2352_v5, %v2356_v40  ;;  %v2806_v5 = vshll.u32 %v13155_v23, 16 }
  0xc9   : > { %11553 = vmatprep.mubr.msk.bf16.mxu0 %vm763_vm2, %v2761_v57  ;;  %11527 = vmatprep.mubr.msk.bf16.mxu1 %vm763_vm2, %v2349_v53  ;;  %v2784_v57 = vrot.slane %v2782_v21, 1  ;;  %v2360_v53 = vor.u32 %v2359_v18, %v2358_v2  ;;  %v2800_v18 = vrot.slane %v2798_v24, 1 }
  0xca   : > { %v2808_v55 = vrot.slane %v2806_v5, 1 }
  0xcb   : > { %v2788_v13 = vor.u32 %v2786_v44, %v2784_v57  ;;  %v2785_v22 = vsel %vm2701_vm7, %v2780_v62, %v2784_v57  ;;  %v2361_v2 = vsel %vm954_vm3, %v2356_v40, %v2360_v53  ;;  %v2372_v57 = vrot.slane %v2370_v3, 3 }
  0xcc   : > { %v2365_v41 = vsel %vm954_vm3, %v2360_v53, %v2364_v37  ;;  %v2804_v40 = vor.u32 %v2802_v19, %v2800_v18 }
  0xce   : > { %v2809_v53 = vsel %vm2701_vm7, %v2804_v40, %v2808_v55 }
  0xd0   : > { %11554 = vmatmul.mubr.msk.bf16.gmra.mxu0 %vm763_vm2, %v2769_v48  ;;  %11528 = vmatmul.mubr.msk.bf16.gmra.mxu1 %vm763_vm2, %v2353_v14  ;;  %v3039_v48 = vld [vmem:[#allocation2 + $0x60] sm:$0xe]  ;;  %v2369_v14 = vrot.slane %v2367_v56, 2 }
  0xd1   : > { %11557 = vmatprep.mubr.msk.bf16.mxu0 %vm763_vm2, %v2777_v1  ;;  %11531 = vmatprep.mubr.msk.bf16.mxu1 %vm763_vm2, %v2357_v0  ;;  %v2793_v1 = vsel %vm2701_vm7, %v2788_v13, %v2792_v50  ;;  %v13175_v0 = vld [vmem:[#allocation2 + $0xd0] ss:$0 sps:$4 sm:$0x11]   ;;  %v10418_v62 = vcombine.low %v3039_v48, %v12930_v59  ;;  %v2801_v50 = vsel %vm2701_vm7, %v2796_v61, %v2800_v18  ;;  %v2810_v59 = vshrl.u32 %v13155_v23, 16 }
  0xd2   : > { %v2373_v56 = vor.u32 %v2372_v57, %v2369_v14  ;;  %v2814_v3 = vshll.u32 %v13175_v0, 16  ;;  %v3048_v48 = vrot.slane %v12948_v45, 1  ;;  %v3050_v45 = vrot.slane %v12956_v6, 1 }
  0xd3   : > { %v3305_v7 = vshrl.u32 %v10418_v62, 16  ;;  %v3308_v13 = vshll.u32 %v10418_v62, 16  ;;  %v2812_v61 = vor.u32 %v2810_v59, %v2808_v55  ;;  %v3317_v55 = vrot.slane %v2718_v9, 2 }
  0xd4   : > { %v2374_v18 = vsel %vm954_vm3, %v2364_v37, %v2373_v56  ;;  %v2816_v14 = vrot.slane %v2814_v3, 1  ;;  %v3052_v37 = vrot.slane %v12973_v8, 1 }
  0xd5   : > { %v3310_v38 = vrot.slane %v3308_v13, 2  ;;  %v3321_v13 = vrot.slane %v2726_v34, 2 }
  0xd6   : > { %v3053_v6 = vsel %vm3046_vm8, %v3050_v45, %v3052_v37 }
  0xd8   : > { %11558 = vmatmul.mubr.msk.bf16.gmra.mxu0 %vm763_vm2, %v2785_v22  ;;  %11532 = vmatmul.mubr.msk.bf16.gmra.mxu1 %vm763_vm2, %v2361_v2  ;;  %v3047_v22 = vrot.slane %v10418_v62, 1  ;;  %v3312_v2 = vrot.slane %v2714_v58, 1  ;;  %v2817_v58 = vsel %vm2701_vm7, %v2812_v61, %v2816_v14  ;;  %v3328_v61 = vrot.slane %v2746_v60, 1 }
  0xd9   : > { %11561 = vmatprep.mubr.msk.bf16.mxu0 %vm763_vm2, %v2793_v1  ;;  %11535 = vmatprep.mubr.msk.bf16.mxu1 %vm763_vm2, %v2365_v41  ;;  %v3307_v1 = vrot.slane %v3305_v7, 1  ;;  %v3313_v41 = vrot.slane %v2710_v63, 2  ;;  %v3316_v63 = vrot.slane %v2722_v35, 1  ;;  %v3051_v35 = vsel %vm3046_vm8, %v3048_v48, %v3050_v45 }
  0xda   : > { %v3049_v57 = vsel %vm3046_vm8, %v3047_v22, %v3048_v48  ;;  %v3329_v14 = vrot.slane %v2742_v30, 2 }
  0xdb   : > { %v3311_v62 = vor.u32 %v3310_v38, %v3307_v1  ;;  %v3314_v40 = vor.u32 %v3313_v41, %v3312_v2  ;;  %v3320_v38 = vrot.slane %v2730_v46, 1  ;;  %v3318_v9 = vor.u32 %v3317_v55, %v3316_v63  ;;  %v13226_v46 = vld [vmem:[%s16584_s0 + $0x58] sm:$0xff]  }
  0xdc   : > { %v3056_v2 = vrot.slane %v13016_v28, 1  ;;  %v3324_v41 = vrot.slane %v2738_v36, 1 }
  0xdd   : > { %v3315_v7 = vsel %vm1685_vm5, %v3311_v62, %v3314_v40  ;;  %v3322_v8 = vor.u32 %v3321_v13, %v3320_v38  ;;  %v3319_v1 = vsel %vm1685_vm5, %v3314_v40, %v3318_v9  ;;  %v3330_v40 = vor.u32 %v3329_v14, %v3328_v61 }
  0xde   : > { %v3332_v38 = vrot.slane %v2754_v52, 1  ;;  %v3333_v13 = vrot.slane %v2750_v43, 2 }
  0xe0   : > { %11562 = vmatmul.mubr.msk.bf16.gmra.mxu0 %vm763_vm2, %v2801_v50  ;;  %11536 = vmatmul.mubr.msk.bf16.gmra.mxu1 %vm763_vm2, %v2374_v18  ;;  %v3325_v18 = vrot.slane %v2734_v32, 2  ;;  %v3334_v43 = vor.u32 %v3333_v13, %v3332_v38 }
  0xe1   : > { %11565 = vmatprep.mubr.msk.bf16.mxu0 %vm763_vm2, %v2809_v53  ;;  %11571 = vmatprep.mubr.msk.bf16.mxu1 %vm763_vm2, %v3049_v57  ;;  %v3054_v53 = vrot.slane %v12991_v51, 1  ;;  %v13255_v57 = vld [vmem:[%s16584_s0 + $0x60] sm:$0xff]  }
  0xe2   : > { %v3326_v30 = vor.u32 %v3325_v18, %v3324_v41  ;;  %v3341_v18 = vrot.slane %v2766_v17, 2  ;;  %v3335_v14 = vsel %vm1685_vm5, %v3330_v40, %v3334_v43 }
  0xe3   : > { %v3055_v51 = vsel %vm3046_vm8, %v3052_v37, %v3054_v53  ;;  %v3057_v28 = vsel %vm3046_vm8, %v3054_v53, %v3056_v2 }
  0xe4   : > { %v3327_v55 = vsel %vm1685_vm5, %v3322_v8, %v3326_v30 }
  0xe8   : > { %v13215_v50 = vpop.f32.mrf.mxu0  ;;  %11566 = vmatmul.mubr.msk.bf16.gmra.mxu0 %vm763_vm2, %v2817_v58  ;;  %v13228_v34 = vpop.f32.mrf.mxu1  ;;  %11572 = vmatmul.mubr.msk.bf16.vlgmr.msra.gmra.mxu1 %vm763_vm2, %v3051_v35  ;;  %v3331_v35 = vsel %vm1685_vm5, %v3326_v30, %v3330_v40 }
  0xe9   : > { %11601 = vmatprep.mubr.msk.bf16.mxu0 %vm763_vm2, %v3315_v7  ;;  %11630 = vmatpush3.bf16.msra.mxu1 %v13010_v4  ;;  %v3323_v4 = vsel %vm1685_vm5, %v3318_v9, %v3322_v8  ;;  %v3060_v7 = vrot.slane %v13056_v47, 1  ;;  %v3337_v9 = vrot.slane %v2758_v29, 2 }
  0xea   : > { %v13219_v56 = vpop.f32.mrf.mxu0  ;;  %11575 = vmatprep.mubr.msk.bf16.mxu1 %vm763_vm2, %v3053_v6  ;;  %v13236_v22 = vpop.f32.mrf.mxu1  ;;  %11689 = vmatprep.subr.bf16.mxu1 %v13226_v46  ;;  %v3336_v6 = vrot.slane %v2762_v54, 1 }
  0xec   : > { %v13231_v3 = vpop.f32.mrf.mxu0  ;;  %v13257_v62 = vpop.f32.mrf.mxu1  ;;  %v3338_v54 = vor.u32 %v3337_v9, %v3336_v6  ;;  %v3349_v9 = vrot.slane %v2782_v21, 2  ;;  %v3353_v21 = vrot.slane %v2790_v25, 2 }
  0xee   : > { %v13238_v48 = vpop.f32.mrf.mxu0  ;;  %v13263_v32 = vpop.f32.mrf.mxu1  ;;  %v3339_v30 = vsel %vm1685_vm5, %v3334_v43, %v3338_v54 }
  0xf0   : > { %v13259_v36 = vpop.f32.mrf.mxu0  ;;  %11602 = vmatmul.mubr.msk.bf16.vlgmr.msra.gmra.mxu0 %vm763_vm2, %v3319_v1  ;;  %v13271_v45 = vpop.f32.mrf.mxu1  ;;  %11576 = vmatmul.mubr.msk.bf16.gmra.mxu1 %vm763_vm2, %v3055_v51  ;;  %v3064_v51 = vrot.slane %v13089_v10, 1 }
  0xf1   : > { %11660 = vmatpush3.bf16.msra.mxu0 %v13028_v27  ;;  %11605 = vmatprep.mubr.msk.bf16.mxu0 %vm763_vm2, %v3323_v4  ;;  %v3058_v27 = vrot.slane %v13041_v15, 1  ;;  %v3340_v4 = vrot.slane %v2770_v42, 1 }
  0xf2   : > { %v13266_v60 = vpop.f32.mrf.mxu0  ;;  %11719 = vmatprep.subr.bf16.mxu0 %v13255_v57  ;;  %11579 = vmatprep.mubr.msk.bf16.mxu1 %vm763_vm2, %v3057_v28  ;;  %v13278_v58 = vpop.f32.mrf.mxu1 }
  0xf3   : > { %v3059_v8 = vsel %vm3046_vm8, %v3056_v2, %v3058_v27  ;;  %v3061_v15 = vsel %vm3046_vm8, %v3058_v27, %v3060_v7  ;;  %v3062_v2 = vrot.slane %v13075_v33, 1  ;;  %v3344_v27 = vrot.slane %v2778_v12, 1 }
  0xf4   : > { %v13274_v63 = vpop.f32.mrf.mxu0  ;;  %v13293_v53 = vpop.f32.mrf.mxu1  ;;  %v3342_v13 = vor.u32 %v3341_v18, %v3340_v4 }
  0xf5   : > { %v3063_v42 = vsel %vm3046_vm8, %v3060_v7, %v3062_v2  ;;  %v3065_v38 = vsel %vm3046_vm8, %v3062_v2, %v3064_v51  ;;  %v3066_v7 = vrot.slane %v13113_v16, 1  ;;  %v3068_v2 = vrot.slane %v13127_v39, 1  ;;  %v13359_v16 = vld [vmem:[#allocation2 + $0x70] sm:$0xf] }
  0xf6   : > { %v13280_v37 = vpop.f32.mrf.mxu0  ;;  %v13299_v52 = vpop.f32.mrf.mxu1  ;;  %v3343_v43 = vsel %vm1685_vm5, %v3338_v54, %v3342_v13 }
  0xf8   : > { %v13295_v1 = vpop.f32.mrf.mxu0  ;;  %11606 = vmatmul.mubr.msk.bf16.gmra.mxu0 %vm763_vm2, %v3327_v55  ;;  %v13305_v47 = vpop.f32.mrf.mxu1  ;;  %11580 = vmatmul.mubr.msk.bf16.gmra.mxu1 %vm763_vm2, %v3059_v8  ;;  %v3345_v55 = vrot.slane %v2774_v26, 2  ;;  %v3348_v8 = vrot.slane %v2786_v44, 1 }
  0xf9   : > { %11609 = vmatprep.mubr.msk.bf16.mxu0 %vm763_vm2, %v3331_v35  ;;  %11583 = vmatprep.mubr.msk.bf16.mxu1 %vm763_vm2, %v3061_v15 }
  0xfa   : > { %v13303_v41 = vpop.f32.mrf.mxu0  ;;  %v13316_v61 = vpop.f32.mrf.mxu1  ;;  %v3346_v12 = vor.u32 %v3345_v55, %v3344_v27  ;;  %v3350_v39 = vor.u32 %v3349_v9, %v3348_v8 }
  0xfc   : > { %v13308_v29 = vpop.f32.mrf.mxu0  ;;  %v13327_v17 = vpop.f32.mrf.mxu1  ;;  %v3347_v4 = vsel %vm1685_vm5, %v3342_v13, %v3346_v12 }
  0xfe   : > { %v13320_v28 = vpop.f32.mrf.mxu0  ;;  %v13333_v40 = vpop.f32.mrf.mxu1 }
 0x100   : > { %v13329_v33 = vpop.f32.mrf.mxu0  ;;  %11610 = vmatmul.mubr.msk.bf16.gmra.mxu0 %vm763_vm2, %v3335_v14  ;;  %v11393_v10 = vpop.f32.mrf.mxu1  ;;  %11584 = vmatmul.mubr.msk.bf16.gmra.mxu1 %vm763_vm2, %v3063_v42  ;;  %v3352_v14 = vrot.slane %v2794_v20, 1  ;;  %v3069_v20 = vsel %vm3046_vm8, %v3066_v7, %v3068_v2 }
 0x101   : > { %11613 = vmatprep.mubr.msk.bf16.mxu0 %vm763_vm2, %v3339_v30  ;;  %v1180_v26 = vadd.f32 %v11393_v10, %v13215_v50  ;;  %11587 = vmatprep.mubr.msk.bf16.mxu1 %vm763_vm2, %v3065_v38  ;;  %v3594_v30 = vld [vmem:[#allocation2 + $0x6c] sm:$0xf]  ;;  %v3596_v10 = vld [vmem:[#allocation2 + $0x74] sm:$0xf] }
 0x102   : > { %v13337_v35 = vpop.f32.mrf.mxu0  ;;  %v1171_v15 = vpop.f32.mrf.mxu1  ;;  %v13369_v25 = vcombine.low %v3594_v30, %v13359_v16 }
 0x103   : > { %v1172_v18 = vadd.f32 %v1171_v15, %v13219_v56  ;;  %v3067_v56 = vsel %vm3046_vm8, %v3064_v51, %v3066_v7  ;;  %v3357_v15 = vrot.slane %v2798_v24, 2  ;;  %v3356_v51 = vrot.slane %v2802_v19, 1 }
 0x104   : > { %v13341_v6 = vpop.f32.mrf.mxu0  ;;  %v11394_v44 = vpop.f32.mrf.mxu1  ;;  %v3070_v7 = vrot.slane %v13134_v49, 1  ;;  %v3351_v19 = vsel %vm1685_vm5, %v3346_v12, %v3350_v39 }
 0x105   : > { %v1183_v54 = vadd.f32 %v11394_v44, %v13231_v3  ;;  %v3354_v3 = vor.u32 %v3353_v21, %v3352_v14  ;;  %v13387_v21 = vcombine.low %v3596_v10, %v12979_v11  ;;  %v3360_v44 = vrot.slane %v2810_v59, 1 }
 0x106   : > { %v13352_v50 = vpop.f32.mrf.mxu0  ;;  %v1174_v55 = vpop.f32.mrf.mxu1  ;;  %v3071_v12 = vsel %vm3046_vm8, %v3068_v2, %v3070_v7 }
 0x107   : > { %v1175_v38 = vadd.f32 %v1174_v55, %v13238_v48  ;;  %v3072_v48 = vrot.slane %v13155_v23, 1  ;;  %v3358_v55 = vor.u32 %v3357_v15, %v3356_v51  ;;  %v3700_v23 = vshrl.u32 %v13369_v25, 16  ;;  %v3600_v51 = vld [vmem:[#allocation2 + $0x84] sm:$0xf] }
 0x108   : > { %v11423_v27 = vpop.f32.mrf.mxu0  ;;  %11614 = vmatmul.mubr.msk.bf16.gmra.mxu0 %vm763_vm2, %v3343_v43  ;;  %11588 = vmatmul.mubr.msk.bf16.gmra.mxu1 %vm763_vm2, %v3067_v56  ;;  %v13407_v2 = vshll.u32 %v13387_v21, 16 }
 0x109   : > { %v13364_v42 = vadd.f32 %v11423_v27, %v1180_v26  ;;  %11617 = vmatprep.mubr.msk.bf16.mxu0 %vm763_vm2, %v3347_v4  ;;  %v11397_v26 = vpop.f32.mrf.mxu1  ;;  %11591 = vmatprep.mubr.msk.bf16.mxu1 %vm763_vm2, %v3069_v20  ;;  %v12262_v4 = vld [vmem:[#allocation2 + $0xd0] ss:$0 sps:$4 sm:$0x33]   ;;  %v3361_v27 = vrot.slane %v2806_v5, 2 }
 0x10a   : > { %v1441_v13 = vpop.f32.mrf.mxu0  ;;  %v1196_v9 = vadd.f32 %v11397_v26, %v13259_v36  ;;  %v3355_v36 = vsel %vm1685_vm5, %v3350_v39, %v3354_v3  ;;  %v3365_v39 = vshrl.u32 %v12262_v4, 16  ;;  %v3368_v10 = vshll.u32 %v12262_v4, 16  ;;  %v3599_v26 = vld [vmem:[#allocation2 + $0x80] sm:$0xf] }
 0x10b   : > { %v13377_v43 = vadd.f32 %v1441_v13, %v1172_v18  ;;  %v1187_v14 = vpop.f32.mrf.mxu1  ;;  %v3702_v18 = vshll.u32 %v13369_v25, 16  ;;  %v3362_v15 = vor.u32 %v3361_v27, %v3360_v44  ;;  %v4036_v25 = vld [vmem:[#allocation2 + $0x6c] sm:$0xe] }
 0x10c   : > { %v11424_v8 = vpop.f32.mrf.mxu0  ;;  %v1188_v49 = vadd.f32 %v1187_v14, %v13266_v60  ;;  %v3073_v60 = vsel %vm3046_vm8, %v3070_v7, %v3072_v48  ;;  %v3601_v7 = vld [vmem:[#allocation2 + $0x88] sm:$0xf]  ;;  %v3370_v44 = vrot.slane %v3368_v10, 2 }
 0x10d   : > { %v13383_v24 = vadd.f32 %v11424_v8, %v1183_v54  ;;  %v11398_v54 = vpop.f32.mrf.mxu1  ;;  %v3704_v5 = vrot.slane %v3702_v18, 1 }
 0x10e   : > { %v1444_v30 = vpop.f32.mrf.mxu0  ;;  %v1199_v20 = vadd.f32 %v11398_v54, %v13274_v63 }
 0x10f   : > { %v13396_v56 = vadd.f32 %v1444_v30, %v1175_v38  ;;  %v1190_v59 = vpop.f32.mrf.mxu1 }
 0x110   : > { %v11427_v13 = vpop.f32.mrf.mxu0  ;;  %11618 = vmatmul.mubr.msk.bf16.gmra.mxu0 %vm763_vm2, %v3351_v19  ;;  %v1191_v63 = vadd.f32 %v1190_v59, %v13280_v37  ;;  %11592 = vmatmul.mubr.msk.bf16.gmra.mxu1 %vm763_vm2, %v3071_v12  ;;  %v13415_v19 = vcombine.low %v12982_v31, %v3599_v26  ;;  %v3359_v37 = vsel %vm1685_vm5, %v3354_v3, %v3358_v55  ;;  %v3709_v12 = vrot.slane %v13407_v2, 1 }
 0x111   : > { %v13402_v8 = vadd.f32 %v11427_v13, %v1196_v9  ;;  %11621 = vmatprep.mubr.msk.bf16.mxu0 %vm763_vm2, %v3355_v36  ;;  %v11401_v14 = vpop.f32.mrf.mxu1  ;;  %v3074_v9 = vrot.slane %v13175_v0, 1  ;;  %11595 = vmatprep.mubr.msk.bf16.mxu1 %vm763_vm2, %v3073_v60  ;;  %v3367_v36 = vrot.slane %v3365_v39, 1  ;;  %v13423_v0 = vcombine.low %v3600_v51, %v3601_v7 }
 0x112   : > { %v1457_v38 = vpop.f32.mrf.mxu0  ;;  %v1212_v18 = vadd.f32 %v11401_v14, %v13295_v1  ;;  %v3363_v1 = vsel %vm1685_vm5, %v3358_v55, %v3362_v15  ;;  %v13428_v59 = vcombine.low %v4036_v25, %v13359_v16  ;;  %v13433_v39 = vshll.u32 %v13415_v19, 16  ;;  %v3602_v55 = vld [vmem:[#allocation2 + $0x8c] sm:$0xf] }
 0x113   : > { %v13411_v4 = vadd.f32 %v1457_v38, %v1188_v49  ;;  %v1203_v27 = vpop.f32.mrf.mxu1  ;;  %v3705_v49 = vor.u32 %v3704_v5, %v3700_v23  ;;  %v3075_v23 = vsel %vm3046_vm8, %v3072_v48, %v3074_v9  ;;  %v13439_v5 = vshrl.u32 %v13387_v21, 16  ;;  %v3603_v38 = vld [vmem:[#allocation2 + $0x90] sm:$0xf] }
 0x114   : > { %v11428_v30 = vpop.f32.mrf.mxu0  ;;  %v1204_v13 = vadd.f32 %v1203_v27, %v13303_v41  ;;  %v3371_v41 = vor.u32 %v3370_v44, %v3367_v36  ;;  %v13449_v14 = vshll.u32 %v13423_v0, 16  ;;  %v4043_v25 = vrot.slane %v13428_v59, 1 }
 0x115   : > { %v13420_v54 = vadd.f32 %v11428_v30, %v1199_v20  ;;  %v11402_v60 = vpop.f32.mrf.mxu1  ;;  %v4044_v30 = vrot.slane %v13387_v21, 1  ;;  %v3717_v27 = vrot.slane %v13433_v39, 1 }
 0x116   : > { %v1460_v26 = vpop.f32.mrf.mxu0  ;;  %v1215_v20 = vadd.f32 %v11402_v60, %v13308_v29  ;;  %v13446_v29 = vshrl.u32 %v13415_v19, 16  ;;  %v3713_v60 = vor.u32 %v13439_v5, %v3709_v12 }
 0x117   : > { %v13430_v3 = vadd.f32 %v1460_v26, %v1191_v63  ;;  %v1206_v51 = vpop.f32.mrf.mxu1  ;;  %v3710_v63 = vsel %vm2701_vm7, %v3705_v49, %v3709_v12  ;;  %v13458_v49 = vcombine.low %v3602_v55, %v3603_v38 }
 0x118   : > { %v11431_v10 = vpop.f32.mrf.mxu0  ;;  %11622 = vmatmul.mubr.msk.bf16.gmra.mxu0 %vm763_vm2, %v3359_v37  ;;  %v1207_v48 = vadd.f32 %v1206_v51, %v13320_v28  ;;  %v3604_v37 = vld [vmem:[#allocation2 + $0x94] sm:$0xf]  ;;  %11596 = vmatmul.mubr.msk.bf16.gmra.mxu1 %vm763_vm2, %v3075_v23  ;;  %v3372_v28 = vsel %vm1685_vm5, %v3362_v15, %v3371_v41  ;;  %v3721_v23 = vor.u32 %v13446_v29, %v3717_v27 }
 0x119   : > { %v13441_v7 = vadd.f32 %v11431_v10, %v1212_v18  ;;  %11625 = vmatprep.mubr.msk.bf16.mxu0 %vm763_vm2, %v3363_v1  ;;  %v3605_v18 = vld [vmem:[#allocation2 + $0x98] sm:$0xf]  ;;  %v11405_v36 = vpop.f32.mrf.mxu1  ;;  %11631 = vmatprep.mubr.msk.bf16.mxu1 %vm763_vm2, %v3710_v63  ;;  %v13475_v12 = vshll.u32 %v13458_v49, 16  ;;  %v3718_v63 = vsel %vm2701_vm7, %v3713_v60, %v3717_v27  ;;  %v13497_v27 = vld [vmem:[%s16584_s0 + $0x68] sm:$0xff]  }
 0x11a   : > { %v1473_v9 = vpop.f32.mrf.mxu0  ;;  %v1228_v26 = vadd.f32 %v11405_v36, %v13329_v33  ;;  %v13468_v51 = vcombine.low %v3604_v37, %v3605_v18  ;;  %v4045_v33 = vsel %vm3046_vm8, %v4043_v25, %v4044_v30  ;;  %v13481_v37 = vshrl.u32 %v13423_v0, 16  ;;  %v3606_v18 = vld [vmem:[#allocation2 + $0x9c] sm:$0xf]  ;;  %v3607_v25 = vld [vmem:[#allocation2 + $0xa0] sm:$0xf]  ;;  %16728 = vst [vmem:[#allocation6_spill] sm:$0xff] %v13497_v27 }
 0x11b   : > { %v13455_v44 = vadd.f32 %v1473_v9, %v1204_v13  ;;  %v1219_v21 = vpop.f32.mrf.mxu1  ;;  %v3725_v13 = vrot.slane %v13449_v14, 1 }
 0x11c   : > { %v11432_v1 = vpop.f32.mrf.mxu0  ;;  %v1220_v55 = vadd.f32 %v1219_v21, %v13337_v35  ;;  %v4046_v35 = vrot.slane %v13415_v19, 1  ;;  %v3608_v21 = vld [vmem:[#allocation2 + $0xa4] sm:$0xf] }
 0x11d   : > { %v13464_v10 = vadd.f32 %v11432_v1, %v1215_v20  ;;  %v11406_v9 = vpop.f32.mrf.mxu1  ;;  %v3726_v1 = vsel %vm2701_vm7, %v3721_v23, %v3725_v13 }
 0x11e   : > { %v1476_v38 = vpop.f32.mrf.mxu0  ;;  %v1231_v20 = vadd.f32 %v11406_v9, %v13341_v6  ;;  %v13489_v6 = vshrl.u32 %v13458_v49, 16  ;;  %v3733_v9 = vrot.slane %v13475_v12, 1 }
 0x11f   : > { %v13472_v15 = vadd.f32 %v1476_v38, %v1207_v48  ;;  %v1222_v36 = vpop.f32.mrf.mxu1  ;;  %v3609_v38 = vld [vmem:[#allocation2 + $0xa8] sm:$0xf] }
 0x120   : > { %v11435_v41 = vpop.f32.mrf.mxu0  ;;  %11626 = vmatmul.mubr.msk.bf16.gmra.mxu0 %vm763_vm2, %v3372_v28  ;;  %v13492_v28 = vshll.u32 %v13468_v51, 16  ;;  %v1223_v19 = vadd.f32 %v1222_v36, %v13352_v50  ;;  %11632 = vmatmul.mubr.msk.bf16.vlgmr.msra.gmra.mxu1 %vm763_vm2, %v3718_v63  ;;  %v3729_v50 = vor.u32 %v13481_v37, %v3725_v13 }
 0x121   : > { %v13484_v48 = vadd.f32 %v11435_v41, %v1228_v26  ;;  %11661 = vmatprep.mubr.msk.bf16.mxu0 %vm763_vm2, %v4045_v33  ;;  %v4048_v26 = vrot.slane %v13423_v0, 1  ;;  %v11409_v33 = vpop.f32.mrf.mxu1  ;;  %v13505_v41 = vcombine.low %v3606_v18, %v3607_v25  ;;  %11690 = vmatpush3.bf16.msra.mxu1 %v13226_v46  ;;  %v4047_v0 = vsel %vm3046_vm8, %v4044_v30, %v4046_v35  ;;  %v13524_v30 = vld [vmem:[%s16584_s0 + $0x70] sm:$0xff]  }
 0x122   : > { %v1489_v60 = vpop.f32.mrf.mxu0  ;;  %v1244_v31 = vadd.f32 %v11409_v33, %v13228_v34  ;;  %11635 = vmatprep.mubr.msk.bf16.mxu1 %vm763_vm2, %v3726_v1  ;;  %v3741_v63 = vrot.slane %v13492_v28, 1  ;;  %v13516_v18 = vcombine.low %v3608_v21, %v3609_v38  ;;  %11749 = vmatprep.subr.bf16.mxu1 %v13497_v27  ;;  %16729 = vst [vmem:[#allocation7_spill] sm:$0xff] %v13524_v30  ;;  %v4050_v21 = vrot.slane %v13458_v49, 1  ;;  %v3610_v38 = vld [vmem:[#allocation2 + $0xac] sm:$0xf] }
 0x123   : > { %16727 = vst [vmem:[#allocation5_spill] sm:$0xff] %v13484_v48  ;;  %v13502_v23 = vadd.f32 %v1489_v60, %v1220_v55  ;;  %v1235_v36 = vpop.f32.mrf.mxu1  ;;  %v3737_v55 = vor.u32 %v13489_v6, %v3733_v9  ;;  %v4049_v13 = vsel %vm3046_vm8, %v4046_v35, %v4048_v26  ;;  %v13529_v25 = vshll.u32 %v13505_v41, 16  ;;  %v3611_v33 = vld [vmem:[#allocation2 + $0xb0] sm:$0xf] }
 0x124   : > { %v11436_v11 = vpop.f32.mrf.mxu0  ;;  %v1236_v34 = vadd.f32 %v1235_v36, %v13236_v22  ;;  %v3734_v22 = vsel %vm2701_vm7, %v3729_v50, %v3733_v9  ;;  %v13535_v35 = vshrl.u32 %v13468_v51, 16  ;;  %v13547_v9 = vshll.u32 %v13516_v18, 16 }
 0x125   : > { %v13512_v48 = vadd.f32 %v11436_v11, %v1231_v20  ;;  %v11410_v11 = vpop.f32.mrf.mxu1  ;;  %16730 = vst [vmem:[#allocation8_spill] sm:$0xff] %v13529_v25 }
 0x126   : > { %v1492_v46 = vpop.f32.mrf.mxu0  ;;  %v1247_v1 = vadd.f32 %v11410_v11, %v13257_v62  ;;  %v3742_v62 = vsel %vm2701_vm7, %v3737_v55, %v3741_v63  ;;  %16733 = vst [vmem:[#allocation11_spill] sm:$0xff] %v13547_v9  ;;  %v3612_v11 = vld [vmem:[#allocation2 + $0xb4] sm:$0xf]  ;;  %v3749_v55 = vrot.slane %v13529_v25, 1 }
 0x127   : > { %v13526_v20 = vadd.f32 %v1492_v46, %v1223_v19  ;;  %v1238_v36 = vpop.f32.mrf.mxu1  ;;  %v4052_v46 = vrot.slane %v13468_v51, 1  ;;  %v4051_v51 = vsel %vm3046_vm8, %v4048_v26, %v4050_v21  ;;  %v3614_v26 = vld [vmem:[#allocation2 + $0xbc] sm:$0xf] }
 0x128   : > { %v11439_v60 = vpop.f32.mrf.mxu0  ;;  %11662 = vmatmul.mubr.msk.bf16.vlgmr.msra.gmra.mxu0 %vm763_vm2, %v4047_v0  ;;  %v13544_v0 = vshrl.u32 %v13505_v41, 16  ;;  %v1239_v50 = vadd.f32 %v1238_v36, %v13263_v32  ;;  %11636 = vmatmul.mubr.msk.bf16.gmra.mxu1 %vm763_vm2, %v3734_v22  ;;  %v3745_v32 = vor.u32 %v13535_v35, %v3741_v63 }
 0x129   : > { %v13538_v19 = vadd.f32 %v11439_v60, %v1244_v31  ;;  %11720 = vmatpush3.bf16.msra.mxu0 %v13255_v57  ;;  %11665 = vmatprep.mubr.msk.bf16.mxu0 %vm763_vm2, %v4049_v13  ;;  %v3613_v31 = vld [vmem:[#allocation2 + $0xb8] sm:$0xf]  ;;  %v11413_v57 = vpop.f32.mrf.mxu1  ;;  %v13556_v60 = vcombine.low %v3610_v38, %v3611_v33 }
 0x12a   : > { %16732 = vst [vmem:[#allocation10_spill] sm:$0xff] %v13544_v0  ;;  %v1505_v49 = vpop.f32.mrf.mxu0  ;;  %11779 = vmatprep.subr.bf16.mxu0 %v13524_v30  ;;  %v1260_v27 = vadd.f32 %v11413_v57, %v13271_v45  ;;  %11639 = vmatprep.mubr.msk.bf16.mxu1 %vm763_vm2, %v3742_v62  ;;  %v3753_v22 = vor.u32 %v13544_v0, %v3749_v55 }
 0x12b   : > { %16731 = vst [vmem:[#allocation9_spill] sm:$0xff] %v13538_v19  ;;  %v13553_v13 = vadd.f32 %v1505_v49, %v1236_v34  ;;  %v1251_v36 = vpop.f32.mrf.mxu1  ;;  %v3757_v34 = vrot.slane %v13547_v9, 1  ;;  %v13566_v49 = vcombine.low %v3612_v11, %v3613_v31  ;;  %v4053_v45 = vsel %vm3046_vm8, %v4050_v21, %v4052_v46  ;;  %v3616_v31 = vld [vmem:[#allocation2 + $0xc4] sm:$0xf] }
 0x12c   : > { %v11440_v19 = vpop.f32.mrf.mxu0  ;;  %v1252_v38 = vadd.f32 %v1251_v36, %v13278_v58  ;;  %v13573_v62 = vshll.u32 %v13556_v60, 16  ;;  %v3750_v11 = vsel %vm2701_vm7, %v3745_v32, %v3749_v55  ;;  %v13579_v58 = vshrl.u32 %v13516_v18, 16 }
 0x12d   : > { %v13562_v30 = vadd.f32 %v11440_v19, %v1247_v1  ;;  %v11414_v57 = vpop.f32.mrf.mxu1  ;;  %v3615_v1 = vld [vmem:[#allocation2 + $0xc0] sm:$0xf]  ;;  %v4054_v21 = vrot.slane %v13505_v41, 1  ;;  %v4056_v41 = vrot.slane %v13516_v18, 1 }
 0x12e   : > { %v1508_v33 = vpop.f32.mrf.mxu0  ;;  %v1263_v19 = vadd.f32 %v11414_v57, %v13293_v53  ;;  %v13587_v53 = vshrl.u32 %v13556_v60, 16  ;;  %v13594_v57 = vcombine.low %v3614_v26, %v3615_v1 }
 0x12f   : > { %16734 = vst [vmem:[#allocation12_spill] sm:$0xff] %v13562_v30  ;;  %v13570_v63 = vadd.f32 %v1508_v33, %v1239_v50  ;;  %v3617_v50 = vld [vmem:[#allocation2 + $0xc8] sm:$0xf]  ;;  %v1254_v36 = vpop.f32.mrf.mxu1  ;;  %v4055_v1 = vsel %vm3046_vm8, %v4052_v46, %v4054_v21 }
 0x130   : > { %v11443_v25 = vpop.f32.mrf.mxu0  ;;  %11666 = vmatmul.mubr.msk.bf16.gmra.mxu0 %vm763_vm2, %v4051_v51  ;;  %v13590_v51 = vshll.u32 %v13566_v49, 16  ;;  %v1255_v55 = vadd.f32 %v1254_v36, %v13299_v52  ;;  %11640 = vmatmul.mubr.msk.bf16.gmra.mxu1 %vm763_vm2, %v3750_v11  ;;  %v3761_v52 = vor.u32 %v13579_v58, %v3757_v34  ;;  %v4057_v36 = vsel %vm3046_vm8, %v4054_v21, %v4056_v41 }
 0x131   : > { %16735 = vst [vmem:[#allocation13_spill] sm:$0xff] %v13570_v63  ;;  %v13582_v33 = vadd.f32 %v11443_v25, %v1260_v27  ;;  %11669 = vmatprep.mubr.msk.bf16.mxu0 %vm763_vm2, %v4053_v45  ;;  %v3758_v63 = vsel %vm2701_vm7, %v3753_v22, %v3757_v34  ;;  %v11417_v9 = vpop.f32.mrf.mxu1  ;;  %v3765_v25 = vrot.slane %v13573_v62, 1  ;;  %v13600_v22 = vcombine.low %v3616_v31, %v3617_v50  ;;  %v3618_v45 = vld [vmem:[#allocation2 + $0xcc] sm:$0xf] }
 0x132   : > { %v1521_v32 = vpop.f32.mrf.mxu0  ;;  %v1276_v0 = vadd.f32 %v11417_v9, %v13305_v47  ;;  %11643 = vmatprep.mubr.msk.bf16.mxu1 %vm763_vm2, %v3758_v63  ;;  %v3773_v11 = vrot.slane %v13590_v51, 1  ;;  %v13613_v47 = vshll.u32 %v13594_v57, 16  ;;  %v13626_v21 = vshrl.u32 %v13566_v49, 16 }
 0x133   : > { %16736 = vst [vmem:[#allocation14_spill] sm:$0xff] %v13582_v33  ;;  %v13597_v27 = vadd.f32 %v1521_v32, %v1252_v38  ;;  %v3619_v33 = vld [vmem:[#allocation2 + $0xd0] sm:$0xf]  ;;  %v1267_v18 = vpop.f32.mrf.mxu1  ;;  %v3769_v38 = vor.u32 %v13587_v53, %v3765_v25  ;;  %v3620_v32 = vld [vmem:[#allocation2 + $0xd4] sm:$0xf] }
 0x134   : > { %v11444_v30 = vpop.f32.mrf.mxu0  ;;  %v1268_v31 = vadd.f32 %v1267_v18, %v13316_v61  ;;  %16737 = vst [vmem:[#allocation15_spill] sm:$0xff] %v13613_v47  ;;  %v13615_v9 = vcombine.low %v3618_v45, %v3619_v33  ;;  %v3766_v61 = vsel %vm2701_vm7, %v3761_v52, %v3765_v25  ;;  %v3621_v33 = vld [vmem:[#allocation2 + $0xd8] sm:$0xf]  ;;  %v3781_v52 = vrot.slane %v13613_v47, 1  ;;  %v4590_v47 = vld [vmem:[#allocation2 + $0x6c] sm:$0x8] }
 0x135   : > { %v13605_v26 = vadd.f32 %v11444_v30, %v1263_v19  ;;  %v11418_v34 = vpop.f32.mrf.mxu1  ;;  %v13620_v30 = vshll.u32 %v13600_v22, 16 }
 0x136   : > { %v1524_v50 = vpop.f32.mrf.mxu0  ;;  %v1279_v46 = vadd.f32 %v11418_v34, %v13327_v17  ;;  %v4058_v17 = vrot.slane %v13556_v60, 1  ;;  %v4060_v34 = vrot.slane %v13566_v49, 1 }
 0x137   : > { %v13617_v63 = vadd.f32 %v1524_v50, %v1255_v55  ;;  %16739 = vst [vmem:[#allocation17_spill] sm:$0xff] %v13620_v30  ;;  %v1270_v45 = vpop.f32.mrf.mxu1  ;;  %v3774_v55 = vsel %vm2701_vm7, %v3769_v38, %v3773_v11  ;;  %v13634_v50 = vshrl.u32 %v13594_v57, 16  ;;  %v3789_v60 = vrot.slane %v13620_v30, 1  ;;  %v13665_v30 = vld [vmem:[#allocation2 + $0xdc] ss:$0 sps:$4 sm:$0x11]  }
 0x138   : > { %v11447_v19 = vpop.f32.mrf.mxu0  ;;  %11670 = vmatmul.mubr.msk.bf16.gmra.mxu0 %vm763_vm2, %v4055_v1  ;;  %v1271_v1 = vadd.f32 %v1270_v45, %v13333_v40  ;;  %11644 = vmatmul.mubr.msk.bf16.gmra.mxu1 %vm763_vm2, %v3766_v61  ;;  %v13650_v40 = vcombine.low %v3620_v32, %v3621_v33  ;;  %v3777_v61 = vor.u32 %v13626_v21, %v3773_v11 }
 0x139   : > { %16738 = vst [vmem:[#allocation16_spill] sm:$0xff] %v13617_v63  ;;  %v13628_v18 = vadd.f32 %v11447_v19, %v1276_v0  ;;  %11673 = vmatprep.mubr.msk.bf16.mxu0 %vm763_vm2, %v4057_v36  ;;  %16740 = vst [vmem:[#allocation18_spill] sm:$0xff] %v13634_v50  ;;  %v13640_v63 = vshll.u32 %v13615_v9, 16  ;;  %v11453_v0 = vpop.f32.mrf.mxu1  ;;  %v13648_v36 = vshrl.u32 %v13600_v22, 16  ;;  %11647 = vmatprep.mubr.msk.bf16.mxu1 %vm763_vm2, %v3774_v55  ;;  %v4062_v55 = vrot.slane %v13594_v57, 1 }
 0x13a   : > { %v1537_v25 = vpop.f32.mrf.mxu0  ;;  %v2015_v49 = vadd.f32 %v11453_v0, %v13364_v42  ;;  %v4059_v32 = vsel %vm3046_vm8, %v4056_v41, %v4058_v17  ;;  %v3785_v33 = vor.u32 %v13634_v50, %v3781_v52  ;;  %v4061_v11 = vsel %vm3046_vm8, %v4058_v17, %v4060_v34 }
 0x13b   : > { %16741 = vst [vmem:[#allocation19_spill] sm:$0xff] %v13640_v63  ;;  %v13644_v38 = vadd.f32 %v1537_v25, %v1268_v31  ;;  %v563_v31 = vld [vmem:[%s13655_s10] sm:$0xf]  ;;  %v1902_v45 = vpop.f32.mrf.mxu1  ;;  %v3793_v41 = vor.u32 %v13648_v36, %v3789_v60  ;;  %v13676_v50 = vshrl.u32 %v13615_v9, 16  ;;  %v3782_v57 = vsel %vm2701_vm7, %v3777_v61, %v3781_v52 }
 0x13c   : > { %v11448_v19 = vpop.f32.mrf.mxu0  ;;  %591 = vst.msk [vmem:[#allocation2 + $0xe0] sm:$0xf] %vm478_vm0, %v563_v31  ;;  %v2013_v42 = vadd.f32 %v1902_v45, %v13377_v43  ;;  %v3811_v43 = vshll.u32 %v13665_v30, 16  ;;  %v4301_v52 = vshrl.u32 %v13428_v59, 16 }
 0x13d   : > { %16742 = vst [vmem:[#allocation20_spill] sm:$0xff] %v13644_v38  ;;  %v13661_v25 = vadd.f32 %v11448_v19, %v1279_v46  ;;  %v3797_v38 = vrot.slane %v13640_v63, 1  ;;  %v11454_v46 = vpop.f32.mrf.mxu1  ;;  %16745 = vst [vmem:[#allocation23_spill] sm:$0xff] %v13676_v50  ;;  %v3790_v63 = vsel %vm2701_vm7, %v3785_v33, %v3789_v60 }
 0x13e   : > { %v1540_v0 = vpop.f32.mrf.mxu0  ;;  %v2016_v31 = vadd.f32 %v11454_v46, %v13383_v24 }
 0x13f   : > { %16743 = vst [vmem:[#allocation21_spill] sm:$0xff] %v13661_v25  ;;  %v13672_v19 = vadd.f32 %v1540_v0, %v1271_v1  ;;  %v13679_v25 = vshll.u32 %v13650_v40, 16  ;;  %v10522_v1 = vcombine.low %v4590_v47, %v13359_v16  ;;  %v1905_v45 = vpop.f32.mrf.mxu1  ;;  %v4304_v16 = vshll.u32 %v13428_v59, 16 }
 0x140   : > { %v11483_v17 = vpop.f32.mrf.mxu0  ;;  %11674 = vmatmul.mubr.msk.bf16.gmra.mxu0 %vm763_vm2, %v4059_v32  ;;  %v2014_v24 = vadd.f32 %v1905_v45, %v13396_v56  ;;  %v4063_v32 = vsel %vm3046_vm8, %v4060_v34, %v4062_v55  ;;  %11648 = vmatmul.mubr.msk.bf16.gmra.mxu1 %vm763_vm2, %v3782_v57  ;;  %v3798_v60 = vsel %vm2701_vm7, %v3793_v41, %v3797_v38  ;;  %v13705_v34 = vshrl.u32 %v13650_v40, 16 }
 0x141   : > { %16744 = vst [vmem:[#allocation22_spill] sm:$0xff] %v13672_v19  ;;  %16746 = vst [vmem:[#allocation24_spill] sm:$0xff] %v13679_v25  ;;  %v13686_v0 = vadd.f32 %v11483_v17, %v2015_v49  ;;  %11677 = vmatprep.mubr.msk.bf16.mxu0 %vm763_vm2, %v4061_v11  ;;  %v4064_v19 = vrot.slane %v13600_v22, 1  ;;  %v11457_v47 = vpop.f32.mrf.mxu1  ;;  %v3801_v22 = vor.u32 %v13676_v50, %v3797_v38  ;;  %v3805_v61 = vrot.slane %v13679_v25, 1 }
 0x142   : > { %v2160_v46 = vpop.f32.mrf.mxu0  ;;  %v2019_v56 = vadd.f32 %v11457_v47, %v13402_v8  ;;  %11651 = vmatprep.mubr.msk.bf16.mxu1 %vm763_vm2, %v3790_v63  ;;  %v4066_v59 = vrot.slane %v13615_v9, 1  ;;  %v4602_v11 = vshrl.u32 %v10522_v1, 16  ;;  %v3813_v57 = vrot.slane %v3811_v43, 1 }
 0x143   : > { %v13697_v49 = vadd.f32 %v2160_v46, %v2013_v42  ;;  %v1918_v17 = vpop.f32.mrf.mxu1  ;;  %v4065_v41 = vsel %vm3046_vm8, %v4062_v55, %v4064_v19  ;;  %v4605_v38 = vshll.u32 %v10522_v1, 16  ;;  %v4303_v8 = vrot.slane %v4301_v52, 1 }
 0x144   : > { %v11484_v33 = vpop.f32.mrf.mxu0  ;;  %v2017_v45 = vadd.f32 %v1918_v17, %v13411_v4  ;;  %v4306_v47 = vrot.slane %v4304_v16, 2  ;;  %v4308_v63 = vrot.slane %v13439_v5, 1  ;;  %v3806_v9 = vsel %vm2701_vm7, %v3801_v22, %v3805_v61 }
 0x145   : > { %16747 = vst [vmem:[#allocation25_spill] sm:$0xff] %v13697_v49  ;;  %v13708_v42 = vadd.f32 %v11484_v33, %v2016_v31  ;;  %v11458_v25 = vpop.f32.mrf.mxu1  ;;  %v4309_v50 = vrot.slane %v13407_v2, 2  ;;  %v4313_v31 = vrot.slane %v13433_v39, 2  ;;  %v4068_v4 = vrot.slane %v13650_v40, 1 }
 0x146   : > { %v2163_v46 = vpop.f32.mrf.mxu0  ;;  %v2020_v55 = vadd.f32 %v11458_v25, %v13420_v54  ;;  %v4070_v1 = vrot.slane %v13665_v30, 1  ;;  %v4604_v52 = vrot.slane %v4602_v11, 3  ;;  %v4609_v22 = vrot.slane %v13439_v5, 3 }
 0x147   : > { %v13713_v49 = vadd.f32 %v2163_v46, %v2014_v24  ;;  %v1921_v16 = vpop.f32.mrf.mxu1  ;;  %v4607_v24 = vrot.slane %v4605_v38, 4  ;;  %v4610_v17 = vrot.slane %v13407_v2, 4  ;;  %v4067_v2 = vsel %vm3046_vm8, %v4064_v19, %v4066_v59 }
 0x148   : > { %v11487_v43 = vpop.f32.mrf.mxu0  ;;  %11678 = vmatmul.mubr.msk.bf16.gmra.mxu0 %vm763_vm2, %v4063_v32  ;;  %v2018_v54 = vadd.f32 %v1921_v16, %v13430_v3  ;;  %11652 = vmatmul.mubr.msk.bf16.gmra.mxu1 %vm763_vm2, %v3798_v60  ;;  %v4307_v5 = vor.u32 %v4306_v47, %v4303_v8  ;;  %v4310_v3 = vor.u32 %v4309_v50, %v4308_v63  ;;  %v4316_v50 = vrot.slane %v13481_v37, 1 }
 0x149   : > { %v13722_v33 = vadd.f32 %v11487_v43, %v2019_v56  ;;  %11681 = vmatprep.mubr.msk.bf16.mxu0 %vm763_vm2, %v4065_v41  ;;  %v11461_v46 = vpop.f32.mrf.mxu1  ;;  %v3809_v56 = vor.u32 %v13705_v34, %v3805_v61  ;;  %11655 = vmatprep.mubr.msk.bf16.mxu1 %vm763_vm2, %v3806_v9  ;;  %v4069_v60 = vsel %vm3046_vm8, %v4066_v59, %v4068_v4  ;;  %v4317_v19 = vrot.slane %v13449_v14, 2 }
 0x14a   : > { %v2176_v25 = vpop.f32.mrf.mxu0  ;;  %v2023_v30 = vadd.f32 %v11461_v46, %v13441_v7  ;;  %v4611_v47 = vor.u32 %v4610_v17, %v4609_v22  ;;  %v16748_v46 = vld [vmem:[#allocation5_spill] sm:$0xff] }
 0x14b   : > { %v13729_v40 = vadd.f32 %v2176_v25, %v2017_v45  ;;  %v1934_v11 = vpop.f32.mrf.mxu1  ;;  %v3814_v9 = vsel %vm2701_vm7, %v3809_v56, %v3813_v57  ;;  %v16749_v56 = vrot.slane %v13446_v29, 1  ;;  %v4318_v22 = vor.u32 %v4317_v19, %v4316_v50 }
 0x14c   : > { %v11488_v32 = vpop.f32.mrf.mxu0  ;;  %v2021_v38 = vadd.f32 %v1934_v11, %v13455_v44  ;;  %v4311_v44 = vsel %vm1685_vm5, %v4307_v5, %v4310_v3 }
 0x14d   : > { %v13734_v41 = vadd.f32 %v11488_v32, %v2020_v55  ;;  %v11462_v45 = vpop.f32.mrf.mxu1  ;;  %v4314_v11 = vor.u32 %v4313_v31, %v16749_v56  ;;  %v4321_v31 = vrot.slane %v13475_v12, 2 }
 0x14e   : > { %v2179_v43 = vpop.f32.mrf.mxu0  ;;  %v2024_v7 = vadd.f32 %v11462_v45, %v13464_v10  ;;  %v4608_v10 = vor.u32 %v4607_v24, %v4604_v52  ;;  %v4071_v24 = vsel %vm3046_vm8, %v4068_v4, %v4070_v1 }
 0x14f   : > { %v13739_v16 = vadd.f32 %v2179_v43, %v2018_v54  ;;  %v1937_v55 = vpop.f32.mrf.mxu1  ;;  %v4613_v54 = vrot.slane %v13446_v29, 3  ;;  %v4617_v43 = vrot.slane %v13481_v37, 3  ;;  %v4324_v37 = vrot.slane %v13535_v35, 1 }
 0x150   : > { %v11491_v61 = vpop.f32.mrf.mxu0  ;;  %11682 = vmatmul.mubr.msk.bf16.gmra.mxu0 %vm763_vm2, %v4067_v2  ;;  %v2022_v59 = vadd.f32 %v1937_v55, %v13472_v15  ;;  %11656 = vmatmul.mubr.msk.bf16.gmra.mxu1 %vm763_vm2, %v3814_v9  ;;  %v4614_v15 = vrot.slane %v13433_v39, 4  ;;  %v4320_v39 = vrot.slane %v13489_v6, 1  ;;  %v4325_v55 = vrot.slane %v13492_v28, 2 }
 0x151   : > { %v13744_v25 = vadd.f32 %v11491_v61, %v2023_v30  ;;  %11685 = vmatprep.mubr.msk.bf16.mxu0 %vm763_vm2, %v4069_v60  ;;  %v11465_v63 = vpop.f32.mrf.mxu1  ;;  %11691 = vmatprep.mubr.msk.bf16.mxu1 %vm763_vm2, %v4311_v44  ;;  %v4618_v60 = vrot.slane %v13449_v14, 4  ;;  %v4319_v14 = vsel %vm1685_vm5, %v4314_v11, %v4318_v22 }
 0x152   : > { %v2192_v8 = vpop.f32.mrf.mxu0  ;;  %v2027_v30 = vadd.f32 %v11465_v63, %v16748_v46  ;;  %v4615_v1 = vor.u32 %v4614_v15, %v4613_v54  ;;  %v16751_v46 = vld [vmem:[#allocation6_spill] sm:$0xff]  ;;  %v4326_v15 = vor.u32 %v4325_v55, %v4324_v37  ;;  %v16757_v55 = vld [vmem:[#allocation13_spill] sm:$0xff] }
 0x153   : > { %v13752_v57 = vadd.f32 %v2192_v8, %v2021_v38  ;;  %v1950_v2 = vpop.f32.mrf.mxu1  ;;  %v4612_v38 = vsel %vm1289_vm4, %v4608_v10, %v4611_v47  ;;  %v4619_v50 = vor.u32 %v4618_v60, %v4617_v43  ;;  %v4322_v8 = vor.u32 %v4321_v31, %v4320_v39  ;;  %v16750_v10 = vld [vmem:[#allocation9_spill] sm:$0xff]  ;;  %v16752_v60 = vld [vmem:[#allocation12_spill] sm:$0xff]  ;;  %v16753_v31 = vld [vmem:[#allocation10_spill] sm:$0xff] }
 0x154   : > { %v11492_v32 = vpop.f32.mrf.mxu0  ;;  %v2025_v17 = vadd.f32 %v1950_v2, %v13502_v23  ;;  %v4315_v23 = vsel %vm1685_vm5, %v4310_v3, %v4314_v11  ;;  %v4616_v11 = vsel %vm1289_vm4, %v4611_v47, %v4615_v1 }
 0x155   : > { %v13760_v52 = vadd.f32 %v11492_v32, %v2024_v7  ;;  %v11466_v45 = vpop.f32.mrf.mxu1  ;;  %v4622_v32 = vrot.slane %v13475_v12, 4  ;;  %v13805_v12 = vld [vmem:[%s16584_s0 + $0x80] sm:$0xff]   ;;  %v4323_v47 = vsel %vm1685_vm5, %v4318_v22, %v4322_v8  ;;  %v4332_v22 = vrot.slane %v13579_v58, 1 }
 0x156   : > { %v2195_v5 = vpop.f32.mrf.mxu0  ;;  %v2028_v7 = vadd.f32 %v11466_v45, %v13512_v48  ;;  %v13783_v48 = vld [vmem:[%s16584_s0 + $0x78] sm:$0xff]  }
 0x157   : > { %v13767_v29 = vadd.f32 %v2195_v5, %v2022_v59  ;;  %v1953_v61 = vpop.f32.mrf.mxu1  ;;  %v4625_v5 = vrot.slane %v13535_v35, 3  ;;  %v4328_v35 = vrot.slane %v16753_v31, 1 }
 0x158   : > { %v11495_v4 = vpop.f32.mrf.mxu0  ;;  %11686 = vmatmul.mubr.msk.bf16.gmra.mxu0 %vm763_vm2, %v4071_v24  ;;  %v2026_v44 = vadd.f32 %v1953_v61, %v13526_v20  ;;  %11692 = vmatmul.mubr.msk.bf16.vlgmr.msra.gmra.mxu1 %vm763_vm2, %v4315_v23  ;;  %v4327_v61 = vsel %vm1685_vm5, %v4322_v8, %v4326_v15 }
 0x159   : > { %v13774_v9 = vadd.f32 %v11495_v4, %v2027_v30  ;;  %11721 = vmatprep.mubr.msk.bf16.mxu0 %vm763_vm2, %v4612_v38  ;;  %v11469_v19 = vpop.f32.mrf.mxu1  ;;  %11750 = vmatpush3.bf16.msra.mxu1 %v16751_v46  ;;  %v4621_v30 = vrot.slane %v13489_v6, 3  ;;  %v4626_v38 = vrot.slane %v13492_v28, 4 }
 0x15a   : > { %v2208_v3 = vpop.f32.mrf.mxu0  ;;  %v2031_v63 = vadd.f32 %v11469_v19, %v16750_v10  ;;  %11695 = vmatprep.mubr.msk.bf16.mxu1 %vm763_vm2, %v4319_v14  ;;  %11809 = vmatprep.subr.bf16.mxu1 %v13783_v48  ;;  %v16756_v14 = vld [vmem:[#allocation11_spill] sm:$0xff] }
 0x15b   : > { %v13787_v59 = vadd.f32 %v2208_v3, %v2025_v17  ;;  %v1966_v20 = vpop.f32.mrf.mxu1  ;;  %v4620_v17 = vsel %vm1289_vm4, %v4615_v1, %v4619_v50  ;;  %v4623_v39 = vor.u32 %v4622_v32, %v4621_v30  ;;  %v16755_v1 = vld [vmem:[#allocation7_spill] sm:$0xff]  ;;  %v4333_v37 = vrot.slane %v16756_v14, 2 }
 0x15c   : > { %v11496_v54 = vpop.f32.mrf.mxu0  ;;  %v2029_v2 = vadd.f32 %v1966_v20, %v13553_v13  ;;  %v4627_v19 = vor.u32 %v4626_v38, %v4625_v5  ;;  %v4629_v32 = vrot.slane %v16753_v31, 3  ;;  %v4336_v31 = vrot.slane %v13587_v53, 1 }
 0x15d   : > { %v13794_v56 = vadd.f32 %v11496_v54, %v2028_v7  ;;  %v11470_v6 = vpop.f32.mrf.mxu1  ;;  %v16754_v7 = vld [vmem:[#allocation8_spill] sm:$0xff]  ;;  %v16758_v54 = vld [vmem:[#allocation14_spill] sm:$0xff]  ;;  %v4334_v5 = vor.u32 %v4333_v37, %v4332_v22 }
 0x15e   : > { %v2211_v24 = vpop.f32.mrf.mxu0  ;;  %v2032_v45 = vadd.f32 %v11470_v6, %v16752_v60  ;;  %v4329_v28 = vrot.slane %v16754_v7, 2  ;;  %v4630_v20 = vrot.slane %v16754_v7, 4  ;;  %v4628_v6 = vsel %vm1289_vm4, %v4623_v39, %v4627_v19  ;;  %v16759_v22 = vld [vmem:[#allocation16_spill] sm:$0xff] }
 0x15f   : > { %v13807_v43 = vadd.f32 %v2211_v24, %v2026_v44  ;;  %v1969_v4 = vpop.f32.mrf.mxu1  ;;  %v4634_v60 = vrot.slane %v16756_v14, 4 }
 0x160   : > { %v11499_v13 = vpop.f32.mrf.mxu0  ;;  %11722 = vmatmul.mubr.msk.bf16.vlgmr.msra.gmra.mxu0 %vm763_vm2, %v4616_v11  ;;  %v2030_v44 = vadd.f32 %v1969_v4, %v16757_v55  ;;  %11696 = vmatmul.mubr.msk.bf16.gmra.mxu1 %vm763_vm2, %v4323_v47  ;;  %v4330_v8 = vor.u32 %v4329_v28, %v4328_v35  ;;  %v4633_v47 = vrot.slane %v13579_v58, 3  ;;  %v4631_v28 = vor.u32 %v4630_v20, %v4629_v32 }
 0x161   : > { %v13814_v23 = vadd.f32 %v11499_v13, %v2031_v63  ;;  %11780 = vmatpush3.bf16.msra.mxu0 %v16755_v1  ;;  %11725 = vmatprep.mubr.msk.bf16.mxu0 %vm763_vm2, %v4620_v17  ;;  %v11473_v10 = vpop.f32.mrf.mxu1  ;;  %v4624_v17 = vsel %vm1289_vm4, %v4619_v50, %v4623_v39  ;;  %v4340_v1 = vrot.slane %v13626_v21, 1 }
 0x162   : > { %v2224_v3 = vpop.f32.mrf.mxu0  ;;  %11839 = vmatprep.subr.bf16.mxu0 %v13805_v12  ;;  %v2035_v46 = vadd.f32 %v11473_v10, %v16758_v54  ;;  %11699 = vmatprep.mubr.msk.bf16.mxu1 %vm763_vm2, %v4327_v61  ;;  %v4335_v58 = vsel %vm1685_vm5, %v4330_v8, %v4334_v5  ;;  %v4341_v61 = vrot.slane %v13590_v51, 2  ;;  %v4635_v37 = vor.u32 %v4634_v60, %v4633_v47 }
 0x163   : > { %v13824_v63 = vadd.f32 %v2224_v3, %v2029_v2  ;;  %v1982_v11 = vpop.f32.mrf.mxu1  ;;  %v4637_v54 = vrot.slane %v13587_v53, 3  ;;  %v4632_v32 = vsel %vm1289_vm4, %v4627_v19, %v4631_v28  ;;  %v16761_v53 = vld [vmem:[#allocation21_spill] sm:$0xff] }
 0x164   : > { %v11500_v30 = vpop.f32.mrf.mxu0  ;;  %v2033_v38 = vadd.f32 %v1982_v11, %v13597_v27  ;;  %v4331_v27 = vsel %vm1685_vm5, %v4326_v15, %v4330_v8  ;;  %v4342_v20 = vor.u32 %v4341_v61, %v4340_v1  ;;  %v16760_v11 = vld [vmem:[#allocation20_spill] sm:$0xff]  ;;  %v16765_v1 = vld [vmem:[#allocation22_spill] sm:$0xff] }
 0x165   : > { %v13830_v24 = vadd.f32 %v11500_v30, %v2032_v45  ;;  %v11474_v13 = vpop.f32.mrf.mxu1  ;;  %v4337_v45 = vrot.slane %v13573_v62, 2 }
 0x166   : > { %v2227_v2 = vpop.f32.mrf.mxu0  ;;  %v2036_v7 = vadd.f32 %v11474_v13, %v13605_v26 }
 0x167   : > { %v13837_v35 = vadd.f32 %v2227_v2, %v2030_v44  ;;  %v1985_v39 = vpop.f32.mrf.mxu1  ;;  %v4338_v44 = vor.u32 %v4337_v45, %v4336_v31  ;;  %v4636_v2 = vsel %vm1289_vm4, %v4631_v28, %v4635_v37  ;;  %v16762_v45 = vld [vmem:[#allocation18_spill] sm:$0xff] }
 0x168   : > { %v11503_v50 = vpop.f32.mrf.mxu0  ;;  %11726 = vmatmul.mubr.msk.bf16.gmra.mxu0 %vm763_vm2, %v4624_v17  ;;  %v2034_v14 = vadd.f32 %v1985_v39, %v16759_v22  ;;  %11700 = vmatmul.mubr.msk.bf16.gmra.mxu1 %vm763_vm2, %v4331_v27 }
 0x169   : > { %v13844_v4 = vadd.f32 %v11503_v50, %v2035_v46  ;;  %11729 = vmatprep.mubr.msk.bf16.mxu0 %vm763_vm2, %v4628_v6  ;;  %v11477_v55 = vpop.f32.mrf.mxu1  ;;  %11703 = vmatprep.mubr.msk.bf16.mxu1 %vm763_vm2, %v4335_v58  ;;  %v4638_v46 = vrot.slane %v13573_v62, 4  ;;  %v4642_v6 = vrot.slane %v13590_v51, 4  ;;  %v4339_v62 = vsel %vm1685_vm5, %v4334_v5, %v4338_v44  ;;  %v16763_v50 = vld [vmem:[#allocation15_spill] sm:$0xff]  ;;  %v16764_v5 = vld [vmem:[#allocation17_spill] sm:$0xff] }
 0x16a   : > { %v2240_v26 = vpop.f32.mrf.mxu0  ;;  %v2039_v3 = vadd.f32 %v11477_v55, %v13628_v18  ;;  %v4641_v18 = vrot.slane %v13626_v21, 3  ;;  %v4345_v27 = vrot.slane %v16763_v50, 2  ;;  %v4343_v51 = vsel %vm1685_vm5, %v4338_v44, %v4342_v20 }
 0x16b   : > { %v13852_v15 = vadd.f32 %v2240_v26, %v2033_v38  ;;  %v1998_v30 = vpop.f32.mrf.mxu1  ;;  %v4639_v19 = vor.u32 %v4638_v46, %v4637_v54  ;;  %v4348_v21 = vrot.slane %v13648_v36, 1  ;;  %v4349_v58 = vrot.slane %v16764_v5, 2 }
 0x16c   : > { %v11504_v10 = vpop.f32.mrf.mxu0  ;;  %v2037_v17 = vadd.f32 %v1998_v30, %v16760_v11 }
 0x16d   : > { %v13858_v8 = vadd.f32 %v11504_v10, %v2036_v7  ;;  %v11478_v47 = vpop.f32.mrf.mxu1  ;;  %v4344_v7 = vrot.slane %v16762_v45, 1  ;;  %v4646_v10 = vrot.slane %v16763_v50, 4  ;;  %v4640_v46 = vsel %vm1289_vm4, %v4635_v37, %v4639_v19 }
 0x16e   : > { %v2243_v38 = vpop.f32.mrf.mxu0  ;;  %v2040_v13 = vadd.f32 %v11478_v47, %v16761_v53  ;;  %v16768_v47 = vld [vmem:[#allocation25_spill] sm:$0xff] }
 0x16f   : > { %v13865_v60 = vadd.f32 %v2243_v38, %v2034_v14  ;;  %v2001_v28 = vpop.f32.mrf.mxu1  ;;  %v4643_v14 = vor.u32 %v4642_v6, %v4641_v18  ;;  %v4346_v30 = vor.u32 %v4345_v27, %v4344_v7  ;;  %v4350_v38 = vor.u32 %v4349_v58, %v4348_v21  ;;  %v16769_v58 = vld [vmem:[#allocation24_spill] sm:$0xff] }
 0x170   : > { %v11507_v31 = vpop.f32.mrf.mxu0  ;;  %11730 = vmatmul.mubr.msk.bf16.gmra.mxu0 %vm763_vm2, %v4632_v32  ;;  %v2038_v61 = vadd.f32 %v2001_v28, %v16765_v1  ;;  %11704 = vmatmul.mubr.msk.bf16.gmra.mxu1 %vm763_vm2, %v4339_v62  ;;  %v4356_v21 = vrot.slane %v13705_v34, 1 }
 0x171   : > { %v13872_v39 = vadd.f32 %v11507_v31, %v2039_v3  ;;  %11733 = vmatprep.mubr.msk.bf16.mxu0 %vm763_vm2, %v4636_v2  ;;  %v11513_v26 = vpop.f32.mrf.mxu1  ;;  %v4645_v3 = vrot.slane %v16762_v45, 3  ;;  %11707 = vmatprep.mubr.msk.bf16.mxu1 %vm763_vm2, %v4343_v51  ;;  %v16766_v2 = vld [vmem:[#allocation23_spill] sm:$0xff]  ;;  %v4644_v31 = vsel %vm1289_vm4, %v4639_v19, %v4643_v14  ;;  %v4650_v45 = vrot.slane %v16764_v5, 4 }
 0x172   : > { %v2256_v22 = vpop.f32.mrf.mxu0  ;;  %v2570_v54 = vadd.f32 %v11513_v26, %v13686_v0  ;;  %v4352_v18 = vrot.slane %v16766_v2, 1  ;;  %v4649_v0 = vrot.slane %v13648_v36, 3  ;;  %v4347_v51 = vsel %vm1685_vm5, %v4342_v20, %v4346_v30 }
 0x173   : > { %v13880_v55 = vadd.f32 %v2256_v22, %v2037_v17  ;;  %v2457_v32 = vpop.f32.mrf.mxu1  ;;  %v16767_v17 = vld [vmem:[#allocation19_spill] sm:$0xff]  ;;  %v4647_v7 = vor.u32 %v4646_v10, %v4645_v3  ;;  %v4357_v19 = vrot.slane %v16769_v58, 2  ;;  %v4351_v5 = vsel %vm1685_vm5, %v4346_v30, %v4350_v38  ;;  %v13907_v3 = vld [vmem:[#allocation2 + $0xdc] sm:$0xf] }
 0x174   : > { %v11508_v44 = vpop.f32.mrf.mxu0  ;;  %v4353_v6 = vrot.slane %v16767_v17, 2  ;;  %v2568_v62 = vadd.f32 %v2457_v32, %v16768_v47  ;;  %v4651_v26 = vor.u32 %v4650_v45, %v4649_v0  ;;  %v5129_v32 = vld [vmem:[#allocation2 + $0x70] sm:$0xf]  ;;  %v13913_v47 = vld [vmem:[#allocation2 + $0x74] sm:$0xf]  ;;  %v4658_v0 = vrot.slane %v16769_v58, 4 }
 0x175   : > { %v13887_v11 = vadd.f32 %v11508_v44, %v2040_v13  ;;  %v11514_v50 = vpop.f32.mrf.mxu1  ;;  %v12284_v13 = vld [vmem:[#allocation2 + $0xdc] ss:$0 sps:$4 sm:$0x33]   ;;  %v4648_v44 = vsel %vm1289_vm4, %v4643_v14, %v4647_v7  ;;  %v4657_v14 = vrot.slane %v13705_v34, 3  ;;  %v10523_v45 = vcombine.low %v13907_v3, %v13907_v3 }
 0x176   : > { %v2259_v53 = vpop.f32.mrf.mxu0  ;;  %v2571_v27 = vadd.f32 %v11514_v50, %v13708_v42  ;;  %v4354_v42 = vor.u32 %v4353_v6, %v4352_v18  ;;  %v4358_v18 = vor.u32 %v4357_v19, %v4356_v21  ;;  %v4653_v6 = vrot.slane %v16766_v2, 3 }
 0x177   : > { %v13895_v37 = vadd.f32 %v2259_v53, %v2038_v61  ;;  %v2460_v1 = vpop.f32.mrf.mxu1  ;;  %v4654_v53 = vrot.slane %v16767_v17, 4 }
 0x178   : > { %v11543_v28 = vpop.f32.mrf.mxu0  ;;  %11734 = vmatmul.mubr.msk.bf16.gmra.mxu0 %vm763_vm2, %v4640_v46  ;;  %v2569_v61 = vadd.f32 %v2460_v1, %v13713_v49  ;;  %11708 = vmatmul.mubr.msk.bf16.gmra.mxu1 %vm763_vm2, %v4347_v51  ;;  %v4364_v46 = vshll.u32 %v12284_v13, 16  ;;  %v4355_v17 = vsel %vm1685_vm5, %v4350_v38, %v4354_v42  ;;  %v4359_v58 = vsel %vm1685_vm5, %v4354_v42, %v4358_v18 }
 0x179   : > { %v13902_v36 = vadd.f32 %v11543_v28, %v2570_v54  ;;  %11737 = vmatprep.mubr.msk.bf16.mxu0 %vm763_vm2, %v4644_v31  ;;  %v11517_v10 = vpop.f32.mrf.mxu1  ;;  %v4361_v54 = vshrl.u32 %v12284_v13, 16  ;;  %11711 = vmatprep.mubr.msk.bf16.mxu1 %vm763_vm2, %v4351_v5  ;;  %v4652_v13 = vsel %vm1289_vm4, %v4647_v7, %v4651_v26  ;;  %v10572_v28 = vcombine.low %v5129_v32, %v13913_v47 }
 0x17a   : > { %v2900_v22 = vpop.f32.mrf.mxu0  ;;  %v2574_v30 = vadd.f32 %v11517_v10, %v13722_v33  ;;  %v4655_v19 = vor.u32 %v4654_v53, %v4653_v6  ;;  %v4659_v7 = vor.u32 %v4658_v0, %v4657_v14 }
 0x17b   : > { %v13910_v20 = vadd.f32 %v2900_v22, %v2568_v62  ;;  %v2473_v31 = vpop.f32.mrf.mxu1  ;;  %v4665_v22 = vshll.u32 %v10523_v45, 16 }
 0x17c   : > { %v11544_v49 = vpop.f32.mrf.mxu0  ;;  %v2572_v33 = vadd.f32 %v2473_v31, %v13729_v40  ;;  %v4366_v40 = vrot.slane %v4364_v46, 2 }
 0x17d   : > { %v13919_v62 = vadd.f32 %v11544_v49, %v2571_v27  ;;  %v11518_v2 = vpop.f32.mrf.mxu1  ;;  %v4363_v27 = vrot.slane %v4361_v54, 1  ;;  %v13938_v54 = vld [vmem:[#allocation2 + $0x78] sm:$0xff]   ;;  %v4667_v14 = vrot.slane %v4665_v22, 4 }
 0x17e   : > { %v2903_v50 = vpop.f32.mrf.mxu0  ;;  %v2575_v34 = vadd.f32 %v11518_v2, %v13734_v41  ;;  %v5237_v41 = vshll.u32 %v10572_v28, 16 }
 0x17f   : > { %v13928_v51 = vadd.f32 %v2903_v50, %v2569_v61  ;;  %v2476_v1 = vpop.f32.mrf.mxu1  ;;  %v4662_v61 = vshrl.u32 %v10523_v45, 16  ;;  %v4367_v49 = vor.u32 %v4366_v40, %v4363_v27 }
 0x180   : > { %v11547_v21 = vpop.f32.mrf.mxu0  ;;  %11738 = vmatmul.mubr.msk.bf16.gmra.mxu0 %vm763_vm2, %v4648_v44  ;;  %v2573_v38 = vadd.f32 %v2476_v1, %v13739_v16  ;;  %11712 = vmatmul.mubr.msk.bf16.gmra.mxu1 %vm763_vm2, %v4355_v17  ;;  %v4660_v16 = vsel %vm1289_vm4, %v4655_v19, %v4659_v7  ;;  %v5239_v50 = vrot.slane %v5237_v41, 1 }
 0x181   : > { %v13934_v5 = vadd.f32 %v11547_v21, %v2574_v30  ;;  %11741 = vmatprep.mubr.msk.bf16.mxu0 %vm763_vm2, %v4652_v13  ;;  %v11521_v32 = vpop.f32.mrf.mxu1  ;;  %11715 = vmatprep.mubr.msk.bf16.mxu1 %vm763_vm2, %v4359_v58  ;;  %v4656_v30 = vsel %vm1289_vm4, %v4651_v26, %v4655_v19  ;;  %v4664_v31 = vrot.slane %v4662_v61, 3  ;;  %v4368_v27 = vsel %vm1685_vm5, %v4358_v18, %v4367_v49  ;;  %v12365_v21 = vld [vmem:[#allocation2 + $0x74] sm:$0xf] }
 0x182   : > { %v2916_v10 = vpop.f32.mrf.mxu0  ;;  %v2578_v44 = vadd.f32 %v11521_v32, %v13744_v25  ;;  %v13951_v25 = vshll.u32 %v13938_v54, 16  ;;  %v13979_v49 = vshrl.u32 %v13938_v54, 16 }
 0x183   : > { %v13941_v42 = vadd.f32 %v2916_v10, %v2572_v33  ;;  %v2489_v6 = vpop.f32.mrf.mxu1  ;;  %v5235_v33 = vshrl.u32 %v10572_v28, 16  ;;  %v4668_v40 = vor.u32 %v4667_v14, %v4664_v31 }
 0x184   : > { %v11548_v46 = vpop.f32.mrf.mxu0  ;;  %v2576_v0 = vadd.f32 %v2489_v6, %v13752_v57  ;;  %16770 = vst [vmem:[#allocation5_spill] sm:$0xff] %v13951_v25  ;;  %v13958_v57 = vld [vmem:[#allocation2 + $0x80] sm:$0xff]   ;;  %v5244_v22 = vrot.slane %v13951_v25, 1  ;;  %16771 = vst [vmem:[#allocation9_spill] sm:$0xff] %v13979_v49 }
 0x185   : > { %v13946_v53 = vadd.f32 %v11548_v46, %v2575_v34  ;;  %v11522_v13 = vpop.f32.mrf.mxu1  ;;  %v12364_v34 = vld [vmem:[#allocation2 + $0x70] sm:$0xf] }
 0x186   : > { %v2919_v45 = vpop.f32.mrf.mxu0  ;;  %v2579_v26 = vadd.f32 %v11522_v13, %v13760_v52  ;;  %v10541_v58 = vcombine.low %v12364_v34, %v12365_v21  ;;  %v5240_v52 = vor.u32 %v5239_v50, %v5235_v33  ;;  %v12366_v50 = vld [vmem:[#allocation2 + $0x80] sm:$0xf]  ;;  %v12367_v13 = vld [vmem:[#allocation2 + $0x84] sm:$0xf]  ;;  %v5248_v21 = vor.u32 %v13979_v49, %v5244_v22 }
 0x187   : > { %v13953_v2 = vadd.f32 %v2919_v45, %v2573_v38  ;;  %v2492_v28 = vpop.f32.mrf.mxu1  ;;  %v13965_v38 = vld [vmem:[#allocation2 + $0x88] sm:$0xff]  }
 0x188   : > { %v11551_v17 = vpop.f32.mrf.mxu0  ;;  %11742 = vmatmul.mubr.msk.bf16.gmra.mxu0 %vm763_vm2, %v4656_v30  ;;  %v2577_v1 = vadd.f32 %v2492_v28, %v13767_v29  ;;  %11716 = vmatmul.mubr.msk.bf16.gmra.mxu1 %vm763_vm2, %v4368_v27  ;;  %v4669_v30 = vsel %vm1289_vm4, %v4659_v7, %v4668_v40  ;;  %v5245_v31 = vsel %vm2701_vm7, %v5240_v52, %v5244_v22  ;;  %v13987_v14 = vshll.u32 %v13965_v38, 16 }
 0x189   : > { %v13960_v19 = vadd.f32 %v11551_v17, %v2578_v44  ;;  %11745 = vmatprep.mubr.msk.bf16.mxu0 %vm763_vm2, %v4660_v16  ;;  %v11525_v18 = vpop.f32.mrf.mxu1  ;;  %11751 = vmatprep.mubr.msk.bf16.mxu1 %vm763_vm2, %v10541_v58  ;;  %v13973_v44 = vshll.u32 %v13958_v57, 16  ;;  %v13994_v17 = vld [vmem:[#allocation2 + $0x90] sm:$0xff]  }
 0x18a   : > { %v2932_v61 = vpop.f32.mrf.mxu0  ;;  %v2582_v41 = vadd.f32 %v11525_v18, %v13774_v9  ;;  %v13984_v9 = vshrl.u32 %v13958_v57, 16  ;;  %16772 = vst [vmem:[#allocation6_spill] sm:$0xff] %v13994_v17  ;;  %v16774_v18 = vld [vmem:[#allocation3_spill] sm:$0xff] }
 0x18b   : > { %v13968_v10 = vadd.f32 %v2932_v61, %v2576_v0  ;;  %v2505_v29 = vpop.f32.mrf.mxu1  ;;  %v14008_v61 = vld [vmem:[#allocation2 + $0x98] sm:$0xff]  }
 0x18c   : > { %v11552_v32 = vpop.f32.mrf.mxu0  ;;  %v2580_v6 = vadd.f32 %v2505_v29, %v13787_v59  ;;  %v10543_v59 = vcombine.low %v12366_v50, %v12367_v13  ;;  %16773 = vst [vmem:[#allocation12_spill] sm:$0xff] %v14008_v61  ;;  %v14032_v50 = vshrl.u32 %v13994_v17, 16  ;;  %v14035_v13 = vshll.u32 %v14008_v61, 16 }
 0x18d   : > { %v13975_v46 = vadd.f32 %v11552_v32, %v2579_v26  ;;  %v11526_v0 = vpop.f32.mrf.mxu1  ;;  %v5252_v26 = vrot.slane %v13973_v44, 1 }
 0x18e   : > { %v2935_v16 = vpop.f32.mrf.mxu0  ;;  %v2583_v33 = vadd.f32 %v11526_v0, %v13794_v56  ;;  %v14003_v56 = vld [vmem:[%s16584_s0 + $0x88] sm:$0xff]  }
 0x18f   : > { %v13989_v45 = vadd.f32 %v2935_v16, %v2577_v1  ;;  %v2508_v27 = vpop.f32.mrf.mxu1  ;;  %v5256_v40 = vor.u32 %v13984_v9, %v5252_v26  ;;  %v5260_v1 = vrot.slane %v13987_v14, 1  ;;  %v5253_v0 = vsel %vm2701_vm7, %v5248_v21, %v5252_v26  ;;  %v12369_v21 = vld [vmem:[#allocation2 + $0x8c] sm:$0xf] }
 0x190   : > { %v11555_v7 = vpop.f32.mrf.mxu0  ;;  %11746 = vmatmul.mubr.msk.bf16.gmra.mxu0 %vm763_vm2, %v4669_v30  ;;  %v2581_v58 = vadd.f32 %v2508_v27, %v13807_v43  ;;  %v14020_v43 = vshll.u32 %v13994_v17, 16  ;;  %v12368_v27 = vld [vmem:[#allocation2 + $0x88] sm:$0xf] }
 0x191   : > { %v13996_v34 = vadd.f32 %v11555_v7, %v2582_v41  ;;  %11781 = vmatprep.mubr.msk.bf16.mxu0 %vm763_vm2, %v5245_v31  ;;  %v11529_v52 = vpop.f32.mrf.mxu1  ;;  %v16775_v41 = vld [vmem:[#allocation4_spill] sm:$0xff]  ;;  %v14026_v7 = vshrl.u32 %v13965_v38, 16 }
 0x192   : > { %v2948_v28 = vpop.f32.mrf.mxu0  ;;  %v16776_v22 = vcombine.low %v16774_v18, %v16775_v41  ;;  %v2586_v29 = vadd.f32 %v11529_v52, %v13814_v23  ;;  %v12370_v52 = vld [vmem:[#allocation2 + $0x90] sm:$0xf]  ;;  %v12371_v18 = vld [vmem:[#allocation2 + $0x94] sm:$0xf] }
 0x193   : > { %v14014_v32 = vadd.f32 %v2948_v28, %v2580_v6  ;;  %v2521_v16 = vpop.f32.mrf.mxu1  ;;  %v10545_v41 = vcombine.low %v12370_v52, %v12371_v18  ;;  %v14072_v18 = vshrl.u32 %v14008_v61, 16 }
 0x194   : > { %11752 = vmatmul.mubr.msk.bf16.vlgmr.msra.gmra.mxu1 %vm763_vm2, %v16776_v22  ;;  %v11556_v30 = vpop.f32.mrf.mxu0  ;;  %v2584_v23 = vadd.f32 %v2521_v16, %v13824_v63  ;;  %v10544_v63 = vcombine.low %v12368_v27, %v12369_v21  ;;  %v5268_v22 = vrot.slane %v14020_v43, 1  ;;  %v14057_v27 = vld [vmem:[#allocation2 + $0xa8] sm:$0xff]  }
 0x195   : > { %11810 = vmatpush3.bf16.msra.mxu1 %v13783_v48  ;;  %11755 = vmatprep.mubr.msk.bf16.mxu1 %vm763_vm2, %v10543_v59  ;;  %v14022_v31 = vadd.f32 %v11556_v30, %v2583_v33  ;;  %v5261_v48 = vsel %vm2701_vm7, %v5256_v40, %v5260_v1  ;;  %v14040_v33 = vld [vmem:[%s16584_s0 + $0x90] sm:$0xff]   ;;  %v11530_v59 = vpop.f32.mrf.mxu1  ;;  %v14047_v30 = vld [vmem:[#allocation2 + $0xa0] sm:$0xff]   ;;  %16779 = vst [vmem:[#allocation7_spill] sm:$0xff] %v14057_v27 }
 0x196   : > { %11869 = vmatprep.subr.bf16.mxu1 %v14003_v56  ;;  %v2951_v6 = vpop.f32.mrf.mxu0  ;;  %16777 = vst [vmem:[#allocation10_spill] sm:$0xff] %v14040_v33  ;;  %v2587_v28 = vadd.f32 %v11530_v59, %v13830_v24  ;;  %16778 = vst [vmem:[#allocation8_spill] sm:$0xff] %v14047_v30  ;;  %v5276_v59 = vrot.slane %v14035_v13, 1 }
 0x197   : > { %v14042_v26 = vadd.f32 %v2951_v6, %v2581_v58  ;;  %v2524_v16 = vpop.f32.mrf.mxu1  ;;  %v5264_v58 = vor.u32 %v14026_v7, %v5260_v1 }
 0x198   : > { %v11559_v40 = vpop.f32.mrf.mxu0  ;;  %11782 = vmatmul.mubr.msk.bf16.vlgmr.msra.gmra.mxu0 %vm763_vm2, %v5253_v0  ;;  %v2585_v24 = vadd.f32 %v2524_v16, %v13837_v35  ;;  %v5272_v0 = vor.u32 %v14032_v50, %v5268_v22  ;;  %v14066_v35 = vshll.u32 %v14047_v30, 16 }
 0x199   : > { %v14049_v17 = vadd.f32 %v11559_v40, %v2586_v29  ;;  %11840 = vmatpush3.bf16.msra.mxu0 %v13805_v12  ;;  %11785 = vmatprep.mubr.msk.bf16.mxu0 %vm763_vm2, %v5261_v48  ;;  %v11533_v21 = vpop.f32.mrf.mxu1  ;;  %v5269_v52 = vsel %vm2701_vm7, %v5264_v58, %v5268_v22 }
 0x19a   : > { %v2964_v6 = vpop.f32.mrf.mxu0  ;;  %11899 = vmatprep.subr.bf16.mxu0 %v14040_v33  ;;  %v2590_v12 = vadd.f32 %v11533_v21, %v13844_v4  ;;  %v5277_v16 = vsel %vm2701_vm7, %v5272_v0, %v5276_v59  ;;  %v14077_v4 = vshrl.u32 %v14047_v30, 16  ;;  %v5284_v30 = vrot.slane %v14066_v35, 1  ;;  %v14087_v33 = vld [vmem:[#allocation2 + $0xb0] sm:$0xff]  }
 0x19b   : > { %v14061_v29 = vadd.f32 %v2964_v6, %v2584_v23  ;;  %v2537_v48 = vpop.f32.mrf.mxu1  ;;  %16782 = vst [vmem:[#allocation14_spill] sm:$0xff] %v14087_v33 }
 0x19c   : > { %11756 = vmatmul.mubr.msk.bf16.gmra.mxu1 %vm763_vm2, %v10544_v63  ;;  %v11560_v1 = vpop.f32.mrf.mxu0  ;;  %v2588_v63 = vadd.f32 %v2537_v48, %v13852_v15  ;;  %v12374_v15 = vld [vmem:[#allocation2 + $0xa0] sm:$0xf]  ;;  %v12375_v48 = vld [vmem:[#allocation2 + $0xa4] sm:$0xf] }
 0x19d   : > { %16780 = vst [vmem:[#allocation11_spill] sm:$0xff] %v14061_v29  ;;  %11759 = vmatprep.mubr.msk.bf16.mxu1 %vm763_vm2, %v10545_v41  ;;  %v14068_v40 = vadd.f32 %v11560_v1, %v2587_v28  ;;  %v14080_v41 = vshll.u32 %v14057_v27, 16  ;;  %v11534_v6 = vpop.f32.mrf.mxu1  ;;  %v12372_v28 = vld [vmem:[#allocation2 + $0x98] sm:$0xf]  ;;  %v12373_v1 = vld [vmem:[#allocation2 + $0x9c] sm:$0xf]  ;;  %v10547_v0 = vcombine.low %v12374_v15, %v12375_v48 }
 0x19e   : > { %v2967_v23 = vpop.f32.mrf.mxu0  ;;  %v10546_v22 = vcombine.low %v12372_v28, %v12373_v1  ;;  %v2591_v58 = vadd.f32 %v11534_v6, %v13858_v8  ;;  %v5288_v6 = vor.u32 %v14077_v4, %v5284_v30  ;;  %v14096_v28 = vld [vmem:[#allocation2 + $0xb8] sm:$0xff]   ;;  %v14110_v48 = vshrl.u32 %v14057_v27, 16 }
 0x19f   : > { %16781 = vst [vmem:[#allocation13_spill] sm:$0xff] %v14068_v40  ;;  %v14082_v21 = vadd.f32 %v2967_v23, %v2585_v24  ;;  %v2540_v40 = vpop.f32.mrf.mxu1  ;;  %v5280_v24 = vor.u32 %v14072_v18, %v5276_v59  ;;  %16783 = vst [vmem:[#allocation16_spill] sm:$0xff] %v14096_v28  ;;  %v14104_v59 = vshll.u32 %v14087_v33, 16 }
 0x1a0   : > { %v11563_v61 = vpop.f32.mrf.mxu0  ;;  %11786 = vmatmul.mubr.msk.bf16.gmra.mxu0 %vm763_vm2, %v5269_v52  ;;  %v2589_v23 = vadd.f32 %v2540_v40, %v13865_v60  ;;  %v5292_v52 = vrot.slane %v14080_v41, 1 }
 0x1a1   : > { %v14089_v29 = vadd.f32 %v11563_v61, %v2590_v12  ;;  %11789 = vmatprep.mubr.msk.bf16.mxu0 %vm763_vm2, %v5277_v16  ;;  %v11537_v1 = vpop.f32.mrf.mxu1  ;;  %16785 = vst [vmem:[#allocation21_spill] sm:$0xff] %v14104_v59  ;;  %v5285_v16 = vsel %vm2701_vm7, %v5280_v24, %v5284_v30  ;;  %v12377_v30 = vld [vmem:[#allocation2 + $0xac] sm:$0xf]  ;;  %v5300_v27 = vrot.slane %v14104_v59, 1 }
 0x1a2   : > { %v2980_v8 = vpop.f32.mrf.mxu0  ;;  %v2594_v61 = vadd.f32 %v11537_v1, %v13872_v39  ;;  %v14115_v39 = vshrl.u32 %v14087_v33, 16 }
 0x1a3   : > { %v14099_v15 = vadd.f32 %v2980_v8, %v2588_v63  ;;  %v2553_v60 = vpop.f32.mrf.mxu1  ;;  %v5293_v8 = vsel %vm2701_vm7, %v5288_v6, %v5292_v52  ;;  %v12378_v6 = vld [vmem:[#allocation2 + $0xb0] sm:$0xf] }
 0x1a4   : > { %11760 = vmatmul.mubr.msk.bf16.gmra.mxu1 %vm763_vm2, %v10546_v22  ;;  %v11564_v12 = vpop.f32.mrf.mxu0  ;;  %v2592_v22 = vadd.f32 %v2553_v60, %v13880_v55  ;;  %16787 = vst [vmem:[#allocation15_spill] sm:$0xff] %v14115_v39  ;;  %v12379_v60 = vld [vmem:[#allocation2 + $0xb4] sm:$0xf] }
 0x1a5   : > { %16784 = vst [vmem:[#allocation20_spill] sm:$0xff] %v14099_v15  ;;  %11763 = vmatprep.mubr.msk.bf16.mxu1 %vm763_vm2, %v10547_v0  ;;  %v14106_v40 = vadd.f32 %v11564_v12, %v2591_v58  ;;  %v14118_v0 = vshll.u32 %v14096_v28, 16  ;;  %v11538_v1 = vpop.f32.mrf.mxu1  ;;  %v12376_v58 = vld [vmem:[#allocation2 + $0xa8] sm:$0xf]  ;;  %v10549_v33 = vcombine.low %v12378_v6, %v12379_v60 }
 0x1a6   : > { %v2983_v63 = vpop.f32.mrf.mxu0  ;;  %v10548_v24 = vcombine.low %v12376_v58, %v12377_v30  ;;  %v2595_v12 = vadd.f32 %v11538_v1, %v13887_v11  ;;  %v564_v58 = vld [vmem:[%s13655_s10 + $0x4] sm:$0xf]  ;;  %v565_v11 = vld [vmem:[%s13655_s10 + $0x8] sm:$0xf]  ;;  %v5304_v30 = vor.u32 %v14115_v39, %v5300_v27 }
 0x1a7   : > { %16786 = vst [vmem:[#allocation18_spill] sm:$0xff] %v14106_v40  ;;  %16788 = vst [vmem:[#allocation17_spill] sm:$0xff] %v14118_v0  ;;  %v14120_v15 = vadd.f32 %v2983_v63, %v2589_v23  ;;  %v14125_v40 = vld [vmem:[#allocation2 + $0xc0] sm:$0xff]   ;;  %v2556_v23 = vpop.f32.mrf.mxu1  ;;  %v5308_v6 = vrot.slane %v14118_v0, 1  ;;  %v14136_v60 = vld [vmem:[#allocation2 + $0xc8] sm:$0xff]   ;;  %v14154_v0 = vshrl.u32 %v14096_v28, 16 }
 0x1a8   : > { %v11567_v55 = vpop.f32.mrf.mxu0  ;;  %11790 = vmatmul.mubr.msk.bf16.gmra.mxu0 %vm763_vm2, %v5285_v16  ;;  %16790 = vst [vmem:[#allocation23_spill] sm:$0xff] %v14125_v40  ;;  %v2593_v1 = vadd.f32 %v2556_v23, %v13895_v37  ;;  %16792 = vst [vmem:[#allocation25_spill] sm:$0xff] %v14136_v60  ;;  %v14148_v23 = vshll.u32 %v14125_v40, 16 }
 0x1a9   : > { %16789 = vst [vmem:[#allocation22_spill] sm:$0xff] %v14120_v15  ;;  %v14127_v63 = vadd.f32 %v11567_v55, %v2594_v61  ;;  %v5296_v15 = vor.u32 %v14110_v48, %v5292_v52  ;;  %11793 = vmatprep.mubr.msk.bf16.mxu0 %vm763_vm2, %v5293_v8  ;;  %592 = vst.msk [vmem:[#allocation2 + $0xe4] sm:$0xf] %vm478_vm0, %v564_v58  ;;  %v566_v61 = vld [vmem:[%s13655_s10 + $0xc] sm:$0xf]  ;;  %v11573_v55 = vpop.f32.mrf.mxu1 }
 0x1aa   : > { %v2996_v16 = vpop.f32.mrf.mxu0  ;;  %593 = vst.msk [vmem:[#allocation2 + $0xe8] sm:$0xf] %vm478_vm0, %v565_v11  ;;  %594 = vst.msk [vmem:[#allocation2 + $0xec] sm:$0xf] %vm478_vm0, %v566_v61  ;;  %v3271_v37 = vadd.f32 %v11573_v55, %v13902_v36  ;;  %v5309_v36 = vsel %vm2701_vm7, %v5304_v30, %v5308_v6  ;;  %v14159_v61 = vshrl.u32 %v14125_v40, 16  ;;  %v5316_v40 = vrot.slane %v14148_v23, 1 }
 0x1ab   : > { %16791 = vst [vmem:[#allocation19_spill] sm:$0xff] %v14127_v63  ;;  %v14142_v52 = vadd.f32 %v2996_v16, %v2592_v22  ;;  %16794 = vst [vmem:[#allocation3_spill] sm:$0xff] %v14148_v23  ;;  %v3158_v63 = vpop.f32.mrf.mxu1  ;;  %v5301_v11 = vsel %vm2701_vm7, %v5296_v15, %v5300_v27  ;;  %v5571_v22 = vld [vmem:[#allocation2 + $0x70] sm:$0xc]  ;;  %v12381_v27 = vld [vmem:[#allocation2 + $0xbc] sm:$0xf] }
 0x1ac   : > { %11764 = vmatmul.mubr.msk.bf16.gmra.mxu1 %vm763_vm2, %v10548_v24  ;;  %v11568_v8 = vpop.f32.mrf.mxu0  ;;  %16796 = vst [vmem:[#allocation26_spill] sm:$0xff] %v14154_v0  ;;  %v3269_v24 = vadd.f32 %v3158_v63, %v13910_v20  ;;  %16797 = vst [vmem:[#allocation27_spill] sm:$0xff] %v14159_v61  ;;  %v12382_v20 = vld [vmem:[#allocation2 + $0xc0] sm:$0xf]  ;;  %v12383_v63 = vld [vmem:[#allocation2 + $0xc4] sm:$0xf]  ;;  %v10604_v59 = vcombine.low %v5571_v22, %v13913_v47 }
 0x1ad   : > { %16793 = vst [vmem:[#allocation24_spill] sm:$0xff] %v14142_v52  ;;  %11767 = vmatprep.mubr.msk.bf16.mxu1 %vm763_vm2, %v10549_v33  ;;  %v14150_v58 = vadd.f32 %v11568_v8, %v2595_v12  ;;  %v14162_v33 = vshll.u32 %v14136_v60, 16  ;;  %v11574_v55 = vpop.f32.mrf.mxu1  ;;  %v12380_v8 = vld [vmem:[#allocation2 + $0xb8] sm:$0xf]  ;;  %v10551_v30 = vcombine.low %v12382_v20, %v12383_v63  ;;  %v14169_v52 = vld [vmem:[#allocation2 + $0xd0] sm:$0xff]  }
 0x1ae   : > { %v2999_v16 = vpop.f32.mrf.mxu0  ;;  %v10550_v15 = vcombine.low %v12380_v8, %v12381_v27  ;;  %v3272_v28 = vadd.f32 %v11574_v55, %v13919_v62  ;;  %16800 = vst [vmem:[#allocation30_spill] sm:$0xff] %v14169_v52  ;;  %v14179_v27 = vld [vmem:[#allocation2 + $0xd8] sm:$0xff]  }
 0x1af   : > { %16795 = vst [vmem:[#allocation4_spill] sm:$0xff] %v14150_v58  ;;  %16798 = vst [vmem:[#allocation28_spill] sm:$0xff] %v14162_v33  ;;  %v14164_v12 = vadd.f32 %v2999_v16, %v2593_v1  ;;  %v3161_v39 = vpop.f32.mrf.mxu1  ;;  %v5312_v16 = vor.u32 %v14154_v0, %v5308_v6  ;;  %v5324_v8 = vrot.slane %v14162_v33, 1 }
 0x1b0   : > { %v11603_v58 = vpop.f32.mrf.mxu0  ;;  %11794 = vmatmul.mubr.msk.bf16.gmra.mxu0 %vm763_vm2, %v5301_v11  ;;  %v3270_v62 = vadd.f32 %v3161_v39, %v13928_v51  ;;  %v5320_v11 = vor.u32 %v14159_v61, %v5316_v40  ;;  %16802 = vst [vmem:[#allocation32_spill] sm:$0xff] %v14179_v27  ;;  %v14190_v51 = vshll.u32 %v14169_v52, 16  ;;  %v5583_v39 = vshrl.u32 %v10604_v59, 16 }
 0x1b1   : > { %16799 = vst [vmem:[#allocation29_spill] sm:$0xff] %v14164_v12  ;;  %v14172_v1 = vadd.f32 %v11603_v58, %v3271_v37  ;;  %11797 = vmatprep.mubr.msk.bf16.mxu0 %vm763_vm2, %v5309_v36  ;;  %v11577_v20 = vpop.f32.mrf.mxu1  ;;  %v14185_v37 = vshrl.u32 %v14136_v60, 16  ;;  %v12384_v12 = vld [vmem:[#allocation2 + $0xc8] sm:$0xf] }
 0x1b2   : > { %v3455_v55 = vpop.f32.mrf.mxu0  ;;  %v3275_v6 = vadd.f32 %v11577_v20, %v13934_v5  ;;  %16805 = vst [vmem:[#allocation35_spill] sm:$0xff] %v14190_v51  ;;  %v5325_v60 = vsel %vm2701_vm7, %v5320_v11, %v5324_v8  ;;  %v14198_v5 = vshrl.u32 %v14169_v52, 16  ;;  %v12387_v11 = vld [vmem:[#allocation2 + $0xd4] sm:$0xf]  ;;  %v5332_v52 = vrot.slane %v14190_v51, 1 }
 0x1b3   : > { %16801 = vst [vmem:[#allocation31_spill] sm:$0xff] %v14172_v1  ;;  %v14182_v22 = vadd.f32 %v3455_v55, %v3269_v24  ;;  %16804 = vst [vmem:[#allocation34_spill] sm:$0xff] %v14185_v37  ;;  %v3174_v36 = vpop.f32.mrf.mxu1  ;;  %v5317_v1 = vsel %vm2701_vm7, %v5312_v16, %v5316_v40  ;;  %v5328_v40 = vor.u32 %v14185_v37, %v5324_v8  ;;  %v12386_v16 = vld [vmem:[#allocation2 + $0xd0] sm:$0xf]  ;;  %v5585_v33 = vrot.slane %v5583_v39, 2 }
 0x1b4   : > { %11768 = vmatmul.mubr.msk.bf16.gmra.mxu1 %vm763_vm2, %v10550_v15  ;;  %v11604_v58 = vpop.f32.mrf.mxu0  ;;  %v5586_v15 = vshll.u32 %v10604_v59, 16  ;;  %v3273_v24 = vadd.f32 %v3174_v36, %v13941_v42  ;;  %16807 = vst [vmem:[#allocation37_spill] sm:$0xff] %v14198_v5  ;;  %v10553_v36 = vcombine.low %v12386_v16, %v12387_v11  ;;  %v5590_v8 = vrot.slane %v13979_v49, 2 }
 0x1b5   : > { %16803 = vst [vmem:[#allocation33_spill] sm:$0xff] %v14182_v22  ;;  %11771 = vmatprep.mubr.msk.bf16.mxu1 %vm763_vm2, %v10551_v30  ;;  %v14192_v63 = vadd.f32 %v11604_v58, %v3272_v28  ;;  %v14201_v30 = vshll.u32 %v14179_v27, 16  ;;  %v11578_v20 = vpop.f32.mrf.mxu1  ;;  %v12385_v28 = vld [vmem:[#allocation2 + $0xcc] sm:$0xf] }
 0x1b6   : > { %v3458_v55 = vpop.f32.mrf.mxu0  ;;  %v10552_v58 = vcombine.low %v12384_v12, %v12385_v28  ;;  %v3276_v59 = vadd.f32 %v11578_v20, %v13946_v53  ;;  %v5588_v12 = vrot.slane %v5586_v15, 3  ;;  %v5591_v53 = vrot.slane %v13951_v25, 3 }
 0x1b7   : > { %16806 = vst [vmem:[#allocation36_spill] sm:$0xff] %v14192_v63  ;;  %16808 = vst [vmem:[#allocation38_spill] sm:$0xff] %v14201_v30  ;;  %v14203_v22 = vadd.f32 %v3458_v55, %v3270_v62  ;;  %v12302_v63 = vld [vmem:[#allocation2 + $0xe0] ss:$0 sps:$4 sm:$0x11]   ;;  %v3177_v23 = vpop.f32.mrf.mxu1  ;;  %v5336_v20 = vor.u32 %v14198_v5, %v5332_v52  ;;  %v5340_v28 = vrot.slane %v14201_v30, 1  ;;  %v5333_v25 = vsel %vm2701_vm7, %v5328_v40, %v5332_v52 }
 0x1b8   : > { %v11607_v42 = vpop.f32.mrf.mxu0  ;;  %11798 = vmatmul.mubr.msk.bf16.gmra.mxu0 %vm763_vm2, %v5317_v1  ;;  %v3274_v55 = vadd.f32 %v3177_v23, %v13953_v2  ;;  %v5346_v2 = vshll.u32 %v12302_v63, 16  ;;  %v5589_v49 = vor.u32 %v5588_v12, %v5585_v33  ;;  %v12388_v63 = vld [vmem:[#allocation2 + $0xd8] sm:$0xf]  ;;  %v5595_v12 = vrot.slane %v13973_v44, 3 }
 0x1b9   : > { %v14209_v62 = vadd.f32 %v11607_v42, %v3275_v6  ;;  %11801 = vmatprep.mubr.msk.bf16.mxu0 %vm763_vm2, %v5325_v60  ;;  %v11581_v16 = vpop.f32.mrf.mxu1  ;;  %v5872_v6 = vld [vmem:[#allocation2 + $0x70] sm:$0x8]  ;;  %v14223_v42 = vshrl.u32 %v14179_v27, 16 }
 0x1ba   : > { %v3471_v1 = vpop.f32.mrf.mxu0  ;;  %v3279_v60 = vadd.f32 %v11581_v16, %v13960_v19  ;;  %v14231_v19 = vcombine.low %v5872_v6, %v13913_v47  ;;  %v5348_v40 = vrot.slane %v5346_v2, 1 }
 0x1bb   : > { %16809 = vst [vmem:[#allocation39_spill] sm:$0xff] %v14209_v62  ;;  %v14218_v39 = vadd.f32 %v3471_v1, %v3273_v24  ;;  %16810 = vst [vmem:[#allocation40_spill] sm:$0xff] %v14223_v42  ;;  %v3190_v23 = vpop.f32.mrf.mxu1  ;;  %v5592_v62 = vor.u32 %v5591_v53, %v5590_v8  ;;  %v5341_v1 = vsel %vm2701_vm7, %v5336_v20, %v5340_v28 }
 0x1bc   : > { %11772 = vmatmul.mubr.msk.bf16.gmra.mxu1 %vm763_vm2, %v10552_v58  ;;  %v11608_v15 = vpop.f32.mrf.mxu0  ;;  %v3277_v24 = vadd.f32 %v3190_v23, %v13968_v10  ;;  %v5344_v10 = vor.u32 %v14223_v42, %v5340_v28  ;;  %v5880_v28 = vrot.slane %v13938_v54, 3 }
 0x1bd   : > { %11775 = vmatprep.mubr.msk.bf16.mxu1 %vm763_vm2, %v10553_v36  ;;  %v14225_v11 = vadd.f32 %v11608_v15, %v3276_v59  ;;  %v5594_v36 = vrot.slane %v13984_v9, 2  ;;  %v11582_v16 = vpop.f32.mrf.mxu1  ;;  %v10554_v59 = vcombine.low %v12388_v63, %v13907_v3  ;;  %v5593_v53 = vsel %vm954_vm3, %v5589_v49, %v5592_v62 }
 0x1be   : > { %v3474_v58 = vpop.f32.mrf.mxu0  ;;  %v3280_v52 = vadd.f32 %v11582_v16, %v13975_v46  ;;  %v5599_v3 = vrot.slane %v13987_v14, 3 }
 0x1bf   : > { %v14234_v27 = vadd.f32 %v3474_v58, %v3274_v55  ;;  %v3193_v47 = vpop.f32.mrf.mxu1  ;;  %v5598_v55 = vrot.slane %v14026_v7, 2  ;;  %v5596_v49 = vor.u32 %v5595_v12, %v5594_v36 }
 0x1c0   : > { %v11611_v33 = vpop.f32.mrf.mxu0  ;;  %11802 = vmatmul.mubr.msk.bf16.gmra.mxu0 %vm763_vm2, %v5333_v25  ;;  %v3278_v46 = vadd.f32 %v3193_v47, %v13989_v45  ;;  %v5879_v25 = vrot.slane %v14231_v19, 3  ;;  %v5349_v45 = vsel %vm2701_vm7, %v5344_v10, %v5348_v40  ;;  %v5882_v10 = vrot.slane %v13958_v57, 3 }
 0x1c1   : > { %v14241_v8 = vadd.f32 %v11611_v33, %v3279_v60  ;;  %11805 = vmatprep.mubr.msk.bf16.mxu0 %vm763_vm2, %v5341_v1  ;;  %v11585_v6 = vpop.f32.mrf.mxu1  ;;  %v5600_v1 = vor.u32 %v5599_v3, %v5598_v55  ;;  %v5603_v33 = vrot.slane %v14020_v43, 3  ;;  %v5607_v55 = vrot.slane %v14035_v13, 3 }
 0x1c2   : > { %v3487_v20 = vpop.f32.mrf.mxu0  ;;  %v3283_v15 = vadd.f32 %v11585_v6, %v13996_v34  ;;  %v5881_v63 = vsel %vm727_vm1, %v5879_v25, %v5880_v28  ;;  %v5602_v34 = vrot.slane %v14032_v50, 2  ;;  %v5884_v57 = vrot.slane %v13965_v38, 3  ;;  %v16811_v38 = vld [vmem:[#allocation11_spill] sm:$0xff] }
 0x1c3   : > { %v14251_v60 = vadd.f32 %v3487_v20, %v3277_v24  ;;  %v3206_v23 = vpop.f32.mrf.mxu1  ;;  %v5601_v47 = vsel %vm954_vm3, %v5596_v49, %v5600_v1 }
 0x1c4   : > { %11776 = vmatmul.mubr.msk.bf16.gmra.mxu1 %vm763_vm2, %v10554_v59  ;;  %v11612_v2 = vpop.f32.mrf.mxu0  ;;  %v3281_v16 = vadd.f32 %v3206_v23, %v14014_v32  ;;  %v5604_v25 = vor.u32 %v5603_v33, %v5602_v34  ;;  %v16812_v34 = vld [vmem:[#allocation13_spill] sm:$0xff] }
 0x1c5   : > { %11811 = vmatprep.mubr.msk.bf16.mxu1 %vm763_vm2, %v5593_v53  ;;  %v14255_v58 = vadd.f32 %v11612_v2, %v3280_v52  ;;  %v11586_v59 = vpop.f32.mrf.mxu1  ;;  %v5597_v52 = vsel %vm954_vm3, %v5592_v62, %v5596_v49  ;;  %v5606_v53 = vrot.slane %v14072_v18, 2 }
 0x1c6   : > { %v3490_v54 = vpop.f32.mrf.mxu0  ;;  %v3284_v36 = vadd.f32 %v11586_v59, %v14022_v31  ;;  %v14277_v31 = vld [vmem:[%s16584_s0 + $0x98] sm:$0xff]   ;;  %v5605_v59 = vsel %vm954_vm3, %v5600_v1, %v5604_v25 }
 0x1c7   : > { %v14260_v24 = vadd.f32 %v3490_v54, %v3278_v46  ;;  %v3209_v32 = vpop.f32.mrf.mxu1  ;;  %v5608_v23 = vor.u32 %v5607_v55, %v5606_v53  ;;  %v5885_v54 = vsel %vm727_vm1, %v5882_v10, %v5884_v57  ;;  %v16814_v53 = vld [vmem:[#allocation10_spill] sm:$0xff]  ;;  %v5614_v55 = vrot.slane %v14110_v48, 2 }
 0x1c8   : > { %v11615_v12 = vpop.f32.mrf.mxu0  ;;  %11806 = vmatmul.mubr.msk.bf16.gmra.mxu0 %vm763_vm2, %v5349_v45  ;;  %v3282_v62 = vadd.f32 %v3209_v32, %v14042_v26  ;;  %v5883_v26 = vsel %vm727_vm1, %v5880_v28, %v5882_v10  ;;  %v5611_v10 = vrot.slane %v14066_v35, 3 }
 0x1c9   : > { %v14268_v40 = vadd.f32 %v11615_v12, %v3283_v15  ;;  %11841 = vmatprep.mubr.msk.bf16.mxu0 %vm763_vm2, %v5881_v63  ;;  %v11589_v46 = vpop.f32.mrf.mxu1  ;;  %v5609_v1 = vsel %vm954_vm3, %v5604_v25, %v5608_v23 }
 0x1ca   : > { %v3503_v3 = vpop.f32.mrf.mxu0  ;;  %v3287_v6 = vadd.f32 %v11589_v46, %v14049_v17  ;;  %v14296_v17 = vld [vmem:[%s16584_s0 + $0xa0] sm:$0xff]  }
 0x1cb   : > { %v14282_v20 = vadd.f32 %v3503_v3, %v3281_v16  ;;  %v3222_v2 = vpop.f32.mrf.mxu1 }
 0x1cc   : > { %11812 = vmatmul.mubr.msk.bf16.vlgmr.msra.gmra.mxu1 %vm763_vm2, %v5597_v52  ;;  %v11616_v15 = vpop.f32.mrf.mxu0  ;;  %v3285_v45 = vadd.f32 %v3222_v2, %v16811_v38  ;;  %v5610_v52 = vrot.slane %v14077_v4, 2 }
 0x1cd   : > { %11870 = vmatpush3.bf16.msra.mxu1 %v14003_v56  ;;  %11815 = vmatprep.mubr.msk.bf16.mxu1 %vm763_vm2, %v5601_v47  ;;  %v14287_v49 = vadd.f32 %v11616_v15, %v3284_v36  ;;  %v11590_v56 = vpop.f32.mrf.mxu1  ;;  %v16813_v36 = vld [vmem:[#allocation6_spill] sm:$0xff]  ;;  %v16815_v15 = vld [vmem:[#allocation12_spill] sm:$0xff] }
 0x1ce   : > { %11929 = vmatprep.subr.bf16.mxu1 %v14277_v31  ;;  %v3506_v16 = vpop.f32.mrf.mxu0  ;;  %v3288_v28 = vadd.f32 %v11590_v56, %v16812_v34  ;;  %v5886_v12 = vrot.slane %v16813_v36, 3  ;;  %v5888_v2 = vrot.slane %v16815_v15, 3  ;;  %v5612_v25 = vor.u32 %v5611_v10, %v5610_v52  ;;  %v16819_v15 = vld [vmem:[#allocation21_spill] sm:$0xff] }
 0x1cf   : > { %v14298_v63 = vadd.f32 %v3506_v16, %v3282_v62  ;;  %v3225_v32 = vpop.f32.mrf.mxu1  ;;  %v5615_v62 = vrot.slane %v14080_v41, 3 }
 0x1d0   : > { %v11619_v33 = vpop.f32.mrf.mxu0  ;;  %11842 = vmatmul.mubr.msk.bf16.vlgmr.msra.gmra.mxu0 %vm763_vm2, %v5883_v26  ;;  %v3286_v3 = vadd.f32 %v3225_v32, %v14082_v21  ;;  %v5887_v21 = vsel %vm727_vm1, %v5884_v57, %v5886_v12  ;;  %v5613_v57 = vsel %vm954_vm3, %v5608_v23, %v5612_v25 }
 0x1d1   : > { %v14306_v47 = vadd.f32 %v11619_v33, %v3287_v6  ;;  %11900 = vmatpush3.bf16.msra.mxu0 %v16814_v53  ;;  %11845 = vmatprep.mubr.msk.bf16.mxu0 %vm763_vm2, %v5885_v54  ;;  %v11593_v26 = vpop.f32.mrf.mxu1  ;;  %v5616_v34 = vor.u32 %v5615_v62, %v5614_v55  ;;  %v16816_v33 = vld [vmem:[#allocation20_spill] sm:$0xff]  ;;  %v5889_v53 = vsel %vm727_vm1, %v5886_v12, %v5888_v2 }
 0x1d2   : > { %v3519_v46 = vpop.f32.mrf.mxu0  ;;  %11959 = vmatprep.subr.bf16.mxu0 %v14296_v17  ;;  %v3291_v38 = vadd.f32 %v11593_v26, %v14089_v29  ;;  %v5619_v26 = vrot.slane %v16819_v15, 3  ;;  %v16825_v15 = vld [vmem:[#allocation7_spill] sm:$0xff] }
 0x1d3   : > { %v14317_v6 = vadd.f32 %v3519_v46, %v3285_v45  ;;  %v3238_v54 = vpop.f32.mrf.mxu1  ;;  %v16818_v46 = vld [vmem:[#allocation15_spill] sm:$0xff]  ;;  %v5617_v12 = vsel %vm954_vm3, %v5612_v25, %v5616_v34 }
 0x1d4   : > { %11816 = vmatmul.mubr.msk.bf16.gmra.mxu1 %vm763_vm2, %v5605_v59  ;;  %v11620_v16 = vpop.f32.mrf.mxu0  ;;  %v3289_v36 = vadd.f32 %v3238_v54, %v16816_v33  ;;  %v5618_v29 = vrot.slane %v16818_v46, 2  ;;  %v16823_v54 = vld [vmem:[#allocation17_spill] sm:$0xff] }
 0x1d5   : > { %11819 = vmatprep.mubr.msk.bf16.mxu1 %vm763_vm2, %v5609_v1  ;;  %v14321_v56 = vadd.f32 %v11620_v16, %v3288_v28  ;;  %v11594_v59 = vpop.f32.mrf.mxu1  ;;  %v16820_v1 = vld [vmem:[#allocation18_spill] sm:$0xff]  ;;  %v16821_v28 = vld [vmem:[#allocation8_spill] sm:$0xff]  ;;  %v5623_v33 = vrot.slane %v16823_v54, 3 }
 0x1d6   : > { %v3522_v32 = vpop.f32.mrf.mxu0  ;;  %v3292_v52 = vadd.f32 %v11594_v59, %v16820_v1  ;;  %v5890_v55 = vrot.slane %v16821_v28, 3 }
 0x1d7   : > { %v14326_v45 = vadd.f32 %v3522_v32, %v3286_v3  ;;  %v3241_v62 = vpop.f32.mrf.mxu1  ;;  %v5622_v3 = vrot.slane %v14154_v0, 2  ;;  %v16824_v32 = vld [vmem:[#allocation22_spill] sm:$0xff] }
 0x1d8   : > { %v11623_v10 = vpop.f32.mrf.mxu0  ;;  %11846 = vmatmul.mubr.msk.bf16.gmra.mxu0 %vm763_vm2, %v5887_v21  ;;  %v3290_v59 = vadd.f32 %v3241_v62, %v16824_v32  ;;  %v5892_v21 = vrot.slane %v16825_v15, 3  ;;  %v5891_v54 = vsel %vm727_vm1, %v5888_v2, %v5890_v55  ;;  %v16827_v32 = vld [vmem:[#allocation24_spill] sm:$0xff]  ;;  %v5626_v2 = vrot.slane %v14159_v61, 2 }
 0x1d9   : > { %16817 = vst [vmem:[#allocation11_spill] sm:$0xff] %v14326_v45  ;;  %v14334_v16 = vadd.f32 %v11623_v10, %v3291_v38  ;;  %11849 = vmatprep.mubr.msk.bf16.mxu0 %vm763_vm2, %v5889_v53  ;;  %v11597_v46 = vpop.f32.mrf.mxu1  ;;  %v5620_v38 = vor.u32 %v5619_v26, %v5618_v29  ;;  %v16826_v10 = vld [vmem:[#allocation19_spill] sm:$0xff]  ;;  %v5624_v62 = vor.u32 %v5623_v33, %v5622_v3 }
 0x1da   : > { %v3535_v1 = vpop.f32.mrf.mxu0  ;;  %v3295_v28 = vadd.f32 %v11597_v46, %v16826_v10  ;;  %v5893_v45 = vsel %vm727_vm1, %v5890_v55, %v5892_v21  ;;  %v16829_v46 = vld [vmem:[#allocation4_spill] sm:$0xff]  ;;  %v16831_v3 = vld [vmem:[#allocation3_spill] sm:$0xff] }
 0x1db   : > { %16822 = vst [vmem:[#allocation13_spill] sm:$0xff] %v14334_v16  ;;  %v14343_v23 = vadd.f32 %v3535_v1, %v3289_v36  ;;  %v3254_v25 = vpop.f32.mrf.mxu1  ;;  %v5621_v29 = vsel %vm954_vm3, %v5616_v34, %v5620_v38  ;;  %v5627_v33 = vrot.slane %v16831_v3, 3  ;;  %v5625_v55 = vsel %vm954_vm3, %v5620_v38, %v5624_v62 }
 0x1dc   : > { %11820 = vmatmul.mubr.msk.bf16.gmra.mxu1 %vm763_vm2, %v5613_v57  ;;  %v11624_v53 = vpop.f32.mrf.mxu0  ;;  %v3293_v16 = vadd.f32 %v3254_v25, %v16827_v32  ;;  %v5630_v34 = vrot.slane %v14185_v37, 2  ;;  %v16834_v32 = vld [vmem:[#allocation29_spill] sm:$0xff] }
 0x1dd   : > { %11823 = vmatprep.mubr.msk.bf16.mxu1 %vm763_vm2, %v5617_v12  ;;  %v14347_v0 = vadd.f32 %v11624_v53, %v3292_v52  ;;  %v11598_v57 = vpop.f32.mrf.mxu1  ;;  %v16830_v52 = vld [vmem:[#allocation14_spill] sm:$0xff] }
 0x1de   : > { %v3538_v15 = vpop.f32.mrf.mxu0  ;;  %v3296_v26 = vadd.f32 %v11598_v57, %v16829_v46  ;;  %v5894_v12 = vrot.slane %v16830_v52, 3  ;;  %v16835_v57 = vld [vmem:[#allocation16_spill] sm:$0xff] }
 0x1df   : > { %v14352_v36 = vadd.f32 %v3538_v15, %v3290_v59  ;;  %v3257_v10 = vpop.f32.mrf.mxu1  ;;  %v16833_v59 = vld [vmem:[#allocation28_spill] sm:$0xff]  ;;  %v5896_v46 = vrot.slane %v16835_v57, 3 }
 0x1e0   : > { %v11627_v1 = vpop.f32.mrf.mxu0  ;;  %11850 = vmatmul.mubr.msk.bf16.gmra.mxu0 %vm763_vm2, %v5891_v54  ;;  %v5631_v25 = vrot.slane %v16833_v59, 3  ;;  %v3294_v15 = vadd.f32 %v3257_v10, %v16834_v32  ;;  %v5895_v59 = vsel %vm727_vm1, %v5892_v21, %v5894_v12  ;;  %v16837_v32 = vld [vmem:[#allocation33_spill] sm:$0xff] }
 0x1e1   : > { %16828 = vst [vmem:[#allocation6_spill] sm:$0xff] %v14352_v36  ;;  %v14360_v53 = vadd.f32 %v11627_v1, %v3295_v28  ;;  %11853 = vmatprep.mubr.msk.bf16.mxu0 %vm763_vm2, %v5893_v45  ;;  %v11633_v52 = vpop.f32.mrf.mxu1  ;;  %v16836_v28 = vld [vmem:[#allocation31_spill] sm:$0xff]  ;;  %v5628_v45 = vor.u32 %v5627_v33, %v5626_v2  ;;  %v5897_v36 = vsel %vm727_vm1, %v5894_v12, %v5896_v46  ;;  %v16838_v2 = vld [vmem:[#allocation36_spill] sm:$0xff] }
 0x1e2   : > { %v3551_v54 = vpop.f32.mrf.mxu0  ;;  %v4010_v1 = vadd.f32 %v11633_v52, %v16836_v28  ;;  %v5632_v10 = vor.u32 %v5631_v25, %v5630_v34  ;;  %v16839_v33 = vld [vmem:[#allocation23_spill] sm:$0xff] }
 0x1e3   : > { %16832 = vst [vmem:[#allocation10_spill] sm:$0xff] %v14360_v53  ;;  %v14369_v3 = vadd.f32 %v3551_v54, %v3293_v16  ;;  %v3897_v38 = vpop.f32.mrf.mxu1  ;;  %v5634_v16 = vrot.slane %v14198_v5, 2  ;;  %v14380_v54 = vld [vmem:[#allocation2 + $0xe0] ss:$0 sps:$4 sm:$0x77]   ;;  %v5629_v21 = vsel %vm954_vm3, %v5624_v62, %v5628_v45  ;;  %v5898_v34 = vrot.slane %v16839_v33, 3 }
 0x1e4   : > { %11824 = vmatmul.mubr.msk.bf16.gmra.mxu1 %vm763_vm2, %v5621_v29  ;;  %v11628_v61 = vpop.f32.mrf.mxu0  ;;  %v4008_v53 = vadd.f32 %v3897_v38, %v16837_v32  ;;  %v5635_v29 = vrot.slane %v14190_v51, 3  ;;  %v5633_v28 = vsel %vm954_vm3, %v5628_v45, %v5632_v10  ;;  %v5638_v38 = vrot.slane %v14223_v42, 2  ;;  %v6426_v33 = vld [vmem:[#allocation2 + $0x7c] sm:$0xc]  ;;  %v14397_v51 = vld [vmem:[#allocation2 + $0x80] sm:$0xf] }
 0x1e5   : > { %11827 = vmatprep.mubr.msk.bf16.mxu1 %vm763_vm2, %v5625_v55  ;;  %v14373_v37 = vadd.f32 %v11628_v61, %v3296_v26  ;;  %v11634_v52 = vpop.f32.mrf.mxu1  ;;  %v5643_v62 = vshrl.u32 %v14380_v54, 16  ;;  %16842 = vst [vmem:[#allocation20_spill] sm:$0xff] %v14397_v51  ;;  %v5646_v45 = vshll.u32 %v14380_v54, 16  ;;  %v5899_v42 = vsel %vm727_vm1, %v5896_v46, %v5898_v34 }
 0x1e6   : > { %v3554_v57 = vpop.f32.mrf.mxu0  ;;  %v4011_v61 = vadd.f32 %v11634_v52, %v16838_v2  ;;  %v5636_v52 = vor.u32 %v5635_v29, %v5634_v16  ;;  %v6140_v16 = vshll.u32 %v14231_v19, 16 }
 0x1e7   : > { %v14382_v55 = vadd.f32 %v3554_v57, %v3294_v15  ;;  %v3900_v25 = vpop.f32.mrf.mxu1  ;;  %v5639_v15 = vrot.slane %v14201_v30, 3  ;;  %v16844_v30 = vld [vmem:[#allocation39_spill] sm:$0xff] }
 0x1e8   : > { %v11663_v26 = vpop.f32.mrf.mxu0  ;;  %11854 = vmatmul.mubr.msk.bf16.gmra.mxu0 %vm763_vm2, %v5895_v59  ;;  %v4009_v32 = vadd.f32 %v3900_v25, %v14203_v22  ;;  %v16841_v59 = vld [vmem:[#allocation25_spill] sm:$0xff] }
 0x1e9   : > { %v14388_v12 = vadd.f32 %v11663_v26, %v4010_v1  ;;  %11857 = vmatprep.mubr.msk.bf16.mxu0 %vm763_vm2, %v5897_v36  ;;  %v5900_v2 = vrot.slane %v16841_v59, 3  ;;  %v11637_v1 = vpop.f32.mrf.mxu1  ;;  %v6137_v26 = vshrl.u32 %v14231_v19, 16  ;;  %v5640_v5 = vor.u32 %v5639_v15, %v5638_v38 }
 0x1ea   : > { %v4154_v57 = vpop.f32.mrf.mxu0  ;;  %v4014_v22 = vadd.f32 %v11637_v1, %v16844_v30  ;;  %v5645_v1 = vrot.slane %v5643_v62, 2 }
 0x1eb   : > { %16840 = vst [vmem:[#allocation12_spill] sm:$0xff] %v14388_v12  ;;  %v14400_v36 = vadd.f32 %v4154_v57, %v4008_v53  ;;  %v3913_v29 = vpop.f32.mrf.mxu1  ;;  %v10659_v53 = vcombine.low %v6426_v33, %v14397_v51  ;;  %v5901_v30 = vsel %vm727_vm1, %v5898_v34, %v5900_v2  ;;  %v14414_v12 = vld [vmem:[#allocation2 + $0x84] sm:$0xff]   ;;  %v6139_v46 = vrot.slane %v6137_v26, 3 }
 0x1ec   : > { %11828 = vmatmul.mubr.msk.bf16.gmra.mxu1 %vm763_vm2, %v5629_v21  ;;  %v11664_v25 = vpop.f32.mrf.mxu0  ;;  %v4012_v21 = vadd.f32 %v3913_v29, %v14218_v39  ;;  %v6142_v39 = vrot.slane %v6140_v16, 4  ;;  %v16847_v33 = vld [vmem:[#allocation9_spill] sm:$0xff] }
 0x1ed   : > { %16843 = vst [vmem:[#allocation18_spill] sm:$0xff] %v14400_v36  ;;  %11831 = vmatprep.mubr.msk.bf16.mxu1 %vm763_vm2, %v5633_v28  ;;  %v14407_v59 = vadd.f32 %v11664_v25, %v4011_v61  ;;  %v5637_v36 = vsel %vm954_vm3, %v5632_v10, %v5636_v52  ;;  %v11638_v28 = vpop.f32.mrf.mxu1  ;;  %v16846_v61 = vld [vmem:[#allocation30_spill] sm:$0xff]  ;;  %v6144_v10 = vrot.slane %v16847_v33, 3  ;;  %v16848_v29 = vld [vmem:[#allocation5_spill] sm:$0xff] }
 0x1ee   : > { %v4157_v57 = vpop.f32.mrf.mxu0  ;;  %v5902_v25 = vrot.slane %v16846_v61, 3  ;;  %v4015_v38 = vadd.f32 %v11638_v28, %v14225_v11  ;;  %v6145_v34 = vrot.slane %v16848_v29, 4  ;;  %v16849_v28 = vld [vmem:[#allocation32_spill] sm:$0xff] }
 0x1ef   : > { %16845 = vst [vmem:[#allocation8_spill] sm:$0xff] %v14407_v59  ;;  %v14416_v19 = vadd.f32 %v4157_v57, %v4009_v32  ;;  %v5648_v59 = vrot.slane %v5646_v45, 3  ;;  %v3916_v62 = vpop.f32.mrf.mxu1  ;;  %v5641_v32 = vsel %vm954_vm3, %v5636_v52, %v5640_v5  ;;  %v6532_v57 = vshrl.u32 %v10659_v53, 16 }
 0x1f0   : > { %v11667_v15 = vpop.f32.mrf.mxu0  ;;  %11858 = vmatmul.mubr.msk.bf16.gmra.mxu0 %vm763_vm2, %v5899_v42  ;;  %v6535_v45 = vshll.u32 %v10659_v53, 16  ;;  %v4013_v26 = vadd.f32 %v3916_v62, %v14234_v27  ;;  %v5904_v61 = vrot.slane %v16849_v28, 3  ;;  %v6143_v27 = vor.u32 %v6142_v39, %v6139_v46  ;;  %v14437_v62 = vld [vmem:[#allocation2 + $0x8c] sm:$0xff]  }
 0x1f1   : > { %v14423_v51 = vadd.f32 %v11667_v15, %v4014_v22  ;;  %11861 = vmatprep.mubr.msk.bf16.mxu0 %vm763_vm2, %v5901_v30  ;;  %v11641_v33 = vpop.f32.mrf.mxu1  ;;  %v5649_v15 = vor.u32 %v5648_v59, %v5645_v1  ;;  %v6148_v30 = vrot.slane %v13984_v9, 3  ;;  %v6146_v29 = vor.u32 %v6145_v34, %v6144_v10  ;;  %v14448_v10 = vld [vmem:[#allocation2 + $0x94] sm:$0xff]  }
 0x1f2   : > { %v4170_v11 = vpop.f32.mrf.mxu0  ;;  %v4018_v52 = vadd.f32 %v11641_v33, %v14241_v8  ;;  %v5903_v16 = vsel %vm727_vm1, %v5900_v2, %v5902_v25  ;;  %v5905_v9 = vsel %vm727_vm1, %v5902_v25, %v5904_v61  ;;  %v16850_v8 = vshrl.u32 %v14414_v12, 16 }
 0x1f3   : > { %v14432_v22 = vadd.f32 %v4170_v11, %v4012_v21  ;;  %v3929_v28 = vpop.f32.mrf.mxu1  ;;  %v6537_v21 = vrot.slane %v6535_v45, 3  ;;  %v16851_v46 = vshll.u32 %v14414_v12, 16  ;;  %v5650_v2 = vsel %vm954_vm3, %v5640_v5, %v5649_v15 }
 0x1f4   : > { %11832 = vmatmul.mubr.msk.bf16.gmra.mxu1 %vm763_vm2, %v5637_v36  ;;  %v11668_v53 = vpop.f32.mrf.mxu0  ;;  %v6534_v36 = vrot.slane %v6532_v57, 2  ;;  %v4016_v59 = vadd.f32 %v3929_v28, %v14251_v60  ;;  %v6542_v11 = vrot.slane %v16850_v8, 2  ;;  %v6149_v60 = vrot.slane %v13973_v44, 4 }
 0x1f5   : > { %11835 = vmatprep.mubr.msk.bf16.mxu1 %vm763_vm2, %v5641_v32  ;;  %v14439_v42 = vadd.f32 %v11668_v53, %v4015_v38  ;;  %v6545_v39 = vrot.slane %v16851_v46, 3  ;;  %v11642_v34 = vpop.f32.mrf.mxu1  ;;  %v5906_v32 = vrot.slane %v14380_v54, 3  ;;  %v6147_v45 = vsel %vm1289_vm4, %v6143_v27, %v6146_v29 }
 0x1f6   : > { %v4173_v1 = vpop.f32.mrf.mxu0  ;;  %v4019_v57 = vadd.f32 %v11642_v34, %v14255_v58  ;;  %v16661_v33 = vshrl.u32 %v14437_v62, 16  ;;  %v16660_v53 = vshll.u32 %v14437_v62, 16  ;;  %v6538_v5 = vor.u32 %v6537_v21, %v6534_v36 }
 0x1f7   : > { %v14450_v38 = vadd.f32 %v4173_v1, %v4013_v26  ;;  %v3932_v28 = vpop.f32.mrf.mxu1  ;;  %v6152_v54 = vrot.slane %v14026_v7, 3  ;;  %v6153_v44 = vrot.slane %v13987_v14, 4  ;;  %v16655_v27 = vshrl.u32 %v14448_v10, 16 }
 0x1f8   : > { %v11671_v25 = vpop.f32.mrf.mxu0  ;;  %11862 = vmatmul.mubr.msk.bf16.gmra.mxu0 %vm763_vm2, %v5903_v16  ;;  %v4017_v58 = vadd.f32 %v3932_v28, %v14260_v24  ;;  %v6546_v16 = vor.u32 %v6545_v39, %v6542_v11  ;;  %v16654_v1 = vshll.u32 %v14448_v10, 16  ;;  %v6150_v46 = vor.u32 %v6149_v60, %v6148_v30  ;;  %v14477_v24 = vld [vmem:[#allocation2 + $0x9c] sm:$0xff]  }
 0x1f9   : > { %v14460_v26 = vadd.f32 %v11671_v25, %v4018_v52  ;;  %11865 = vmatprep.mubr.msk.bf16.mxu0 %vm763_vm2, %v5905_v9  ;;  %v11645_v8 = vpop.f32.mrf.mxu1  ;;  %v6551_v14 = vrot.slane %v16661_v33, 2  ;;  %v6554_v7 = vrot.slane %v16660_v53, 3  ;;  %v6154_v39 = vor.u32 %v6153_v44, %v6152_v54  ;;  %v14488_v25 = vld [vmem:[#allocation2 + $0xa4] sm:$0xff]  }
 0x1fa   : > { %v4186_v15 = vpop.f32.mrf.mxu0  ;;  %v4022_v36 = vadd.f32 %v11645_v8, %v14268_v40  ;;  %v6547_v34 = vsel %vm954_vm3, %v6538_v5, %v6546_v16  ;;  %v6563_v60 = vrot.slane %v16654_v1, 3  ;;  %v16653_v44 = vshrl.u32 %v14477_v24, 16  ;;  %v567_v1 = vld [vmem:[%s13655_s10 + $0x10] sm:$0xf] }
 0x1fb   : > { %v14469_v52 = vadd.f32 %v4186_v15, %v4016_v59  ;;  %v3945_v9 = vpop.f32.mrf.mxu1  ;;  %v5907_v59 = vsel %vm727_vm1, %v5904_v61, %v5906_v32  ;;  %v6156_v61 = vrot.slane %v14032_v50, 3  ;;  %v6555_v54 = vor.u32 %v6554_v7, %v6551_v14  ;;  %595 = vst.msk [vmem:[#allocation2 + $0xf0] sm:$0xf] %vm478_vm0, %v567_v1  ;;  %v16863_v1 = vld [vmem:[#allocation3_spill] sm:$0xff] }
 0x1fc   : > { %11836 = vmatmul.mubr.msk.bf16.gmra.mxu1 %vm763_vm2, %v5650_v2  ;;  %v11672_v21 = vpop.f32.mrf.mxu0  ;;  %v4020_v30 = vadd.f32 %v3945_v9, %v14282_v20  ;;  %v6560_v2 = vrot.slane %v16655_v27, 2  ;;  %v6157_v20 = vrot.slane %v14020_v43, 4  ;;  %v16652_v15 = vshll.u32 %v14477_v24, 16 }
 0x1fd   : > { %11871 = vmatprep.mubr.msk.bf16.mxu1 %vm763_vm2, %v6147_v45  ;;  %v14479_v11 = vadd.f32 %v11672_v21, %v4019_v57  ;;  %v11646_v45 = vpop.f32.mrf.mxu1  ;;  %v6151_v57 = vsel %vm1289_vm4, %v6146_v29, %v6150_v46  ;;  %v6155_v29 = vsel %vm1289_vm4, %v6150_v46, %v6154_v39  ;;  %v6160_v50 = vrot.slane %v14072_v18, 3 }
 0x1fe   : > { %v4189_v40 = vpop.f32.mrf.mxu0  ;;  %v4023_v32 = vadd.f32 %v11646_v45, %v14287_v49  ;;  %v6161_v43 = vrot.slane %v14035_v13, 4  ;;  %v14508_v49 = vld [vmem:[%s16584_s0 + $0xa8] sm:$0xff]   ;;  %v14511_v7 = vor.u32 %v6563_v60, %v6560_v2  ;;  %v16646_v9 = vshll.u32 %v14488_v25, 16 }
 0x1ff   : > { %v14490_v28 = vadd.f32 %v4189_v40, %v4017_v58  ;;  %v3948_v8 = vpop.f32.mrf.mxu1  ;;  %v6158_v13 = vor.u32 %v6157_v20, %v6156_v61  ;;  %v14525_v2 = vld [vmem:[#allocation2 + $0xac] sm:$0xff]  }
 0x200   : > { %v11675_v5 = vpop.f32.mrf.mxu0  ;;  %11866 = vmatmul.mubr.msk.bf16.gmra.mxu0 %vm763_vm2, %v5907_v59  ;;  %v4021_v58 = vadd.f32 %v3948_v8, %v14298_v63  ;;  %v6569_v63 = vrot.slane %v16653_v44, 2  ;;  %v6565_v61 = vsel %vm954_vm3, %v6555_v54, %v14511_v7  ;;  %v14538_v8 = vld [vmem:[#allocation2 + $0xb4] sm:$0xff]  }
 0x201   : > { %v14499_v21 = vadd.f32 %v11675_v5, %v4022_v36  ;;  %11901 = vmatprep.mubr.msk.bf16.mxu0 %vm763_vm2, %v6547_v34  ;;  %v16647_v36 = vshrl.u32 %v14488_v25, 16  ;;  %v11649_v59 = vpop.f32.mrf.mxu1  ;;  %v6572_v34 = vrot.slane %v16652_v15, 3  ;;  %v6581_v5 = vrot.slane %v16646_v9, 3 }
 0x202   : > { %v4202_v14 = vpop.f32.mrf.mxu0  ;;  %v4026_v46 = vadd.f32 %v11649_v59, %v14306_v47 }
 0x203   : > { %v14516_v18 = vadd.f32 %v4202_v14, %v4020_v30  ;;  %v3961_v60 = vpop.f32.mrf.mxu1  ;;  %v6556_v30 = vsel %vm954_vm3, %v6546_v16, %v6555_v54  ;;  %v6578_v20 = vrot.slane %v16647_v36, 2  ;;  %v14543_v16 = vld [vmem:[%s16584_s0 + $0xb0] sm:$0xff]   ;;  %v6164_v54 = vrot.slane %v14077_v4, 3 }
 0x204   : > { %11872 = vmatmul.mubr.msk.bf16.vlgmr.msra.gmra.mxu1 %vm763_vm2, %v6151_v57  ;;  %v11676_v40 = vpop.f32.mrf.mxu0  ;;  %v6162_v57 = vor.u32 %v6161_v43, %v6160_v50  ;;  %v6165_v50 = vrot.slane %v14066_v35, 4  ;;  %v6573_v59 = vor.u32 %v6572_v34, %v6569_v63  ;;  %v6168_v35 = vrot.slane %v14110_v48, 3 }
 0x205   : > { %11930 = vmatpush3.bf16.msra.mxu1 %v14277_v31  ;;  %11875 = vmatprep.mubr.msk.bf16.mxu1 %vm763_vm2, %v6155_v29  ;;  %v14527_v45 = vadd.f32 %v11676_v40, %v4023_v32  ;;  %v4024_v31 = vadd.f32 %v3961_v60, %v14317_v6  ;;  %v11650_v32 = vpop.f32.mrf.mxu1  ;;  %v6159_v6 = vsel %vm1289_vm4, %v6154_v39, %v6158_v13  ;;  %v16651_v40 = vshrl.u32 %v14525_v2, 16  ;;  %v16852_v39 = vld [vmem:[#allocation11_spill] sm:$0xff] }
 0x206   : > { %11989 = vmatprep.subr.bf16.mxu1 %v14508_v49  ;;  %v4205_v47 = vpop.f32.mrf.mxu0  ;;  %v4027_v43 = vadd.f32 %v11650_v32, %v14321_v56  ;;  %v16650_v60 = vshll.u32 %v14525_v2, 16  ;;  %v6163_v4 = vsel %vm1289_vm4, %v6158_v13, %v6162_v57  ;;  %v6169_v56 = vrot.slane %v14080_v41, 4 }
 0x207   : > { %v14545_v29 = vadd.f32 %v4205_v47, %v4021_v58  ;;  %v3964_v9 = vpop.f32.mrf.mxu1  ;;  %v6582_v34 = vor.u32 %v6581_v5, %v6578_v20  ;;  %v16649_v47 = vshll.u32 %v14538_v8, 16  ;;  %v6166_v13 = vor.u32 %v6165_v50, %v6164_v54  ;;  %v14574_v20 = vld [vmem:[#allocation2 + $0xbc] sm:$0xff]  }
 0x208   : > { %v11679_v14 = vpop.f32.mrf.mxu0  ;;  %11902 = vmatmul.mubr.msk.bf16.vlgmr.msra.gmra.mxu0 %vm763_vm2, %v6556_v30  ;;  %v4025_v58 = vadd.f32 %v3964_v9, %v16852_v39  ;;  %v16648_v30 = vshrl.u32 %v14538_v8, 16  ;;  %v6587_v41 = vrot.slane %v16651_v40, 2  ;;  %v6590_v9 = vrot.slane %v16650_v60, 3 }
 0x209   : > { %v14554_v36 = vadd.f32 %v11679_v14, %v4026_v46  ;;  %11960 = vmatpush3.bf16.msra.mxu0 %v14296_v17  ;;  %11905 = vmatprep.mubr.msk.bf16.mxu0 %vm763_vm2, %v6565_v61  ;;  %v11653_v46 = vpop.f32.mrf.mxu1  ;;  %v16853_v61 = vld [vmem:[#allocation13_spill] sm:$0xff]  ;;  %v16657_v60 = vshll.u32 %v14574_v20, 16 }
 0x20a   : > { %v4218_v63 = vpop.f32.mrf.mxu0  ;;  %12019 = vmatprep.subr.bf16.mxu0 %v14543_v16  ;;  %v4030_v48 = vadd.f32 %v11653_v46, %v16853_v61  ;;  %v6596_v39 = vrot.slane %v16648_v30, 2  ;;  %v14586_v46 = vld [vmem:[#allocation2 + $0xc4] sm:$0xff]   ;;  %v6591_v30 = vor.u32 %v6590_v9, %v6587_v41 }
 0x20b   : > { %v14566_v17 = vadd.f32 %v4218_v63, %v4024_v31  ;;  %v3977_v5 = vpop.f32.mrf.mxu1  ;;  %v6574_v31 = vsel %vm954_vm3, %v14511_v7, %v6573_v59  ;;  %v6599_v63 = vrot.slane %v16649_v47, 3  ;;  %16854 = vst [vmem:[#allocation22_spill] sm:$0xff] %v14586_v46  ;;  %v16855_v7 = vld [vmem:[#allocation15_spill] sm:$0xff]  ;;  %v16656_v47 = vshrl.u32 %v14574_v20, 16 }
 0x20c   : > { %11876 = vmatmul.mubr.msk.bf16.gmra.mxu1 %vm763_vm2, %v6159_v6  ;;  %v11680_v32 = vpop.f32.mrf.mxu0  ;;  %v6170_v6 = vor.u32 %v6169_v56, %v6168_v35  ;;  %v4028_v54 = vadd.f32 %v3977_v5, %v14343_v23  ;;  %v6172_v35 = vrot.slane %v16855_v7, 3  ;;  %v16856_v56 = vld [vmem:[#allocation21_spill] sm:$0xff]  ;;  %v16658_v41 = vshrl.u32 %v14586_v46, 16 }
 0x20d   : > { %11879 = vmatprep.mubr.msk.bf16.mxu1 %vm763_vm2, %v6163_v4  ;;  %v14576_v14 = vadd.f32 %v11680_v32, %v4027_v43  ;;  %v6583_v4 = vsel %vm954_vm3, %v6573_v59, %v6582_v34  ;;  %v11654_v61 = vpop.f32.mrf.mxu1  ;;  %v6167_v32 = vsel %vm1289_vm4, %v6162_v57, %v6166_v13  ;;  %v6173_v23 = vrot.slane %v16856_v56, 4  ;;  %v16858_v56 = vld [vmem:[#allocation17_spill] sm:$0xff] }
 0x20e   : > { %v4221_v50 = vpop.f32.mrf.mxu0  ;;  %v4031_v5 = vadd.f32 %v11654_v61, %v14347_v0  ;;  %v6171_v57 = vsel %vm1289_vm4, %v6166_v13, %v6170_v6  ;;  %v6177_v0 = vrot.slane %v16858_v56, 4  ;;  %v16859_v61 = vld [vmem:[#allocation6_spill] sm:$0xff]  ;;  %v16659_v9 = vshll.u32 %v14586_v46, 16 }
 0x20f   : > { %v14588_v43 = vadd.f32 %v4221_v50, %v4025_v58  ;;  %v3980_v40 = vpop.f32.mrf.mxu1  ;;  %v16857_v50 = vld [vmem:[#allocation26_spill] sm:$0xff] }
 0x210   : > { %v11683_v59 = vpop.f32.mrf.mxu0  ;;  %11906 = vmatmul.mubr.msk.bf16.gmra.mxu0 %vm763_vm2, %v6574_v31  ;;  %v6176_v7 = vrot.slane %v16857_v50, 3  ;;  %v4029_v15 = vadd.f32 %v3980_v40, %v16859_v61  ;;  %v6600_v31 = vor.u32 %v6599_v63, %v6596_v39  ;;  %v14610_v13 = vld [vmem:[#allocation2 + $0xcc] sm:$0xff]   ;;  %v6592_v39 = vsel %vm954_vm3, %v6582_v34, %v6591_v30 }
 0x211   : > { %v14597_v58 = vadd.f32 %v11683_v59, %v4030_v48  ;;  %11909 = vmatprep.mubr.msk.bf16.mxu0 %vm763_vm2, %v6583_v4  ;;  %v11657_v27 = vpop.f32.mrf.mxu1  ;;  %v6174_v4 = vor.u32 %v6173_v23, %v6172_v35  ;;  %16860 = vst [vmem:[#allocation7_spill] sm:$0xff] %v14610_v13  ;;  %v16861_v59 = vld [vmem:[#allocation10_spill] sm:$0xff]  ;;  %v6605_v63 = vrot.slane %v16656_v47, 2  ;;  %v16862_v23 = vld [vmem:[#allocation27_spill] sm:$0xff]  ;;  %v6181_v61 = vrot.slane %v16863_v1, 4  ;;  %v16866_v1 = vld [vmem:[#allocation28_spill] sm:$0xff] }
 0x212   : > { %v4234_v44 = vpop.f32.mrf.mxu0  ;;  %v4034_v50 = vadd.f32 %v11657_v27, %v16861_v59  ;;  %v6178_v35 = vor.u32 %v6177_v0, %v6176_v7  ;;  %v6180_v56 = vrot.slane %v16862_v23, 3  ;;  %v6614_v34 = vrot.slane %v16658_v41, 2 }
 0x213   : > { %v14608_v48 = vadd.f32 %v4234_v44, %v4028_v54  ;;  %v3993_v44 = vpop.f32.mrf.mxu1  ;;  %v6617_v47 = vrot.slane %v16659_v9, 3  ;;  %v6175_v7 = vsel %vm1289_vm4, %v6170_v6, %v6174_v4  ;;  %v6185_v41 = vrot.slane %v16866_v1, 4 }
 0x214   : > { %11880 = vmatmul.mubr.msk.bf16.gmra.mxu1 %vm763_vm2, %v6167_v32  ;;  %v11684_v40 = vpop.f32.mrf.mxu0  ;;  %v6608_v32 = vrot.slane %v16657_v60, 3  ;;  %v4032_v27 = vadd.f32 %v3993_v44, %v14369_v3  ;;  %v14630_v60 = vld [vmem:[#allocation2 + $0xd4] sm:$0xff]  }
 0x215   : > { %11883 = vmatprep.mubr.msk.bf16.mxu1 %vm763_vm2, %v6171_v57  ;;  %v14620_v54 = vadd.f32 %v11684_v40, %v4031_v5  ;;  %v6601_v57 = vsel %vm954_vm3, %v6591_v30, %v6600_v31  ;;  %16864 = vst [vmem:[#allocation19_spill] sm:$0xff] %v14630_v60  ;;  %v11658_v5 = vpop.f32.mrf.mxu1  ;;  %v16865_v30 = vld [vmem:[#allocation34_spill] sm:$0xff]  ;;  %v6618_v0 = vor.u32 %v6617_v47, %v6614_v34  ;;  %v16871_v47 = vshll.u32 %v14610_v13, 16 }
 0x216   : > { %v4237_v59 = vpop.f32.mrf.mxu0  ;;  %v4035_v3 = vadd.f32 %v11658_v5, %v14373_v37  ;;  %v6184_v23 = vrot.slane %v16865_v30, 3  ;;  %v6609_v6 = vor.u32 %v6608_v32, %v6605_v63  ;;  %v16665_v30 = vshll.u32 %v14630_v60, 16 }
 0x217   : > { %v14632_v40 = vadd.f32 %v4237_v59, %v4029_v15  ;;  %v3996_v53 = vpop.f32.mrf.mxu1  ;;  %v6179_v15 = vsel %vm1289_vm4, %v6174_v4, %v6178_v35  ;;  %v6182_v59 = vor.u32 %v6181_v61, %v6180_v56  ;;  %v6626_v32 = vrot.slane %v16871_v47, 3 }
 0x218   : > { %v11687_v44 = vpop.f32.mrf.mxu0  ;;  %11910 = vmatmul.mubr.msk.bf16.gmra.mxu0 %vm763_vm2, %v6592_v39  ;;  %v4033_v37 = vadd.f32 %v3996_v53, %v14382_v55  ;;  %v16664_v39 = vshrl.u32 %v14630_v60, 16  ;;  %v14655_v63 = vor.u32 %v6185_v41, %v6184_v23  ;;  %v16870_v55 = vshrl.u32 %v14610_v13, 16 }
 0x219   : > { %v14641_v33 = vadd.f32 %v11687_v44, %v4034_v50  ;;  %11913 = vmatprep.mubr.msk.bf16.mxu0 %vm763_vm2, %v6601_v57  ;;  %v11693_v1 = vpop.f32.mrf.mxu1  ;;  %v14651_v50 = vld [vmem:[#allocation2 + $0xdc] sm:$0xff]   ;;  %v6183_v34 = vsel %vm1289_vm4, %v6178_v35, %v6182_v59  ;;  %v16876_v35 = vld [vmem:[#allocation35_spill] sm:$0xff] }
 0x21a   : > { %v4250_v5 = vpop.f32.mrf.mxu0  ;;  %16868 = vst [vmem:[#allocation4_spill] sm:$0xff] %v14651_v50  ;;  %v16869_v57 = vld [vmem:[#allocation12_spill] sm:$0xff]  ;;  %v6623_v53 = vrot.slane %v16870_v55, 2  ;;  %v6632_v55 = vrot.slane %v16664_v39, 2  ;;  %v6189_v13 = vrot.slane %v16876_v35, 4 }
 0x21b   : > { %v14649_v9 = vadd.f32 %v4250_v5, %v4032_v27  ;;  %v4564_v44 = vadd.f32 %v11693_v1, %v16869_v57  ;;  %v4451_v56 = vpop.f32.mrf.mxu1  ;;  %v6610_v27 = vsel %vm954_vm3, %v6600_v31, %v6609_v6  ;;  %v14666_v1 = vld [vmem:[#allocation2 + $0xe4] sm:$0xff]   ;;  %v6619_v57 = vsel %vm954_vm3, %v6609_v6, %v6618_v0 }
 0x21c   : > { %11884 = vmatmul.mubr.msk.bf16.gmra.mxu1 %vm763_vm2, %v6175_v7  ;;  %v11688_v4 = vpop.f32.mrf.mxu0  ;;  %v16873_v7 = vld [vmem:[#allocation37_spill] sm:$0xff]  ;;  %v6187_v6 = vsel %vm1289_vm4, %v6182_v59, %v14655_v63  ;;  %v6627_v39 = vor.u32 %v6626_v32, %v6623_v53  ;;  %v16882_v53 = vshll.u32 %v14651_v50, 16 }
 0x21d   : > { %16867 = vst [vmem:[#allocation24_spill] sm:$0xff] %v14649_v9  ;;  %11887 = vmatprep.mubr.msk.bf16.mxu1 %vm763_vm2, %v6179_v15  ;;  %v14661_v61 = vadd.f32 %v11688_v4, %v4035_v3  ;;  %v6188_v5 = vrot.slane %v16873_v7, 3  ;;  %v16874_v15 = vld [vmem:[#allocation18_spill] sm:$0xff]  ;;  %v6635_v3 = vrot.slane %v16665_v30, 3  ;;  %v12321_v4 = vld [vmem:[#allocation2 + $0xe0] ss:$0 sps:$4 sm:$0xff]   ;;  %v11694_v47 = vpop.f32.mrf.mxu1 }
 0x21e   : > { %v4562_v41 = vadd.f32 %v4451_v56, %v16874_v15  ;;  %v4253_v23 = vpop.f32.mrf.mxu0  ;;  %v16877_v56 = vld [vmem:[#allocation8_spill] sm:$0xff]  ;;  %v6644_v32 = vrot.slane %v16882_v53, 3 }
 0x21f   : > { %16872 = vst [vmem:[#allocation14_spill] sm:$0xff] %v14661_v61  ;;  %v14674_v31 = vadd.f32 %v4253_v23, %v4033_v37  ;;  %v4565_v15 = vadd.f32 %v11694_v47, %v16877_v56  ;;  %v16878_v30 = vld [vmem:[#allocation40_spill] sm:$0xff]  ;;  %v4454_v46 = vpop.f32.mrf.mxu1  ;;  %v16879_v23 = vld [vmem:[#allocation38_spill] sm:$0xff]  ;;  %v6648_v61 = vshrl.u32 %v14666_v1, 16  ;;  %v6636_v7 = vor.u32 %v6635_v3, %v6632_v55 }
 0x220   : > { %v11723_v9 = vpop.f32.mrf.mxu0  ;;  %11914 = vmatmul.mubr.msk.bf16.gmra.mxu0 %vm763_vm2, %v6610_v27  ;;  %v6192_v60 = vrot.slane %v16878_v30, 3  ;;  %v6193_v35 = vrot.slane %v16879_v23, 4  ;;  %v4563_v56 = vadd.f32 %v4454_v46, %v14416_v19  ;;  %v6628_v19 = vsel %vm954_vm3, %v6618_v0, %v6627_v39  ;;  %v14701_v55 = vld [vmem:[#allocation2 + $0xec] ss:$0 sps:$4 sm:$0x77]  }
 0x221   : > { %16875 = vst [vmem:[#allocation29_spill] sm:$0xff] %v14674_v31  ;;  %v14684_v37 = vadd.f32 %v11723_v9, %v4564_v44  ;;  %11917 = vmatprep.mubr.msk.bf16.mxu0 %vm763_vm2, %v6619_v57  ;;  %v6197_v31 = vshrl.u32 %v12321_v4, 16  ;;  %v11697_v59 = vpop.f32.mrf.mxu1  ;;  %v16881_v9 = vshrl.u32 %v14651_v50, 16  ;;  %v6200_v57 = vshll.u32 %v12321_v4, 16 }
 0x222   : > { %v4752_v27 = vpop.f32.mrf.mxu0  ;;  %v4568_v23 = vadd.f32 %v11697_v59, %v14423_v51  ;;  %v6190_v46 = vor.u32 %v6189_v13, %v6188_v5  ;;  %v16883_v4 = vshll.u32 %v14666_v1, 16 }
 0x223   : > { %v14692_v30 = vadd.f32 %v4752_v27, %v4562_v41  ;;  %v6641_v44 = vrot.slane %v16881_v9, 2  ;;  %v4467_v41 = vpop.f32.mrf.mxu1  ;;  %v6194_v27 = vor.u32 %v6193_v35, %v6192_v60  ;;  %v6650_v9 = vrot.slane %v6648_v61, 2 }
 0x224   : > { %11888 = vmatmul.mubr.msk.bf16.gmra.mxu1 %vm763_vm2, %v6183_v34  ;;  %v11724_v47 = vpop.f32.mrf.mxu0  ;;  %v6886_v34 = vld [vmem:[#allocation2 + $0x7c] sm:$0x8]  ;;  %v6653_v53 = vrot.slane %v16883_v4, 3  ;;  %v4566_v51 = vadd.f32 %v4467_v41, %v14432_v22  ;;  %v6199_v0 = vrot.slane %v6197_v31, 3  ;;  %v6191_v4 = vsel %vm1289_vm4, %v14655_v63, %v6190_v46 }
 0x225   : > { %16880 = vst [vmem:[#allocation16_spill] sm:$0xff] %v14692_v30  ;;  %11891 = vmatprep.mubr.msk.bf16.mxu1 %vm763_vm2, %v6187_v6  ;;  %v14703_v3 = vadd.f32 %v11724_v47, %v4565_v15  ;;  %v6637_v6 = vsel %vm954_vm3, %v6627_v39, %v6636_v7  ;;  %v11698_v13 = vpop.f32.mrf.mxu1  ;;  %v6645_v50 = vor.u32 %v6644_v32, %v6641_v44  ;;  %v6202_v30 = vrot.slane %v6200_v57, 4  ;;  %v16884_v15 = vld [vmem:[#allocation20_spill] sm:$0xff] }
 0x226   : > { %v4755_v59 = vpop.f32.mrf.mxu0  ;;  %v10691_v47 = vcombine.low %v6886_v34, %v16884_v15  ;;  %v4569_v60 = vadd.f32 %v11698_v13, %v14439_v42  ;;  %v6657_v22 = vshrl.u32 %v14701_v55, 16  ;;  %v6660_v39 = vshll.u32 %v14701_v55, 16 }
 0x227   : > { %v14711_v5 = vadd.f32 %v4755_v59, %v4563_v56  ;;  %v4470_v31 = vpop.f32.mrf.mxu1  ;;  %v6195_v56 = vsel %vm1289_vm4, %v6190_v46, %v6194_v27  ;;  %v6654_v44 = vor.u32 %v6653_v53, %v6650_v9  ;;  %v6646_v59 = vsel %vm954_vm3, %v6636_v7, %v6645_v50 }
 0x228   : > { %v11727_v35 = vpop.f32.mrf.mxu0  ;;  %11918 = vmatmul.mubr.msk.bf16.gmra.mxu0 %vm763_vm2, %v6628_v19  ;;  %v7151_v32 = vshrl.u32 %v10691_v47, 16  ;;  %v4567_v42 = vadd.f32 %v4470_v31, %v14450_v38  ;;  %v7154_v19 = vshll.u32 %v10691_v47, 16  ;;  %v6203_v13 = vor.u32 %v6202_v30, %v6199_v0 }
 0x229   : > { %v14720_v41 = vadd.f32 %v11727_v35, %v4568_v23  ;;  %11921 = vmatprep.mubr.msk.bf16.mxu0 %vm763_vm2, %v6637_v6  ;;  %v11701_v34 = vpop.f32.mrf.mxu1  ;;  %v6659_v46 = vrot.slane %v6657_v22, 2  ;;  %v6662_v9 = vrot.slane %v6660_v39, 3  ;;  %v6894_v53 = vrot.slane %v14414_v12, 3 }
 0x22a   : > { %v4768_v57 = vpop.f32.mrf.mxu0  ;;  %v4572_v23 = vadd.f32 %v11701_v34, %v14460_v26  ;;  %v6655_v35 = vsel %vm954_vm3, %v6645_v50, %v6654_v44  ;;  %v7156_v30 = vrot.slane %v7154_v19, 4  ;;  %v16885_v26 = vshrl.u32 %v14414_v12, 16 }
 0x22b   : > { %v14726_v63 = vadd.f32 %v4768_v57, %v4566_v51  ;;  %v4483_v38 = vpop.f32.mrf.mxu1  ;;  %v7153_v51 = vrot.slane %v7151_v32, 3  ;;  %v6204_v50 = vsel %vm1289_vm4, %v6194_v27, %v6203_v13  ;;  %v6663_v32 = vor.u32 %v6662_v9, %v6659_v46 }
 0x22c   : > { %11892 = vmatmul.mubr.msk.bf16.gmra.mxu1 %vm763_vm2, %v6191_v4  ;;  %v11728_v15 = vpop.f32.mrf.mxu0  ;;  %v6893_v4 = vrot.slane %v10691_v47, 3  ;;  %v4570_v31 = vadd.f32 %v4483_v38, %v14469_v52  ;;  %v7158_v0 = vrot.slane %v16885_v26, 3  ;;  %v6896_v13 = vrot.slane %v14437_v62, 3 }
 0x22d   : > { %11895 = vmatprep.mubr.msk.bf16.mxu1 %vm763_vm2, %v6195_v56  ;;  %v14732_v6 = vadd.f32 %v11728_v15, %v4569_v60  ;;  %v16886_v56 = vshll.u32 %v14414_v12, 16  ;;  %v11702_v39 = vpop.f32.mrf.mxu1 }
 0x22e   : > { %v4771_v7 = vpop.f32.mrf.mxu0  ;;  %v4573_v60 = vadd.f32 %v11702_v39, %v14479_v11  ;;  %v6895_v19 = vsel %vm727_vm1, %v6893_v4, %v6894_v53 }
 0x22f   : > { %v7159_v22 = vrot.slane %v16886_v56, 4  ;;  %v14740_v57 = vadd.f32 %v4771_v7, %v4567_v42  ;;  %v4486_v47 = vpop.f32.mrf.mxu1  ;;  %v7157_v42 = vor.u32 %v7156_v30, %v7153_v51  ;;  %v6664_v51 = vsel %vm954_vm3, %v6654_v44, %v6663_v32 }
 0x230   : > { %v11731_v34 = vpop.f32.mrf.mxu0  ;;  %11922 = vmatmul.mubr.msk.bf16.gmra.mxu0 %vm763_vm2, %v6646_v59  ;;  %v4571_v12 = vadd.f32 %v4486_v47, %v14490_v28  ;;  %v16888_v28 = vshll.u32 %v14437_v62, 16  ;;  %v6897_v44 = vsel %vm727_vm1, %v6894_v53, %v6896_v13 }
 0x231   : > { %v14745_v52 = vadd.f32 %v11731_v34, %v4572_v23  ;;  %11925 = vmatprep.mubr.msk.bf16.mxu0 %vm763_vm2, %v6655_v35  ;;  %v7160_v38 = vor.u32 %v7159_v22, %v7158_v0  ;;  %v11705_v7 = vpop.f32.mrf.mxu1  ;;  %v16887_v23 = vshrl.u32 %v14437_v62, 16  ;;  %v16889_v0 = vshrl.u32 %v14448_v10, 16 }
 0x232   : > { %v4784_v15 = vpop.f32.mrf.mxu0  ;;  %v4576_v27 = vadd.f32 %v11705_v7, %v14499_v21  ;;  %v7163_v9 = vrot.slane %v16888_v28, 4  ;;  %v16890_v22 = vshll.u32 %v14448_v10, 16  ;;  %v16891_v28 = vshrl.u32 %v14477_v24, 16 }
 0x233   : > { %v14751_v11 = vadd.f32 %v4784_v15, %v4570_v31  ;;  %v7162_v46 = vrot.slane %v16887_v23, 3  ;;  %v4499_v35 = vpop.f32.mrf.mxu1  ;;  %v6898_v31 = vrot.slane %v14448_v10, 3  ;;  %v7161_v26 = vsel %vm1289_vm4, %v7157_v42, %v7160_v38  ;;  %v14782_v10 = vld [vmem:[%s16584_s0 + $0xb8] sm:$0xff]  }
 0x234   : > { %11896 = vmatmul.mubr.msk.bf16.gmra.mxu1 %vm763_vm2, %v6204_v50  ;;  %v11732_v59 = vpop.f32.mrf.mxu0  ;;  %v4574_v21 = vadd.f32 %v4499_v35, %v14516_v18  ;;  %v7166_v56 = vrot.slane %v16889_v0, 3  ;;  %v7167_v39 = vrot.slane %v16890_v22, 4  ;;  %v16892_v35 = vshll.u32 %v14477_v24, 16 }
 0x235   : > { %11931 = vmatprep.mubr.msk.bf16.mxu1 %vm763_vm2, %v6895_v19  ;;  %v14760_v4 = vadd.f32 %v11732_v59, %v4573_v60  ;;  %v11706_v62 = vpop.f32.mrf.mxu1  ;;  %v7164_v18 = vor.u32 %v7163_v9, %v7162_v46  ;;  %v6899_v19 = vsel %vm727_vm1, %v6896_v13, %v6898_v31  ;;  %v6900_v13 = vrot.slane %v14477_v24, 3 }
 0x236   : > { %v4787_v30 = vpop.f32.mrf.mxu0  ;;  %v4577_v60 = vadd.f32 %v11706_v62, %v14527_v45  ;;  %v7168_v15 = vor.u32 %v7167_v39, %v7166_v56  ;;  %v6902_v46 = vrot.slane %v14488_v25, 3  ;;  %v7170_v9 = vrot.slane %v16891_v28, 3  ;;  %v14810_v56 = vld [vmem:[%s16584_s0 + $0xc0] sm:$0xff]  }
 0x237   : > { %v14770_v34 = vadd.f32 %v4787_v30, %v4571_v12  ;;  %v4502_v47 = vpop.f32.mrf.mxu1  ;;  %v7165_v59 = vsel %vm1289_vm4, %v7160_v38, %v7164_v18  ;;  %v6901_v62 = vsel %vm727_vm1, %v6898_v31, %v6900_v13  ;;  %v6906_v28 = vrot.slane %v14538_v8, 3 }
 0x238   : > { %v11735_v50 = vpop.f32.mrf.mxu0  ;;  %11926 = vmatmul.mubr.msk.bf16.gmra.mxu0 %vm763_vm2, %v6664_v51  ;;  %v4575_v45 = vadd.f32 %v4502_v47, %v14545_v29  ;;  %v7169_v38 = vsel %vm1289_vm4, %v7164_v18, %v7168_v15 }
 0x239   : > { %v14775_v32 = vadd.f32 %v11735_v50, %v4576_v27  ;;  %11961 = vmatprep.mubr.msk.bf16.mxu0 %vm763_vm2, %v7161_v26  ;;  %v11709_v42 = vpop.f32.mrf.mxu1  ;;  %v16894_v26 = vshll.u32 %v14488_v25, 16 }
 0x23a   : > { %v4800_v12 = vpop.f32.mrf.mxu0  ;;  %v4580_v7 = vadd.f32 %v11709_v42, %v14554_v36  ;;  %v7171_v36 = vrot.slane %v16892_v35, 4  ;;  %v16895_v42 = vshrl.u32 %v14525_v2, 16 }
 0x23b   : > { %v14786_v53 = vadd.f32 %v4800_v12, %v4574_v21  ;;  %v4515_v23 = vpop.f32.mrf.mxu1  ;;  %v16893_v21 = vshrl.u32 %v14488_v25, 16  ;;  %v7175_v0 = vrot.slane %v16894_v26, 4  ;;  %v6903_v25 = vsel %vm727_vm1, %v6900_v13, %v6902_v46 }
 0x23c   : > { %11932 = vmatmul.mubr.msk.bf16.vlgmr.msra.gmra.mxu1 %vm763_vm2, %v6897_v44  ;;  %v11736_v27 = vpop.f32.mrf.mxu0  ;;  %v7172_v44 = vor.u32 %v7171_v36, %v7170_v9  ;;  %v16897_v36 = vshrl.u32 %v14538_v8, 16 }
 0x23d   : > { %11990 = vmatpush3.bf16.msra.mxu1 %v14508_v49  ;;  %11935 = vmatprep.mubr.msk.bf16.mxu1 %vm763_vm2, %v6899_v19  ;;  %v14793_v29 = vadd.f32 %v11736_v27, %v4577_v60  ;;  %v4578_v49 = vadd.f32 %v4515_v23, %v14566_v17  ;;  %v7174_v30 = vrot.slane %v16893_v21, 3  ;;  %v11710_v24 = vpop.f32.mrf.mxu1 }
 0x23e   : > { %12049 = vmatprep.subr.bf16.mxu1 %v14782_v10  ;;  %v4803_v51 = vpop.f32.mrf.mxu0  ;;  %v4581_v39 = vadd.f32 %v11710_v24, %v14576_v14  ;;  %v7173_v23 = vsel %vm1289_vm4, %v7168_v15, %v7172_v44 }
 0x23f   : > { %v14812_v22 = vadd.f32 %v4803_v51, %v4575_v45  ;;  %v4518_v60 = vpop.f32.mrf.mxu1  ;;  %v7176_v19 = vor.u32 %v7175_v0, %v7174_v30  ;;  %v16898_v51 = vshll.u32 %v14538_v8, 16 }
 0x240   : > { %v11739_v17 = vpop.f32.mrf.mxu0  ;;  %11962 = vmatmul.mubr.msk.bf16.vlgmr.msra.gmra.mxu0 %vm763_vm2, %v7165_v59  ;;  %v4579_v18 = vadd.f32 %v4518_v60, %v14588_v43  ;;  %v16896_v43 = vshll.u32 %v14525_v2, 16 }
 0x241   : > { %v14817_v50 = vadd.f32 %v11739_v17, %v4580_v7  ;;  %12020 = vmatpush3.bf16.msra.mxu0 %v14543_v16  ;;  %11965 = vmatprep.mubr.msk.bf16.mxu0 %vm763_vm2, %v7169_v38  ;;  %v11713_v14 = vpop.f32.mrf.mxu1  ;;  %v6904_v16 = vrot.slane %v14525_v2, 3  ;;  %v7178_v7 = vrot.slane %v16895_v42, 3  ;;  %v7177_v35 = vsel %vm1289_vm4, %v7172_v44, %v7176_v19 }
 0x242   : > { %v4816_v47 = vpop.f32.mrf.mxu0  ;;  %12079 = vmatprep.subr.bf16.mxu0 %v14810_v56  ;;  %v4584_v45 = vadd.f32 %v11713_v14, %v14597_v58  ;;  %v7179_v27 = vrot.slane %v16896_v43, 4  ;;  %v7183_v38 = vrot.slane %v16898_v51, 4  ;;  %v16901_v42 = vshll.u32 %v14574_v20, 16  ;;  %v16902_v43 = vld [vmem:[#allocation24_spill] sm:$0xff] }
 0x243   : > { %v14825_v31 = vadd.f32 %v4816_v47, %v4578_v49  ;;  %v4531_v59 = vpop.f32.mrf.mxu1  ;;  %v7182_v49 = vrot.slane %v16897_v36, 3  ;;  %v6905_v15 = vsel %vm727_vm1, %v6902_v46, %v6904_v16 }
 0x244   : > { %11936 = vmatmul.mubr.msk.bf16.gmra.mxu1 %vm763_vm2, %v6901_v62  ;;  %v11740_v12 = vpop.f32.mrf.mxu0  ;;  %v4582_v58 = vadd.f32 %v4531_v59, %v14608_v48  ;;  %v7180_v48 = vor.u32 %v7179_v27, %v7178_v7  ;;  %v7187_v7 = vrot.slane %v16901_v42, 4 }
 0x245   : > { %11939 = vmatprep.mubr.msk.bf16.mxu1 %vm763_vm2, %v6903_v25  ;;  %v14834_v13 = vadd.f32 %v11740_v12, %v4581_v39  ;;  %v11714_v2 = vpop.f32.mrf.mxu1  ;;  %v6907_v39 = vsel %vm727_vm1, %v6904_v16, %v6906_v28  ;;  %v7184_v62 = vor.u32 %v7183_v38, %v7182_v49  ;;  %v16900_v12 = vshrl.u32 %v14574_v20, 16  ;;  %v16905_v49 = vld [vmem:[#allocation14_spill] sm:$0xff] }
 0x246   : > { %v4819_v9 = vpop.f32.mrf.mxu0  ;;  %v4585_v30 = vadd.f32 %v11714_v2, %v14620_v54  ;;  %v7181_v44 = vsel %vm1289_vm4, %v7176_v19, %v7180_v48 }
 0x247   : > { %v14844_v21 = vadd.f32 %v4819_v9, %v4579_v18  ;;  %v4534_v0 = vpop.f32.mrf.mxu1  ;;  %v6908_v18 = vrot.slane %v14574_v20, 3  ;;  %v7186_v16 = vrot.slane %v16900_v12, 3  ;;  %v7185_v59 = vsel %vm1289_vm4, %v7180_v48, %v7184_v62  ;;  %v16906_v48 = vld [vmem:[#allocation29_spill] sm:$0xff] }
 0x248   : > { %v11743_v26 = vpop.f32.mrf.mxu0  ;;  %11966 = vmatmul.mubr.msk.bf16.gmra.mxu0 %vm763_vm2, %v7173_v23  ;;  %v4583_v8 = vadd.f32 %v4534_v0, %v14632_v40  ;;  %v16899_v40 = vld [vmem:[#allocation22_spill] sm:$0xff] }
 0x249   : > { %v14849_v24 = vadd.f32 %v11743_v26, %v4584_v45  ;;  %11969 = vmatprep.mubr.msk.bf16.mxu0 %vm763_vm2, %v7177_v35  ;;  %v11717_v60 = vpop.f32.mrf.mxu1  ;;  %v6910_v45 = vrot.slane %v16899_v40, 3  ;;  %v16903_v19 = vshrl.u32 %v16899_v40, 16  ;;  %v6909_v20 = vsel %vm727_vm1, %v6906_v28, %v6908_v18 }
 0x24a   : > { %v4832_v17 = vpop.f32.mrf.mxu0  ;;  %v4588_v25 = vadd.f32 %v11717_v60, %v14641_v33 }
 0x24b   : > { %v14855_v54 = vadd.f32 %v4832_v17, %v4582_v58  ;;  %v4547_v47 = vpop.f32.mrf.mxu1  ;;  %v7190_v23 = vrot.slane %v16903_v19, 3  ;;  %v16904_v58 = vshll.u32 %v16899_v40, 16  ;;  %v6911_v26 = vsel %vm727_vm1, %v6908_v18, %v6910_v45  ;;  %v16911_v19 = vld [vmem:[#allocation16_spill] sm:$0xff] }
 0x24c   : > { %11940 = vmatmul.mubr.msk.bf16.gmra.mxu1 %vm763_vm2, %v6905_v15  ;;  %v11744_v46 = vpop.f32.mrf.mxu0  ;;  %v4586_v33 = vadd.f32 %v4547_v47, %v16902_v43  ;;  %v7188_v15 = vor.u32 %v7187_v7, %v7186_v16  ;;  %v568_v16 = vld [vmem:[%s13655_s10 + $0x14] sm:$0xf] }
 0x24d   : > { %11943 = vmatprep.mubr.msk.bf16.mxu1 %vm763_vm2, %v6907_v39  ;;  %v14861_v14 = vadd.f32 %v11744_v46, %v4585_v30  ;;  %v7191_v9 = vrot.slane %v16904_v58, 4  ;;  %v11718_v35 = vpop.f32.mrf.mxu1  ;;  %596 = vst.msk [vmem:[#allocation2 + $0xf4] sm:$0xf] %vm478_vm0, %v568_v16 }
 0x24e   : > { %v4835_v27 = vpop.f32.mrf.mxu0  ;;  %v4589_v51 = vadd.f32 %v11718_v35, %v16905_v49  ;;  %v7189_v43 = vsel %vm1289_vm4, %v7184_v62, %v7188_v15 }
 0x24f   : > { %v14874_v36 = vadd.f32 %v4835_v27, %v4583_v8  ;;  %v4550_v2 = vpop.f32.mrf.mxu1  ;;  %v7192_v8 = vor.u32 %v7191_v9, %v7190_v23 }
 0x250   : > { %v11747_v38 = vpop.f32.mrf.mxu0  ;;  %11970 = vmatmul.mubr.msk.bf16.gmra.mxu0 %vm763_vm2, %v7181_v44  ;;  %v4587_v0 = vadd.f32 %v4550_v2, %v16906_v48 }
 0x251   : > { %v14879_v30 = vadd.f32 %v11747_v38, %v4588_v25  ;;  %11973 = vmatprep.mubr.msk.bf16.mxu0 %vm763_vm2, %v7185_v59  ;;  %v16907_v25 = vld [vmem:[#allocation7_spill] sm:$0xff]  ;;  %v14899_v59 = vld [vmem:[#allocation2 + $0x84] sm:$0xf]  ;;  %v7193_v9 = vsel %vm1289_vm4, %v7188_v15, %v7192_v8 }
 0x252   : > { %v4848_v39 = vpop.f32.mrf.mxu0  ;;  %v6912_v44 = vrot.slane %v16907_v25, 3  ;;  %v16908_v47 = vshrl.u32 %v16907_v25, 16  ;;  %v16909_v40 = vshll.u32 %v16907_v25, 16 }
 0x253   : > { %v14885_v60 = vadd.f32 %v4848_v39, %v4586_v33  ;;  %v16910_v33 = vld [vmem:[#allocation19_spill] sm:$0xff] }
 0x254   : > { %v11753_v17 = vpop.f32.mrf.mxu1  ;;  %11944 = vmatmul.mubr.msk.bf16.gmra.mxu1 %vm763_vm2, %v6909_v20  ;;  %v11748_v46 = vpop.f32.mrf.mxu0  ;;  %v7194_v18 = vrot.slane %v16908_v47, 3  ;;  %v7195_v12 = vrot.slane %v16909_v40, 4  ;;  %v6914_v27 = vrot.slane %v16910_v33, 3  ;;  %v16912_v35 = vshrl.u32 %v16910_v33, 16  ;;  %v14918_v47 = vld [vmem:[#allocation2 + $0x88] sm:$0xff]  }
 0x255   : > { %v5103_v28 = vadd.f32 %v11753_v17, %v14684_v37  ;;  %11947 = vmatprep.mubr.msk.bf16.mxu1 %vm763_vm2, %v6911_v26  ;;  %v14895_v7 = vadd.f32 %v11748_v46, %v4589_v51  ;;  %v7440_v37 = vld [vmem:[#allocation2 + $0x80] sm:$0xe]  ;;  %v16913_v51 = vshll.u32 %v16910_v33, 16  ;;  %v6913_v48 = vsel %vm727_vm1, %v6910_v45, %v6912_v44 }
 0x256   : > { %v4990_v42 = vpop.f32.mrf.mxu1  ;;  %v4851_v58 = vpop.f32.mrf.mxu0  ;;  %v7198_v49 = vrot.slane %v16912_v35, 3  ;;  %v7196_v39 = vor.u32 %v7195_v12, %v7194_v18  ;;  %v10727_v17 = vcombine.low %v7440_v37, %v14899_v59  ;;  %v6915_v25 = vsel %vm727_vm1, %v6912_v44, %v6914_v27  ;;  %v16914_v18 = vld [vmem:[#allocation4_spill] sm:$0xff]  ;;  %v12326_v44 = vld [vmem:[#allocation2 + $0xec] ss:$0 sps:$4 sm:$0xff]  }
 0x257   : > { %v5101_v23 = vadd.f32 %v4990_v42, %v16911_v19  ;;  %v7199_v38 = vrot.slane %v16913_v51, 4  ;;  %v14908_v62 = vadd.f32 %v4851_v58, %v4587_v0  ;;  %v6916_v12 = vrot.slane %v16914_v18, 3 }
 0x258   : > { %v11754_v20 = vpop.f32.mrf.mxu1  ;;  %v11783_v26 = vpop.f32.mrf.mxu0  ;;  %11974 = vmatmul.mubr.msk.bf16.gmra.mxu0 %vm763_vm2, %v7189_v43  ;;  %v16916_v43 = vshll.u32 %v16914_v18, 16  ;;  %v7546_v58 = vshrl.u32 %v10727_v17, 16  ;;  %v16681_v51 = vshrl.u32 %v14918_v47, 16 }
 0x259   : > { %v5104_v2 = vadd.f32 %v11754_v20, %v14703_v3  ;;  %v14914_v46 = vadd.f32 %v11783_v26, %v5103_v28  ;;  %11977 = vmatprep.mubr.msk.bf16.mxu0 %vm763_vm2, %v7193_v9  ;;  %v7200_v40 = vor.u32 %v7199_v38, %v7198_v49  ;;  %v16915_v28 = vshrl.u32 %v16914_v18, 16  ;;  %v14946_v18 = vld [vmem:[#allocation2 + $0x90] sm:$0xff]  }
 0x25a   : > { %v4993_v15 = vpop.f32.mrf.mxu1  ;;  %v5432_v3 = vpop.f32.mrf.mxu0  ;;  %v7203_v33 = vrot.slane %v16916_v43, 4  ;;  %v7549_v9 = vshll.u32 %v10727_v17, 16  ;;  %v6918_v49 = vrot.slane %v14666_v1, 3  ;;  %v16672_v38 = vshll.u32 %v14918_v47, 16 }
 0x25b   : > { %v5102_v0 = vadd.f32 %v4993_v15, %v14711_v5  ;;  %v14922_v45 = vadd.f32 %v5432_v3, %v5101_v23  ;;  %v7202_v42 = vrot.slane %v16915_v28, 3  ;;  %v7197_v5 = vsel %vm1289_vm4, %v7192_v8, %v7196_v39 }
 0x25c   : > { %v11757_v16 = vpop.f32.mrf.mxu1  ;;  %11948 = vmatmul.mubr.msk.bf16.gmra.mxu1 %vm763_vm2, %v6913_v48  ;;  %v11784_v19 = vpop.f32.mrf.mxu0  ;;  %v7206_v48 = vrot.slane %v6648_v61, 3  ;;  %v16917_v8 = vshll.u32 %v14666_v1, 16  ;;  %v7548_v43 = vrot.slane %v7546_v58, 1  ;;  %v7551_v61 = vrot.slane %v7549_v9, 2 }
 0x25d   : > { %v5107_v37 = vadd.f32 %v11757_v16, %v14720_v41  ;;  %11951 = vmatprep.mubr.msk.bf16.mxu1 %vm763_vm2, %v6915_v25  ;;  %v14932_v35 = vadd.f32 %v11784_v19, %v5104_v2  ;;  %v7201_v41 = vsel %vm1289_vm4, %v7196_v39, %v7200_v40  ;;  %v6917_v25 = vsel %vm727_vm1, %v6914_v27, %v6916_v12 }
 0x25e   : > { %v5006_v23 = vpop.f32.mrf.mxu1  ;;  %v5435_v26 = vpop.f32.mrf.mxu0  ;;  %v7207_v17 = vrot.slane %v16917_v8, 4  ;;  %v7204_v3 = vor.u32 %v7203_v33, %v7202_v42  ;;  %v7211_v16 = vshrl.u32 %v12326_v44, 16  ;;  %v7214_v39 = vshll.u32 %v12326_v44, 16 }
 0x25f   : > { %v5105_v20 = vadd.f32 %v5006_v23, %v14726_v63  ;;  %v14943_v2 = vadd.f32 %v5435_v26, %v5102_v0  ;;  %v6919_v0 = vsel %vm727_vm1, %v6916_v12, %v6918_v49  ;;  %v7556_v27 = vrot.slane %v16681_v51, 1 }
 0x260   : > { %v11758_v15 = vpop.f32.mrf.mxu1  ;;  %v11787_v28 = vpop.f32.mrf.mxu0  ;;  %11978 = vmatmul.mubr.msk.bf16.gmra.mxu0 %vm763_vm2, %v7197_v5  ;;  %v7559_v42 = vrot.slane %v16672_v38, 2  ;;  %v6920_v5 = vrot.slane %v14701_v55, 3  ;;  %v7208_v58 = vor.u32 %v7207_v17, %v7206_v48  ;;  %v7205_v12 = vsel %vm1289_vm4, %v7200_v40, %v7204_v3 }
 0x261   : > { %v5108_v63 = vadd.f32 %v11758_v15, %v14732_v6  ;;  %v14950_v1 = vadd.f32 %v11787_v28, %v5107_v37  ;;  %11981 = vmatprep.mubr.msk.bf16.mxu0 %vm763_vm2, %v7201_v41  ;;  %v14958_v6 = vld [vmem:[#allocation2 + $0x98] sm:$0xff]   ;;  %v16680_v23 = vshrl.u32 %v14946_v18, 16  ;;  %v16675_v26 = vshll.u32 %v14946_v18, 16  ;;  %v7900_v41 = vld [vmem:[#allocation2 + $0x80] sm:$0xc] }
 0x262   : > { %v5009_v19 = vpop.f32.mrf.mxu1  ;;  %v5448_v44 = vpop.f32.mrf.mxu0  ;;  %v7216_v55 = vrot.slane %v7214_v39, 4  ;;  %v7552_v48 = vor.u32 %v7551_v61, %v7548_v43  ;;  %v16673_v40 = vshll.u32 %v14958_v6, 16  ;;  %v7209_v38 = vsel %vm1289_vm4, %v7204_v3, %v7208_v58 }
 0x263   : > { %v5106_v33 = vadd.f32 %v5009_v19, %v14740_v57  ;;  %v14963_v9 = vadd.f32 %v5448_v44, %v5105_v20  ;;  %v7213_v57 = vrot.slane %v7211_v16, 3  ;;  %v7560_v20 = vor.u32 %v7559_v42, %v7556_v27  ;;  %v14990_v27 = vld [vmem:[#allocation2 + $0xa8] sm:$0xff]  }
 0x264   : > { %v11761_v37 = vpop.f32.mrf.mxu1  ;;  %11952 = vmatmul.mubr.msk.bf16.gmra.mxu1 %vm763_vm2, %v6917_v25  ;;  %v11788_v15 = vpop.f32.mrf.mxu0  ;;  %v16674_v25 = vshrl.u32 %v14958_v6, 16  ;;  %v7568_v43 = vrot.slane %v16675_v26, 2  ;;  %v6921_v3 = vsel %vm727_vm1, %v6918_v49, %v6920_v5  ;;  %v7908_v5 = vrot.slane %v14918_v47, 2 }
 0x265   : > { %v5111_v8 = vadd.f32 %v11761_v37, %v14745_v52  ;;  %11955 = vmatprep.mubr.msk.bf16.mxu1 %vm763_vm2, %v6919_v0  ;;  %v14970_v28 = vadd.f32 %v11788_v15, %v5108_v63  ;;  %v14977_v52 = vcombine.low %v7900_v41, %v14899_v59  ;;  %v14979_v0 = vld [vmem:[#allocation2 + $0xa0] sm:$0xff]   ;;  %v7565_v63 = vrot.slane %v16680_v23, 1 }
 0x266   : > { %v5022_v17 = vpop.f32.mrf.mxu1  ;;  %v5451_v44 = vpop.f32.mrf.mxu0  ;;  %v7217_v59 = vor.u32 %v7216_v55, %v7213_v57  ;;  %v7574_v41 = vrot.slane %v16674_v25, 1 }
 0x267   : > { %v5109_v19 = vadd.f32 %v5022_v17, %v14751_v11  ;;  %v14981_v39 = vadd.f32 %v5451_v44, %v5106_v33  ;;  %v7561_v33 = vsel %vm1685_vm5, %v7552_v48, %v7560_v20  ;;  %v7907_v49 = vrot.slane %v14977_v52, 2  ;;  %v15008_v17 = vld [vmem:[#allocation2 + $0xb0] sm:$0xff]  }
 0x268   : > { %v11762_v16 = vpop.f32.mrf.mxu1  ;;  %v11791_v11 = vpop.f32.mrf.mxu0  ;;  %11982 = vmatmul.mubr.msk.bf16.gmra.mxu0 %vm763_vm2, %v7205_v12  ;;  %v7569_v55 = vor.u32 %v7568_v43, %v7565_v63  ;;  %v16678_v48 = vshll.u32 %v14979_v0, 16 }
 0x269   : > { %v5112_v61 = vadd.f32 %v11762_v16, %v14760_v4  ;;  %v14992_v37 = vadd.f32 %v11791_v11, %v5111_v8  ;;  %11985 = vmatprep.mubr.msk.bf16.mxu0 %vm763_vm2, %v7209_v38  ;;  %v7577_v4 = vrot.slane %v16673_v40, 2  ;;  %v16679_v8 = vshrl.u32 %v14979_v0, 16 }
 0x26a   : > { %v5025_v42 = vpop.f32.mrf.mxu1  ;;  %v5464_v15 = vpop.f32.mrf.mxu0  ;;  %v16677_v16 = vshrl.u32 %v14990_v27, 16  ;;  %v16676_v11 = vshll.u32 %v14990_v27, 16  ;;  %v7570_v26 = vsel %vm1685_vm5, %v7560_v20, %v7569_v55 }
 0x26b   : > { %v5110_v12 = vadd.f32 %v5025_v42, %v14770_v34  ;;  %v15005_v38 = vadd.f32 %v5464_v15, %v5109_v19  ;;  %v7218_v19 = vsel %vm1289_vm4, %v7208_v58, %v7217_v59  ;;  %v7909_v15 = vsel %vm2048_vm6, %v7907_v49, %v7908_v5 }
 0x26c   : > { %v11765_v57 = vpop.f32.mrf.mxu1  ;;  %11956 = vmatmul.mubr.msk.bf16.gmra.mxu1 %vm763_vm2, %v6921_v3  ;;  %v11792_v34 = vpop.f32.mrf.mxu0  ;;  %v7578_v3 = vor.u32 %v7577_v4, %v7574_v41  ;;  %v16684_v58 = vshrl.u32 %v15008_v17, 16  ;;  %v7592_v41 = vrot.slane %v16677_v16, 1  ;;  %v7595_v4 = vrot.slane %v16676_v11, 2 }
 0x26d   : > { %v5115_v44 = vadd.f32 %v11765_v57, %v14775_v32  ;;  %11991 = vmatprep.mubr.msk.bf16.mxu1 %vm763_vm2, %v7561_v33  ;;  %v15014_v40 = vadd.f32 %v11792_v34, %v5112_v61  ;;  %v7583_v32 = vrot.slane %v16679_v8, 1  ;;  %v15021_v57 = vld [vmem:[#allocation2 + $0xb8] sm:$0xff]   ;;  %v7586_v61 = vrot.slane %v16678_v48, 2 }
 0x26e   : > { %v5038_v42 = vpop.f32.mrf.mxu1  ;;  %v5467_v43 = vpop.f32.mrf.mxu0  ;;  %v7579_v34 = vsel %vm1685_vm5, %v7569_v55, %v7578_v3  ;;  %v7596_v23 = vor.u32 %v7595_v4, %v7592_v41  ;;  %v15081_v41 = vld [vmem:[%s16584_s0 + $0xd0] sm:$0xff]  }
 0x26f   : > { %v5113_v63 = vadd.f32 %v5038_v42, %v14786_v53  ;;  %v15023_v25 = vadd.f32 %v5467_v43, %v5110_v12  ;;  %v16683_v12 = vshll.u32 %v15008_v17, 16  ;;  %v16685_v42 = vrot.slane %v14958_v6, 2  ;;  %v15047_v43 = vld [vmem:[%s16584_s0 + $0xc8] sm:$0xff]   ;;  %16920 = vst [vmem:[#allocation33_spill] sm:$0xff] %v15081_v41 }
 0x270   : > { %v11766_v33 = vpop.f32.mrf.mxu1  ;;  %v11795_v59 = vpop.f32.mrf.mxu0  ;;  %11986 = vmatmul.mubr.msk.bf16.gmra.mxu0 %vm763_vm2, %v7218_v19  ;;  %v15042_v19 = vld [vmem:[#allocation2 + $0xc0] sm:$0xff]   ;;  %16918 = vst [vmem:[#allocation31_spill] sm:$0xff] %v15047_v43  ;;  %v7587_v16 = vor.u32 %v7586_v61, %v7583_v32 }
 0x271   : > { %v5116_v53 = vadd.f32 %v11766_v33, %v14793_v29  ;;  %v15036_v20 = vadd.f32 %v11795_v59, %v5115_v44  ;;  %12021 = vmatprep.mubr.msk.bf16.mxu0 %vm763_vm2, %v7909_v15  ;;  %v7910_v29 = vrot.slane %v14946_v18, 2  ;;  %v16682_v44 = vshrl.u32 %v15021_v57, 16 }
 0x272   : > { %v5041_v49 = vpop.f32.mrf.mxu1  ;;  %v5480_v11 = vpop.f32.mrf.mxu0 }
 0x273   : > { %v5114_v33 = vadd.f32 %v5041_v49, %v14812_v22  ;;  %v15053_v55 = vadd.f32 %v5480_v11, %v5113_v63  ;;  %v7601_v22 = vrot.slane %v16684_v58, 1  ;;  %v7604_v49 = vrot.slane %v16683_v12, 2  ;;  %v15069_v11 = vld [vmem:[#allocation2 + $0xc8] sm:$0xff]  }
 0x274   : > { %v11769_v59 = vpop.f32.mrf.mxu1  ;;  %11992 = vmatmul.mubr.msk.bf16.vlgmr.msra.gmra.mxu1 %vm763_vm2, %v7570_v26  ;;  %v11796_v8 = vpop.f32.mrf.mxu0  ;;  %v7911_v26 = vsel %vm2048_vm6, %v7908_v5, %v7910_v29  ;;  %v7610_v61 = vrot.slane %v16682_v44, 1  ;;  %v16686_v5 = vshll.u32 %v15042_v19, 16  ;;  %v7914_v44 = vrot.slane %v14979_v0, 2 }
 0x275   : > { %v5119_v48 = vadd.f32 %v11769_v59, %v14817_v50  ;;  %12050 = vmatpush3.bf16.msra.mxu1 %v14782_v10  ;;  %11995 = vmatprep.mubr.msk.bf16.mxu1 %vm763_vm2, %v7579_v34  ;;  %v15062_v15 = vadd.f32 %v11796_v8, %v5116_v53  ;;  %v7913_v50 = vsel %vm2048_vm6, %v7910_v29, %v16685_v42  ;;  %v16687_v10 = vshrl.u32 %v15042_v19, 16 }
 0x276   : > { %v5054_v51 = vpop.f32.mrf.mxu1  ;;  %12109 = vmatprep.subr.bf16.mxu1 %v15047_v43  ;;  %v5483_v32 = vpop.f32.mrf.mxu0  ;;  %v16919_v8 = vshll.u32 %v15021_v57, 16  ;;  %v7588_v29 = vsel %vm1685_vm5, %v7578_v3, %v7587_v16  ;;  %v7605_v12 = vor.u32 %v7604_v49, %v7601_v22 }
 0x277   : > { %v5117_v63 = vadd.f32 %v5054_v51, %v14825_v31  ;;  %v15083_v34 = vadd.f32 %v5483_v32, %v5114_v33  ;;  %v15086_v31 = vld [vmem:[#allocation2 + $0xd0] sm:$0xff]   ;;  %v7619_v3 = vrot.slane %v16687_v10, 1  ;;  %v16690_v33 = vshll.u32 %v15069_v11, 16 }
 0x278   : > { %v7613_v53 = vrot.slane %v16919_v8, 2  ;;  %v11770_v4 = vpop.f32.mrf.mxu1  ;;  %16921 = vst [vmem:[#allocation36_spill] sm:$0xff] %v15086_v31  ;;  %v11799_v59 = vpop.f32.mrf.mxu0  ;;  %12022 = vmatmul.mubr.msk.bf16.vlgmr.msra.gmra.mxu0 %vm763_vm2, %v7911_v26  ;;  %v7597_v8 = vsel %vm1685_vm5, %v7587_v16, %v7596_v23  ;;  %v7916_v32 = vrot.slane %v14990_v27, 2 }
 0x279   : > { %v5120_v51 = vadd.f32 %v11770_v4, %v14834_v13  ;;  %v15092_v42 = vadd.f32 %v11799_v59, %v5119_v48  ;;  %12080 = vmatpush3.bf16.msra.mxu0 %v14810_v56  ;;  %12025 = vmatprep.mubr.msk.bf16.mxu0 %vm763_vm2, %v7913_v50  ;;  %v16689_v13 = vshrl.u32 %v15069_v11, 16  ;;  %v7622_v48 = vrot.slane %v16686_v5, 2  ;;  %v15116_v5 = vld [vmem:[#allocation2 + $0xd8] sm:$0xff]  }
 0x27a   : > { %v5057_v58 = vpop.f32.mrf.mxu1  ;;  %v5496_v16 = vpop.f32.mrf.mxu0  ;;  %v7614_v22 = vor.u32 %v7613_v53, %v7610_v61  ;;  %12139 = vmatprep.subr.bf16.mxu0 %v15081_v41  ;;  %v16923_v61 = vrot.slane %v14958_v6, 2  ;;  %v7918_v59 = vrot.slane %v15008_v17, 2  ;;  %v7917_v4 = vsel %vm2048_vm6, %v7914_v44, %v7916_v32 }
 0x27b   : > { %v5118_v26 = vadd.f32 %v5057_v58, %v14844_v21  ;;  %v15106_v49 = vadd.f32 %v5496_v16, %v5117_v63  ;;  %v7606_v16 = vsel %vm1685_vm5, %v7596_v23, %v7605_v12  ;;  %v7628_v10 = vrot.slane %v16689_v13, 1 }
 0x27c   : > { %v11773_v56 = vpop.f32.mrf.mxu1  ;;  %11996 = vmatmul.mubr.msk.bf16.gmra.mxu1 %vm763_vm2, %v7588_v29  ;;  %v11800_v58 = vpop.f32.mrf.mxu0  ;;  %v7915_v53 = vsel %vm2048_vm6, %v16923_v61, %v7914_v44  ;;  %v7615_v50 = vsel %vm1685_vm5, %v7605_v12, %v7614_v22  ;;  %v7623_v41 = vor.u32 %v7622_v48, %v7619_v3  ;;  %v7920_v23 = vrot.slane %v15021_v57, 2 }
 0x27d   : > { %16922 = vst [vmem:[#allocation23_spill] sm:$0xff] %v15106_v49  ;;  %v5123_v21 = vadd.f32 %v11773_v56, %v14849_v24  ;;  %11999 = vmatprep.mubr.msk.bf16.mxu1 %vm763_vm2, %v7597_v8  ;;  %v15118_v63 = vadd.f32 %v11800_v58, %v5120_v51  ;;  %v7631_v24 = vrot.slane %v16690_v33, 2  ;;  %v15125_v8 = vld [vmem:[#allocation2 + $0xe0] sm:$0xff]   ;;  %v16925_v13 = vshrl.u32 %v15086_v31, 16 }
 0x27e   : > { %v5070_v29 = vpop.f32.mrf.mxu1  ;;  %v5499_v61 = vpop.f32.mrf.mxu0  ;;  %v16926_v33 = vshll.u32 %v15086_v31, 16  ;;  %v7919_v44 = vsel %vm2048_vm6, %v7916_v32, %v7918_v59  ;;  %v16694_v12 = vshrl.u32 %v15116_v5, 16  ;;  %v16692_v3 = vshll.u32 %v15116_v5, 16 }
 0x27f   : > { %16924 = vst [vmem:[#allocation25_spill] sm:$0xff] %v15118_v63  ;;  %v5121_v56 = vadd.f32 %v5070_v29, %v14855_v54  ;;  %v15130_v58 = vadd.f32 %v5499_v61, %v5118_v26  ;;  %v7637_v63 = vrot.slane %v16925_v13, 1  ;;  %v7632_v13 = vor.u32 %v7631_v24, %v7628_v10 }
 0x280   : > { %v11774_v51 = vpop.f32.mrf.mxu1  ;;  %v7640_v49 = vrot.slane %v16926_v33, 2  ;;  %v11803_v54 = vpop.f32.mrf.mxu0  ;;  %12026 = vmatmul.mubr.msk.bf16.gmra.mxu0 %vm763_vm2, %v7915_v53  ;;  %v16695_v29 = vrot.slane %v15042_v19, 2  ;;  %v16693_v33 = vshrl.u32 %v15125_v8, 16  ;;  %v7624_v53 = vsel %vm1685_vm5, %v7614_v22, %v7623_v41 }
 0x281   : > { %v5124_v43 = vadd.f32 %v11774_v51, %v14861_v14  ;;  %v15142_v48 = vadd.f32 %v11803_v54, %v5123_v21  ;;  %12029 = vmatprep.mubr.msk.bf16.mxu0 %vm763_vm2, %v7917_v4  ;;  %v15150_v51 = vld [vmem:[#allocation2 + $0xe8] sm:$0xff]   ;;  %v10862_v21 = vld [vmem:[%s16586_s2 + $0xe0] sm:$0xff]  ;;  %v7921_v4 = vsel %vm2048_vm6, %v7918_v59, %v7920_v23  ;;  %v7646_v32 = vrot.slane %v16694_v12, 1 }
 0x282   : > { %v5073_v26 = vpop.f32.mrf.mxu1  ;;  %v5512_v61 = vpop.f32.mrf.mxu0  ;;  %v7641_v24 = vor.u32 %v7640_v49, %v7637_v63  ;;  %vm9569_vm9 = vcmp.gt.f32.partialorder %v10862_v21, 0.5  ;;  %v7633_v63 = vsel %vm1685_vm5, %v7623_v41, %v7632_v13 }
 0x283   : > { %v5122_v14 = vadd.f32 %v5073_v26, %v14874_v36  ;;  %v15156_v10 = vadd.f32 %v5512_v61, %v5121_v56  ;;  %v16696_v36 = vmov 0   ;;  %v15178_v61 = vld [vmem:[#allocation2 + $0xf0] ss:$0 sps:$4 sm:$0x33]  }
 0x284   : > { %v11777_v54 = vpop.f32.mrf.mxu1  ;;  %12000 = vmatmul.mubr.msk.bf16.gmra.mxu1 %vm763_vm2, %v7606_v16  ;;  %12200 = vset.pattern.permute.xlu0 %v16696_v36  ;;  %v11804_v26 = vpop.f32.mrf.mxu0  ;;  %v7649_v16 = vrot.slane %v16692_v3, 2  ;;  %v9597_v56 = vsel %vm9569_vm9, 1, %v16696_v36  ;;  %v16929_v3 = vshll.u32 %v15125_v8, 16 }
 0x285   : > { %16927 = vst [vmem:[#allocation39_spill] sm:$0xff] %v15156_v10  ;;  %v5127_v22 = vadd.f32 %v11777_v54, %v14879_v30  ;;  %12003 = vmatprep.mubr.msk.bf16.mxu1 %vm763_vm2, %v7615_v50  ;;  %12201 = vset.pattern.permute.xlu1 %v16696_v36  ;;  %v15168_v59 = vadd.f32 %v11804_v26, %v5124_v43  ;;  %v7655_v50 = vrot.slane %v16693_v33, 1  ;;  %v10863_v33 = vld [vmem:[%s16586_s2 + $0xe8] sm:$0xff] }
 0x286   : > { %v5086_v49 = vpop.f32.mrf.mxu1  ;;  %v15174_v30 = vsel %vm2048_vm6, %v7920_v23, %v16695_v29  ;;  %9626 = vperm.xlu0 %12200, %v9597_v56   ;;  %v5515_v54 = vpop.f32.mrf.mxu0  ;;  %v7658_v43 = vrot.slane %v16929_v3, 2  ;;  %v10864_v23 = vld [vmem:[%s16586_s2 + $0xf0] sm:$0xff]  ;;  %vm9570_vm11 = vcmp.gt.f32.partialorder %v10863_v33, 0.5  ;;  %v7650_v29 = vor.u32 %v7649_v16, %v7646_v32 }
 0x287   : > { %16928 = vst [vmem:[#allocation30_spill] sm:$0xff] %v15168_v59  ;;  %v5125_v21 = vadd.f32 %v5086_v49, %v14885_v60  ;;  %v15191_v56 = vadd.f32 %v5515_v54, %v5122_v14  ;;  %v7924_v60 = vrot.slane %v15069_v11, 2  ;;  %vm9571_vm10 = vcmp.gt.f32.partialorder %v10864_v23, 0.5 }
 0x288   : > { %v11778_v12 = vpop.f32.mrf.mxu1  ;;  %v11807_v49 = vpop.f32.mrf.mxu0  ;;  %12030 = vmatmul.mubr.msk.bf16.gmra.mxu0 %vm763_vm2, %v7919_v44  ;;  %v9599_v41 = vsel %vm9571_vm10, 1, %v16696_v36  ;;  %v9598_v26 = vsel %vm9570_vm11, 1, %v16696_v36  ;;  %v15202_v14 = vsel %vm1685_vm5, %v7632_v13, %v7641_v24  ;;  %v7671_v33 = vshrl.u32 %v15178_v61, 16  ;;  %v10865_v13 = vld [vmem:[%s16586_s2 + $0xf8] sm:$0xff] }
 0x289   : > { %v5128_v3 = vadd.f32 %v11778_v12, %v14895_v7  ;;  %v15198_v10 = vadd.f32 %v11807_v49, %v5127_v22  ;;  %12033 = vmatprep.mubr.msk.bf16.mxu0 %vm763_vm2, %v7921_v4  ;;  %v7674_v7 = vshll.u32 %v15178_v61, 16  ;;  %9632 = vperm.xlu1 %12201, %v9599_v41   ;;  %v7926_v32 = vrot.slane %v15086_v31, 2  ;;  %v10866_v4 = vld [vmem:[%s16586_s2 + $0x100] sm:$0xff] }
 0x28a   : > { %v5089_v59 = vpop.f32.mrf.mxu1  ;;  %v5528_v12 = vpop.f32.mrf.mxu0  ;;  %v16931_v16 = vshrl.u32 %v15150_v51, 16  ;;  %v16932_v22 = vshll.u32 %v15150_v51, 16  ;;  %9629 = vperm.xlu0 %12200, %v9598_v26   ;;  %v7659_v26 = vor.u32 %v7658_v43, %v7655_v50  ;;  %vm9572_vm12 = vcmp.gt.f32.partialorder %v10865_v13, 0.5 }
 0x28b   : > { %16930 = vst [vmem:[#allocation9_spill] sm:$0xff] %v15198_v10  ;;  %v5126_v44 = vadd.f32 %v5089_v59, %v14908_v62  ;;  %v15219_v62 = vadd.f32 %v5528_v12, %v5125_v21  ;;  %v16934_v59 = vrot.slane %v15042_v19, 2  ;;  %v7651_v36 = vsel %vm1685_vm5, %v7641_v24, %v7650_v29 }
 0x28c   : > { %v7664_v54 = vrot.slane %v16931_v16, 1  ;;  %v7667_v23 = vrot.slane %v16932_v22, 2  ;;  %v11813_v41 = vpop.f32.mrf.mxu1  ;;  %12004 = vmatmul.mubr.msk.bf16.gmra.mxu1 %vm763_vm2, %v7624_v53  ;;  %v11808_v22 = vpop.f32.mrf.mxu0  ;;  %v16935_v31 = vmov 0   ;;  %vm9573_vm13 = vcmp.gt.f32.partialorder %v10866_v4, 0.5 }
 0x28d   : > { %16933 = vst [vmem:[#allocation5_spill] sm:$0xff] %v15219_v62  ;;  %v7925_v49 = vsel %vm2048_vm6, %v16934_v59, %v7924_v60  ;;  %v5846_v16 = vadd.f32 %v11813_v41, %v14914_v46  ;;  %12007 = vmatprep.mubr.msk.bf16.mxu1 %vm763_vm2, %v7633_v63  ;;  %v9600_v10 = vsel %vm9572_vm12, 1, %v16935_v31  ;;  %v15230_v21 = vadd.f32 %v11808_v22, %v5128_v3  ;;  %v10867_v3 = vld [vmem:[%s16586_s2 + $0x108] sm:$0xff] }
 0x28e   : > { %v5733_v53 = vpop.f32.mrf.mxu1  ;;  %v15232_v12 = vrot.slane %v7671_v33, 1  ;;  %v15234_v62 = vrot.slane %v7674_v7, 2  ;;  %9635 = vperm.xlu1 %12201, %v9600_v10   ;;  %v9601_v50 = vsel %vm9573_vm13, 1, %v16935_v31  ;;  %v5531_v43 = vpop.f32.mrf.mxu0  ;;  %v7928_v63 = vrot.slane %v15116_v5, 2  ;;  %v10868_v10 = vld [vmem:[%s16586_s2 + $0x110] sm:$0xff] }
 0x28f   : > { %v5844_v46 = vadd.f32 %v5733_v53, %v14922_v45  ;;  %v15239_v13 = vor.u32 %v7667_v23, %v7664_v54  ;;  %v7930_v24 = vrot.slane %v15125_v8, 2  ;;  %9638 = vperm.xlu0 %12200, %v9601_v50   ;;  %v15248_v7 = vadd.f32 %v5531_v43, %v5126_v44  ;;  %v8454_v50 = vld [vmem:[#allocation2 + $0x84] sm:$0xf] }
 0x290   : > { %v11814_v33 = vpop.f32.mrf.mxu1  ;;  %v8165_v45 = vshrl.u32 %v14977_v52, 16  ;;  %vm9574_vm14 = vcmp.gt.f32.partialorder %v10867_v3, 0.5  ;;  %vm9575_vm15 = vcmp.gt.f32.partialorder %v10868_v10, 0.5  ;;  %v11843_v23 = vpop.f32.mrf.mxu0  ;;  %12034 = vmatmul.mubr.msk.bf16.gmra.mxu0 %vm763_vm2, %v15174_v30  ;;  %v8168_v4 = vshll.u32 %v14977_v52, 16  ;;  %v15274_v3 = vld [vmem:[#allocation2 + $0x88] sm:$0xf] }
 0x291   : > { %v5847_v54 = vadd.f32 %v11814_v33, %v14932_v35  ;;  %v9602_v41 = vsel %vm9574_vm14, 1, %v16935_v31  ;;  %v9603_v59 = vsel %vm9575_vm15, 1, %v16935_v31  ;;  %v15257_v53 = vadd.f32 %v11843_v23, %v5846_v16  ;;  %12037 = vmatprep.mubr.msk.bf16.mxu0 %vm763_vm2, %v7925_v49 }
 0x292   : > { %v5736_v22 = vpop.f32.mrf.mxu1  ;;  %v7927_v44 = vsel %vm2048_vm6, %v7924_v60, %v7926_v32  ;;  %v15264_v35 = vsel %vm1685_vm5, %v7650_v29, %v7659_v26  ;;  %9641 = vperm.xlu1 %12201, %v9602_v41   ;;  %v5990_v30 = vpop.f32.mrf.mxu0  ;;  %v7929_v43 = vsel %vm2048_vm6, %v7926_v32, %v7928_v63  ;;  %v15270_v16 = vsel %vm1685_vm5, %v7659_v26, %v15239_v13  ;;  %v10869_v29 = vld [vmem:[%s16586_s2 + $0x118] sm:$0xff] }
 0x293   : > { %v5845_v52 = vadd.f32 %v5736_v22, %v14943_v2  ;;  %v7677_v49 = vor.u32 %v15234_v62, %v15232_v12  ;;  %9644 = vperm.xlu0 %12200, %v9603_v59   ;;  %v10870_v2 = vld [vmem:[%s16586_s2 + $0x120] sm:$0xff]  ;;  %v15284_v32 = vadd.f32 %v5990_v30, %v5844_v46  ;;  %v15289_v62 = vsel %vm2048_vm6, %v7928_v63, %v7930_v24 }
 0x294   : > { %v11817_v60 = vpop.f32.mrf.mxu1  ;;  %12008 = vmatmul.mubr.msk.bf16.gmra.mxu1 %vm763_vm2, %v15202_v14  ;;  %v15291_v26 = vrot.slane %v8165_v45, 2  ;;  %vm9576_vm1 = vcmp.gt.f32.partialorder %v10869_v29, 0.5  ;;  %v11844_v10 = vpop.f32.mrf.mxu0  ;;  %v15295_v33 = vrot.slane %v8168_v4, 3  ;;  %vm9577_vm4 = vcmp.gt.f32.partialorder %v10870_v2, 0.5 }
 0x295   : > { %v5850_v12 = vadd.f32 %v11817_v60, %v14950_v1  ;;  %12011 = vmatprep.mubr.msk.bf16.mxu1 %vm763_vm2, %v7651_v36  ;;  %v9604_v23 = vsel %vm9576_vm1, 1, %v16935_v31  ;;  %v15298_v46 = vadd.f32 %v11844_v10, %v5847_v54  ;;  %v16936_v41 = vshrl.u32 %v14918_v47, 16  ;;  %v15313_v60 = vld [vmem:[#allocation2 + $0x8c] sm:$0xff]  }
 0x296   : > { %v5749_v14 = vpop.f32.mrf.mxu1  ;;  %v15303_v45 = vcombine.low %v8454_v50, %v15274_v3  ;;  %9647 = vperm.xlu1 %12201, %v9604_v23   ;;  %v9605_v1 = vsel %vm9577_vm4, 1, %v16935_v31  ;;  %v5993_v36 = vpop.f32.mrf.mxu0  ;;  %v16937_v4 = vshll.u32 %v14918_v47, 16  ;;  %v16938_v30 = vshrl.u32 %v14946_v18, 16  ;;  %v10871_v50 = vld [vmem:[%s16586_s2 + $0x128] sm:$0xff] }
 0x297   : > { %v8172_v63 = vrot.slane %v16936_v41, 2  ;;  %v5848_v59 = vadd.f32 %v5749_v14, %v14963_v9  ;;  %v16939_v54 = vshll.u32 %v14946_v18, 16  ;;  %9650 = vperm.xlu0 %12200, %v9605_v1   ;;  %v10872_v9 = vld [vmem:[%s16586_s2 + $0x130] sm:$0xff]  ;;  %v15321_v47 = vadd.f32 %v5993_v36, %v5845_v52 }
 0x298   : > { %v8173_v22 = vrot.slane %v16937_v4, 3  ;;  %v8176_v29 = vrot.slane %v16938_v30, 2  ;;  %v11818_v10 = vpop.f32.mrf.mxu1  ;;  %v7932_v23 = vrot.slane %v15150_v51, 2  ;;  %vm9578_vm9 = vcmp.gt.f32.partialorder %v10871_v50, 0.5  ;;  %v11847_v14 = vpop.f32.mrf.mxu0  ;;  %12038 = vmatmul.mubr.msk.bf16.gmra.mxu0 %vm763_vm2, %v7927_v44 }
 0x299   : > { %v8177_v2 = vrot.slane %v16939_v54, 3  ;;  %vm9579_vm10 = vcmp.gt.f32.partialorder %v10872_v9, 0.5  ;;  %v5851_v18 = vadd.f32 %v11818_v10, %v14970_v28  ;;  %v15328_v41 = vsel %vm1685_vm5, %v15239_v13, %v7677_v49  ;;  %12041 = vmatprep.mubr.msk.bf16.mxu0 %vm763_vm2, %v7929_v43  ;;  %v10873_v43 = vld [vmem:[%s16586_s2 + $0x138] sm:$0xff] }
 0x29a   : > { %v9606_v1 = vsel %vm9578_vm9, 1, %v16935_v31  ;;  %v9607_v4 = vsel %vm9579_vm10, 1, %v16935_v31  ;;  %v5752_v30 = vpop.f32.mrf.mxu1  ;;  %v15332_v52 = vadd.f32 %v11847_v14, %v5850_v12  ;;  %v7934_v36 = vrot.slane %v15178_v61, 2  ;;  %v6006_v49 = vpop.f32.mrf.mxu0  ;;  %v10874_v61 = vld [vmem:[%s16586_s2 + $0x140] sm:$0xff] }
 0x29b   : > { %v8171_v28 = vor.u32 %v15295_v33, %v15291_v26  ;;  %v8562_v44 = vshll.u32 %v15303_v45, 16  ;;  %9653 = vperm.xlu1 %12201, %v9606_v1   ;;  %v5849_v13 = vadd.f32 %v5752_v30, %v14981_v39  ;;  %v8174_v54 = vor.u32 %v8173_v22, %v8172_v63  ;;  %9656 = vperm.xlu0 %12200, %v9607_v4  }
 0x29c   : > { %v15340_v50 = vor.u32 %v8177_v2, %v8176_v29  ;;  %v16708_v9 = vshll.u32 %v15313_v60, 16  ;;  %v11821_v26 = vpop.f32.mrf.mxu1  ;;  %12012 = vmatmul.mubr.msk.bf16.gmra.mxu1 %vm763_vm2, %v15264_v35  ;;  %v15351_v39 = vadd.f32 %v6006_v49, %v5848_v59  ;;  %v7933_v12 = vsel %vm2048_vm6, %v7930_v24, %v7932_v23  ;;  %v11848_v63 = vpop.f32.mrf.mxu0  ;;  %v15360_v29 = vld [vmem:[#allocation2 + $0x94] sm:$0xff]  }
 0x29d   : > { %vm9580_vm11 = vcmp.gt.f32.partialorder %v10873_v43, 0.5  ;;  %vm9581_vm12 = vcmp.gt.f32.partialorder %v10874_v61, 0.5  ;;  %v5854_v33 = vadd.f32 %v11821_v26, %v14992_v37  ;;  %12015 = vmatprep.mubr.msk.bf16.mxu1 %vm763_vm2, %v15270_v16  ;;  %v8560_v22 = vshrl.u32 %v15303_v45, 16 }
 0x29e   : > { %v9608_v35 = vsel %vm9580_vm11, 1, %v16935_v31  ;;  %v9609_v59 = vsel %vm9581_vm12, 1, %v16935_v31  ;;  %v5765_v2 = vpop.f32.mrf.mxu1  ;;  %v15364_v10 = vadd.f32 %v11848_v63, %v5851_v18  ;;  %v8564_v24 = vrot.slane %v8562_v44, 1  ;;  %v6009_v45 = vpop.f32.mrf.mxu0  ;;  %v10875_v44 = vld [vmem:[%s16586_s2 + $0x148] sm:$0xff] }
 0x29f   : > { %v16940_v14 = vshrl.u32 %v14958_v6, 16  ;;  %v16941_v37 = vshll.u32 %v14958_v6, 16  ;;  %9659 = vperm.xlu1 %12201, %v9608_v35   ;;  %v5852_v16 = vadd.f32 %v5765_v2, %v15005_v38  ;;  %v15372_v30 = vsel %vm2048_vm6, %v7932_v23, %v7934_v36  ;;  %9662 = vperm.xlu0 %12200, %v9609_v59   ;;  %v10876_v6 = vld [vmem:[%s16586_s2 + $0x150] sm:$0xff] }
 0x2a0   : > { %v8569_v49 = vrot.slane %v16708_v9, 1  ;;  %v16712_v18 = vshrl.u32 %v15313_v60, 16  ;;  %v11822_v43 = vpop.f32.mrf.mxu1  ;;  %v15383_v38 = vadd.f32 %v6009_v45, %v5849_v13  ;;  %v8175_v23 = vsel %vm954_vm3, %v8171_v28, %v8174_v54  ;;  %v11851_v61 = vpop.f32.mrf.mxu0  ;;  %12042 = vmatmul.mubr.msk.bf16.gmra.mxu0 %vm763_vm2, %v15289_v62 }
 0x2a1   : > { %v8180_v1 = vrot.slane %v16940_v14, 2  ;;  %v8181_v4 = vrot.slane %v16941_v37, 3  ;;  %vm9582_vm6 = vcmp.gt.f32.partialorder %v10875_v44, 0.5  ;;  %vm9583_vm13 = vcmp.gt.f32.partialorder %v10876_v6, 0.5  ;;  %12045 = vmatprep.mubr.msk.bf16.mxu0 %vm763_vm2, %v7933_v12  ;;  %v15397_v14 = vld [vmem:[#allocation2 + $0x9c] sm:$0xff]  }
 0x2a2   : > { %v5855_v36 = vadd.f32 %v11822_v43, %v15014_v40  ;;  %v16703_v26 = vshll.u32 %v15360_v29, 16  ;;  %v9610_v63 = vsel %vm9582_vm6, 1, %v16935_v31  ;;  %v9611_v35 = vsel %vm9583_vm13, 1, %v16935_v31  ;;  %v5768_v59 = vpop.f32.mrf.mxu1  ;;  %v6022_v62 = vpop.f32.mrf.mxu0  ;;  %v10877_v12 = vld [vmem:[%s16586_s2 + $0x158] sm:$0xff] }
 0x2a3   : > { %v15392_v2 = vadd.f32 %v11851_v61, %v5854_v33  ;;  %v8565_v28 = vor.u32 %v8564_v24, %v8560_v22  ;;  %v15395_v13 = vor.u32 %v8181_v4, %v8180_v1  ;;  %9665 = vperm.xlu1 %12201, %v9610_v63   ;;  %v5853_v40 = vadd.f32 %v5768_v59, %v15023_v25  ;;  %v10878_v22 = vld [vmem:[%s16586_s2 + $0x160] sm:$0xff] }
 0x2a4   : > { %v8179_v37 = vsel %vm954_vm3, %v8174_v54, %v15340_v50  ;;  %v8573_v45 = vor.u32 %v16712_v18, %v8569_v49  ;;  %v16942_v33 = vshrl.u32 %v14979_v0, 16  ;;  %9668 = vperm.xlu0 %12200, %v9611_v35   ;;  %v11825_v25 = vpop.f32.mrf.mxu1  ;;  %12016 = vmatmul.mubr.msk.bf16.gmra.mxu1 %vm763_vm2, %v15328_v41  ;;  %v15414_v54 = vadd.f32 %v6022_v62, %v5852_v16  ;;  %v11852_v6 = vpop.f32.mrf.mxu0  ;;  %v15431_v59 = vld [vmem:[#allocation2 + $0xa4] sm:$0xff]  }
 0x2a5   : > { %v16943_v24 = vshll.u32 %v14979_v0, 16  ;;  %vm9584_vm14 = vcmp.gt.f32.partialorder %v10877_v12, 0.5  ;;  %vm9585_vm15 = vcmp.gt.f32.partialorder %v10878_v22, 0.5  ;;  %v5858_v4 = vadd.f32 %v11825_v25, %v15036_v20  ;;  %12051 = vmatprep.mubr.msk.bf16.mxu1 %vm763_vm2, %v8175_v23 }
 0x2a6   : > { %v8184_v44 = vrot.slane %v16942_v33, 2  ;;  %v8577_v43 = vrot.slane %v16703_v26, 1  ;;  %v9612_v61 = vsel %vm9584_vm14, 1, %v16935_v31  ;;  %v9613_v63 = vsel %vm9585_vm15, 1, %v16935_v31  ;;  %v5781_v41 = vpop.f32.mrf.mxu1  ;;  %v6025_v62 = vpop.f32.mrf.mxu0 }
 0x2a7   : > { %v8185_v1 = vrot.slane %v16943_v24, 3  ;;  %v15424_v16 = vadd.f32 %v11852_v6, %v5855_v36  ;;  %v8570_v0 = vsel %vm2701_vm7, %v8565_v28, %v8569_v49  ;;  %v8183_v35 = vsel %vm954_vm3, %v15340_v50, %v15395_v13  ;;  %9671 = vperm.xlu1 %12201, %v9612_v61   ;;  %v10879_v50 = vld [vmem:[%s16586_s2 + $0x168] sm:$0xff]  ;;  %v10880_v28 = vld [vmem:[%s16586_s2 + $0x170] sm:$0xff] }
 0x2a8   : > { %v16701_v20 = vshll.u32 %v15397_v14, 16  ;;  %v5856_v23 = vadd.f32 %v5781_v41, %v15053_v55  ;;  %v16706_v33 = vshrl.u32 %v15360_v29, 16  ;;  %v16944_v12 = vshrl.u32 %v14990_v27, 16  ;;  %9674 = vperm.xlu0 %12200, %v9613_v63   ;;  %v11826_v25 = vpop.f32.mrf.mxu1  ;;  %v11855_v61 = vpop.f32.mrf.mxu0  ;;  %12046 = vmatmul.mubr.msk.bf16.gmra.mxu0 %vm763_vm2, %v15372_v30 }
 0x2a9   : > { %v16945_v22 = vshll.u32 %v14990_v27, 16  ;;  %v15445_v55 = vadd.f32 %v6025_v62, %v5853_v40  ;;  %v8186_v24 = vor.u32 %v8185_v1, %v8184_v44  ;;  %vm9586_vm1 = vcmp.gt.f32.partialorder %v10879_v50, 0.5  ;;  %12081 = vmatprep.mubr.msk.bf16.mxu0 %vm763_vm2, %v8570_v0  ;;  %v15460_v1 = vld [vmem:[#allocation2 + $0xac] sm:$0xff]  }
 0x2aa   : > { %v8188_v36 = vrot.slane %v16944_v12, 2  ;;  %vm9587_vm4 = vcmp.gt.f32.partialorder %v10880_v28, 0.5  ;;  %v5859_v6 = vadd.f32 %v11826_v25, %v15062_v15  ;;  %v8578_v27 = vsel %vm2701_vm7, %v8573_v45, %v8577_v43  ;;  %v5784_v12 = vpop.f32.mrf.mxu1  ;;  %v6038_v45 = vpop.f32.mrf.mxu0  ;;  %v10881_v28 = vld [vmem:[%s16586_s2 + $0x178] sm:$0xff]  ;;  %v10882_v25 = vld [vmem:[%s16586_s2 + $0x180] sm:$0xff] }
 0x2ab   : > { %v8189_v49 = vrot.slane %v16945_v22, 3  ;;  %v9614_v63 = vsel %vm9586_vm1, 1, %v16935_v31  ;;  %v9615_v41 = vsel %vm9587_vm4, 1, %v16935_v31  ;;  %v15453_v22 = vadd.f32 %v11855_v61, %v5858_v4 }
 0x2ac   : > { %v8585_v40 = vrot.slane %v16701_v20, 1  ;;  %v16702_v15 = vshrl.u32 %v15397_v14, 16  ;;  %v16700_v44 = vshll.u32 %v15431_v59, 16  ;;  %9677 = vperm.xlu1 %12201, %v9614_v63   ;;  %v5857_v30 = vadd.f32 %v5784_v12, %v15083_v34  ;;  %9680 = vperm.xlu0 %12200, %v9615_v41   ;;  %v11829_v61 = vpop.f32.mrf.mxu1  ;;  %v11856_v63 = vpop.f32.mrf.mxu0  ;;  %v16948_v41 = vld [vmem:[#allocation31_spill] sm:$0xff] }
 0x2ad   : > { %v8581_v62 = vor.u32 %v16706_v33, %v8577_v43  ;;  %v15465_v4 = vor.u32 %v8189_v49, %v8188_v36  ;;  %v16946_v0 = vshrl.u32 %v15008_v17, 16  ;;  %12052 = vmatmul.mubr.msk.bf16.vlgmr.msra.gmra.mxu1 %vm763_vm2, %v8179_v37  ;;  %v15476_v34 = vadd.f32 %v6038_v45, %v5856_v23  ;;  %v15513_v20 = vld [vmem:[#allocation2 + $0xb4] sm:$0xff]  }
 0x2ae   : > { %v16947_v43 = vshll.u32 %v15008_v17, 16  ;;  %vm9588_vm9 = vcmp.gt.f32.partialorder %v10881_v28, 0.5  ;;  %vm9589_vm10 = vcmp.gt.f32.partialorder %v10882_v25, 0.5  ;;  %v5862_v49 = vadd.f32 %v11829_v61, %v15092_v42  ;;  %12110 = vmatpush3.bf16.msra.mxu1 %v16948_v41  ;;  %12055 = vmatprep.mubr.msk.bf16.mxu1 %vm763_vm2, %v8183_v35  ;;  %v5797_v23 = vpop.f32.mrf.mxu1  ;;  %v16949_v35 = vld [vmem:[#allocation23_spill] sm:$0xff]  ;;  %v6041_v61 = vpop.f32.mrf.mxu0 }
 0x2af   : > { %v8192_v50 = vrot.slane %v16946_v0, 2  ;;  %v8187_v12 = vsel %vm954_vm3, %v15395_v13, %v8186_v24  ;;  %v9616_v0 = vsel %vm9588_vm9, 1, %v16935_v31  ;;  %v9617_v37 = vsel %vm9589_vm10, 1, %v16935_v31  ;;  %v10884_v41 = vld [vmem:[%s16586_s2 + $0x190] sm:$0xff] }
 0x2b0   : > { %v8193_v36 = vrot.slane %v16947_v43, 3  ;;  %v15487_v45 = vadd.f32 %v11856_v63, %v5859_v6  ;;  %v8589_v17 = vor.u32 %v16702_v15, %v8585_v40  ;;  %v8593_v42 = vrot.slane %v16700_v44, 1  ;;  %9683 = vperm.xlu1 %12201, %v9616_v0   ;;  %9686 = vperm.xlu0 %12200, %v9617_v37   ;;  %v10883_v63 = vld [vmem:[%s16586_s2 + $0x188] sm:$0xff]  ;;  %v11830_v0 = vpop.f32.mrf.mxu1 }
 0x2b1   : > { %v16704_v28 = vshll.u32 %v15460_v1, 16  ;;  %v5860_v25 = vadd.f32 %v5797_v23, %v16949_v35  ;;  %v8586_v13 = vsel %vm2701_vm7, %v8581_v62, %v8585_v40  ;;  %v8191_v43 = vsel %vm954_vm3, %v8186_v24, %v15465_v4  ;;  %v16950_v40 = vld [vmem:[#allocation25_spill] sm:$0xff]  ;;  %v11859_v62 = vpop.f32.mrf.mxu0  ;;  %12082 = vmatmul.mubr.msk.bf16.vlgmr.msra.gmra.mxu0 %vm763_vm2, %v8578_v27 }
 0x2b2   : > { %v16705_v6 = vshrl.u32 %v15431_v59, 16  ;;  %v15505_v44 = vadd.f32 %v6041_v61, %v5857_v30  ;;  %v15507_v23 = vor.u32 %v8193_v36, %v8192_v50  ;;  %vm9590_vm11 = vcmp.gt.f32.partialorder %v10883_v63, 0.5  ;;  %v5800_v30 = vpop.f32.mrf.mxu1  ;;  %v16952_v50 = vld [vmem:[#allocation33_spill] sm:$0xff]  ;;  %12085 = vmatprep.mubr.msk.bf16.mxu0 %vm763_vm2, %v8586_v13  ;;  %v10885_v13 = vld [vmem:[%s16586_s2 + $0x198] sm:$0xff] }
 0x2b3   : > { %vm9591_vm12 = vcmp.gt.f32.partialorder %v10884_v41, 0.5  ;;  %v5863_v24 = vadd.f32 %v11830_v0, %v16950_v40  ;;  %v16951_v37 = vshrl.u32 %v15021_v57, 16  ;;  %v9618_v15 = vsel %vm9590_vm11, 1, %v16935_v31  ;;  %12140 = vmatpush3.bf16.msra.mxu0 %v16952_v50  ;;  %v6054_v40 = vpop.f32.mrf.mxu0 }
 0x2b4   : > { %v9619_v26 = vsel %vm9591_vm12, 1, %v16935_v31  ;;  %v15517_v61 = vadd.f32 %v11859_v62, %v5862_v49  ;;  %v8601_v36 = vrot.slane %v16704_v28, 1  ;;  %v16707_v27 = vshrl.u32 %v15460_v1, 16  ;;  %v15530_v62 = vld [vmem:[#allocation2 + $0xbc] sm:$0xff]   ;;  %9689 = vperm.xlu1 %12201, %v9618_v15   ;;  %v11833_v50 = vpop.f32.mrf.mxu1 }
 0x2b5   : > { %v8196_v35 = vrot.slane %v16951_v37, 2  ;;  %v16953_v63 = vshll.u32 %v15021_v57, 16  ;;  %v5861_v0 = vadd.f32 %v5800_v30, %v15130_v58  ;;  %v8594_v37 = vsel %vm2701_vm7, %v8589_v17, %v8593_v42  ;;  %9692 = vperm.xlu0 %12200, %v9619_v26   ;;  %v10886_v57 = vld [vmem:[%s16586_s2 + $0x1a0] sm:$0xff]  ;;  %12056 = vmatmul.mubr.msk.bf16.gmra.mxu1 %vm763_vm2, %v8187_v12  ;;  %v11860_v15 = vpop.f32.mrf.mxu0 }
 0x2b6   : > { %v8597_v49 = vor.u32 %v16705_v6, %v8593_v42  ;;  %v15539_v58 = vadd.f32 %v6054_v40, %v5860_v25  ;;  %v8195_v17 = vsel %vm954_vm3, %v15465_v4, %v15507_v23  ;;  %vm9592_vm6 = vcmp.gt.f32.partialorder %v10885_v13, 0.5  ;;  %12059 = vmatprep.mubr.msk.bf16.mxu1 %vm763_vm2, %v8191_v43  ;;  %v5813_v12 = vpop.f32.mrf.mxu1 }
 0x2b7   : > { %v8197_v41 = vrot.slane %v16953_v63, 3  ;;  %vm9593_vm13 = vcmp.gt.f32.partialorder %v10886_v57, 0.5  ;;  %v5866_v26 = vadd.f32 %v11833_v50, %v15142_v48  ;;  %v16709_v42 = vshll.u32 %v15513_v20, 16  ;;  %v16955_v57 = vld [vmem:[#allocation39_spill] sm:$0xff]  ;;  %v6057_v43 = vpop.f32.mrf.mxu0 }
 0x2b8   : > { %v9620_v30 = vsel %vm9592_vm6, 1, %v16935_v31  ;;  %v9621_v63 = vsel %vm9593_vm13, 1, %v16935_v31  ;;  %v15549_v25 = vadd.f32 %v11860_v15, %v5863_v24  ;;  %v8605_v40 = vor.u32 %v16707_v27, %v8601_v36  ;;  %v10887_v24 = vld [vmem:[%s16586_s2 + $0x1a8] sm:$0xff] }
 0x2b9   : > { %v15553_v4 = vor.u32 %v8197_v41, %v8196_v35  ;;  %v16954_v13 = vshrl.u32 %v15042_v19, 16  ;;  %v5864_v50 = vadd.f32 %v5813_v12, %v16955_v57  ;;  %v8602_v28 = vsel %vm2701_vm7, %v8597_v49, %v8601_v36  ;;  %9695 = vperm.xlu1 %12201, %v9620_v30   ;;  %9698 = vperm.xlu0 %12200, %v9621_v63   ;;  %v10888_v35 = vld [vmem:[%s16586_s2 + $0x1b0] sm:$0xff]  ;;  %v11834_v41 = vpop.f32.mrf.mxu1  ;;  %v16957_v49 = vld [vmem:[#allocation30_spill] sm:$0xff]  ;;  %v11863_v30 = vpop.f32.mrf.mxu0 }
 0x2ba   : > { %v16711_v6 = vshrl.u32 %v15513_v20, 16  ;;  %v16710_v33 = vshll.u32 %v15530_v62, 16  ;;  %v15567_v15 = vadd.f32 %v6057_v43, %v5861_v0  ;;  %v16956_v12 = vshll.u32 %v15042_v19, 16  ;;  %12086 = vmatmul.mubr.msk.bf16.gmra.mxu0 %vm763_vm2, %v8594_v37  ;;  %v15575_v57 = vld [vmem:[#allocation2 + $0xc4] sm:$0xff]  }
 0x2bb   : > { %v8200_v48 = vrot.slane %v16954_v13, 2  ;;  %vm9594_vm14 = vcmp.gt.f32.partialorder %v10887_v24, 0.5  ;;  %vm9595_vm15 = vcmp.gt.f32.partialorder %v10888_v35, 0.5  ;;  %v5867_v13 = vadd.f32 %v11834_v41, %v16957_v49  ;;  %16958 = vst [vmem:[#allocation32_spill] sm:$0xff] %v15575_v57  ;;  %v5816_v43 = vpop.f32.mrf.mxu1  ;;  %12089 = vmatprep.mubr.msk.bf16.mxu0 %vm763_vm2, %v8602_v28  ;;  %v6070_v49 = vpop.f32.mrf.mxu0  ;;  %v15594_v28 = vld [vmem:[#allocation2 + $0xcc] sm:$0xff]  }
 0x2bc   : > { %v8201_v36 = vrot.slane %v16956_v12, 3  ;;  %v8609_v63 = vrot.slane %v16709_v42, 1  ;;  %v9622_v27 = vsel %vm9594_vm14, 1, %v16935_v31  ;;  %v9623_v0 = vsel %vm9595_vm15, 1, %v16935_v31 }
 0x2bd   : > { %v15579_v9 = vadd.f32 %v11863_v30, %v5866_v26  ;;  %v8199_v19 = vsel %vm954_vm3, %v15507_v23, %v15553_v4  ;;  %v16959_v37 = vshrl.u32 %v15069_v11, 16  ;;  %v16960_v35 = vshll.u32 %v15069_v11, 16  ;;  %9701 = vperm.xlu1 %12201, %v9622_v27   ;;  %9704 = vperm.xlu0 %12200, %v9623_v0   ;;  %v10889_v23 = vld [vmem:[%s16586_s2 + $0x1b8] sm:$0xff]  ;;  %v11837_v30 = vpop.f32.mrf.mxu1 }
 0x2be   : > { %v5865_v12 = vadd.f32 %v5816_v43, %v15191_v56  ;;  %v8613_v42 = vor.u32 %v16711_v6, %v8609_v63  ;;  %v8617_v26 = vrot.slane %v16710_v33, 1  ;;  %12060 = vmatmul.mubr.msk.bf16.gmra.mxu1 %vm763_vm2, %v8195_v17  ;;  %v15600_v11 = vadd.f32 %v6070_v49, %v5864_v50  ;;  %v16961_v43 = vld [vmem:[#allocation9_spill] sm:$0xff] }
 0x2bf   : > { %v8204_v24 = vrot.slane %v16959_v37, 2  ;;  %v8205_v41 = vrot.slane %v16960_v35, 3  ;;  %v8202_v56 = vor.u32 %v8201_v36, %v8200_v48  ;;  %vm9596_vm1 = vcmp.gt.f32.partialorder %v10889_v23, 0.5  ;;  %v11864_v35 = vpop.f32.mrf.mxu0  ;;  %12063 = vmatprep.mubr.msk.bf16.mxu1 %vm763_vm2, %v8199_v19  ;;  %v5829_v6 = vpop.f32.mrf.mxu1  ;;  %v16962_v49 = vld [vmem:[#allocation5_spill] sm:$0xff] }
 0x2c0   : > { %v5870_v37 = vadd.f32 %v11837_v30, %v16961_v43  ;;  %v9624_v0 = vsel %vm9596_vm1, 1, %v16935_v31  ;;  %v15607_v18 = vadd.f32 %v11864_v35, %v5867_v13  ;;  %v8610_v17 = vsel %vm2701_vm7, %v8605_v40, %v8609_v63  ;;  %v16963_v31 = vld [vmem:[#allocation36_spill] sm:$0xff] }
 0x2c1   : > { %v8206_v50 = vor.u32 %v8205_v41, %v8204_v24  ;;  %v5868_v48 = vadd.f32 %v5829_v6, %v16962_v49  ;;  %v6073_v36 = vpop.f32.mrf.mxu0  ;;  %v8618_v23 = vsel %vm2701_vm7, %v8613_v42, %v8617_v26  ;;  %v16713_v30 = vshrl.u32 %v15575_v57, 16  ;;  %9707 = vperm.xlu1 %12201, %v9624_v0   ;;  %v11838_v43 = vpop.f32.mrf.mxu1  ;;  %v15620_v63 = vld [vmem:[#allocation2 + $0xd4] sm:$0xff]  }
 0x2c2   : > { %v15614_v27 = vadd.f32 %v6073_v36, %v5865_v12  ;;  %v16964_v33 = vshrl.u32 %v16963_v31, 16  ;;  %v16965_v35 = vshll.u32 %v16963_v31, 16  ;;  %16966 = vst [vmem:[#allocation11_spill] sm:$0xff] %v15620_v63  ;;  %v5871_v6 = vadd.f32 %v11838_v43, %v15230_v21  ;;  %12090 = vmatmul.mubr.msk.bf16.gmra.mxu0 %vm763_vm2, %v8610_v17 }
 0x2c3   : > { %v11867_v24 = vpop.f32.mrf.mxu0  ;;  %v8203_v42 = vsel %vm954_vm3, %v15553_v4, %v8202_v56  ;;  %v16967_v41 = vshrl.u32 %v15530_v62, 16  ;;  %v16968_v0 = vshll.u32 %v15575_v57, 16  ;;  %12093 = vmatprep.mubr.msk.bf16.mxu0 %vm763_vm2, %v8618_v23  ;;  %v8207_v31 = vsel %vm954_vm3, %v8202_v56, %v8206_v50  ;;  %v12360_v57 = vld [vmem:[#allocation2 + $0xf0] ss:$0 sps:$4 sm:$0x77]  }
 0x2c4   : > { %v8208_v13 = vrot.slane %v16964_v33, 2  ;;  %v8209_v40 = vrot.slane %v16965_v35, 3  ;;  %v5832_v33 = vpop.f32.mrf.mxu1  ;;  %v15630_v36 = vadd.f32 %v11867_v24, %v5870_v37  ;;  %v16970_v21 = vshrl.u32 %v15116_v5, 16  ;;  %v15643_v24 = vld [vmem:[#allocation2 + $0xdc] sm:$0xff]  }
 0x2c5   : > { %v8621_v12 = vor.u32 %v16967_v41, %v8617_v26  ;;  %v8625_v49 = vrot.slane %v16968_v0, 1  ;;  %v16971_v17 = vshll.u32 %v15116_v5, 16  ;;  %v5869_v4 = vadd.f32 %v5832_v33, %v15248_v7  ;;  %v6086_v19 = vpop.f32.mrf.mxu0 }
 0x2c6   : > { %16969 = vst [vmem:[#allocation13_spill] sm:$0xff] %v15630_v36  ;;  %v8212_v43 = vrot.slane %v16970_v21, 2  ;;  %v16972_v41 = vshll.u32 %v15594_v28, 16  ;;  %v11873_v23 = vpop.f32.mrf.mxu1  ;;  %12064 = vmatmul.mubr.msk.bf16.gmra.mxu1 %vm763_vm2, %v8203_v42  ;;  %v15646_v56 = vadd.f32 %v6086_v19, %v5868_v48  ;;  %v8210_v0 = vor.u32 %v8209_v40, %v8208_v13 }
 0x2c7   : > { %v8213_v35 = vrot.slane %v16971_v17, 3  ;;  %v8629_v26 = vor.u32 %v16713_v30, %v8625_v49  ;;  %v16716_v5 = vshll.u32 %v15620_v63, 16  ;;  %v6400_v21 = vadd.f32 %v11873_v23, %v15257_v53  ;;  %v11868_v7 = vpop.f32.mrf.mxu0  ;;  %12067 = vmatprep.mubr.msk.bf16.mxu1 %vm763_vm2, %v8207_v31 }
 0x2c8   : > { %v8633_v37 = vrot.slane %v16972_v41, 1  ;;  %v6287_v33 = vpop.f32.mrf.mxu1  ;;  %v15651_v17 = vadd.f32 %v11868_v7, %v5871_v6  ;;  %v8626_v41 = vsel %vm2701_vm7, %v8621_v12, %v8625_v49  ;;  %v16717_v30 = vshrl.u32 %v15594_v28, 16 }
 0x2c9   : > { %v8214_v36 = vor.u32 %v8213_v35, %v8212_v43  ;;  %v6398_v48 = vadd.f32 %v6287_v33, %v15284_v32  ;;  %v6089_v19 = vpop.f32.mrf.mxu0  ;;  %v16718_v40 = vshrl.u32 %v15620_v63, 16  ;;  %v8211_v6 = vsel %vm954_vm3, %v8206_v50, %v8210_v0  ;;  %v15666_v35 = vld [vmem:[#allocation2 + $0xe4] sm:$0xff]  }
 0x2ca   : > { %v8634_v13 = vsel %vm2701_vm7, %v8629_v26, %v8633_v37  ;;  %v11874_v42 = vpop.f32.mrf.mxu1  ;;  %v15659_v31 = vadd.f32 %v6089_v19, %v5869_v4  ;;  %v8641_v12 = vrot.slane %v16716_v5, 1  ;;  %v16973_v49 = vshrl.u32 %v15125_v8, 16  ;;  %12094 = vmatmul.mubr.msk.bf16.gmra.mxu0 %vm763_vm2, %v8626_v41 }
 0x2cb   : > { %v6401_v32 = vadd.f32 %v11874_v42, %v15298_v46  ;;  %v11903_v26 = vpop.f32.mrf.mxu0  ;;  %v16974_v23 = vshll.u32 %v15125_v8, 16  ;;  %v16975_v4 = vshrl.u32 %v15150_v51, 16  ;;  %v16976_v50 = vshll.u32 %v15150_v51, 16  ;;  %12097 = vmatprep.mubr.msk.bf16.mxu0 %vm763_vm2, %v8634_v13  ;;  %v15682_v42 = vld [vmem:[#allocation2 + $0xec] sm:$0xff]  }
 0x2cc   : > { %v8216_v43 = vrot.slane %v16973_v49, 2  ;;  %v6290_v5 = vpop.f32.mrf.mxu1  ;;  %v15676_v53 = vadd.f32 %v11903_v26, %v6400_v21  ;;  %v8637_v49 = vor.u32 %v16717_v30, %v8633_v37  ;;  %v8215_v46 = vsel %vm954_vm3, %v8210_v0, %v8214_v36 }
 0x2cd   : > { %v8217_v7 = vrot.slane %v16974_v23, 3  ;;  %v8220_v33 = vrot.slane %v16975_v4, 2  ;;  %v8221_v19 = vrot.slane %v16976_v50, 3  ;;  %v8225_v41 = vshrl.u32 %v12360_v57, 16  ;;  %v6747_v23 = vpop.f32.mrf.mxu0 }
 0x2ce   : > { %16977 = vst [vmem:[#allocation15_spill] sm:$0xff] %v15676_v53  ;;  %v6399_v8 = vadd.f32 %v6290_v5, %v15321_v47  ;;  %v8645_v51 = vor.u32 %v16718_v40, %v8641_v12  ;;  %v16978_v4 = vshll.u32 %v15643_v24, 16  ;;  %v11877_v50 = vpop.f32.mrf.mxu1  ;;  %12068 = vmatmul.mubr.msk.bf16.gmra.mxu1 %vm763_vm2, %v8211_v6  ;;  %v15691_v37 = vadd.f32 %v6747_v23, %v6398_v48  ;;  %v8896_v53 = vld [vmem:[#allocation2 + $0x84] sm:$0xe] }
 0x2cf   : > { %v16722_v0 = vshll.u32 %v15666_v35, 16  ;;  %v8228_v13 = vshll.u32 %v12360_v57, 16  ;;  %v6404_v30 = vadd.f32 %v11877_v50, %v15332_v52  ;;  %v11904_v47 = vpop.f32.mrf.mxu0  ;;  %12071 = vmatprep.mubr.msk.bf16.mxu1 %vm763_vm2, %v8215_v46  ;;  %v8218_v5 = vor.u32 %v8217_v7, %v8216_v43 }
 0x2d0   : > { %v8649_v21 = vrot.slane %v16978_v4, 1  ;;  %v8222_v40 = vor.u32 %v8221_v19, %v8220_v33  ;;  %v6303_v63 = vpop.f32.mrf.mxu1  ;;  %v15696_v4 = vadd.f32 %v11904_v47, %v6401_v32  ;;  %v8642_v26 = vsel %vm2701_vm7, %v8637_v49, %v8641_v12 }
 0x2d1   : > { %v16723_v6 = vshrl.u32 %v15666_v35, 16  ;;  %v16721_v48 = vshll.u32 %v15682_v42, 16  ;;  %v6402_v23 = vadd.f32 %v6303_v63, %v15351_v39  ;;  %v6750_v57 = vpop.f32.mrf.mxu0  ;;  %v16979_v50 = vshrl.u32 %v15643_v24, 16 }
 0x2d2   : > { %v8650_v52 = vsel %vm2701_vm7, %v8645_v51, %v8649_v21  ;;  %v8227_v43 = vrot.slane %v8225_v41, 2  ;;  %v11878_v7 = vpop.f32.mrf.mxu1  ;;  %v15705_v33 = vadd.f32 %v6750_v57, %v6399_v8  ;;  %v8657_v32 = vrot.slane %v16722_v0, 1  ;;  %12098 = vmatmul.mubr.msk.bf16.gmra.mxu0 %vm763_vm2, %v8642_v26  ;;  %v15714_v51 = vld [vmem:[#allocation2 + $0xf4] ss:$0 sps:$4 sm:$0x11]  }
 0x2d3   : > { %v8653_v46 = vor.u32 %v16979_v50, %v8649_v21  ;;  %v8230_v12 = vrot.slane %v8228_v13, 3  ;;  %v10827_v19 = vcombine.low %v8896_v53, %v15274_v3  ;;  %v6405_v49 = vadd.f32 %v11878_v7, %v15364_v10  ;;  %v11907_v47 = vpop.f32.mrf.mxu0  ;;  %12101 = vmatprep.mubr.msk.bf16.mxu0 %vm763_vm2, %v8650_v52 }
 0x2d4   : > { %v8219_v39 = vsel %vm954_vm3, %v8214_v36, %v8218_v5  ;;  %v8223_v63 = vsel %vm954_vm3, %v8218_v5, %v8222_v40  ;;  %v6306_v41 = vpop.f32.mrf.mxu1  ;;  %v15716_v8 = vadd.f32 %v11907_v47, %v6404_v30  ;;  %v8661_v21 = vor.u32 %v16723_v6, %v8657_v32 }
 0x2d5   : > { %v8665_v3 = vrot.slane %v16721_v48, 1  ;;  %v9161_v10 = vshrl.u32 %v10827_v19, 16  ;;  %v6403_v53 = vadd.f32 %v6306_v41, %v15383_v38  ;;  %v6763_v26 = vpop.f32.mrf.mxu0  ;;  %v9164_v36 = vshll.u32 %v10827_v19, 16 }
 0x2d6   : > { %v11881_v13 = vpop.f32.mrf.mxu1  ;;  %12072 = vmatmul.mubr.msk.bf16.gmra.mxu1 %vm763_vm2, %v8219_v39  ;;  %v15725_v5 = vadd.f32 %v6763_v26, %v6402_v23  ;;  %v8658_v30 = vsel %vm2701_vm7, %v8653_v46, %v8657_v32  ;;  %v8231_v57 = vor.u32 %v8230_v12, %v8227_v43  ;;  %v8667_v7 = vshrl.u32 %v15682_v42, 16 }
 0x2d7   : > { %v6408_v52 = vadd.f32 %v11881_v13, %v15392_v2  ;;  %v11908_v50 = vpop.f32.mrf.mxu0  ;;  %12075 = vmatprep.mubr.msk.bf16.mxu1 %vm763_vm2, %v8223_v63  ;;  %v8671_v47 = vshll.u32 %v15714_v51, 16  ;;  %v8904_v38 = vrot.slane %v15313_v60, 1  ;;  %v8666_v23 = vsel %vm2701_vm7, %v8661_v21, %v8665_v3 }
 0x2d8   : > { %v6319_v41 = vpop.f32.mrf.mxu1  ;;  %v15733_v48 = vadd.f32 %v11908_v50, %v6405_v49  ;;  %v8903_v39 = vrot.slane %v10827_v19, 1  ;;  %v9163_v26 = vrot.slane %v9161_v10, 1  ;;  %v9166_v2 = vrot.slane %v9164_v36, 2 }
 0x2d9   : > { %v6406_v46 = vadd.f32 %v6319_v41, %v15414_v54  ;;  %v6766_v43 = vpop.f32.mrf.mxu0  ;;  %v16980_v32 = vshrl.u32 %v15313_v60, 16  ;;  %v16981_v63 = vshll.u32 %v15313_v60, 16  ;;  %v8232_v19 = vsel %vm954_vm3, %v8222_v40, %v8231_v57 }
 0x2da   : > { %v11882_v0 = vpop.f32.mrf.mxu1  ;;  %v15741_v6 = vadd.f32 %v6766_v43, %v6403_v53  ;;  %12102 = vmatmul.mubr.msk.bf16.gmra.mxu0 %vm763_vm2, %v8658_v30  ;;  %v8669_v10 = vor.u32 %v8667_v7, %v8665_v3  ;;  %v8673_v60 = vrot.slane %v8671_v47, 1  ;;  %v8905_v36 = vsel %vm3046_vm8, %v8903_v39, %v8904_v38 }
 0x2db   : > { %v9168_v12 = vrot.slane %v16980_v32, 1  ;;  %v9169_v13 = vrot.slane %v16981_v63, 2  ;;  %v6409_v49 = vadd.f32 %v11882_v0, %v15424_v16  ;;  %v11911_v50 = vpop.f32.mrf.mxu0  ;;  %12105 = vmatprep.mubr.msk.bf16.mxu0 %vm763_vm2, %v8666_v23  ;;  %v9167_v16 = vor.u32 %v9166_v2, %v9163_v26 }
 0x2dc   : > { %v6322_v21 = vpop.f32.mrf.mxu1  ;;  %v15746_v54 = vadd.f32 %v11911_v50, %v6408_v52  ;;  %v16982_v30 = vshrl.u32 %v15360_v29, 16  ;;  %v8906_v47 = vrot.slane %v15360_v29, 1  ;;  %v8674_v2 = vsel %vm2701_vm7, %v8669_v10, %v8673_v60 }
 0x2dd   : > { %v6407_v53 = vadd.f32 %v6322_v21, %v15445_v55  ;;  %v6779_v41 = vpop.f32.mrf.mxu0  ;;  %v9170_v0 = vor.u32 %v9169_v13, %v9168_v12  ;;  %v16983_v55 = vshll.u32 %v15360_v29, 16  ;;  %v16984_v63 = vshrl.u32 %v15397_v14, 16 }
 0x2de   : > { %v11885_v43 = vpop.f32.mrf.mxu1  ;;  %12076 = vmatmul.mubr.msk.bf16.gmra.mxu1 %vm763_vm2, %v8232_v19  ;;  %v15754_v40 = vadd.f32 %v6779_v41, %v6406_v46  ;;  %v9172_v57 = vrot.slane %v16982_v30, 1  ;;  %v8908_v46 = vrot.slane %v15397_v14, 1  ;;  %v16985_v50 = vshll.u32 %v15397_v14, 16 }
 0x2df   : > { %v6412_v3 = vadd.f32 %v11885_v43, %v15453_v22  ;;  %v11912_v52 = vpop.f32.mrf.mxu0  ;;  %12111 = vmatprep.mubr.msk.bf16.mxu1 %vm763_vm2, %v8905_v36  ;;  %v9173_v23 = vrot.slane %v16983_v55, 2  ;;  %v9171_v22 = vsel %vm1685_vm5, %v9167_v16, %v9170_v0  ;;  %v9176_v13 = vrot.slane %v16984_v63, 1 }
 0x2e0   : > { %v6335_v39 = vpop.f32.mrf.mxu1  ;;  %v15763_v26 = vadd.f32 %v11912_v52, %v6409_v49  ;;  %v9177_v19 = vrot.slane %v16985_v50, 2  ;;  %v8907_v10 = vsel %vm3046_vm8, %v8904_v38, %v8906_v47  ;;  %v8909_v16 = vsel %vm3046_vm8, %v8906_v47, %v8908_v46 }
 0x2e1   : > { %v6410_v32 = vadd.f32 %v6335_v39, %v15476_v34  ;;  %v6782_v12 = vpop.f32.mrf.mxu0  ;;  %v9174_v34 = vor.u32 %v9173_v23, %v9172_v57  ;;  %v16986_v52 = vshrl.u32 %v15431_v59, 16  ;;  %v8910_v55 = vrot.slane %v15431_v59, 1 }
 0x2e2   : > { %v11886_v29 = vpop.f32.mrf.mxu1  ;;  %v15773_v21 = vadd.f32 %v6782_v12, %v6407_v53  ;;  %12106 = vmatmul.mubr.msk.bf16.gmra.mxu0 %vm763_vm2, %v8674_v2  ;;  %v9178_v53 = vor.u32 %v9177_v19, %v9176_v13  ;;  %v8912_v39 = vrot.slane %v15460_v1, 1  ;;  %v16987_v2 = vshll.u32 %v15431_v59, 16 }
 0x2e3   : > { %v6413_v49 = vadd.f32 %v11886_v29, %v15487_v45  ;;  %v11915_v36 = vpop.f32.mrf.mxu0  ;;  %12141 = vmatprep.mubr.msk.bf16.mxu0 %vm763_vm2, %v9171_v22  ;;  %v9180_v38 = vrot.slane %v16986_v52, 1  ;;  %v16988_v63 = vshrl.u32 %v15460_v1, 16  ;;  %v16989_v50 = vshll.u32 %v15460_v1, 16 }
 0x2e4   : > { %v6338_v60 = vpop.f32.mrf.mxu1  ;;  %v15778_v41 = vadd.f32 %v11915_v36, %v6412_v3  ;;  %v8911_v59 = vsel %vm3046_vm8, %v8908_v46, %v8910_v55 }
 0x2e5   : > { %v6411_v14 = vadd.f32 %v6338_v60, %v15505_v44  ;;  %v6795_v43 = vpop.f32.mrf.mxu0  ;;  %v9175_v44 = vsel %vm1685_vm5, %v9170_v0, %v9174_v34  ;;  %v9184_v13 = vrot.slane %v16988_v63, 1  ;;  %v9185_v19 = vrot.slane %v16989_v50, 2 }
 0x2e6   : > { %v11889_v30 = vpop.f32.mrf.mxu1  ;;  %12112 = vmatmul.mubr.msk.bf16.vlgmr.msra.gmra.mxu1 %vm763_vm2, %v8907_v10  ;;  %v15784_v45 = vadd.f32 %v6795_v43, %v6410_v32  ;;  %v9181_v32 = vrot.slane %v16987_v2, 2  ;;  %v16993_v63 = vshll.u32 %v15530_v62, 16 }
 0x2e7   : > { %v6416_v57 = vadd.f32 %v11889_v30, %v15517_v61  ;;  %v11916_v3 = vpop.f32.mrf.mxu0  ;;  %12115 = vmatprep.mubr.msk.bf16.mxu1 %vm763_vm2, %v8909_v16  ;;  %v9179_v61 = vsel %vm1685_vm5, %v9174_v34, %v9178_v53  ;;  %v8913_v34 = vsel %vm3046_vm8, %v8910_v55, %v8912_v39  ;;  %v16990_v30 = vshrl.u32 %v15513_v20, 16 }
 0x2e8   : > { %v6351_v47 = vpop.f32.mrf.mxu1  ;;  %v15791_v23 = vadd.f32 %v11916_v3, %v6413_v49  ;;  %v9182_v60 = vor.u32 %v9181_v32, %v9180_v38  ;;  %v8914_v3 = vrot.slane %v15513_v20, 1 }
 0x2e9   : > { %v6414_v12 = vadd.f32 %v6351_v47, %v15539_v58  ;;  %v6798_v22 = vpop.f32.mrf.mxu0  ;;  %v9188_v46 = vrot.slane %v16990_v30, 1  ;;  %v8916_v47 = vrot.slane %v15530_v62, 1 }
 0x2ea   : > { %v11890_v29 = vpop.f32.mrf.mxu1  ;;  %v15803_v49 = vadd.f32 %v6798_v22, %v6411_v14  ;;  %12142 = vmatmul.mubr.msk.bf16.vlgmr.msra.gmra.mxu0 %vm763_vm2, %v9175_v44  ;;  %v9186_v14 = vor.u32 %v9185_v19, %v9184_v13  ;;  %v16991_v44 = vshll.u32 %v15513_v20, 16  ;;  %v16992_v22 = vshrl.u32 %v15530_v62, 16 }
 0x2eb   : > { %v6417_v0 = vadd.f32 %v11890_v29, %v15549_v25  ;;  %v11919_v36 = vpop.f32.mrf.mxu0  ;;  %12145 = vmatprep.mubr.msk.bf16.mxu0 %vm763_vm2, %v9179_v61  ;;  %v9193_v13 = vrot.slane %v16993_v63, 2  ;;  %v8915_v20 = vsel %vm3046_vm8, %v8912_v39, %v8914_v3 }
 0x2ec   : > { %v6354_v58 = vpop.f32.mrf.mxu1  ;;  %v15808_v10 = vadd.f32 %v11919_v36, %v6416_v57  ;;  %v9189_v2 = vrot.slane %v16991_v44, 2  ;;  %v9192_v61 = vrot.slane %v16992_v22, 1  ;;  %v8917_v36 = vsel %vm3046_vm8, %v8914_v3, %v8916_v47 }
 0x2ed   : > { %v6415_v1 = vadd.f32 %v6354_v58, %v15567_v15  ;;  %v6811_v16 = vpop.f32.mrf.mxu0  ;;  %v9183_v15 = vsel %vm1685_vm5, %v9178_v53, %v9182_v60 }
 0x2ee   : > { %v11893_v43 = vpop.f32.mrf.mxu1  ;;  %12116 = vmatmul.mubr.msk.bf16.gmra.mxu1 %vm763_vm2, %v8911_v59  ;;  %v15814_v25 = vadd.f32 %v6811_v16, %v6414_v12  ;;  %v9190_v59 = vor.u32 %v9189_v2, %v9188_v46 }
 0x2ef   : > { %v6420_v52 = vadd.f32 %v11893_v43, %v15579_v9  ;;  %v11920_v57 = vpop.f32.mrf.mxu0  ;;  %12119 = vmatprep.mubr.msk.bf16.mxu1 %vm763_vm2, %v8913_v34  ;;  %v9187_v9 = vsel %vm1685_vm5, %v9182_v60, %v9186_v14  ;;  %v9194_v34 = vor.u32 %v9193_v13, %v9192_v61  ;;  %v16996_v43 = vld [vmem:[#allocation13_spill] sm:$0xff]  ;;  %v16999_v61 = vshll.u32 %v15594_v28, 16 }
 0x2f0   : > { %v6367_v38 = vpop.f32.mrf.mxu1  ;;  %v15821_v55 = vadd.f32 %v11920_v57, %v6417_v0 }
 0x2f1   : > { %v6418_v32 = vadd.f32 %v6367_v38, %v15600_v11  ;;  %v6814_v12 = vpop.f32.mrf.mxu0  ;;  %v8920_v38 = vrot.slane %v15594_v28, 1  ;;  %v9201_v63 = vrot.slane %v16999_v61, 2 }
 0x2f2   : > { %v11894_v50 = vpop.f32.mrf.mxu1  ;;  %v15833_v19 = vadd.f32 %v6814_v12, %v6415_v1  ;;  %12146 = vmatmul.mubr.msk.bf16.gmra.mxu0 %vm763_vm2, %v9183_v15  ;;  %v16994_v1 = vld [vmem:[#allocation32_spill] sm:$0xff]  ;;  %v9195_v12 = vsel %vm1685_vm5, %v9190_v59, %v9194_v34 }
 0x2f3   : > { %v6421_v53 = vadd.f32 %v11894_v50, %v15607_v18  ;;  %v11923_v29 = vpop.f32.mrf.mxu0  ;;  %12149 = vmatprep.mubr.msk.bf16.mxu0 %vm763_vm2, %v9187_v9  ;;  %v16995_v16 = vshrl.u32 %v16994_v1, 16  ;;  %v8918_v57 = vrot.slane %v16994_v1, 1  ;;  %v16997_v15 = vshll.u32 %v16994_v1, 16 }
 0x2f4   : > { %v6370_v11 = vpop.f32.mrf.mxu1  ;;  %v15838_v0 = vadd.f32 %v11923_v29, %v6420_v52  ;;  %v16998_v9 = vshrl.u32 %v15594_v28, 16 }
 0x2f5   : > { %v6419_v62 = vadd.f32 %v6370_v11, %v15614_v27  ;;  %v6827_v58 = vpop.f32.mrf.mxu0  ;;  %v9196_v39 = vrot.slane %v16995_v16, 1  ;;  %v9191_v27 = vsel %vm1685_vm5, %v9186_v14, %v9190_v59  ;;  %v9197_v44 = vrot.slane %v16997_v15, 2  ;;  %v17002_v16 = vld [vmem:[#allocation15_spill] sm:$0xff] }
 0x2f6   : > { %v11897_v60 = vpop.f32.mrf.mxu1  ;;  %12120 = vmatmul.mubr.msk.bf16.gmra.mxu1 %vm763_vm2, %v8915_v20  ;;  %v15844_v18 = vadd.f32 %v6827_v58, %v6418_v32  ;;  %v9200_v22 = vrot.slane %v16998_v9, 1  ;;  %v8919_v29 = vsel %vm3046_vm8, %v8916_v47, %v8918_v57  ;;  %v8921_v11 = vsel %vm3046_vm8, %v8918_v57, %v8920_v38 }
 0x2f7   : > { %v6424_v30 = vadd.f32 %v11897_v60, %v16996_v43  ;;  %v11924_v52 = vpop.f32.mrf.mxu0  ;;  %12123 = vmatprep.mubr.msk.bf16.mxu1 %vm763_vm2, %v8917_v36  ;;  %v9198_v36 = vor.u32 %v9197_v44, %v9196_v39  ;;  %v17000_v60 = vld [vmem:[#allocation11_spill] sm:$0xff] }
 0x2f8   : > { %v6383_v46 = vpop.f32.mrf.mxu1  ;;  %v15851_v3 = vadd.f32 %v11924_v52, %v6421_v53  ;;  %v17001_v1 = vshrl.u32 %v17000_v60, 16  ;;  %v8922_v52 = vrot.slane %v17000_v60, 1 }
 0x2f9   : > { %v6422_v2 = vadd.f32 %v6383_v46, %v15646_v56  ;;  %v6830_v32 = vpop.f32.mrf.mxu0  ;;  %v8924_v46 = vrot.slane %v15643_v24, 1 }
 0x2fa   : > { %v11898_v13 = vpop.f32.mrf.mxu1  ;;  %v15863_v50 = vadd.f32 %v6830_v32, %v6419_v62  ;;  %12150 = vmatmul.mubr.msk.bf16.gmra.mxu0 %vm763_vm2, %v9191_v27  ;;  %v9202_v62 = vor.u32 %v9201_v63, %v9200_v22  ;;  %v9204_v47 = vrot.slane %v17001_v1, 1  ;;  %v17003_v27 = vshll.u32 %v17000_v60, 16 }
 0x2fb   : > { %v6425_v14 = vadd.f32 %v11898_v13, %v15651_v17  ;;  %v11927_v53 = vpop.f32.mrf.mxu0  ;;  %12153 = vmatprep.mubr.msk.bf16.mxu0 %vm763_vm2, %v9195_v12  ;;  %v17004_v12 = vshrl.u32 %v15643_v24, 16  ;;  %v17005_v22 = vshll.u32 %v15643_v24, 16 }
 0x2fc   : > { %v6386_v56 = vpop.f32.mrf.mxu1  ;;  %v15868_v20 = vadd.f32 %v11927_v53, %v6424_v30  ;;  %v9205_v15 = vrot.slane %v17003_v27, 2  ;;  %v9203_v32 = vsel %vm1685_vm5, %v9198_v36, %v9202_v62  ;;  %v8923_v53 = vsel %vm3046_vm8, %v8920_v38, %v8922_v52 }
 0x2fd   : > { %v6423_v28 = vadd.f32 %v6386_v56, %v15659_v31  ;;  %v6843_v59 = vpop.f32.mrf.mxu0  ;;  %v9199_v31 = vsel %vm1685_vm5, %v9194_v34, %v9198_v36  ;;  %v9208_v9 = vrot.slane %v17004_v12, 1  ;;  %v9209_v61 = vrot.slane %v17005_v22, 2 }
 0x2fe   : > { %v11933_v58 = vpop.f32.mrf.mxu1  ;;  %12124 = vmatmul.mubr.msk.bf16.gmra.mxu1 %vm763_vm2, %v8919_v29  ;;  %v15874_v17 = vadd.f32 %v6843_v59, %v6422_v2  ;;  %v8925_v56 = vsel %vm3046_vm8, %v8922_v52, %v8924_v46 }
 0x2ff   : > { %v7117_v43 = vadd.f32 %v11933_v58, %v17002_v16  ;;  %v11928_v30 = vpop.f32.mrf.mxu0  ;;  %12127 = vmatprep.mubr.msk.bf16.mxu1 %vm763_vm2, %v8921_v11  ;;  %v9206_v11 = vor.u32 %v9205_v15, %v9204_v47  ;;  %v17006_v58 = vshrl.u32 %v15666_v35, 16  ;;  %v8926_v16 = vrot.slane %v15666_v35, 1 }
 0x300   : > { %v7004_v39 = vpop.f32.mrf.mxu1  ;;  %v15881_v57 = vadd.f32 %v11928_v30, %v6425_v14  ;;  %v17007_v47 = vshll.u32 %v15666_v35, 16 }
 0x301   : > { %v7115_v44 = vadd.f32 %v7004_v39, %v15691_v37  ;;  %v6846_v2 = vpop.f32.mrf.mxu0  ;;  %v9212_v38 = vrot.slane %v17006_v58, 1  ;;  %v9207_v52 = vsel %vm1685_vm5, %v9202_v62, %v9206_v11  ;;  %v8928_v39 = vrot.slane %v15682_v42, 1 }
 0x302   : > { %v11934_v63 = vpop.f32.mrf.mxu1  ;;  %v15893_v13 = vadd.f32 %v6846_v2, %v6423_v28  ;;  %12154 = vmatmul.mubr.msk.bf16.gmra.mxu0 %vm763_vm2, %v9199_v31  ;;  %v9210_v28 = vor.u32 %v9209_v61, %v9208_v9  ;;  %v12363_v31 = vld [vmem:[#allocation2 + $0xf4] ss:$0 sps:$4 sm:$0x33]   ;;  %v17008_v2 = vshll.u32 %v15682_v42, 16  ;;  %v8927_v22 = vsel %vm3046_vm8, %v8924_v46, %v8926_v16 }
 0x303   : > { %v7118_v34 = vadd.f32 %v11934_v63, %v15696_v4  ;;  %v11963_v14 = vpop.f32.mrf.mxu0  ;;  %12157 = vmatprep.mubr.msk.bf16.mxu0 %vm763_vm2, %v9203_v32  ;;  %v9221_v42 = vshrl.u32 %v12363_v31, 16 }
 0x304   : > { %v7007_v37 = vpop.f32.mrf.mxu1  ;;  %v15898_v29 = vadd.f32 %v11963_v14, %v7117_v43  ;;  %v9217_v35 = vrot.slane %v17008_v2, 2 }
 0x305   : > { %v7116_v24 = vadd.f32 %v7007_v37, %v15705_v33  ;;  %v7301_v36 = vpop.f32.mrf.mxu0  ;;  %v9213_v33 = vrot.slane %v17007_v47, 2 }
 0x306   : > { %v11937_v59 = vpop.f32.mrf.mxu1  ;;  %12128 = vmatmul.mubr.msk.bf16.gmra.mxu1 %vm763_vm2, %v8923_v53  ;;  %v15904_v4 = vadd.f32 %v7301_v36, %v7115_v44  ;;  %v9216_v44 = vrot.slane %v8667_v7, 1  ;;  %v8929_v7 = vsel %vm3046_vm8, %v8926_v16, %v8928_v39 }
 0x307   : > { %v7121_v60 = vadd.f32 %v11937_v59, %v15716_v8  ;;  %v11964_v1 = vpop.f32.mrf.mxu0  ;;  %12131 = vmatprep.mubr.msk.bf16.mxu1 %vm763_vm2, %v8925_v56  ;;  %v9211_v8 = vsel %vm1685_vm5, %v9206_v11, %v9210_v28 }
 0x308   : > { %v7020_v43 = vpop.f32.mrf.mxu1  ;;  %v15913_v30 = vadd.f32 %v11964_v1, %v7118_v34  ;;  %v9224_v34 = vshll.u32 %v12363_v31, 16  ;;  %v9218_v37 = vor.u32 %v9217_v35, %v9216_v44 }
 0x309   : > { %v7119_v27 = vadd.f32 %v7020_v43, %v15725_v5  ;;  %v7304_v15 = vpop.f32.mrf.mxu0  ;;  %v9214_v5 = vor.u32 %v9213_v33, %v9212_v38 }
 0x30a   : > { %v11938_v32 = vpop.f32.mrf.mxu1  ;;  %v15923_v12 = vadd.f32 %v7304_v15, %v7116_v24  ;;  %12158 = vmatmul.mubr.msk.bf16.gmra.mxu0 %vm763_vm2, %v9207_v52  ;;  %v8930_v24 = vrot.slane %v15714_v51, 1  ;;  %v9226_v38 = vrot.slane %v9224_v34, 2 }
 0x30b   : > { %v7122_v9 = vadd.f32 %v11938_v32, %v15733_v48  ;;  %v11967_v62 = vpop.f32.mrf.mxu0  ;;  %12161 = vmatprep.mubr.msk.bf16.mxu0 %vm763_vm2, %v9211_v8  ;;  %v9215_v58 = vsel %vm1685_vm5, %v9210_v28, %v9214_v5  ;;  %v9219_v16 = vsel %vm1685_vm5, %v9214_v5, %v9218_v37 }
 0x30c   : > { %v7023_v61 = vpop.f32.mrf.mxu1  ;;  %v15928_v63 = vadd.f32 %v11967_v62, %v7121_v60  ;;  %v8931_v51 = vsel %vm3046_vm8, %v8928_v39, %v8930_v24 }
 0x30d   : > { %v7120_v14 = vadd.f32 %v7023_v61, %v15741_v6  ;;  %v7317_v53 = vpop.f32.mrf.mxu0  ;;  %v9223_v6 = vrot.slane %v9221_v42, 1 }
 0x30e   : > { %v11941_v48 = vpop.f32.mrf.mxu1  ;;  %12132 = vmatmul.mubr.msk.bf16.gmra.mxu1 %vm763_vm2, %v8927_v22  ;;  %v15934_v56 = vadd.f32 %v7317_v53, %v7119_v27 }
 0x30f   : > { %v7125_v46 = vadd.f32 %v11941_v48, %v15746_v54  ;;  %v11968_v11 = vpop.f32.mrf.mxu0  ;;  %12135 = vmatprep.mubr.msk.bf16.mxu1 %vm763_vm2, %v8929_v7  ;;  %v9227_v28 = vor.u32 %v9226_v38, %v9223_v6 }
 0x310   : > { %v7036_v36 = vpop.f32.mrf.mxu1  ;;  %v15939_v59 = vadd.f32 %v11968_v11, %v7122_v9 }
 0x311   : > { %v7123_v60 = vadd.f32 %v7036_v36, %v15754_v40  ;;  %v7320_v1 = vpop.f32.mrf.mxu0  ;;  %v9228_v39 = vsel %vm1685_vm5, %v9218_v37, %v9227_v28 }
 0x312   : > { %v11942_v47 = vpop.f32.mrf.mxu1  ;;  %v15944_v33 = vadd.f32 %v7320_v1, %v7120_v14  ;;  %12162 = vmatmul.mubr.msk.bf16.gmra.mxu0 %vm763_vm2, %v9215_v58 }
 0x313   : > { %v7126_v54 = vadd.f32 %v11942_v47, %v15763_v26  ;;  %v11971_v43 = vpop.f32.mrf.mxu0  ;;  %12165 = vmatprep.mubr.msk.bf16.mxu0 %vm763_vm2, %v9219_v16 }
 0x314   : > { %v7039_v52 = vpop.f32.mrf.mxu1  ;;  %v15949_v31 = vadd.f32 %v11971_v43, %v7125_v46 }
 0x315   : > { %v7124_v40 = vadd.f32 %v7039_v52, %v15773_v21  ;;  %v7333_v27 = vpop.f32.mrf.mxu0 }
 0x316   : > { %v11945_v15 = vpop.f32.mrf.mxu1  ;;  %12136 = vmatmul.mubr.msk.bf16.gmra.mxu1 %vm763_vm2, %v8931_v51  ;;  %v15954_v8 = vadd.f32 %v7333_v27, %v7123_v60 }
 0x317   : > { %v7129_v26 = vadd.f32 %v11945_v15, %v15778_v41  ;;  %v11972_v44 = vpop.f32.mrf.mxu0 }
 0x318   : > { %v7052_v2 = vpop.f32.mrf.mxu1  ;;  %v15957_v35 = vadd.f32 %v11972_v44, %v7126_v54 }
 0x319   : > { %v7127_v32 = vadd.f32 %v7052_v2, %v15784_v45  ;;  %v7336_v9 = vpop.f32.mrf.mxu0 }
 0x31a   : > { %v11946_v62 = vpop.f32.mrf.mxu1  ;;  %v15961_v22 = vadd.f32 %v7336_v9, %v7124_v40  ;;  %12166 = vmatmul.mubr.msk.bf16.gmra.mxu0 %vm763_vm2, %v9228_v39 }
 0x31b   : > { %v7130_v21 = vadd.f32 %v11946_v62, %v15791_v23  ;;  %v11975_v5 = vpop.f32.mrf.mxu0 }
 0x31c   : > { %v7055_v61 = vpop.f32.mrf.mxu1  ;;  %v15965_v7 = vadd.f32 %v11975_v5, %v7129_v26 }
 0x31d   : > { %v7128_v41 = vadd.f32 %v7055_v61, %v15803_v49  ;;  %v7349_v42 = vpop.f32.mrf.mxu0 }
 0x31e   : > { %v11949_v34 = vpop.f32.mrf.mxu1  ;;  %v15968_v14 = vadd.f32 %v7349_v42, %v7127_v32 }
 0x31f   : > { %v7133_v45 = vadd.f32 %v11949_v34, %v15808_v10  ;;  %v11976_v53 = vpop.f32.mrf.mxu0 }
 0x320   : > { %v7068_v37 = vpop.f32.mrf.mxu1  ;;  %v15971_v48 = vadd.f32 %v11976_v53, %v7130_v21 }
 0x321   : > { %v7131_v23 = vadd.f32 %v7068_v37, %v15814_v25  ;;  %v7352_v46 = vpop.f32.mrf.mxu0 }
 0x322   : > { %v11950_v11 = vpop.f32.mrf.mxu1  ;;  %v15974_v24 = vadd.f32 %v7352_v46, %v7128_v41 }
 0x323   : > { %v7134_v36 = vadd.f32 %v11950_v11, %v15821_v55  ;;  %v11979_v58 = vpop.f32.mrf.mxu0 }
 0x324   : > { %v7071_v49 = vpop.f32.mrf.mxu1  ;;  %v15977_v6 = vadd.f32 %v11979_v58, %v7133_v45 }
 0x325   : > { %v7132_v38 = vadd.f32 %v7071_v49, %v15833_v19  ;;  %v7365_v60 = vpop.f32.mrf.mxu0 }
 0x326   : > { %v11953_v10 = vpop.f32.mrf.mxu1  ;;  %v15980_v1 = vadd.f32 %v7365_v60, %v7131_v23 }
 0x327   : > { %v7137_v16 = vadd.f32 %v11953_v10, %v15838_v0  ;;  %v11980_v47 = vpop.f32.mrf.mxu0 }
 0x328   : > { %v7084_v25 = vpop.f32.mrf.mxu1  ;;  %v15983_v54 = vadd.f32 %v11980_v47, %v7134_v36 }
 0x329   : > { %v7135_v43 = vadd.f32 %v7084_v25, %v15844_v18  ;;  %v7368_v51 = vpop.f32.mrf.mxu0 }
 0x32a   : > { %v11954_v55 = vpop.f32.mrf.mxu1  ;;  %v15986_v52 = vadd.f32 %v7368_v51, %v7132_v38 }
 0x32b   : > { %v7138_v28 = vadd.f32 %v11954_v55, %v15851_v3  ;;  %v11983_v40 = vpop.f32.mrf.mxu0 }
 0x32c   : > { %v7087_v19 = vpop.f32.mrf.mxu1  ;;  %v15989_v27 = vadd.f32 %v11983_v40, %v7137_v16 }
 0x32d   : > { %v7136_v15 = vadd.f32 %v7087_v19, %v15863_v50  ;;  %v7381_v26 = vpop.f32.mrf.mxu0 }
 0x32e   : > { %v11957_v0 = vpop.f32.mrf.mxu1  ;;  %v15992_v44 = vadd.f32 %v7381_v26, %v7135_v43 }
 0x32f   : > { %v7141_v2 = vadd.f32 %v11957_v0, %v15868_v20  ;;  %v11984_v39 = vpop.f32.mrf.mxu0 }
 0x330   : > { %v7100_v18 = vpop.f32.mrf.mxu1  ;;  %v15995_v32 = vadd.f32 %v11984_v39, %v7138_v28 }
 0x331   : > { %v7139_v9 = vadd.f32 %v7100_v18, %v15874_v17  ;;  %v7384_v62 = vpop.f32.mrf.mxu0 }
 0x332   : > { %v11958_v3 = vpop.f32.mrf.mxu1  ;;  %v15998_v21 = vadd.f32 %v7384_v62, %v7136_v15 }
 0x333   : > { %v7142_v5 = vadd.f32 %v11958_v3, %v15881_v57  ;;  %v11987_v61 = vpop.f32.mrf.mxu0 }
 0x334   : > { %v7103_v50 = vpop.f32.mrf.mxu1  ;;  %v16001_v41 = vadd.f32 %v11987_v61, %v7141_v2 }
 0x335   : > { %v7140_v42 = vadd.f32 %v7103_v50, %v15893_v13  ;;  %v7397_v34 = vpop.f32.mrf.mxu0 }
 0x336   : > { %v11993_v20 = vpop.f32.mrf.mxu1  ;;  %v16004_v45 = vadd.f32 %v7397_v34, %v7139_v9 }
 0x337   : > { %v7874_v53 = vadd.f32 %v11993_v20, %v15898_v29  ;;  %v11988_v37 = vpop.f32.mrf.mxu0 }
 0x338   : > { %v7761_v17 = vpop.f32.mrf.mxu1  ;;  %v16007_v23 = vadd.f32 %v11988_v37, %v7142_v5 }
 0x339   : > { %v7872_v46 = vadd.f32 %v7761_v17, %v15904_v4  ;;  %v7400_v11 = vpop.f32.mrf.mxu0 }
 0x33a   : > { %v11994_v57 = vpop.f32.mrf.mxu1  ;;  %v16010_v36 = vadd.f32 %v7400_v11, %v7140_v42 }
 0x33b   : > { %v7875_v58 = vadd.f32 %v11994_v57, %v15913_v30  ;;  %v12023_v49 = vpop.f32.mrf.mxu0 }
 0x33c   : > { %v7764_v13 = vpop.f32.mrf.mxu1  ;;  %v16013_v38 = vadd.f32 %v12023_v49, %v7874_v53 }
 0x33d   : > { %v7873_v60 = vadd.f32 %v7764_v13, %v15923_v12  ;;  %v8018_v10 = vpop.f32.mrf.mxu0 }
 0x33e   : > { %v11997_v29 = vpop.f32.mrf.mxu1  ;;  %v16016_v16 = vadd.f32 %v8018_v10, %v7872_v46 }
 0x33f   : > { %v7878_v47 = vadd.f32 %v11997_v29, %v15928_v63  ;;  %v12024_v25 = vpop.f32.mrf.mxu0 }
 0x340   : > { %v7777_v4 = vpop.f32.mrf.mxu1  ;;  %v16019_v43 = vadd.f32 %v12024_v25, %v7875_v58 }
 0x341   : > { %v7876_v51 = vadd.f32 %v7777_v4, %v15934_v56  ;;  %v8021_v55 = vpop.f32.mrf.mxu0 }
 0x342   : > { %v11998_v30 = vpop.f32.mrf.mxu1  ;;  %v16022_v28 = vadd.f32 %v8021_v55, %v7873_v60 }
 0x343   : > { %v7879_v40 = vadd.f32 %v11998_v30, %v15939_v59  ;;  %v12027_v19 = vpop.f32.mrf.mxu0 }
 0x344   : > { %v7780_v12 = vpop.f32.mrf.mxu1  ;;  %v16025_v15 = vadd.f32 %v12027_v19, %v7878_v47 }
 0x345   : > { %v7877_v26 = vadd.f32 %v7780_v12, %v15944_v33  ;;  %v8034_v0 = vpop.f32.mrf.mxu0 }
 0x346   : > { %v12001_v63 = vpop.f32.mrf.mxu1  ;;  %v16028_v2 = vadd.f32 %v8034_v0, %v7876_v51 }
 0x347   : > { %v7882_v39 = vadd.f32 %v12001_v63, %v15949_v31  ;;  %v12028_v18 = vpop.f32.mrf.mxu0 }
 0x348   : > { %v7793_v56 = vpop.f32.mrf.mxu1  ;;  %v16031_v9 = vadd.f32 %v12028_v18, %v7879_v40 }
 0x349   : > { %v7880_v62 = vadd.f32 %v7793_v56, %v15954_v8  ;;  %v8037_v3 = vpop.f32.mrf.mxu0 }
 0x34a   : > { %v12002_v59 = vpop.f32.mrf.mxu1  ;;  %v16034_v5 = vadd.f32 %v8037_v3, %v7877_v26 }
 0x34b   : > { %v7883_v61 = vadd.f32 %v12002_v59, %v15957_v35  ;;  %v12031_v50 = vpop.f32.mrf.mxu0 }
 0x34c   : > { %v7796_v33 = vpop.f32.mrf.mxu1  ;;  %v16037_v42 = vadd.f32 %v12031_v50, %v7882_v39 }
 0x34d   : > { %v7881_v34 = vadd.f32 %v7796_v33, %v15961_v22  ;;  %v8050_v20 = vpop.f32.mrf.mxu0 }
 0x34e   : > { %v12005_v31 = vpop.f32.mrf.mxu1  ;;  %v16040_v53 = vadd.f32 %v8050_v20, %v7880_v62 }
 0x34f   : > { %v7886_v37 = vadd.f32 %v12005_v31, %v15965_v7  ;;  %v12032_v17 = vpop.f32.mrf.mxu0 }
 0x350   : > { %v7809_v8 = vpop.f32.mrf.mxu1  ;;  %v16043_v46 = vadd.f32 %v12032_v17, %v7883_v61 }
 0x351   : > { %v7884_v11 = vadd.f32 %v7809_v8, %v15968_v14  ;;  %v8053_v57 = vpop.f32.mrf.mxu0 }
 0x352   : > { %v12006_v35 = vpop.f32.mrf.mxu1  ;;  %v16046_v58 = vadd.f32 %v8053_v57, %v7881_v34 }
 0x353   : > { %v7887_v49 = vadd.f32 %v12006_v35, %v15971_v48  ;;  %v12035_v13 = vpop.f32.mrf.mxu0 }
 0x354   : > { %v7812_v22 = vpop.f32.mrf.mxu1  ;;  %v16049_v60 = vadd.f32 %v12035_v13, %v7886_v37 }
 0x355   : > { %v7885_v10 = vadd.f32 %v7812_v22, %v15974_v24  ;;  %v8066_v29 = vpop.f32.mrf.mxu0 }
 0x356   : > { %v12009_v7 = vpop.f32.mrf.mxu1  ;;  %v16052_v47 = vadd.f32 %v8066_v29, %v7884_v11 }
 0x357   : > { %v7890_v25 = vadd.f32 %v12009_v7, %v15977_v6  ;;  %v12036_v4 = vpop.f32.mrf.mxu0 }
 0x358   : > { %17009 = vst [vmem:[#allocation21_spill] sm:$0xff] %v16052_v47  ;;  %v7825_v14 = vpop.f32.mrf.mxu1  ;;  %v16055_v51 = vadd.f32 %v12036_v4, %v7887_v49 }
 0x359   : > { %v7888_v55 = vadd.f32 %v7825_v14, %v15980_v1  ;;  %v8069_v30 = vpop.f32.mrf.mxu0 }
 0x35a   : > { %v12010_v48 = vpop.f32.mrf.mxu1  ;;  %v16058_v40 = vadd.f32 %v8069_v30, %v7885_v10 }
 0x35b   : > { %v7891_v19 = vadd.f32 %v12010_v48, %v15983_v54  ;;  %v12039_v12 = vpop.f32.mrf.mxu0 }
 0x35c   : > { %v7828_v24 = vpop.f32.mrf.mxu1  ;;  %v16061_v26 = vadd.f32 %v12039_v12, %v7890_v25 }
 0x35d   : > { %v7889_v0 = vadd.f32 %v7828_v24, %v15986_v52  ;;  %v8082_v63 = vpop.f32.mrf.mxu0 }
 0x35e   : > { %v12013_v6 = vpop.f32.mrf.mxu1  ;;  %v16064_v39 = vadd.f32 %v8082_v63, %v7888_v55 }
 0x35f   : > { %v7894_v18 = vadd.f32 %v12013_v6, %v15989_v27  ;;  %v12040_v56 = vpop.f32.mrf.mxu0 }
 0x360   : > { %v7841_v1 = vpop.f32.mrf.mxu1  ;;  %v16067_v62 = vadd.f32 %v12040_v56, %v7891_v19 }
 0x361   : > { %v7892_v3 = vadd.f32 %v7841_v1, %v15992_v44  ;;  %v8085_v59 = vpop.f32.mrf.mxu0 }
 0x362   : > { %v12014_v54 = vpop.f32.mrf.mxu1  ;;  %v16070_v61 = vadd.f32 %v8085_v59, %v7889_v0 }
 0x363   : > { %v7895_v50 = vadd.f32 %v12014_v54, %v15995_v32  ;;  %v12043_v33 = vpop.f32.mrf.mxu0 }
 0x364   : > { %v7844_v52 = vpop.f32.mrf.mxu1  ;;  %v16073_v34 = vadd.f32 %v12043_v33, %v7894_v18 }
 0x365   : > { %v7893_v20 = vadd.f32 %v7844_v52, %v15998_v21  ;;  %v8098_v31 = vpop.f32.mrf.mxu0 }
 0x366   : > { %v12017_v27 = vpop.f32.mrf.mxu1  ;;  %v16076_v37 = vadd.f32 %v8098_v31, %v7892_v3 }
 0x367   : > { %v7898_v17 = vadd.f32 %v12017_v27, %v16001_v41  ;;  %v12044_v8 = vpop.f32.mrf.mxu0 }
 0x368   : > { %v7857_v44 = vpop.f32.mrf.mxu1  ;;  %v16079_v11 = vadd.f32 %v12044_v8, %v7895_v50 }
 0x369   : > { %v7896_v57 = vadd.f32 %v7857_v44, %v16004_v45  ;;  %v8101_v35 = vpop.f32.mrf.mxu0 }
 0x36a   : > { %v12018_v32 = vpop.f32.mrf.mxu1  ;;  %v16082_v49 = vadd.f32 %v8101_v35, %v7893_v20 }
 0x36b   : > { %v7899_v13 = vadd.f32 %v12018_v32, %v16007_v23  ;;  %v12047_v22 = vpop.f32.mrf.mxu0 }
 0x36c   : > { %v7860_v21 = vpop.f32.mrf.mxu1  ;;  %v16085_v10 = vadd.f32 %v12047_v22, %v7898_v17  ;;  %v12414_v17 = vmov 0.0  }
 0x36d   : > { %v7897_v29 = vadd.f32 %v7860_v21, %v16010_v36  ;;  %v8114_v7 = vpop.f32.mrf.mxu0  ;;  %9909 = vst.msk [vmem:[%s16142_s9] sm:$0xff] %vm763_vm2, %v12414_v17 }
 0x36e   : > { %v16088_v41 = vpop.f32.mrf.mxu1  ;;  %v16090_v25 = vadd.f32 %v8114_v7, %v7896_v57 }
 0x36f   : > { %v12048_v4 = vpop.f32.mrf.mxu0 }
 0x370   : > { %v16092_v14 = vpop.f32.mrf.mxu1  ;;  %v16094_v45 = vadd.f32 %v12048_v4, %v7899_v13 }
 0x371   : > { %v8117_v55 = vpop.f32.mrf.mxu0 }
 0x372   : > { %v16096_v30 = vpop.f32.mrf.mxu1  ;;  %v16098_v23 = vadd.f32 %v8117_v55, %v7897_v29 }
 0x373   : > { %v16100_v48 = vpop.f32.mrf.mxu0 }
 0x374   : > { %v16102_v19 = vpop.f32.mrf.mxu1 }
 0x375   : > { %v16104_v36 = vpop.f32.mrf.mxu0 }
 0x376   : > { %v16106_v12 = vpop.f32.mrf.mxu1 }
 0x377   : > { %v16108_v24 = vpop.f32.mrf.mxu0 }
 0x378   : > { %v16110_v0 = vpop.f32.mrf.mxu1 }
 0x379   : > { %v16112_v63 = vpop.f32.mrf.mxu0 }
 0x37a   : > { %v16114_v6 = vpop.f32.mrf.mxu1 }
 0x37b   : > { %v16116_v18 = vpop.f32.mrf.mxu0 }
 0x37c   : > { %v16118_v56 = vpop.f32.mrf.mxu1 }
 0x37d   : > { %v16120_v1 = vpop.f32.mrf.mxu0 }
 0x37e   : > { %v16122_v3 = vpop.f32.mrf.mxu1 }
 0x37f   : > { %v16124_v59 = vpop.f32.mrf.mxu0 }
 0x380   : > { %v16126_v54 = vpop.f32.mrf.mxu1 }
 0x381   : > { %v16128_v50 = vpop.f32.mrf.mxu0 }
 0x382   : > { %v16130_v33 = vpop.f32.mrf.mxu1 }
 0x383   : > { %v16132_v52 = vpop.f32.mrf.mxu0 }
 0x384   : > { %v16134_v20 = vpop.f32.mrf.mxu1 }
 0x385   : > { %v16137_v31 = vpop.f32.mrf.mxu0 }
 0x386   : > { %17010 = vst [vmem:[#allocation26_spill] sm:$0xff] %v16137_v31  ;;  %v16144_v27 = vpop.f32.mrf.mxu1 }
 0x387   : > { %v16148_v8 = vpop.f32.mrf.mxu0 }
 0x388   : > { %17011 = vst [vmem:[#allocation17_spill] sm:$0xff] %v16148_v8  ;;  %v16150_v44 = vpop.f32.mrf.mxu1 }
 0x389   : > { %17012 = vst [vmem:[#allocation6_spill] sm:$0xff] %v16150_v44  ;;  %v16152_v57 = vpop.f32.mrf.mxu0 }
 0x38a   : > { %17013 = vst [vmem:[#allocation10_spill] sm:$0xff] %v16152_v57  ;;  %v12066_v35 = vpop.f32.mrf.mxu1 }
 0x38b   : > { %v8441_v32 = vadd.f32 %v12066_v35, %v16055_v51  ;;  %v16155_v13 = vpop.f32.mrf.mxu0 }
 0x38c   : > { %17014 = vst [vmem:[#allocation27_spill] sm:$0xff] %v16155_v13  ;;  %v8366_v22 = vpop.f32.mrf.mxu1 }
 0x38d   : > { %v8439_v21 = vadd.f32 %v8366_v22, %v16058_v40  ;;  %v16158_v29 = vpop.f32.mrf.mxu0 }
 0x38e   : > { %17015 = vst [vmem:[#allocation3_spill] sm:$0xff] %v16158_v29  ;;  %v12069_v7 = vpop.f32.mrf.mxu1 }
 0x38f   : > { %v8444_v4 = vadd.f32 %v12069_v7, %v16061_v26  ;;  %v12096_v55 = vpop.f32.mrf.mxu0 }
 0x390   : > { %v8379_v17 = vpop.f32.mrf.mxu1  ;;  %v16161_v8 = vadd.f32 %v12096_v55, %v8441_v32 }
 0x391   : > { %v8442_v44 = vadd.f32 %v8379_v17, %v16064_v39  ;;  %v8808_v57 = vpop.f32.mrf.mxu0 }
 0x392   : > { %v12070_v47 = vpop.f32.mrf.mxu1  ;;  %v16164_v31 = vadd.f32 %v8808_v57, %v8439_v21 }
 0x393   : > { %v8445_v51 = vadd.f32 %v12070_v47, %v16067_v62  ;;  %v12099_v35 = vpop.f32.mrf.mxu0 }
 0x394   : > { %v8382_v13 = vpop.f32.mrf.mxu1  ;;  %v16167_v40 = vadd.f32 %v12099_v35, %v8444_v4 }
 0x395   : > { %v8443_v22 = vadd.f32 %v8382_v13, %v16070_v61  ;;  %v8821_v29 = vpop.f32.mrf.mxu0 }
 0x396   : > { %v12073_v26 = vpop.f32.mrf.mxu1  ;;  %v16170_v7 = vadd.f32 %v8821_v29, %v8442_v44 }
 0x397   : > { %v8448_v32 = vadd.f32 %v12073_v26, %v16073_v34  ;;  %v12100_v55 = vpop.f32.mrf.mxu0 }
 0x398   : > { %v8395_v39 = vpop.f32.mrf.mxu1  ;;  %v16173_v17 = vadd.f32 %v12100_v55, %v8445_v51 }
 0x399   : > { %v8446_v57 = vadd.f32 %v8395_v39, %v16076_v37  ;;  %v8824_v21 = vpop.f32.mrf.mxu0 }
 0x39a   : > { %v12074_v47 = vpop.f32.mrf.mxu1  ;;  %v16176_v62 = vadd.f32 %v8824_v21, %v8443_v22  ;;  %v16187_v22 = vpop.permute.xlu0 %9626 }
 0x39b   : > { %v8449_v4 = vadd.f32 %v12074_v47, %v16079_v11  ;;  %v12103_v35 = vpop.f32.mrf.mxu0  ;;  %vm9709_vm3 = vcmp.eq.s32.totalorder %v16187_v22, 1 }
 0x39c   : > { %v8398_v61 = vpop.f32.mrf.mxu1  ;;  %v16179_v13 = vadd.f32 %v12103_v35, %v8448_v32 }
 0x39d   : > { %v8447_v44 = vadd.f32 %v8398_v61, %v16082_v49  ;;  %v8837_v29 = vpop.f32.mrf.mxu0 }
 0x39e   : > { %v12077_v34 = vpop.f32.mrf.mxu1  ;;  %v16182_v26 = vadd.f32 %v8837_v29, %v8446_v57 }
 0x39f   : > { %v8452_v51 = vadd.f32 %v12077_v34, %v16085_v10  ;;  %v12104_v55 = vpop.f32.mrf.mxu0  ;;  %v16198_v34 = vpop.permute.xlu1 %9632 }
 0x3a0   : > { %v8411_v37 = vpop.f32.mrf.mxu1  ;;  %v16185_v39 = vadd.f32 %v12104_v55, %v8449_v4  ;;  %v8428_v4 = vadd.f32 %v16088_v41, %v16013_v38  ;;  %v8427_v41 = vadd.f32 %v16102_v19, %v16022_v28  ;;  %vm9711_vm5 = vcmp.eq.s32.totalorder %v16198_v34, 1  ;;  %v16225_v28 = vld [vmem:[%s16585_s1] ss:$0 sm:$0xff] }
 0x3a1   : > { %v8450_v11 = vadd.f32 %v8411_v37, %v16090_v25  ;;  %v8840_v21 = vpop.f32.mrf.mxu0  ;;  %v16202_v37 = vpop.permute.xlu0 %9629 }
 0x3a2   : > { %v12078_v47 = vpop.f32.mrf.mxu1  ;;  %v16190_v32 = vadd.f32 %v8840_v21, %v8447_v44  ;;  %vm9710_vm8 = vcmp.eq.s32.totalorder %v16202_v37, 1 }
 0x3a3   : > { %v8453_v49 = vadd.f32 %v12078_v47, %v16094_v45  ;;  %v12107_v35 = vpop.f32.mrf.mxu0  ;;  %v8426_v45 = vadd.f32 %v16092_v14, %v16016_v16  ;;  %v8432_v16 = vadd.f32 %v16106_v12, %v16025_v15  ;;  %v8430_v14 = vadd.f32 %v16110_v0, %v16028_v2  ;;  %v16229_v19 = vpop.permute.xlu1 %9635 }
 0x3a4   : > { %v8414_v61 = vpop.f32.mrf.mxu1  ;;  %v16193_v57 = vadd.f32 %v12107_v35, %v8452_v51  ;;  %v8870_v51 = vadd.f32 %v16100_v48, %v8428_v4  ;;  %v8869_v48 = vadd.f32 %v16112_v63, %v8427_v41  ;;  %v8433_v2 = vadd.f32 %v16114_v6, %v16031_v9 }
 0x3a5   : > { %v8451_v10 = vadd.f32 %v8414_v61, %v16098_v23  ;;  %v8853_v29 = vpop.f32.mrf.mxu0  ;;  %v8429_v23 = vadd.f32 %v16096_v30, %v16019_v43  ;;  %v8431_v0 = vadd.f32 %v16118_v56, %v16034_v5  ;;  %vm9712_vm7 = vcmp.eq.s32.totalorder %v16229_v19, 1 }
 0x3a6   : > { %v12113_v55 = vpop.f32.mrf.mxu1  ;;  %v16200_v25 = vadd.f32 %v8853_v29, %v8450_v11  ;;  %v8868_v11 = vadd.f32 %v16104_v36, %v8426_v45  ;;  %v8436_v4 = vadd.f32 %v16122_v3, %v16037_v42  ;;  %v8434_v5 = vadd.f32 %v16126_v54, %v16040_v53 }
 0x3a7   : > { %v12108_v44 = vpop.f32.mrf.mxu0  ;;  %v9127_v35 = vadd.f32 %v12113_v55, %v8870_v51  ;;  %v8871_v30 = vadd.f32 %v16108_v24, %v8429_v23  ;;  %v16238_v24 = vpop.permute.xlu0 %9638  ;;  %v8875_v6 = vadd.f32 %v16124_v59, %v8433_v2  ;;  %v8873_v56 = vadd.f32 %v16128_v50, %v8431_v0 }
 0x3a8   : > { %v9014_v21 = vpop.f32.mrf.mxu1  ;;  %v16207_v47 = vadd.f32 %v12108_v44, %v8453_v49  ;;  %v8874_v49 = vadd.f32 %v16116_v18, %v8432_v16  ;;  %v8437_v18 = vadd.f32 %v16130_v33, %v16043_v46  ;;  %v8878_v41 = vadd.f32 %v16132_v52, %v8436_v4  ;;  %v17016_v46 = vld [vmem:[#allocation26_spill] sm:$0xff]  ;;  %v17017_v16 = vld [vmem:[#allocation21_spill] sm:$0xff]  ;;  %v17021_v4 = vld [vmem:[#allocation27_spill] sm:$0xff] }
 0x3a9   : > { %v8856_v38 = vpop.f32.mrf.mxu0  ;;  %v9125_v15 = vadd.f32 %v9014_v21, %v8868_v11  ;;  %v8440_v53 = vadd.f32 %v16144_v27, %v16049_v60  ;;  %v16257_v59 = vadd.f32 %v17016_v46, %v8434_v5  ;;  %v17019_v52 = vld [vmem:[#allocation17_spill] sm:$0xff]  ;;  %vm9713_vm9 = vcmp.eq.s32.totalorder %v16238_v24, 1 }
 0x3aa   : > { %v12114_v61 = vpop.f32.mrf.mxu1  ;;  %v16214_v29 = vadd.f32 %v8856_v38, %v8451_v10  ;;  %v8872_v10 = vadd.f32 %v16120_v1, %v8430_v14  ;;  %v8435_v38 = vadd.f32 %v16134_v20, %v16046_v58  ;;  %v17018_v58 = vld [vmem:[#allocation6_spill] sm:$0xff]  ;;  %v16263_v14 = vadd.f32 %v17019_v52, %v8437_v18 }
 0x3ab   : > { %v12143_v43 = vpop.f32.mrf.mxu0  ;;  %v9128_v55 = vadd.f32 %v12114_v61, %v8871_v30  ;;  %v8438_v20 = vadd.f32 %v17018_v58, %v17017_v16  ;;  %v16268_v60 = vpop.permute.xlu0 %9644 }
 0x3ac   : > { %v9017_v36 = vpop.f32.mrf.mxu1  ;;  %v9424_v12 = vadd.f32 %v12143_v43, %v9127_v35  ;;  %v17020_v43 = vld [vmem:[#allocation10_spill] sm:$0xff]  ;;  %vm9715_vm4 = vcmp.eq.s32.totalorder %v16268_v60, 1 }
 0x3ad   : > { %v9311_v63 = vpop.f32.mrf.mxu0  ;;  %v9126_v51 = vadd.f32 %v9017_v36, %v8869_v48  ;;  %v16266_v30 = vadd.f32 %v17020_v43, %v8435_v38 }
 0x3ae   : > { %v9459_v44 = vadd.f32 %v16225_v28, %v9424_v12  ;;  %v12117_v45 = vpop.f32.mrf.mxu1  ;;  %v9422_v9 = vadd.f32 %v9311_v63, %v9125_v15  ;;  %v16270_v15 = vpop.permute.xlu1 %9641 }
 0x3af   : > { %v12144_v1 = vpop.f32.mrf.mxu0  ;;  %v9131_v27 = vadd.f32 %v12117_v45, %v8874_v49  ;;  %v16283_v49 = vadd.f32 %v17021_v4, %v8440_v53  ;;  %vm9714_vm11 = vcmp.eq.s32.totalorder %v16270_v15, 1 }
 0x3b0   : > { %v9487_v21 = vmul.f32 0.01, %v9459_v44  ;;  %v9457_v42 = vadd.f32 %v16225_v28, %v9422_v9  ;;  %v9030_v3 = vpop.f32.mrf.mxu1  ;;  %v9425_v23 = vadd.f32 %v12144_v1, %v9128_v55  ;;  %v17022_v55 = vld [vmem:[#allocation3_spill] sm:$0xff] }
 0x3b1   : > { %v9314_v54 = vpop.f32.mrf.mxu0  ;;  %v9129_v38 = vadd.f32 %v9030_v3, %v8872_v10 }
 0x3b2   : > { %v9515_v50 = vmax.f32 %v9459_v44, %v9487_v21  ;;  %v9485_v33 = vmul.f32 0.01, %v9457_v42  ;;  %v9460_v11 = vadd.f32 %v16225_v28, %v9425_v23  ;;  %v12118_v35 = vpop.f32.mrf.mxu1  ;;  %v9423_v61 = vadd.f32 %v9314_v54, %v9126_v51 }
 0x3b3   : > { %v12147_v48 = vpop.f32.mrf.mxu0  ;;  %v16287_v44 = vadd.f32 %v17022_v55, %v8438_v20  ;;  %v9132_v53 = vadd.f32 %v12118_v35, %v8875_v6  ;;  %v16304_v35 = vpop.permute.xlu1 %9647 }
 0x3b4   : > { %v9739_v36 = vsel %vm9711_vm5, %v9515_v50, 0.0  ;;  %v9513_v12 = vmax.f32 %v9457_v42, %v9485_v33  ;;  %v9488_v2 = vmul.f32 0.01, %v9460_v11  ;;  %v9458_v0 = vadd.f32 %v16225_v28, %v9423_v61  ;;  %v9033_v63 = vpop.f32.mrf.mxu1  ;;  %v16298_v61 = vpop.permute.xlu0 %9650 }
 0x3b5   : > { %v10928_v45 = vpack.c.bf16 %v9739_v36, %v9739_v36  ;;  %v9978_v9 = vmul.f32 %v9739_v36, %v9739_v36  ;;  %v9327_v5 = vpop.f32.mrf.mxu0  ;;  %v9428_v51 = vadd.f32 %v12147_v48, %v9131_v27  ;;  %v9914_v42 = vsel %vm763_vm2, %v9739_v36, 0.0 }
 0x3b6   : > { %v9737_v34 = vsel %vm9709_vm3, %v9513_v12, 0.0  ;;  %v9516_v18 = vmax.f32 %v9460_v11, %v9488_v2  ;;  %v9486_v1 = vmul.f32 0.01, %v9458_v0  ;;  %v12121_v21 = vpop.f32.mrf.mxu1  ;;  %v9130_v33 = vadd.f32 %v9033_v63, %v8873_v56 }
 0x3b7   : > { %9879 = vst.msk [vmem:[%s16277_s16 + $0x8] sm:$0xf] %vm478_vm0, %v10928_v45  ;;  %v10926_v23 = vpack.c.bf16 %v9737_v34, %v9737_v34  ;;  %v12148_v46 = vpop.f32.mrf.mxu0  ;;  %v9463_v22 = vadd.f32 %v16225_v28, %v9428_v51  ;;  %v10007_v16 = vsel %vm763_vm2, %v9978_v9, 0.0  ;;  %v9911_v10 = vsel %vm763_vm2, %v9737_v34, 0.0 }
 0x3b8   : > { %v9740_v54 = vsel %vm9712_vm7, %v9516_v18, 0.0  ;;  %v9514_v50 = vmax.f32 %v9458_v0, %v9486_v1  ;;  %v9046_v11 = vpop.f32.mrf.mxu1  ;;  %v9976_v6 = vmul.f32 %v9737_v34, %v9737_v34  ;;  %v9135_v20 = vadd.f32 %v12121_v21, %v8878_v41 }
 0x3b9   : > { %9877 = vst.msk [vmem:[%s16277_s16] sm:$0xf] %vm478_vm0, %v10926_v23  ;;  %v10929_v3 = vpack.c.bf16 %v9740_v54, %v9740_v54  ;;  %v9330_v19 = vpop.f32.mrf.mxu0  ;;  %v9491_v58 = vmul.f32 0.01, %v9463_v22  ;;  %v9426_v52 = vadd.f32 %v9327_v5, %v9129_v38  ;;  %v9979_v27 = vmul.f32 %v9740_v54, %v9740_v54  ;;  %v16323_v38 = vpop.permute.xlu0 %9656 }
 0x3ba   : > { %v9738_v56 = vsel %vm9710_vm8, %v9514_v50, 0.0  ;;  %v12122_v43 = vpop.f32.mrf.mxu1  ;;  %vm9716_vm10 = vcmp.eq.s32.totalorder %v16304_v35, 1  ;;  %v9429_v4 = vadd.f32 %v12148_v46, %v9132_v53  ;;  %v10004_v41 = vsel %vm763_vm2, %v9976_v6, 0.0 }
 0x3bb   : > { %9880 = vst.msk [vmem:[%s16277_s16 + $0xc] sm:$0xf] %vm478_vm0, %v10929_v3  ;;  %v10927_v48 = vpack.c.bf16 %v9738_v56, %v9738_v56  ;;  %v9912_v36 = vsel %vm763_vm2, %v9738_v56, 0.0  ;;  %v9977_v12 = vmul.f32 %v9738_v56, %v9738_v56  ;;  %v12151_v2 = vpop.f32.mrf.mxu0  ;;  %v9519_v63 = vmax.f32 %v9463_v22, %v9491_v58  ;;  %v16328_v22 = vpop.permute.xlu1 %9653 }
 0x3bc   : > { %v9913_v0 = vadd.f32 %v9912_v36, %v9911_v10  ;;  %v9461_v37 = vadd.f32 %v16225_v28, %v9426_v52  ;;  %v9049_v55 = vpop.f32.mrf.mxu1  ;;  %v9916_v45 = vsel %vm763_vm2, %v9740_v54, 0.0  ;;  %v9427_v5 = vadd.f32 %v9330_v19, %v9130_v33 }
 0x3bd   : > { %9878 = vst.msk [vmem:[%s16277_s16 + $0x4] sm:$0xf] %vm478_vm0, %v10927_v48  ;;  %v10005_v9 = vsel %vm763_vm2, %v9977_v12, 0.0  ;;  %v9343_v34 = vpop.f32.mrf.mxu0  ;;  %v9743_v51 = vsel %vm9715_vm4, %v9519_v63, 0.0  ;;  %v10009_v53 = vsel %vm763_vm2, %v9979_v27, 0.0  ;;  %v9133_v54 = vadd.f32 %v9046_v11, %v16257_v59 }
 0x3be   : > { %v9915_v18 = vadd.f32 %v9914_v42, %v9913_v0  ;;  %v10006_v1 = vadd.f32 %v10005_v9, %v10004_v41  ;;  %v9489_v21 = vmul.f32 0.01, %v9461_v37  ;;  %v16321_v23 = vpop.f32.mrf.mxu1  ;;  %v10932_v46 = vpack.c.bf16 %v9743_v51, %v9743_v51  ;;  %v16347_v41 = vpop.permute.xlu0 %9662 }
 0x3bf   : > { %v9464_v50 = vadd.f32 %v16225_v28, %v9429_v4  ;;  %v12152_v33 = vpop.f32.mrf.mxu0  ;;  %v9462_v6 = vadd.f32 %v16225_v28, %v9427_v5  ;;  %v9982_v19 = vmul.f32 %v9743_v51, %v9743_v51  ;;  %v9136_v58 = vadd.f32 %v12122_v43, %v16263_v14 }
 0x3c0   : > { %v10008_v42 = vadd.f32 %v10007_v16, %v10006_v1  ;;  %v9517_v10 = vmax.f32 %v9461_v37, %v9489_v21  ;;  %v9917_v60 = vadd.f32 %v9916_v45, %v9915_v18  ;;  %v9062_v3 = vpop.f32.mrf.mxu1  ;;  %9883 = vst.msk [vmem:[%s16277_s16 + $0x18] sm:$0xf] %vm478_vm0, %v10932_v46  ;;  %v9432_v52 = vadd.f32 %v12151_v2, %v9135_v20  ;;  %v9660_v1 = vpop.permute.xlu1 %9659 }
 0x3c1   : > { %v9492_v56 = vmul.f32 0.01, %v9464_v50  ;;  %v9346_v27 = vpop.f32.mrf.mxu0  ;;  %vm9717_vm12 = vcmp.eq.s32.totalorder %v16298_v61, 1  ;;  %vm9719_vm6 = vcmp.eq.s32.totalorder %v16323_v38, 1  ;;  %v9490_v16 = vmul.f32 0.01, %v9462_v6 }
 0x3c2   : > { %v9741_v59 = vsel %vm9713_vm9, %v9517_v10, 0.0  ;;  %v10010_v11 = vadd.f32 %v10009_v53, %v10008_v42  ;;  %v9430_v48 = vadd.f32 %v9343_v34, %v9133_v54  ;;  %v16338_v36 = vpop.f32.mrf.mxu1  ;;  %v9467_v37 = vadd.f32 %v16225_v28, %v9432_v52 }
 0x3c3   : > { %v10930_v12 = vpack.c.bf16 %v9741_v59, %v9741_v59  ;;  %v9918_v0 = vsel %vm763_vm2, %v9741_v59, 0.0  ;;  %v9980_v63 = vmul.f32 %v9741_v59, %v9741_v59  ;;  %v9520_v14 = vmax.f32 %v9464_v50, %v9492_v56  ;;  %v16341_v20 = vpop.f32.mrf.mxu0 }
 0x3c4   : > { %v9919_v43 = vadd.f32 %v9918_v0, %v9917_v60  ;;  %v9518_v2 = vmax.f32 %v9462_v6, %v9490_v16  ;;  %v9465_v24 = vadd.f32 %v16225_v28, %v9430_v48  ;;  %v16345_v4 = vpop.f32.mrf.mxu1  ;;  %v9134_v5 = vadd.f32 %v9049_v55, %v16266_v30  ;;  %v16376_v0 = vpop.permute.xlu0 %9668 }
 0x3c5   : > { %9881 = vst.msk [vmem:[%s16277_s16 + $0x10] sm:$0xf] %vm478_vm0, %v10930_v12  ;;  %v10011_v45 = vsel %vm763_vm2, %v9980_v63, 0.0  ;;  %v9744_v9 = vsel %vm9716_vm10, %v9520_v14, 0.0  ;;  %v9433_v34 = vadd.f32 %v12152_v33, %v9136_v58  ;;  %v9359_v18 = vpop.f32.mrf.mxu0  ;;  %v9922_v21 = vsel %vm763_vm2, %v9743_v51, 0.0 }
 0x3c6   : > { %v10015_v53 = vsel %vm763_vm2, %v9982_v19, 0.0  ;;  %v10012_v46 = vadd.f32 %v10011_v45, %v10010_v11  ;;  %v10933_v54 = vpack.c.bf16 %v9744_v9, %v9744_v9  ;;  %v16357_v50 = vpop.f32.mrf.mxu1  ;;  %vm9720_vm13 = vcmp.eq.s32.totalorder %v9660_v1, 1 }
 0x3c7   : > { %v9742_v42 = vsel %vm9714_vm11, %v9518_v2, 0.0  ;;  %v9495_v35 = vmul.f32 0.01, %v9467_v37  ;;  %v9493_v10 = vmul.f32 0.01, %v9465_v24  ;;  %v9468_v30 = vadd.f32 %v16225_v28, %v9433_v34  ;;  %v16362_v55 = vpop.f32.mrf.mxu0  ;;  %v16384_v2 = vpop.permute.xlu1 %9665 }
 0x3c8   : > { %9884 = vst.msk [vmem:[%s16277_s16 + $0x1c] sm:$0xf] %vm478_vm0, %v10933_v54  ;;  %v9983_v51 = vmul.f32 %v9744_v9, %v9744_v9  ;;  %v10931_v33 = vpack.c.bf16 %v9742_v42, %v9742_v42  ;;  %v9920_v60 = vsel %vm763_vm2, %v9742_v42, 0.0  ;;  %v9981_v6 = vmul.f32 %v9742_v42, %v9742_v42  ;;  %v16367_v19 = vpop.f32.mrf.mxu1 }
 0x3c9   : > { %v9921_v56 = vadd.f32 %v9920_v60, %v9919_v43  ;;  %v9523_v58 = vmax.f32 %v9467_v37, %v9495_v35  ;;  %v9139_v15 = vadd.f32 %v16321_v23, %v16283_v49  ;;  %v9521_v52 = vmax.f32 %v9465_v24, %v9493_v10  ;;  %v9362_v59 = vpop.f32.mrf.mxu0 }
 0x3ca   : > { %9882 = vst.msk [vmem:[%s16277_s16 + $0x14] sm:$0xf] %vm478_vm0, %v10931_v33  ;;  %v10013_v11 = vsel %vm763_vm2, %v9981_v6, 0.0  ;;  %v9137_v16 = vadd.f32 %v9062_v3, %v16287_v44  ;;  %v9496_v48 = vmul.f32 0.01, %v9468_v30  ;;  %v9431_v12 = vadd.f32 %v9346_v27, %v9134_v5  ;;  %v16388_v24 = vpop.f32.mrf.mxu1 }
 0x3cb   : > { %vm9718_vm14 = vcmp.eq.s32.totalorder %v16328_v22, 1  ;;  %v9923_v63 = vadd.f32 %v9922_v21, %v9921_v56  ;;  %v10014_v14 = vadd.f32 %v10013_v11, %v10012_v46  ;;  %v9747_v49 = vsel %vm9719_vm6, %v9523_v58, 0.0  ;;  %v16382_v43 = vpop.f32.mrf.mxu0  ;;  %v16406_v56 = vpop.permute.xlu0 %9674 }
 0x3cc   : > { %v9745_v23 = vsel %vm9717_vm12, %v9521_v52, 0.0  ;;  %v9924_v44 = vsel %vm763_vm2, %v9744_v9, 0.0  ;;  %v10017_v3 = vsel %vm763_vm2, %v9983_v51, 0.0  ;;  %v10936_v27 = vpack.c.bf16 %v9747_v49, %v9747_v49  ;;  %v9081_v6 = vpop.f32.mrf.mxu1 }
 0x3cd   : > { %v10934_v37 = vpack.c.bf16 %v9745_v23, %v9745_v23  ;;  %vm9723_vm15 = vcmp.eq.s32.totalorder %v16376_v0, 1  ;;  %v10016_v38 = vadd.f32 %v10015_v53, %v10014_v14  ;;  %v9986_v45 = vmul.f32 %v9747_v49, %v9747_v49  ;;  %v16391_v34 = vpop.f32.mrf.mxu0 }
 0x3ce   : > { %v9925_v5 = vadd.f32 %v9924_v44, %v9923_v63  ;;  %v9984_v61 = vmul.f32 %v9745_v23, %v9745_v23  ;;  %9887 = vst.msk [vmem:[%s16277_s16 + $0x28] sm:$0xf] %vm478_vm0, %v10936_v27  ;;  %v9926_v9 = vsel %vm763_vm2, %v9745_v23, 0.0  ;;  %v9524_v21 = vmax.f32 %v9468_v30, %v9496_v48  ;;  %v12133_v44 = vpop.f32.mrf.mxu1 }
 0x3cf   : > { %9885 = vst.msk [vmem:[%s16277_s16 + $0x20] sm:$0xf] %vm478_vm0, %v10934_v37  ;;  %v9466_v46 = vadd.f32 %v16225_v28, %v9431_v12  ;;  %v9436_v54 = vadd.f32 %v16341_v20, %v9139_v15  ;;  %vm9721_vm1 = vcmp.eq.s32.totalorder %v16347_v41, 1  ;;  %v10018_v53 = vadd.f32 %v10017_v3, %v10016_v38  ;;  %v16411_v11 = vpop.f32.mrf.mxu0 }
 0x3d0   : > { %v9927_v42 = vadd.f32 %v9926_v9, %v9925_v5  ;;  %v10019_v35 = vsel %vm763_vm2, %v9984_v61, 0.0  ;;  %v9140_v10 = vadd.f32 %v16338_v36, %v16161_v8  ;;  %v9748_v51 = vsel %vm9720_vm13, %v9524_v21, 0.0  ;;  %v9672_v8 = vpop.permute.xlu1 %9671 }
 0x3d1   : > { %v9494_v33 = vmul.f32 0.01, %v9466_v46  ;;  %v9471_v60 = vadd.f32 %v16225_v28, %v9436_v54  ;;  %v9434_v30 = vadd.f32 %v9359_v18, %v9137_v16  ;;  %v9930_v20 = vsel %vm763_vm2, %v9747_v49, 0.0 }
 0x3d2   : > { %v10020_v58 = vadd.f32 %v10019_v35, %v10018_v53  ;;  %v10937_v15 = vpack.c.bf16 %v9748_v51, %v9748_v51  ;;  %v9138_v52 = vadd.f32 %v16345_v4, %v16164_v31  ;;  %v10023_v36 = vsel %vm763_vm2, %v9986_v45, 0.0  ;;  %v16431_v45 = vpop.permute.xlu0 %9680  ;;  %v9094_v35 = vpop.f32.mrf.mxu1 }
 0x3d3   : > { %v9522_v1 = vmax.f32 %v9466_v46, %v9494_v33  ;;  %v9499_v48 = vmul.f32 0.01, %v9471_v60  ;;  %v9469_v12 = vadd.f32 %v16225_v28, %v9434_v30  ;;  %vm9724_vm3 = vcmp.eq.s32.totalorder %v9672_v8, 1 }
 0x3d4   : > { %9888 = vst.msk [vmem:[%s16277_s16 + $0x2c] sm:$0xf] %vm478_vm0, %v10937_v15  ;;  %v9987_v18 = vmul.f32 %v9748_v51, %v9748_v51  ;;  %v9143_v16 = vadd.f32 %v16357_v50, %v16167_v40  ;;  %v9437_v63 = vadd.f32 %v16362_v55, %v9140_v10  ;;  %v9435_v14 = vadd.f32 %v9362_v59, %v9138_v52  ;;  %v16426_v50 = vpop.f32.mrf.mxu0  ;;  %v16439_v46 = vpop.permute.xlu1 %9677 }
 0x3d5   : > { %v9932_v31 = vsel %vm763_vm2, %v9748_v51, 0.0  ;;  %v9746_v4 = vsel %vm9718_vm14, %v9522_v1, 0.0  ;;  %v9527_v49 = vmax.f32 %v9471_v60, %v9499_v48  ;;  %v9497_v23 = vmul.f32 0.01, %v9469_v12 }
 0x3d6   : > { %vm9722_vm5 = vcmp.eq.s32.totalorder %v16384_v2, 1  ;;  %v10935_v3 = vpack.c.bf16 %v9746_v4, %v9746_v4  ;;  %v9928_v27 = vsel %vm763_vm2, %v9746_v4, 0.0  ;;  %v9985_v37 = vmul.f32 %v9746_v4, %v9746_v4  ;;  %v12163_v30 = vpop.f32.mrf.mxu0 }
 0x3d7   : > { %v9472_v40 = vadd.f32 %v16225_v28, %v9437_v63  ;;  %v9929_v55 = vadd.f32 %v9928_v27, %v9927_v42  ;;  %v9751_v22 = vsel %vm9723_vm15, %v9527_v49, 0.0  ;;  %v9525_v59 = vmax.f32 %v9469_v12, %v9497_v23  ;;  %v12134_v12 = vpop.f32.mrf.mxu1 }
 0x3d8   : > { %v9470_v38 = vadd.f32 %v16225_v28, %v9435_v14  ;;  %v10025_v5 = vsel %vm763_vm2, %v9987_v18, 0.0  ;;  %9886 = vst.msk [vmem:[%s16277_s16 + $0x24] sm:$0xf] %vm478_vm0, %v10935_v3  ;;  %v10021_v61 = vsel %vm763_vm2, %v9985_v37, 0.0  ;;  %v10940_v9 = vpack.c.bf16 %v9751_v22, %v9751_v22  ;;  %v16456_v18 = vpop.permute.xlu0 %9686 }
 0x3d9   : > { %v9141_v21 = vadd.f32 %v16367_v19, %v16170_v7  ;;  %v9931_v0 = vadd.f32 %v9930_v20, %v9929_v55  ;;  %v10022_v54 = vadd.f32 %v10021_v61, %v10020_v58  ;;  %v9749_v42 = vsel %vm9721_vm1, %v9525_v59, 0.0  ;;  %v9097_v59 = vpop.f32.mrf.mxu1 }
 0x3da   : > { %v9500_v53 = vmul.f32 0.01, %v9472_v40  ;;  %9891 = vst.msk [vmem:[%s16277_s16 + $0x38] sm:$0xf] %vm478_vm0, %v10940_v9  ;;  %v9990_v10 = vmul.f32 %v9751_v22, %v9751_v22  ;;  %v10938_v51 = vpack.c.bf16 %v9749_v42, %v9749_v42  ;;  %v9988_v33 = vmul.f32 %v9749_v42, %v9749_v42 }
 0x3db   : > { %v9144_v60 = vadd.f32 %v16388_v24, %v16173_v17  ;;  %v10024_v7 = vadd.f32 %v10023_v36, %v10022_v54  ;;  %v9933_v19 = vadd.f32 %v9932_v31, %v9931_v0  ;;  %v9498_v20 = vmul.f32 0.01, %v9470_v38 }
 0x3dc   : > { %v9528_v15 = vmax.f32 %v9472_v40, %v9500_v53  ;;  %vm9725_vm7 = vcmp.eq.s32.totalorder %v16406_v56, 1  ;;  %vm9727_vm8 = vcmp.eq.s32.totalorder %v16431_v45, 1  ;;  %9889 = vst.msk [vmem:[%s16277_s16 + $0x30] sm:$0xf] %vm478_vm0, %v10938_v51  ;;  %v9934_v41 = vsel %vm763_vm2, %v9749_v42, 0.0 }
 0x3dd   : > { %v9142_v58 = vadd.f32 %v9081_v6, %v16176_v62  ;;  %v9440_v52 = vadd.f32 %v16382_v43, %v9143_v16  ;;  %v9438_v1 = vadd.f32 %v16391_v34, %v9141_v21  ;;  %v9935_v17 = vadd.f32 %v9934_v41, %v9933_v19  ;;  %v9391_v6 = vpop.f32.mrf.mxu0  ;;  %v16461_v43 = vpop.permute.xlu1 %9683 }
 0x3de   : > { %v10026_v24 = vadd.f32 %v10025_v5, %v10024_v7  ;;  %v9752_v36 = vsel %vm9724_vm3, %v9528_v15, 0.0  ;;  %v9526_v48 = vmax.f32 %v9470_v38, %v9498_v20  ;;  %v9938_v63 = vsel %vm763_vm2, %v9751_v22, 0.0  ;;  %v12137_v19 = vpop.f32.mrf.mxu1 }
 0x3df   : > { %v10027_v14 = vsel %vm763_vm2, %v9988_v33, 0.0  ;;  %v10941_v31 = vpack.c.bf16 %v9752_v36, %v9752_v36  ;;  %v9475_v62 = vadd.f32 %v16225_v28, %v9440_v52  ;;  %v10031_v34 = vsel %vm763_vm2, %v9990_v10, 0.0  ;;  %v12164_v9 = vpop.f32.mrf.mxu0 }
 0x3e0   : > { %v10028_v16 = vadd.f32 %v10027_v14, %v10026_v24  ;;  %v9750_v8 = vsel %vm9722_vm5, %v9526_v48, 0.0  ;;  %v9473_v4 = vadd.f32 %v16225_v28, %v9438_v1  ;;  %v9147_v27 = vadd.f32 %v12133_v44, %v16179_v13 }
 0x3e1   : > { %9892 = vst.msk [vmem:[%s16277_s16 + $0x3c] sm:$0xf] %vm478_vm0, %v10941_v31  ;;  %v10939_v49 = vpack.c.bf16 %v9750_v8, %v9750_v8  ;;  %v9936_v23 = vsel %vm763_vm2, %v9750_v8, 0.0  ;;  %v9989_v3 = vmul.f32 %v9750_v8, %v9750_v8  ;;  %v9503_v40 = vmul.f32 0.01, %v9475_v62  ;;  %v16484_v51 = vpop.permute.xlu1 %9689  ;;  %v9394_v20 = vpop.f32.mrf.mxu0 }
 0x3e2   : > { %v9937_v37 = vadd.f32 %v9936_v23, %v9935_v17  ;;  %v9501_v55 = vmul.f32 0.01, %v9473_v4  ;;  %v9441_v22 = vadd.f32 %v16411_v11, %v9144_v60  ;;  %vm9728_vm4 = vcmp.eq.s32.totalorder %v16461_v43, 1  ;;  %v16479_v11 = vpop.permute.xlu0 %9692 }
 0x3e3   : > { %v9940_v2 = vsel %vm763_vm2, %v9752_v36, 0.0  ;;  %v9991_v38 = vmul.f32 %v9752_v36, %v9752_v36  ;;  %9890 = vst.msk [vmem:[%s16277_s16 + $0x34] sm:$0xf] %vm478_vm0, %v10939_v49  ;;  %v10029_v5 = vsel %vm763_vm2, %v9989_v3, 0.0  ;;  %v9439_v61 = vadd.f32 %v16426_v50, %v9142_v58  ;;  %v12167_v8 = vpop.f32.mrf.mxu0 }
 0x3e4   : > { %vm9726_vm9 = vcmp.eq.s32.totalorder %v16439_v46, 1  ;;  %v9939_v13 = vadd.f32 %v9938_v63, %v9937_v37  ;;  %v10030_v44 = vadd.f32 %v10029_v5, %v10028_v16  ;;  %v9531_v21 = vmax.f32 %v9475_v62, %v9503_v40  ;;  %v9110_v63 = vpop.f32.mrf.mxu1 }
 0x3e5   : > { %v9529_v0 = vmax.f32 %v9473_v4, %v9501_v55  ;;  %v9145_v54 = vadd.f32 %v9094_v35, %v16182_v26  ;;  %v9476_v42 = vadd.f32 %v16225_v28, %v9441_v22  ;;  %v9474_v53 = vadd.f32 %v16225_v28, %v9439_v61  ;;  %v9696_v4 = vpop.permute.xlu1 %9695 }
 0x3e6   : > { %v9444_v10 = vadd.f32 %v12163_v30, %v9147_v27  ;;  %v10032_v50 = vadd.f32 %v10031_v34, %v10030_v44  ;;  %v9755_v33 = vsel %vm9727_vm8, %v9531_v21, 0.0  ;;  %v9941_v7 = vadd.f32 %v9940_v2, %v9939_v13  ;;  %v16502_v14 = vpop.permute.xlu0 %9698 }
 0x3e7   : > { %v9753_v60 = vsel %vm9725_vm7, %v9529_v0, 0.0  ;;  %vm9731_vm10 = vcmp.eq.s32.totalorder %v16479_v11, 1  ;;  %v10033_v26 = vsel %vm763_vm2, %v9991_v38, 0.0  ;;  %v10944_v35 = vpack.c.bf16 %v9755_v33, %v9755_v33 }
 0x3e8   : > { %v10942_v15 = vpack.c.bf16 %v9753_v60, %v9753_v60  ;;  %v9148_v30 = vadd.f32 %v12134_v12, %v16185_v39  ;;  %v9942_v41 = vsel %vm763_vm2, %v9753_v60, 0.0  ;;  %v9992_v58 = vmul.f32 %v9753_v60, %v9753_v60 }
 0x3e9   : > { %v10034_v45 = vadd.f32 %v10033_v26, %v10032_v50  ;;  %v9504_v52 = vmul.f32 0.01, %v9476_v42  ;;  %9895 = vst.msk [vmem:[%s16277_s16 + $0x48] sm:$0xf] %vm478_vm0, %v10944_v35  ;;  %v9994_v56 = vmul.f32 %v9755_v33, %v9755_v33  ;;  %v9943_v1 = vadd.f32 %v9942_v41, %v9941_v7 }
 0x3ea   : > { %9893 = vst.msk [vmem:[%s16277_s16 + $0x40] sm:$0xf] %vm478_vm0, %v10942_v15  ;;  %v9502_v17 = vmul.f32 0.01, %v9474_v53  ;;  %v9479_v24 = vadd.f32 %v16225_v28, %v9444_v10  ;;  %v10035_v36 = vsel %vm763_vm2, %v9992_v58, 0.0  ;;  %v9146_v39 = vadd.f32 %v9097_v59, %v16190_v32  ;;  %v12138_v59 = vpop.f32.mrf.mxu1  ;;  %v9705_v0 = vpop.permute.xlu0 %9704 }
 0x3eb   : > { %v9532_v48 = vmax.f32 %v9476_v42, %v9504_v52  ;;  %v9442_v12 = vadd.f32 %v9391_v6, %v9145_v54  ;;  %vm9729_vm11 = vcmp.eq.s32.totalorder %v16456_v18, 1  ;;  %v10036_v31 = vadd.f32 %v10035_v36, %v10034_v45 }
 0x3ec   : > { %v9530_v62 = vmax.f32 %v9474_v53, %v9502_v17  ;;  %v9507_v34 = vmul.f32 0.01, %v9479_v24  ;;  %v9445_v16 = vadd.f32 %v12164_v9, %v9148_v30  ;;  %v9151_v23 = vadd.f32 %v12137_v19, %v16193_v57  ;;  %v9407_v9 = vpop.f32.mrf.mxu0 }
 0x3ed   : > { %v9756_v49 = vsel %vm9728_vm4, %v9532_v48, 0.0  ;;  %v9477_v32 = vadd.f32 %v16225_v28, %v9442_v12  ;;  %v9443_v6 = vadd.f32 %v9394_v20, %v9146_v39  ;;  %vm9730_vm12 = vcmp.eq.s32.totalorder %v16484_v51, 1  ;;  %v9113_v20 = vpop.f32.mrf.mxu1 }
 0x3ee   : > { %vm9732_vm6 = vcmp.eq.s32.totalorder %v9696_v4, 1  ;;  %v9946_v3 = vsel %vm763_vm2, %v9755_v33, 0.0  ;;  %v10039_v27 = vsel %vm763_vm2, %v9994_v56, 0.0  ;;  %v10945_v37 = vpack.c.bf16 %v9756_v49, %v9756_v49  ;;  %v12168_v35 = vpop.f32.mrf.mxu0 }
 0x3ef   : > { %v9754_v40 = vsel %vm9726_vm9, %v9530_v62, 0.0  ;;  %v9535_v57 = vmax.f32 %v9479_v24, %v9507_v34  ;;  %v9995_v2 = vmul.f32 %v9756_v49, %v9756_v49  ;;  %v9505_v5 = vmul.f32 0.01, %v9477_v32 }
 0x3f0   : > { %v10943_v43 = vpack.c.bf16 %v9754_v40, %v9754_v40  ;;  %v9944_v55 = vsel %vm763_vm2, %v9754_v40, 0.0  ;;  %v9993_v22 = vmul.f32 %v9754_v40, %v9754_v40  ;;  %9896 = vst.msk [vmem:[%s16277_s16 + $0x4c] sm:$0xf] %vm478_vm0, %v10945_v37  ;;  %v9480_v61 = vadd.f32 %v16225_v28, %v9445_v16 }
 0x3f1   : > { %v9945_v38 = vadd.f32 %v9944_v55, %v9943_v1  ;;  %v9759_v13 = vsel %vm9731_vm10, %v9535_v57, 0.0  ;;  %v9149_v44 = vadd.f32 %v9110_v63, %v16200_v25  ;;  %v9478_v21 = vadd.f32 %v16225_v28, %v9443_v6  ;;  %v9410_v63 = vpop.f32.mrf.mxu0 }
 0x3f2   : > { %9894 = vst.msk [vmem:[%s16277_s16 + $0x44] sm:$0xf] %vm478_vm0, %v10943_v43  ;;  %v10037_v46 = vsel %vm763_vm2, %v9993_v22, 0.0  ;;  %v10948_v53 = vpack.c.bf16 %v9759_v13, %v9759_v13  ;;  %v9152_v10 = vadd.f32 %v12138_v59, %v16207_v47  ;;  %v9948_v50 = vsel %vm763_vm2, %v9756_v49, 0.0 }
 0x3f3   : > { %v9947_v54 = vadd.f32 %v9946_v3, %v9945_v38  ;;  %v10038_v42 = vadd.f32 %v10037_v46, %v10036_v31  ;;  %v9533_v33 = vmax.f32 %v9477_v32, %v9505_v5  ;;  %v9508_v60 = vmul.f32 0.01, %v9480_v61 }
 0x3f4   : > { %v9506_v7 = vmul.f32 0.01, %v9478_v21  ;;  %v10041_v19 = vsel %vm763_vm2, %v9995_v2, 0.0  ;;  %9899 = vst.msk [vmem:[%s16277_s16 + $0x58] sm:$0xf] %vm478_vm0, %v10948_v53  ;;  %v9448_v25 = vadd.f32 %v12167_v8, %v9151_v23  ;;  %vm9735_vm13 = vcmp.eq.s32.totalorder %v9705_v0, 1  ;;  %v9702_v8 = vpop.permute.xlu1 %9701 }
 0x3f5   : > { %v10040_v26 = vadd.f32 %v10039_v27, %v10038_v42  ;;  %v9949_v11 = vadd.f32 %v9948_v50, %v9947_v54  ;;  %v9757_v15 = vsel %vm9729_vm11, %v9533_v33, 0.0  ;;  %v9536_v30 = vmax.f32 %v9480_v61, %v9508_v60 }
 0x3f6   : > { %v9534_v47 = vmax.f32 %v9478_v21, %v9506_v7  ;;  %v9446_v41 = vadd.f32 %v9407_v9, %v9149_v44  ;;  %v10946_v58 = vpack.c.bf16 %v9757_v15, %v9757_v15  ;;  %v9950_v45 = vsel %vm763_vm2, %v9757_v15, 0.0 }
 0x3f7   : > { %v9996_v52 = vmul.f32 %v9757_v15, %v9757_v15  ;;  %v10042_v56 = vadd.f32 %v10041_v19, %v10040_v26  ;;  %v9951_v1 = vadd.f32 %v9950_v45, %v9949_v11  ;;  %v9760_v17 = vsel %vm9732_vm6, %v9536_v30, 0.0 }
 0x3f8   : > { %v9758_v24 = vsel %vm9730_vm12, %v9534_v47, 0.0  ;;  %v9483_v36 = vadd.f32 %v16225_v28, %v9448_v25  ;;  %v9998_v18 = vmul.f32 %v9759_v13, %v9759_v13  ;;  %9897 = vst.msk [vmem:[%s16277_s16 + $0x50] sm:$0xf] %vm478_vm0, %v10946_v58  ;;  %v10949_v39 = vpack.c.bf16 %v9760_v17, %v9760_v17  ;;  %v9708_v44 = vpop.permute.xlu1 %9707 }
 0x3f9   : > { %v10043_v48 = vsel %vm763_vm2, %v9996_v52, 0.0  ;;  %v9150_v12 = vadd.f32 %v9113_v20, %v16214_v29  ;;  %v10947_v62 = vpack.c.bf16 %v9758_v24, %v9758_v24  ;;  %v9952_v34 = vsel %vm763_vm2, %v9758_v24, 0.0 }
 0x3fa   : > { %v10044_v31 = vadd.f32 %v10043_v48, %v10042_v56  ;;  %v9997_v16 = vmul.f32 %v9758_v24, %v9758_v24  ;;  %v9954_v51 = vsel %vm763_vm2, %v9759_v13, 0.0  ;;  %9900 = vst.msk [vmem:[%s16277_s16 + $0x5c] sm:$0xf] %vm478_vm0, %v10949_v39  ;;  %v9953_v4 = vadd.f32 %v9952_v34, %v9951_v1 }
 0x3fb   : > { %v9511_v49 = vmul.f32 0.01, %v9483_v36  ;;  %v9481_v23 = vadd.f32 %v16225_v28, %v9446_v41  ;;  %v9999_v32 = vmul.f32 %v9760_v17, %v9760_v17  ;;  %9898 = vst.msk [vmem:[%s16277_s16 + $0x54] sm:$0xf] %vm478_vm0, %v10947_v62  ;;  %v9449_v6 = vadd.f32 %v12168_v35, %v9152_v10 }
 0x3fc   : > { %v10045_v29 = vsel %vm763_vm2, %v9997_v16, 0.0  ;;  %v9447_v3 = vadd.f32 %v9410_v63, %v9150_v12  ;;  %v9955_v27 = vadd.f32 %v9954_v51, %v9953_v4  ;;  %v10047_v55 = vsel %vm763_vm2, %v9998_v18, 0.0 }
 0x3fd   : > { %v10046_v37 = vadd.f32 %v10045_v29, %v10044_v31  ;;  %v9539_v40 = vmax.f32 %v9483_v36, %v9511_v49  ;;  %v9509_v43 = vmul.f32 0.01, %v9481_v23  ;;  %v9956_v22 = vsel %vm763_vm2, %v9760_v17, 0.0  ;;  %v9975_v49 = vld [vmem:[%s16142_s9 + $0x1] sm:$0x1] }
 0x3fe   : > { %v9484_v57 = vadd.f32 %v16225_v28, %v9449_v6  ;;  %v9482_v59 = vadd.f32 %v16225_v28, %v9447_v3  ;;  %v9957_v61 = vadd.f32 %v9956_v22, %v9955_v27  ;;  %vm9733_vm14 = vcmp.eq.s32.totalorder %v16502_v14, 1 }
 0x3ff   : > { %v10048_v2 = vadd.f32 %v10047_v55, %v10046_v37  ;;  %v9763_v38 = vsel %vm9735_vm13, %v9539_v40, 0.0  ;;  %v9537_v5 = vmax.f32 %v9481_v23, %v9509_v43  ;;  %v10049_v9 = vsel %vm763_vm2, %v9999_v32, 0.0 }
 0x400   : > { %v10952_v46 = vpack.c.bf16 %v9763_v38, %v9763_v38  ;;  %v9512_v13 = vmul.f32 0.01, %v9484_v57  ;;  %v9510_v42 = vmul.f32 0.01, %v9482_v59  ;;  %vm9734_vm15 = vcmp.eq.s32.totalorder %v9702_v8, 1 }
 0x401   : > { %v9761_v21 = vsel %vm9733_vm14, %v9537_v5, 0.0  ;;  %v10050_v54 = vadd.f32 %v10049_v9, %v10048_v2  ;;  %vm9736_vm1 = vcmp.eq.s32.totalorder %v9708_v44, 1  ;;  %v10002_v25 = vmul.f32 %v9763_v38, %v9763_v38  ;;  %v9910_v8 = vld [vmem:[%s16142_s9] sm:$0x1] }
 0x402   : > { %9903 = vst.msk [vmem:[%s16277_s16 + $0x68] sm:$0xf] %vm478_vm0, %v10952_v46  ;;  %v10950_v53 = vpack.c.bf16 %v9761_v21, %v9761_v21  ;;  %v9958_v28 = vsel %vm763_vm2, %v9761_v21, 0.0  ;;  %v10000_v0 = vmul.f32 %v9761_v21, %v9761_v21  ;;  %v9540_v50 = vmax.f32 %v9484_v57, %v9512_v13 }
 0x403   : > { %v9959_v10 = vadd.f32 %v9958_v28, %v9957_v61  ;;  %v9538_v14 = vmax.f32 %v9482_v59, %v9510_v42  ;;  %v9962_v47 = vsel %vm763_vm2, %v9763_v38, 0.0  ;;  %v10055_v52 = vsel %vm763_vm2, %v10002_v25, 0.0 }
 0x404   : > { %9901 = vst.msk [vmem:[%s16277_s16 + $0x60] sm:$0xf] %vm478_vm0, %v10950_v53  ;;  %v10051_v33 = vsel %vm763_vm2, %v10000_v0, 0.0  ;;  %v9764_v7 = vsel %vm9736_vm1, %v9540_v50, 0.0 }
 0x405   : > { %v10052_v60 = vadd.f32 %v10051_v33, %v10050_v54  ;;  %v9762_v19 = vsel %vm9734_vm15, %v9538_v14, 0.0  ;;  %v10953_v26 = vpack.c.bf16 %v9764_v7, %v9764_v7  ;;  %v10003_v20 = vmul.f32 %v9764_v7, %v9764_v7 }
 0x406   : > { %v10951_v11 = vpack.c.bf16 %v9762_v19, %v9762_v19  ;;  %v9960_v35 = vsel %vm763_vm2, %v9762_v19, 0.0  ;;  %v10001_v15 = vmul.f32 %v9762_v19, %v9762_v19  ;;  %v9964_v56 = vsel %vm763_vm2, %v9764_v7, 0.0 }
 0x407   : > { %9904 = vst.msk [vmem:[%s16277_s16 + $0x6c] sm:$0xf] %vm478_vm0, %v10953_v26  ;;  %v9961_v30 = vadd.f32 %v9960_v35, %v9959_v10  ;;  %v10057_v24 = vsel %vm763_vm2, %v10003_v20, 0.0 }
 0x408   : > { %9902 = vst.msk [vmem:[%s16277_s16 + $0x64] sm:$0xf] %vm478_vm0, %v10951_v11  ;;  %v10053_v41 = vsel %vm763_vm2, %v10001_v15, 0.0  ;;  %vm9973_vm0 = vcmask 122880  }
 0x409   : > { %v9963_v58 = vadd.f32 %v9962_v47, %v9961_v30  ;;  %v10054_v45 = vadd.f32 %v10053_v41, %v10052_v60 }
 0x40b   : > { %v9965_v1 = vadd.f32 %v9964_v56, %v9963_v58  ;;  %v10056_v17 = vadd.f32 %v10055_v52, %v10054_v45 }
 0x40d   : > { %v9966_v36 = vrot.slane %v9965_v1, 4  ;;  %v10058_v18 = vadd.f32 %v10057_v24, %v10056_v17 }
 0x40f   : > { %v9967_v48 = vadd.f32 %v9966_v36, %v9965_v1  ;;  %v10059_v39 = vrot.slane %v10058_v18, 4 }
 0x411   : > { %v9968_v12 = vrot.slane %v9967_v48, 2  ;;  %v10060_v63 = vadd.f32 %v10059_v39, %v10058_v18 }
 0x413   : > { %v9969_v31 = vadd.f32 %v9968_v12, %v9967_v48  ;;  %v10061_v62 = vrot.slane %v10060_v63, 2 }
 0x415   : > { %v9970_v34 = vrot.slane %v9969_v31, 1  ;;  %v10062_v16 = vadd.f32 %v10061_v62, %v10060_v63 }
 0x417   : > { %v9971_v51 = vadd.f32 %v9970_v34, %v9969_v31  ;;  %v10063_v4 = vrot.slane %v10062_v16, 1 }
 0x419   : > { %v9972_v23 = vadd.f32 %v9971_v51, %v9910_v8  ;;  %v10064_v32 = vadd.f32 %v10063_v4, %v10062_v16 }
 0x41b   : > { %9974 = vst.msk [vmem:[%s16142_s9] sm:$0x1] %vm9973_vm0, %v9972_v23  ;;  %v10065_v29 = vadd.f32 %v10064_v32, %v9975_v49 }
 0x41d   : > { %10066 = vst.msk [vmem:[%s16142_s9 + $0x1] sm:$0x1] %vm9973_vm0, %v10065_v29 }
 0x41e PF: > { %s18_s26 = sadd.s32 1, %s12411_s26   ;;  %s17023_s24 = smov %s12407_s25 }
 0x41f   : > { %p15_p5 = scmp.ge.s32.totalorder %s18_s26, 4   ;;  %s17024_s25 = smov %s17026_s27 }
 0x421   :  { %17 = sbr.rel (!%p15_p5) target bundleno = 2 (0x2), region = 125 }

</bundles_post_ra>
